<compile_context>
chip_gen: v6e
topology: v6e:2x2x1
jax: 0.10.0
libtpu: 0.0.40
codegen_flags: <defaults>
</compile_context>

<pallas_src>
import math

import numpy as np

import jax
import jax.numpy as jnp
from jax import lax
from jax.experimental import pallas as pl
from jax.experimental.pallas import tpu as pltpu

BN_EPS = 1e-5
NEG_SLOPE = 0.2


def _pad8(n):
    return ((n + 7) // 8) * 8


# ---------------------------------------------------------------------------
# Init-time lowering: conv / conv-transpose geometry -> PER-SAMPLE 0/1
# selection matrices with the k^2 taps concatenated along columns:
#     Y = X @ T_hcat ,   Y[ci, tap*Rout + r'] = X[ci, input pixel of (tap, r')]
# ---------------------------------------------------------------------------
def _conv_sel_hcat(Hin, Win, k, s, p):
    Ho = (Hin + 2 * p - k) // s + 1
    Wo = (Win + 2 * p - k) // s + 1
    Ro = Ho * Wo
    T = np.zeros((Hin * Win, k * k * Ro), np.int8)
    for kh in range(k):
        for kw in range(k):
            kidx = kh * k + kw
            for ho in range(Ho):
                hi = ho * s + kh - p
                if hi < 0 or hi >= Hin:
                    continue
                for wo in range(Wo):
                    wi = wo * s + kw - p
                    if wi < 0 or wi >= Win:
                        continue
                    T[hi * Win + wi, kidx * Ro + ho * Wo + wo] = 1
    return T


def _convT_sel_hcat(Hin, Win, k, s, p):
    Ho = (Hin - 1) * s - 2 * p + k
    Wo = (Win - 1) * s - 2 * p + k
    Ro = Ho * Wo
    pad = k - 1 - p
    T = np.zeros((Hin * Win, k * k * Ro), np.int8)
    for kh in range(k):
        for kw in range(k):
            kidx = kh * k + kw
            for ho in range(Ho):
                zi = ho + kh - pad
                if zi < 0 or zi % s != 0 or zi // s >= Hin:
                    continue
                hi = zi // s
                for wo in range(Wo):
                    zj = wo + kw - pad
                    if zj < 0 or zj % s != 0 or zj // s >= Win:
                        continue
                    wi = zj // s
                    T[hi * Win + wi, kidx * Ro + ho * Wo + wo] = 1
    return T


def _conv_wcat(w):
    """Conv2d weight (Cout, Cin, k, k) -> (Cout, k*k*Cin), columns (tap, ci)."""
    w = np.asarray(w, np.float32)
    Cout, Cin, k, _ = w.shape
    return np.transpose(w, (0, 2, 3, 1)).reshape(Cout, k * k * Cin)


def _convT_wcat(wt):
    """ConvTranspose2d weight (Cin, Cout, k, k) -> equivalent-conv (Cout, k*k*Cin)."""
    wt = np.asarray(wt, np.float32)
    Cin, Cout, k, _ = wt.shape
    w_eq = np.transpose(wt[:, :, ::-1, ::-1], (1, 0, 2, 3))   # (Cout, Cin, k, k)
    return np.transpose(w_eq, (0, 2, 3, 1)).reshape(Cout, k * k * Cin)


def _pack_bn(entries):
    """Pack (bias, gamma, beta) per layer into one (N, 4) f32 table."""
    off, rows, cur = {}, [], 0
    for name, b_, g_, bt_ in entries:
        c = int(np.asarray(b_).shape[0])
        cp = _pad8(c)
        blk = np.zeros((cp, 4), np.float32)
        blk[:, 1] = 1.0
        blk[:c, 0] = np.asarray(b_, np.float32)
        if g_ is not None:
            blk[:c, 1] = np.asarray(g_, np.float32)
        if bt_ is not None:
            blk[:c, 2] = np.asarray(bt_, np.float32)
        off[name] = (cur, c)
        rows.append(blk)
        cur += cp
    return np.concatenate(rows, 0), off


def _pack_slab(entries):
    """Pack small weight matrices into one bf16 slab (single DMA)."""
    width = max(int(np.asarray(a).shape[1]) for _, a in entries)
    width = ((width + 127) // 128) * 128
    off, rows, cur = {}, [], 0
    for name, a in entries:
        a = np.asarray(a, np.float32)
        r, c = a.shape
        rp = _pad8(r)
        buf = np.zeros((rp, width), np.float32)
        buf[:r, :c] = a
        off[name] = (cur, r, c)
        rows.append(buf)
        cur += rp
    return np.concatenate(rows, 0), off


# ------------------------------ parameters ----------------------------------
def init_params(key, hidden_size, input_size):
    h0, h1, h2, h3 = hidden_size
    S = int(math.sqrt(input_size))
    keys = jax.random.split(key, 24)
    it = iter(keys)

    def w(shape, scale=0.1):
        return (scale * jax.random.normal(next(it), shape)).astype(jnp.float32)

    def bias(n):
        return (0.01 * jax.random.normal(next(it), (n,))).astype(jnp.float32)

    ones = lambda n: jnp.ones((n,), jnp.float32)
    zeros = lambda n: jnp.zeros((n,), jnp.float32)

    p = {}
    p["conv1_w"], p["conv1_b"] = w((h0, 1, 3, 3)), bias(h0)
    p["bn1_g"], p["bn1_b"] = ones(h0), zeros(h0)
    p["conv2_w"], p["conv2_b"] = w((h1, h0, 3, 3)), bias(h1)
    p["bn2_g"], p["bn2_b"] = ones(h1), zeros(h1)
    p["conv3_w"], p["conv3_b"] = w((h2, h1, 1, 1)), bias(h2)
    p["bn3_g"], p["bn3_b"] = ones(h2), zeros(h2)
    fc1_in = int(S * S * h2 / 16)
    p["fc1_w"], p["fc1_b"] = w((h2, fc1_in)), bias(h2)
    p["bn4_g"], p["bn4_b"] = ones(h2), zeros(h2)
    p["fc2_1_w"], p["fc2_1_b"] = w((h3, h2)), bias(h3)
    p["fc2_2_w"], p["fc2_2_b"] = w((h3, h2)), bias(h3)
    p["fc3_w"], p["fc3_b"] = w((h2 * 64, h3)), bias(h2 * 64)
    p["deconv1_w"], p["deconv1_b"] = w((64, h0, 4, 4)), bias(h0)   # ConvTranspose2d
    p["debn1_g"], p["debn1_b"] = ones(h0), zeros(h0)
    p["deconv2_w"], p["deconv2_b"] = w((h1, h0, 1, 1)), bias(h1)   # Conv2d 1x1
    p["debn2_g"], p["debn2_b"] = ones(h1), zeros(h1)
    p["deconv3_w"], p["deconv3_b"] = w((h1, h2, 4, 4)), bias(h2)   # ConvTranspose2d
    p["debn3_g"], p["debn3_b"] = ones(h2), zeros(h2)
    p["deconv4_w"], p["deconv4_b"] = w((1, h2, 1, 1)), bias(1)     # Conv2d 1x1
    return p


# --------------------------- fused forward builder ---------------------------
def make_forward(p, hidden_size, input_size, B):
    h0, h1, h2, h3 = hidden_size
    S = int(math.sqrt(input_size))
    assert S * S == input_size and S % 4 == 0
    SD = int(math.sqrt(h2))
    assert SD * SD == h2, "hidden_size[2] must be a perfect square"
    S1, S2 = S // 2, S // 4
    R0, R1, R2 = S * S, S1 * S1, S2 * S2        # per-sample pixel counts
    Q = R2                                      # encoder flatten spatial size
    QD = SD * SD                                # decoder grid after fc3 view
    RD1, RD3 = (2 * SD) ** 2, (4 * SD) ** 2     # spatial after deconv1 / deconv3
    assert int(p["fc1_w"].shape[1]) == h2 * Q
    bf16 = jnp.bfloat16

    # ---- per-sample int8 selection matrices (batch handled by a static loop;
    #      no O(B^2) blow-up of T memory / X@T FLOPs) --------------------------
    t1_np = _conv_sel_hcat(S, S, 3, 2, 1)               # (R0, 9*R1) (folded below)
    t2_np = _conv_sel_hcat(S1, S1, 3, 2, 1)             # (R1, 9*R2)
    td1_np = _convT_sel_hcat(SD, SD, 4, 2, 1)           # (QD, 16*RD1)
    td3_np = _convT_sel_hcat(2 * SD, 2 * SD, 4, 2, 1)   # (RD1, 16*RD3)

    # conv1 (Cin == 1): fold its weights straight into the selection matrix.
    w1_np = np.asarray(p["conv1_w"], np.float32).reshape(h0, 9)
    m1_np = np.einsum("rko,ck->rco",
                      t1_np.astype(np.float32).reshape(R0, 9, R1),
                      w1_np).reshape(R0, h0 * R1)

    # Tap-stacked conv / deconv weights (Cout, k^2*Cin), columns (tap, ci).
    w2cat_np = _conv_wcat(p["conv2_w"])                 # (h1, 9*h0)
    wd1cat_np = _convT_wcat(p["deconv1_w"])             # (h0, 16*64)
    wd3cat_np = _convT_wcat(p["deconv3_w"])             # (h2, 16*h1)

    # fc1: weight columns permuted to (q, c); 0/1 selection for the flatten.
    wf1p_np = np.transpose(
        np.asarray(p["fc1_w"], np.float32).reshape(h2, h2, Q),
        (0, 2, 1)).reshape(h2, Q * h2)
    sf1_np = np.zeros((B * Q, Q * B), np.float32)
    for q in range(Q):
        for b in range(B):
            sf1_np[b * Q + q, q * B + b] = 1.0

    # fc2_1 / fc2_2 merged (mu rows first, logvar rows second).
    wmv_np = np.concatenate([np.asarray(p["fc2_1_w"], np.float32),
                             np.asarray(p["fc2_2_w"], np.float32)], 0)
    bmv_np = np.concatenate([np.asarray(p["fc2_1_b"], np.float32),
                             np.asarray(p["fc2_2_b"], np.float32)], 0)

    # fc3: rows permuted to (q, ch); one 0/1 permutation matrix scatters the
    # per-q row blocks back into the channel-major (64, B*QD) layout.
    wf3p_np = np.transpose(
        np.asarray(p["fc3_w"], np.float32).reshape(64, QD, h3),
        (1, 0, 2)).reshape(64 * QD, h3)
    bf3p_np = np.asarray(p["fc3_b"], np.float32).reshape(64, QD).T.reshape(64 * QD, 1)
    evc_np = np.zeros((QD * B, B * QD), np.float32)
    for q in range(QD):
        for b in range(B):
            evc_np[q * B + b, b * QD + q] = 1.0

    # Small weight matrices -> one bf16 slab (static slices in-kernel).
    slab_np, slab_off = _pack_slab([
        ("w2", w2cat_np),
        ("w3", np.asarray(p["conv3_w"], np.float32)[:, :, 0, 0]),
        ("sf1", sf1_np),
        ("wf1", wf1p_np),
        ("wmv", wmv_np),
        ("evc", evc_np),
        ("wd2", np.asarray(p["deconv2_w"], np.float32)[:, :, 0, 0]),
        ("wd3", wd3cat_np),
        ("wd4", np.asarray(p["deconv4_w"], np.float32)[:, :, 0, 0]),
    ])

    # Per-channel constants (bias / gamma / beta) -> one (N, 4) f32 table.
    bn_np, bn_off = _pack_bn([
        ("c1", p["conv1_b"], p["bn1_g"], p["bn1_b"]),
        ("c2", p["conv2_b"], p["bn2_g"], p["bn2_b"]),
        ("c3", p["conv3_b"], p["bn3_g"], p["bn3_b"]),
        ("f1", p["fc1_b"], p["bn4_g"], p["bn4_b"]),
        ("d1", p["deconv1_b"], p["debn1_g"], p["debn1_b"]),
        ("d2", p["deconv2_b"], p["debn2_g"], p["debn2_b"]),
        ("d3", p["deconv3_b"], p["debn3_g"], p["debn3_b"]),
        ("mv", bmv_np, None, None),
        ("d4", p["deconv4_b"], None, None),
    ])

    ops = (
        jnp.asarray(m1_np, bf16),           # conv1 (weights folded)
        jnp.asarray(t2_np),                 # int8 selection, conv2
        jnp.asarray(slab_np, bf16),         # packed small weights
        jnp.asarray(wf3p_np, bf16),         # fc3 weight (rows permuted)
        jnp.asarray(bf3p_np, jnp.float32),  # fc3 bias (rows permuted)
        jnp.asarray(td1_np),                # int8 selection, deconv1
        jnp.asarray(wd1cat_np, bf16),       # deconv1 tap-stacked weights
        jnp.asarray(td3_np),                # int8 selection, deconv3 (stays in HBM)
        jnp.asarray(bn_np, jnp.float32),    # packed bias/gamma/beta
    )

    # --------------------------------- kernel ---------------------------------
    def kernel(x_ref, eps_ref, m1_ref, t2_ref, slab_ref, wf3_ref, bf3_ref,
               td1_ref, wd1_ref, td3_hbm, bn_ref,
               recon_ref, muvar_ref,
               p_c1, p_c2, p_fc1, p_f3, p_d1, p_d3, td3_buf, dma_sem):
        f32 = jnp.float32

        # Prefetch the decoder's largest constant (int8, HBM->VMEM) so its DMA
        # overlaps with the whole encoder; waited on right before deconv3.
        td3_copy = pltpu.make_async_copy(td3_hbm, td3_buf, dma_sem.at[0])
        td3_copy.start()

        def slab(name):
            o, r, c = slab_off[name]
            return slab_ref[o:o + r, :c]                        # bf16 (r, c)

        def cvec(name, col):
            o, c = bn_off[name]
            return bn_ref[o:o + c, col:col + 1]                 # f32 (c, 1)

        def mm(a, b):
            return jnp.dot(a, b, preferred_element_type=f32)

        def bn_lrelu(y, name):
            # conv-bias -> training-mode BatchNorm (batch stats, biased var;
            # valid because the full batch lives inside this one kernel call)
            # -> LeakyReLU(0.2).  Single-pass stats: one reduction of [y; y^2].
            c, n = y.shape
            y = y + cvec(name, 0)
            s = jnp.sum(jnp.concatenate([y, y * y], axis=0),
                        axis=1, keepdims=True) * (1.0 / n)
            mean, ex2 = s[:c], s[c:]
            var = ex2 - mean * mean
            z = cvec(name, 1) * (y - mean) * lax.rsqrt(var + BN_EPS) + cvec(name, 2)
            return jnp.where(z >= 0.0, z, NEG_SLOPE * z)

        # --------------------------------- encoder -----------------------------
        # conv1: per-sample (1, R0) @ (R0, h0*R1); weights already folded in.
        x16 = x_ref[...].astype(bf16)                           # (1, B*R0)
        m1 = m1_ref[...]
        for b in range(B):
            y = mm(x16[:, b * R0:(b + 1) * R0], m1)             # (1, h0*R1)
            for co in range(h0):
                p_c1[co:co + 1, b * R1:(b + 1) * R1] = y[:, co * R1:(co + 1) * R1]
        a1 = bn_lrelu(p_c1[...], "c1")                          # (h0, B*R1)

        # conv2: one per-sample X@T matmul + 9 block copies + one K=9*h0 matmul.
        a1_16 = a1.astype(bf16)
        t2v = t2_ref[...].astype(f32).astype(bf16)              # (R1, 9*R2)
        for b in range(B):
            yb = mm(a1_16[:, b * R1:(b + 1) * R1], t2v).astype(bf16)
            for kk in range(9):
                p_c2[kk * h0:(kk + 1) * h0, b * R2:(b + 1) * R2] = \
                    yb[:, kk * R2:(kk + 1) * R2]
        a2 = bn_lrelu(mm(slab("w2"), p_c2[...]), "c2")          # (h1, B*R2)

        # conv3 (1x1).
        a3 = bn_lrelu(mm(slab("w3"), a2.astype(bf16)), "c3")    # (h2, B*R2)

        # fc1 == NCHW flatten + Linear: one select matmul, Q block copies,
        # then one (h2, Q*h2) @ (Q*h2, B) matmul.
        yq = mm(a3.astype(bf16), slab("sf1")).astype(bf16)      # (h2, Q*B)
        for q in range(Q):
            p_fc1[q * h2:(q + 1) * h2, :] = yq[:, q * B:(q + 1) * B]
        h = bn_lrelu(mm(slab("wf1"), p_fc1[...]), "f1")         # (h2, B)

        # fc2_1 / fc2_2 merged into one matmul and one output.
        muvar = mm(slab("wmv"), h.astype(bf16)) + cvec("mv", 0)  # (2*h3, B)
        muvar_ref[...] = muvar

        # ------------------------------ reparameterize --------------------------
        mu, lv = muvar[:h3], muvar[h3:]
        z = mu + eps_ref[...] * jnp.exp(0.5 * lv)               # (h3, B)

        # --------------------------------- decoder ------------------------------
        # fc3 (rows pre-permuted to (q, ch)) + ReLU, then QD block copies and
        # one 0/1 matmul scatter back into the channel-major (64, B*QD) layout.
        o2 = jnp.maximum(mm(wf3_ref[...], z.astype(bf16)) + bf3_ref[...], 0.0)
        o2 = o2.astype(bf16)                                    # (64*QD, B)
        for q in range(QD):
            p_f3[:, q * B:(q + 1) * B] = o2[q * 64:(q + 1) * 64, :]
        d = mm(p_f3[...], slab("evc"))                          # (64, B*QD)

        # deconv1 (4x4, s2): K-stacked contraction with K = 16*64 = 1024.
        d16 = d.astype(bf16)
        td1v = td1_ref[...].astype(f32).astype(bf16)            # (QD, 16*RD1)
        for b in range(B):
            yb = mm(d16[:, b * QD:(b + 1) * QD], td1v).astype(bf16)  # (64, 16*RD1)
            for kk in range(16):
                p_d1[kk * 64:(kk + 1) * 64, b * RD1:(b + 1) * RD1] = \
                    yb[:, kk * RD1:(kk + 1) * RD1]
        a5 = bn_lrelu(mm(wd1_ref[...], p_d1[...]), "d1")        # (h0, B*RD1)

        # deconv2 (1x1).
        a6 = bn_lrelu(mm(slab("wd2"), a5.astype(bf16)), "d2")   # (h1, B*RD1)

        # deconv3 (4x4, s2): its selection matrix was prefetched at kernel entry.
        td3_copy.wait()
        td3v = td3_buf[...].astype(f32).astype(bf16)            # (RD1, 16*RD3)
        a6_16 = a6.astype(bf16)
        for b in range(B):
            yb = mm(a6_16[:, b * RD1:(b + 1) * RD1], td3v).astype(bf16)  # (h1, 16*RD3)
            for kk in range(16):
                p_d3[kk * h1:(kk + 1) * h1, b * RD3:(b + 1) * RD3] = \
                    yb[:, kk * RD3:(kk + 1) * RD3]
        a7 = bn_lrelu(mm(slab("wd3"), p_d3[...]), "d3")         # (h2, B*RD3)

        # deconv4 (1x1): lane-dense (1, B*RD3) reconstruction row.
        recon_ref[...] = mm(slab("wd4"), a7.astype(bf16)) + cvec("d4", 0)

    vmem = pl.BlockSpec(memory_space=pltpu.MemorySpace.VMEM)
    in_specs = [vmem] * 9 + [pl.BlockSpec(memory_space=pl.ANY), vmem]

    fused = pl.pallas_call(
        kernel,
        out_shape=(jax.ShapeDtypeStruct((1, B * RD3), jnp.float32),
                   jax.ShapeDtypeStruct((2 * h3, B), jnp.float32)),
        in_specs=in_specs,
        scratch_shapes=[
            pltpu.VMEM((h0, B * R1), jnp.float32),          # conv1 relayout
            pltpu.VMEM((9 * h0, B * R2), jnp.bfloat16),     # conv2 im2col patches
            pltpu.VMEM((Q * h2, B), jnp.bfloat16),          # fc1 flatten
            pltpu.VMEM((64, QD * B), jnp.bfloat16),         # fc3 row-block gather
            pltpu.VMEM((16 * 64, B * RD1), jnp.bfloat16),   # deconv1 im2col patches
            pltpu.VMEM((16 * h1, B * RD3), jnp.bfloat16),   # deconv3 im2col patches
            pltpu.VMEM((RD1, 16 * RD3), jnp.int8),          # prefetched deconv3 T
            pltpu.SemaphoreType.DMA((1,)),
        ],
        compiler_params=pltpu.CompilerParams(
            vmem_limit_bytes=32 * 1024 * 1024),
    )

    @jax.jit
    def _fwd(x_nchw, eps_cm, op_tuple):
        x0 = x_nchw.astype(jnp.float32).reshape(1, B * R0)      # (1, B*S*S)
        recon, muvar = fused(x0, eps_cm, *op_tuple)
        mu = muvar[:h3, :].T
        logvar = muvar[h3:, :].T
        return recon.reshape(B, 1, 4 * SD, 4 * SD), mu, logvar

    def forward(x_nchw, eps_cm):
        return _fwd(x_nchw, eps_cm, ops)

    return forward


# ------------------------------------ main -----------------------------------
if __name__ == "__main__":
    hidden_size = [8, 16, 16, 8]   # hidden_size[2] = 16 is a perfect square
    input_size = 256               # sqrt -> 16x16 images
    B = 2

    key = jax.random.PRNGKey(0)
    kp, kx, ke = jax.random.split(key, 3)
    params = init_params(kp, hidden_size, input_size)
    forward = make_forward(params, hidden_size, input_size, B)

    x = jax.random.normal(kx, (B, 1, 16, 16), dtype=jnp.float32)
    # eps for reparameterize (torch.randn_like equivalent), channel-major (h3, B).
    eps = jax.random.normal(ke, (hidden_size[3], B), dtype=jnp.float32)

    out, mu, logvar = forward(x, eps)
    jax.block_until_ready((out, mu, logvar))

    assert out.shape == (B, 1, 16, 16), out.shape
    assert mu.shape == (B, hidden_size[3]) and logvar.shape == (B, hidden_size[3])
    assert bool(jnp.all(jnp.isfinite(out)))
    assert bool(jnp.all(jnp.isfinite(mu))) and bool(jnp.all(jnp.isfinite(logvar)))
    print("KERNEL_OK")
</pallas_src>

<mosaic_0001>
module attributes {stable_mosaic.version = 11 : i64} {
  func.func @kernel(%arg0: memref<1x512xf32, #tpu.memory_space<vmem>>, %arg1: memref<8x2xf32, #tpu.memory_space<vmem>>, %arg2: memref<256x512xbf16, #tpu.memory_space<vmem>>, %arg3: memref<64x144xi8, #tpu.memory_space<vmem>>, %arg4: memref<168x256xbf16, #tpu.memory_space<vmem>>, %arg5: memref<1024x8xbf16, #tpu.memory_space<vmem>>, %arg6: memref<1024x1xf32, #tpu.memory_space<vmem>>, %arg7: memref<16x1024xi8, #tpu.memory_space<vmem>>, %arg8: memref<8x1024xbf16, #tpu.memory_space<vmem>>, %arg9: memref<64x4096xi8, #tpu.memory_space<any>>, %arg10: memref<120x4xf32, #tpu.memory_space<vmem>>, %arg11: memref<1x512xf32, #tpu.memory_space<vmem>>, %arg12: memref<16x2xf32, #tpu.memory_space<vmem>>, %arg13: memref<8x128xf32, #tpu.memory_space<vmem>>, %arg14: memref<72x32xbf16, #tpu.memory_space<vmem>>, %arg15: memref<256x2xbf16, #tpu.memory_space<vmem>>, %arg16: memref<64x32xbf16, #tpu.memory_space<vmem>>, %arg17: memref<1024x128xbf16, #tpu.memory_space<vmem>>, %arg18: memref<256x512xbf16, #tpu.memory_space<vmem>>, %arg19: memref<64x4096xi8, #tpu.memory_space<vmem>>, %arg20: memref<1x!tpu.dma_semaphore, #tpu.memory_space<semaphore_mem>>) attributes {dimension_semantics = [], scalar_prefetch = 0 : i64, scratch_operands = 8 : i64, tpu.core_type = #tpu.core_type<tc>} {
    %c0_i32 = arith.constant 0 : i32
    %0 = tpu.memref_slice %arg20[%c0_i32] : memref<1x!tpu.dma_semaphore, #tpu.memory_space<semaphore_mem>> -> memref<1x!tpu.dma_semaphore, #tpu.memory_space<semaphore_mem>>
    %1 = tpu.memref_squeeze %0 : memref<1x!tpu.dma_semaphore, #tpu.memory_space<semaphore_mem>> -> memref<!tpu.dma_semaphore, #tpu.memory_space<semaphore_mem>>
    tpu.enqueue_dma source(%arg9 : memref<64x4096xi8, #tpu.memory_space<any>>) target(%arg19 : memref<64x4096xi8, #tpu.memory_space<vmem>>) target_semaphore(%1 : memref<!tpu.dma_semaphore, #tpu.memory_space<semaphore_mem>>)
    %c0 = arith.constant 0 : index
    %c0_0 = arith.constant 0 : index
    %2 = vector.load %arg0[%c0, %c0_0] : memref<1x512xf32, #tpu.memory_space<vmem>>, vector<1x512xf32>
    %3 = arith.truncf %2 : vector<1x512xf32> to vector<1x512xbf16>
    %c0_1 = arith.constant 0 : index
    %c0_2 = arith.constant 0 : index
    %4 = vector.load %arg2[%c0_1, %c0_2] : memref<256x512xbf16, #tpu.memory_space<vmem>>, vector<256x512xbf16>
    %5 = vector.extract_strided_slice %3 {offsets = [0, 0], sizes = [1, 256], strides = [1, 1]} : vector<1x512xbf16> to vector<1x256xbf16>
    %cst = arith.constant dense<0.000000e+00> : vector<1x512xf32>
    %6 = tpu.matmul %5, %4, %cst {dimension_numbers = #tpu.dot_dimension_numbers<[1], [0], [0], [1], [0, 0, 1, 1], [], []>} : vector<1x256xbf16>, vector<256x512xbf16>, vector<1x512xf32> -> vector<1x512xf32>
    %7 = vector.extract_strided_slice %6 {offsets = [0, 0], sizes = [1, 64], strides = [1, 1]} : vector<1x512xf32> to vector<1x64xf32>
    %c0_3 = arith.constant 0 : index
    %c0_4 = arith.constant 0 : index
    %8 = vector.load %arg13[%c0_3, %c0_4] : memref<8x128xf32, #tpu.memory_space<vmem>>, vector<1x64xf32>
    tpu.vector_store %arg13[%c0_3, %c0_4], %7 {strides = array<i32>} : memref<8x128xf32, #tpu.memory_space<vmem>>, vector<1x64xf32>,
    %9 = vector.extract_strided_slice %6 {offsets = [0, 64], sizes = [1, 64], strides = [1, 1]} : vector<1x512xf32> to vector<1x64xf32>
    %c1 = arith.constant 1 : index
    %c0_5 = arith.constant 0 : index
    %10 = vector.load %arg13[%c1, %c0_5] : memref<8x128xf32, #tpu.memory_space<vmem>>, vector<1x64xf32>
    tpu.vector_store %arg13[%c1, %c0_5], %9 {strides = array<i32>} : memref<8x128xf32, #tpu.memory_space<vmem>>, vector<1x64xf32>,
    %11 = vector.extract_strided_slice %6 {offsets = [0, 128], sizes = [1, 64], strides = [1, 1]} : vector<1x512xf32> to vector<1x64xf32>
    %c2 = arith.constant 2 : index
    %c0_6 = arith.constant 0 : index
    %12 = vector.load %arg13[%c2, %c0_6] : memref<8x128xf32, #tpu.memory_space<vmem>>, vector<1x64xf32>
    tpu.vector_store %arg13[%c2, %c0_6], %11 {strides = array<i32>} : memref<8x128xf32, #tpu.memory_space<vmem>>, vector<1x64xf32>,
    %13 = vector.extract_strided_slice %6 {offsets = [0, 192], sizes = [1, 64], strides = [1, 1]} : vector<1x512xf32> to vector<1x64xf32>
    %c3 = arith.constant 3 : index
    %c0_7 = arith.constant 0 : index
    %14 = vector.load %arg13[%c3, %c0_7] : memref<8x128xf32, #tpu.memory_space<vmem>>, vector<1x64xf32>
    tpu.vector_store %arg13[%c3, %c0_7], %13 {strides = array<i32>} : memref<8x128xf32, #tpu.memory_space<vmem>>, vector<1x64xf32>,
    %15 = vector.extract_strided_slice %6 {offsets = [0, 256], sizes = [1, 64], strides = [1, 1]} : vector<1x512xf32> to vector<1x64xf32>
    %c4 = arith.constant 4 : index
    %c0_8 = arith.constant 0 : index
    %16 = vector.load %arg13[%c4, %c0_8] : memref<8x128xf32, #tpu.memory_space<vmem>>, vector<1x64xf32>
    tpu.vector_store %arg13[%c4, %c0_8], %15 {strides = array<i32>} : memref<8x128xf32, #tpu.memory_space<vmem>>, vector<1x64xf32>,
    %17 = vector.extract_strided_slice %6 {offsets = [0, 320], sizes = [1, 64], strides = [1, 1]} : vector<1x512xf32> to vector<1x64xf32>
    %c5 = arith.constant 5 : index
    %c0_9 = arith.constant 0 : index
    %18 = vector.load %arg13[%c5, %c0_9] : memref<8x128xf32, #tpu.memory_space<vmem>>, vector<1x64xf32>
    tpu.vector_store %arg13[%c5, %c0_9], %17 {strides = array<i32>} : memref<8x128xf32, #tpu.memory_space<vmem>>, vector<1x64xf32>,
    %19 = vector.extract_strided_slice %6 {offsets = [0, 384], sizes = [1, 64], strides = [1, 1]} : vector<1x512xf32> to vector<1x64xf32>
    %c6 = arith.constant 6 : index
    %c0_10 = arith.constant 0 : index
    %20 = vector.load %arg13[%c6, %c0_10] : memref<8x128xf32, #tpu.memory_space<vmem>>, vector<1x64xf32>
    tpu.vector_store %arg13[%c6, %c0_10], %19 {strides = array<i32>} : memref<8x128xf32, #tpu.memory_space<vmem>>, vector<1x64xf32>,
    %21 = vector.extract_strided_slice %6 {offsets = [0, 448], sizes = [1, 64], strides = [1, 1]} : vector<1x512xf32> to vector<1x64xf32>
    %c7 = arith.constant 7 : index
    %c0_11 = arith.constant 0 : index
    %22 = vector.load %arg13[%c7, %c0_11] : memref<8x128xf32, #tpu.memory_space<vmem>>, vector<1x64xf32>
    tpu.vector_store %arg13[%c7, %c0_11], %21 {strides = array<i32>} : memref<8x128xf32, #tpu.memory_space<vmem>>, vector<1x64xf32>,
    %23 = vector.extract_strided_slice %3 {offsets = [0, 256], sizes = [1, 256], strides = [1, 1]} : vector<1x512xbf16> to vector<1x256xbf16>
    %cst_12 = arith.constant dense<0.000000e+00> : vector<1x512xf32>
    %24 = tpu.matmul %23, %4, %cst_12 {dimension_numbers = #tpu.dot_dimension_numbers<[1], [0], [0], [1], [0, 0, 1, 1], [], []>} : vector<1x256xbf16>, vector<256x512xbf16>, vector<1x512xf32> -> vector<1x512xf32>
    %25 = vector.extract_strided_slice %24 {offsets = [0, 0], sizes = [1, 64], strides = [1, 1]} : vector<1x512xf32> to vector<1x64xf32>
    %c0_13 = arith.constant 0 : index
    %c64 = arith.constant 64 : index
    %26 = vector.load %arg13[%c0_13, %c64] : memref<8x128xf32, #tpu.memory_space<vmem>>, vector<1x64xf32>
    tpu.vector_store %arg13[%c0_13, %c64], %25 {strides = array<i32>} : memref<8x128xf32, #tpu.memory_space<vmem>>, vector<1x64xf32>,
    %27 = vector.extract_strided_slice %24 {offsets = [0, 64], sizes = [1, 64], strides = [1, 1]} : vector<1x512xf32> to vector<1x64xf32>
    %c1_14 = arith.constant 1 : index
    %c64_15 = arith.constant 64 : index
    %28 = vector.load %arg13[%c1_14, %c64_15] : memref<8x128xf32, #tpu.memory_space<vmem>>, vector<1x64xf32>
    tpu.vector_store %arg13[%c1_14, %c64_15], %27 {strides = array<i32>} : memref<8x128xf32, #tpu.memory_space<vmem>>, vector<1x64xf32>,
    %29 = vector.extract_strided_slice %24 {offsets = [0, 128], sizes = [1, 64], strides = [1, 1]} : vector<1x512xf32> to vector<1x64xf32>
    %c2_16 = arith.constant 2 : index
    %c64_17 = arith.constant 64 : index
    %30 = vector.load %arg13[%c2_16, %c64_17] : memref<8x128xf32, #tpu.memory_space<vmem>>, vector<1x64xf32>
    tpu.vector_store %arg13[%c2_16, %c64_17], %29 {strides = array<i32>} : memref<8x128xf32, #tpu.memory_space<vmem>>, vector<1x64xf32>,
    %31 = vector.extract_strided_slice %24 {offsets = [0, 192], sizes = [1, 64], strides = [1, 1]} : vector<1x512xf32> to vector<1x64xf32>
    %c3_18 = arith.constant 3 : index
    %c64_19 = arith.constant 64 : index
    %32 = vector.load %arg13[%c3_18, %c64_19] : memref<8x128xf32, #tpu.memory_space<vmem>>, vector<1x64xf32>
    tpu.vector_store %arg13[%c3_18, %c64_19], %31 {strides = array<i32>} : memref<8x128xf32, #tpu.memory_space<vmem>>, vector<1x64xf32>,
    %33 = vector.extract_strided_slice %24 {offsets = [0, 256], sizes = [1, 64], strides = [1, 1]} : vector<1x512xf32> to vector<1x64xf32>
    %c4_20 = arith.constant 4 : index
    %c64_21 = arith.constant 64 : index
    %34 = vector.load %arg13[%c4_20, %c64_21] : memref<8x128xf32, #tpu.memory_space<vmem>>, vector<1x64xf32>
    tpu.vector_store %arg13[%c4_20, %c64_21], %33 {strides = array<i32>} : memref<8x128xf32, #tpu.memory_space<vmem>>, vector<1x64xf32>,
    %35 = vector.extract_strided_slice %24 {offsets = [0, 320], sizes = [1, 64], strides = [1, 1]} : vector<1x512xf32> to vector<1x64xf32>
    %c5_22 = arith.constant 5 : index
    %c64_23 = arith.constant 64 : index
    %36 = vector.load %arg13[%c5_22, %c64_23] : memref<8x128xf32, #tpu.memory_space<vmem>>, vector<1x64xf32>
    tpu.vector_store %arg13[%c5_22, %c64_23], %35 {strides = array<i32>} : memref<8x128xf32, #tpu.memory_space<vmem>>, vector<1x64xf32>,
    %37 = vector.extract_strided_slice %24 {offsets = [0, 384], sizes = [1, 64], strides = [1, 1]} : vector<1x512xf32> to vector<1x64xf32>
    %c6_24 = arith.constant 6 : index
    %c64_25 = arith.constant 64 : index
    %38 = vector.load %arg13[%c6_24, %c64_25] : memref<8x128xf32, #tpu.memory_space<vmem>>, vector<1x64xf32>
    tpu.vector_store %arg13[%c6_24, %c64_25], %37 {strides = array<i32>} : memref<8x128xf32, #tpu.memory_space<vmem>>, vector<1x64xf32>,
    %39 = vector.extract_strided_slice %24 {offsets = [0, 448], sizes = [1, 64], strides = [1, 1]} : vector<1x512xf32> to vector<1x64xf32>
    %c7_26 = arith.constant 7 : index
    %c64_27 = arith.constant 64 : index
    %40 = vector.load %arg13[%c7_26, %c64_27] : memref<8x128xf32, #tpu.memory_space<vmem>>, vector<1x64xf32>
    tpu.vector_store %arg13[%c7_26, %c64_27], %39 {strides = array<i32>} : memref<8x128xf32, #tpu.memory_space<vmem>>, vector<1x64xf32>,
    %c0_28 = arith.constant 0 : index
    %c0_29 = arith.constant 0 : index
    %41 = vector.load %arg13[%c0_28, %c0_29] : memref<8x128xf32, #tpu.memory_space<vmem>>, vector<8x128xf32>
    %c0_30 = arith.constant 0 : index
    %c0_31 = arith.constant 0 : index
    %42 = vector.load %arg10[%c0_30, %c0_31] : memref<120x4xf32, #tpu.memory_space<vmem>>, vector<8x1xf32>
    %43 = vector.broadcast %42 : vector<8x1xf32> to vector<8x128xf32>
    %44 = arith.addf %41, %43 : vector<8x128xf32>
    %45 = arith.mulf %44, %44 : vector<8x128xf32>
    %46 = tpu.concatenate %44, %45 in 0 : vector<8x128xf32>, vector<8x128xf32> -> vector<16x128xf32>
    %cst_32 = arith.constant dense<0.000000e+00> : vector<16xf32>
    %47 = vector.multi_reduction <add>, %46, %cst_32 [1] : vector<16x128xf32> to vector<16xf32>
    %48 = vector.shape_cast %47 : vector<16xf32> to vector<16x1xf32>
    %cst_33 = arith.constant 7.812500e-03 : f32
    %49 = vector.broadcast %cst_33 : f32 to vector<16x1xf32>
    %50 = arith.mulf %48, %49 : vector<16x1xf32>
    %51 = vector.extract_strided_slice %50 {offsets = [0, 0], sizes = [8, 1], strides = [1, 1]} : vector<16x1xf32> to vector<8x1xf32>
    %52 = vector.extract_strided_slice %50 {offsets = [8, 0], sizes = [8, 1], strides = [1, 1]} : vector<16x1xf32> to vector<8x1xf32>
    %53 = arith.mulf %51, %51 : vector<8x1xf32>
    %54 = arith.subf %52, %53 : vector<8x1xf32>
    %c0_34 = arith.constant 0 : index
    %c1_35 = arith.constant 1 : index
    %55 = vector.load %arg10[%c0_34, %c1_35] : memref<120x4xf32, #tpu.memory_space<vmem>>, vector<8x1xf32>
    %56 = vector.broadcast %51 : vector<8x1xf32> to vector<8x128xf32>
    %57 = arith.subf %44, %56 : vector<8x128xf32>
    %58 = vector.broadcast %55 : vector<8x1xf32> to vector<8x128xf32>
    %59 = arith.mulf %58, %57 : vector<8x128xf32>
    %cst_36 = arith.constant 9.99999974E-6 : f32
    %60 = vector.broadcast %cst_36 : f32 to vector<8x1xf32>
    %61 = arith.addf %54, %60 : vector<8x1xf32>
    %62 = math.rsqrt %61 : vector<8x1xf32>
    %63 = vector.broadcast %62 : vector<8x1xf32> to vector<8x128xf32>
    %64 = arith.mulf %59, %63 : vector<8x128xf32>
    %c0_37 = arith.constant 0 : index
    %c2_38 = arith.constant 2 : index
    %65 = vector.load %arg10[%c0_37, %c2_38] : memref<120x4xf32, #tpu.memory_space<vmem>>, vector<8x1xf32>
    %66 = vector.broadcast %65 : vector<8x1xf32> to vector<8x128xf32>
    %67 = arith.addf %64, %66 : vector<8x128xf32>
    %cst_39 = arith.constant 0.000000e+00 : f32
    %68 = vector.broadcast %cst_39 : f32 to vector<8x128xf32>
    %69 = arith.cmpf oge, %67, %68 : vector<8x128xf32>
    %cst_40 = arith.constant 2.000000e-01 : f32
    %70 = vector.broadcast %cst_40 : f32 to vector<8x128xf32>
    %71 = arith.mulf %70, %67 : vector<8x128xf32>
    %72 = arith.select %69, %67, %71 : vector<8x128xi1>, vector<8x128xf32>
    %73 = arith.truncf %72 : vector<8x128xf32> to vector<8x128xbf16>
    %c0_41 = arith.constant 0 : index
    %c0_42 = arith.constant 0 : index
    %74 = vector.load %arg3[%c0_41, %c0_42] : memref<64x144xi8, #tpu.memory_space<vmem>>, vector<64x144xi8>
    %75 = arith.sitofp %74 : vector<64x144xi8> to vector<64x144xf32>
    %76 = arith.truncf %75 : vector<64x144xf32> to vector<64x144xbf16>
    %77 = vector.extract_strided_slice %73 {offsets = [0, 0], sizes = [8, 64], strides = [1, 1]} : vector<8x128xbf16> to vector<8x64xbf16>
    %cst_43 = arith.constant dense<0.000000e+00> : vector<8x144xf32>
    %78 = tpu.matmul %77, %76, %cst_43 {dimension_numbers = #tpu.dot_dimension_numbers<[1], [0], [0], [1], [0, 0, 1, 1], [], []>} : vector<8x64xbf16>, vector<64x144xbf16>, vector<8x144xf32> -> vector<8x144xf32>
    %79 = arith.truncf %78 : vector<8x144xf32> to vector<8x144xbf16>
    %80 = vector.extract_strided_slice %79 {offsets = [0, 0], sizes = [8, 16], strides = [1, 1]} : vector<8x144xbf16> to vector<8x16xbf16>
    %c0_44 = arith.constant 0 : index
    %c0_45 = arith.constant 0 : index
    %81 = vector.load %arg14[%c0_44, %c0_45] : memref<72x32xbf16, #tpu.memory_space<vmem>>, vector<8x16xbf16>
    tpu.vector_store %arg14[%c0_44, %c0_45], %80 {strides = array<i32>} : memref<72x32xbf16, #tpu.memory_space<vmem>>, vector<8x16xbf16>,
    %82 = vector.extract_strided_slice %79 {offsets = [0, 16], sizes = [8, 16], strides = [1, 1]} : vector<8x144xbf16> to vector<8x16xbf16>
    %c8 = arith.constant 8 : index
    %c0_46 = arith.constant 0 : index
    %83 = vector.load %arg14[%c8, %c0_46] : memref<72x32xbf16, #tpu.memory_space<vmem>>, vector<8x16xbf16>
    tpu.vector_store %arg14[%c8, %c0_46], %82 {strides = array<i32>} : memref<72x32xbf16, #tpu.memory_space<vmem>>, vector<8x16xbf16>,
    %84 = vector.extract_strided_slice %79 {offsets = [0, 32], sizes = [8, 16], strides = [1, 1]} : vector<8x144xbf16> to vector<8x16xbf16>
    %c16 = arith.constant 16 : index
    %c0_47 = arith.constant 0 : index
    %85 = vector.load %arg14[%c16, %c0_47] : memref<72x32xbf16, #tpu.memory_space<vmem>>, vector<8x16xbf16>
    tpu.vector_store %arg14[%c16, %c0_47], %84 {strides = array<i32>} : memref<72x32xbf16, #tpu.memory_space<vmem>>, vector<8x16xbf16>,
    %86 = vector.extract_strided_slice %79 {offsets = [0, 48], sizes = [8, 16], strides = [1, 1]} : vector<8x144xbf16> to vector<8x16xbf16>
    %c24 = arith.constant 24 : index
    %c0_48 = arith.constant 0 : index
    %87 = vector.load %arg14[%c24, %c0_48] : memref<72x32xbf16, #tpu.memory_space<vmem>>, vector<8x16xbf16>
    tpu.vector_store %arg14[%c24, %c0_48], %86 {strides = array<i32>} : memref<72x32xbf16, #tpu.memory_space<vmem>>, vector<8x16xbf16>,
    %88 = vector.extract_strided_slice %79 {offsets = [0, 64], sizes = [8, 16], strides = [1, 1]} : vector<8x144xbf16> to vector<8x16xbf16>
    %c32 = arith.constant 32 : index
    %c0_49 = arith.constant 0 : index
    %89 = vector.load %arg14[%c32, %c0_49] : memref<72x32xbf16, #tpu.memory_space<vmem>>, vector<8x16xbf16>
    tpu.vector_store %arg14[%c32, %c0_49], %88 {strides = array<i32>} : memref<72x32xbf16, #tpu.memory_space<vmem>>, vector<8x16xbf16>,
    %90 = vector.extract_strided_slice %79 {offsets = [0, 80], sizes = [8, 16], strides = [1, 1]} : vector<8x144xbf16> to vector<8x16xbf16>
    %c40 = arith.constant 40 : index
    %c0_50 = arith.constant 0 : index
    %91 = vector.load %arg14[%c40, %c0_50] : memref<72x32xbf16, #tpu.memory_space<vmem>>, vector<8x16xbf16>
    tpu.vector_store %arg14[%c40, %c0_50], %90 {strides = array<i32>} : memref<72x32xbf16, #tpu.memory_space<vmem>>, vector<8x16xbf16>,
    %92 = vector.extract_strided_slice %79 {offsets = [0, 96], sizes = [8, 16], strides = [1, 1]} : vector<8x144xbf16> to vector<8x16xbf16>
    %c48 = arith.constant 48 : index
    %c0_51 = arith.constant 0 : index
    %93 = vector.load %arg14[%c48, %c0_51] : memref<72x32xbf16, #tpu.memory_space<vmem>>, vector<8x16xbf16>
    tpu.vector_store %arg14[%c48, %c0_51], %92 {strides = array<i32>} : memref<72x32xbf16, #tpu.memory_space<vmem>>, vector<8x16xbf16>,
    %94 = vector.extract_strided_slice %79 {offsets = [0, 112], sizes = [8, 16], strides = [1, 1]} : vector<8x144xbf16> to vector<8x16xbf16>
    %c56 = arith.constant 56 : index
    %c0_52 = arith.constant 0 : index
    %95 = vector.load %arg14[%c56, %c0_52] : memref<72x32xbf16, #tpu.memory_space<vmem>>, vector<8x16xbf16>
    tpu.vector_store %arg14[%c56, %c0_52], %94 {strides = array<i32>} : memref<72x32xbf16, #tpu.memory_space<vmem>>, vector<8x16xbf16>,
    %96 = vector.extract_strided_slice %79 {offsets = [0, 128], sizes = [8, 16], strides = [1, 1]} : vector<8x144xbf16> to vector<8x16xbf16>
    %c64_53 = arith.constant 64 : index
    %c0_54 = arith.constant 0 : index
    %97 = vector.load %arg14[%c64_53, %c0_54] : memref<72x32xbf16, #tpu.memory_space<vmem>>, vector<8x16xbf16>
    tpu.vector_store %arg14[%c64_53, %c0_54], %96 {strides = array<i32>} : memref<72x32xbf16, #tpu.memory_space<vmem>>, vector<8x16xbf16>,
    %98 = vector.extract_strided_slice %73 {offsets = [0, 64], sizes = [8, 64], strides = [1, 1]} : vector<8x128xbf16> to vector<8x64xbf16>
    %cst_55 = arith.constant dense<0.000000e+00> : vector<8x144xf32>
    %99 = tpu.matmul %98, %76, %cst_55 {dimension_numbers = #tpu.dot_dimension_numbers<[1], [0], [0], [1], [0, 0, 1, 1], [], []>} : vector<8x64xbf16>, vector<64x144xbf16>, vector<8x144xf32> -> vector<8x144xf32>
    %100 = arith.truncf %99 : vector<8x144xf32> to vector<8x144xbf16>
    %101 = vector.extract_strided_slice %100 {offsets = [0, 0], sizes = [8, 16], strides = [1, 1]} : vector<8x144xbf16> to vector<8x16xbf16>
    %c0_56 = arith.constant 0 : index
    %c16_57 = arith.constant 16 : index
    %102 = vector.load %arg14[%c0_56, %c16_57] : memref<72x32xbf16, #tpu.memory_space<vmem>>, vector<8x16xbf16>
    tpu.vector_store %arg14[%c0_56, %c16_57], %101 {strides = array<i32>} : memref<72x32xbf16, #tpu.memory_space<vmem>>, vector<8x16xbf16>,
    %103 = vector.extract_strided_slice %100 {offsets = [0, 16], sizes = [8, 16], strides = [1, 1]} : vector<8x144xbf16> to vector<8x16xbf16>
    %c8_58 = arith.constant 8 : index
    %c16_59 = arith.constant 16 : index
    %104 = vector.load %arg14[%c8_58, %c16_59] : memref<72x32xbf16, #tpu.memory_space<vmem>>, vector<8x16xbf16>
    tpu.vector_store %arg14[%c8_58, %c16_59], %103 {strides = array<i32>} : memref<72x32xbf16, #tpu.memory_space<vmem>>, vector<8x16xbf16>,
    %105 = vector.extract_strided_slice %100 {offsets = [0, 32], sizes = [8, 16], strides = [1, 1]} : vector<8x144xbf16> to vector<8x16xbf16>
    %c16_60 = arith.constant 16 : index
    %c16_61 = arith.constant 16 : index
    %106 = vector.load %arg14[%c16_60, %c16_61] : memref<72x32xbf16, #tpu.memory_space<vmem>>, vector<8x16xbf16>
    tpu.vector_store %arg14[%c16_60, %c16_61], %105 {strides = array<i32>} : memref<72x32xbf16, #tpu.memory_space<vmem>>, vector<8x16xbf16>,
    %107 = vector.extract_strided_slice %100 {offsets = [0, 48], sizes = [8, 16], strides = [1, 1]} : vector<8x144xbf16> to vector<8x16xbf16>
    %c24_62 = arith.constant 24 : index
    %c16_63 = arith.constant 16 : index
    %108 = vector.load %arg14[%c24_62, %c16_63] : memref<72x32xbf16, #tpu.memory_space<vmem>>, vector<8x16xbf16>
    tpu.vector_store %arg14[%c24_62, %c16_63], %107 {strides = array<i32>} : memref<72x32xbf16, #tpu.memory_space<vmem>>, vector<8x16xbf16>,
    %109 = vector.extract_strided_slice %100 {offsets = [0, 64], sizes = [8, 16], strides = [1, 1]} : vector<8x144xbf16> to vector<8x16xbf16>
    %c32_64 = arith.constant 32 : index
    %c16_65 = arith.constant 16 : index
    %110 = vector.load %arg14[%c32_64, %c16_65] : memref<72x32xbf16, #tpu.memory_space<vmem>>, vector<8x16xbf16>
    tpu.vector_store %arg14[%c32_64, %c16_65], %109 {strides = array<i32>} : memref<72x32xbf16, #tpu.memory_space<vmem>>, vector<8x16xbf16>,
    %111 = vector.extract_strided_slice %100 {offsets = [0, 80], sizes = [8, 16], strides = [1, 1]} : vector<8x144xbf16> to vector<8x16xbf16>
    %c40_66 = arith.constant 40 : index
    %c16_67 = arith.constant 16 : index
    %112 = vector.load %arg14[%c40_66, %c16_67] : memref<72x32xbf16, #tpu.memory_space<vmem>>, vector<8x16xbf16>
    tpu.vector_store %arg14[%c40_66, %c16_67], %111 {strides = array<i32>} : memref<72x32xbf16, #tpu.memory_space<vmem>>, vector<8x16xbf16>,
    %113 = vector.extract_strided_slice %100 {offsets = [0, 96], sizes = [8, 16], strides = [1, 1]} : vector<8x144xbf16> to vector<8x16xbf16>
    %c48_68 = arith.constant 48 : index
    %c16_69 = arith.constant 16 : index
    %114 = vector.load %arg14[%c48_68, %c16_69] : memref<72x32xbf16, #tpu.memory_space<vmem>>, vector<8x16xbf16>
    tpu.vector_store %arg14[%c48_68, %c16_69], %113 {strides = array<i32>} : memref<72x32xbf16, #tpu.memory_space<vmem>>, vector<8x16xbf16>,
    %115 = vector.extract_strided_slice %100 {offsets = [0, 112], sizes = [8, 16], strides = [1, 1]} : vector<8x144xbf16> to vector<8x16xbf16>
    %c56_70 = arith.constant 56 : index
    %c16_71 = arith.constant 16 : index
    %116 = vector.load %arg14[%c56_70, %c16_71] : memref<72x32xbf16, #tpu.memory_space<vmem>>, vector<8x16xbf16>
    tpu.vector_store %arg14[%c56_70, %c16_71], %115 {strides = array<i32>} : memref<72x32xbf16, #tpu.memory_space<vmem>>, vector<8x16xbf16>,
    %117 = vector.extract_strided_slice %100 {offsets = [0, 128], sizes = [8, 16], strides = [1, 1]} : vector<8x144xbf16> to vector<8x16xbf16>
    %c64_72 = arith.constant 64 : index
    %c16_73 = arith.constant 16 : index
    %118 = vector.load %arg14[%c64_72, %c16_73] : memref<72x32xbf16, #tpu.memory_space<vmem>>, vector<8x16xbf16>
    tpu.vector_store %arg14[%c64_72, %c16_73], %117 {strides = array<i32>} : memref<72x32xbf16, #tpu.memory_space<vmem>>, vector<8x16xbf16>,
    %c0_74 = arith.constant 0 : index
    %c0_75 = arith.constant 0 : index
    %119 = vector.load %arg4[%c0_74, %c0_75] : memref<168x256xbf16, #tpu.memory_space<vmem>>, vector<16x72xbf16>
    %c0_76 = arith.constant 0 : index
    %c0_77 = arith.constant 0 : index
    %120 = vector.load %arg14[%c0_76, %c0_77] : memref<72x32xbf16, #tpu.memory_space<vmem>>, vector<72x32xbf16>
    %cst_78 = arith.constant dense<0.000000e+00> : vector<16x32xf32>
    %121 = tpu.matmul %119, %120, %cst_78 {dimension_numbers = #tpu.dot_dimension_numbers<[1], [0], [0], [1], [0, 0, 1, 1], [], []>} : vector<16x72xbf16>, vector<72x32xbf16>, vector<16x32xf32> -> vector<16x32xf32>
    %c8_79 = arith.constant 8 : index
    %c0_80 = arith.constant 0 : index
    %122 = vector.load %arg10[%c8_79, %c0_80] : memref<120x4xf32, #tpu.memory_space<vmem>>, vector<16x1xf32>
    %123 = vector.broadcast %122 : vector<16x1xf32> to vector<16x32xf32>
    %124 = arith.addf %121, %123 : vector<16x32xf32>
    %125 = arith.mulf %124, %124 : vector<16x32xf32>
    %126 = tpu.concatenate %124, %125 in 0 : vector<16x32xf32>, vector<16x32xf32> -> vector<32x32xf32>
    %cst_81 = arith.constant dense<0.000000e+00> : vector<32xf32>
    %127 = vector.multi_reduction <add>, %126, %cst_81 [1] : vector<32x32xf32> to vector<32xf32>
    %128 = vector.shape_cast %127 : vector<32xf32> to vector<32x1xf32>
    %cst_82 = arith.constant 3.125000e-02 : f32
    %129 = vector.broadcast %cst_82 : f32 to vector<32x1xf32>
    %130 = arith.mulf %128, %129 : vector<32x1xf32>
    %131 = vector.extract_strided_slice %130 {offsets = [0, 0], sizes = [16, 1], strides = [1, 1]} : vector<32x1xf32> to vector<16x1xf32>
    %132 = vector.extract_strided_slice %130 {offsets = [16, 0], sizes = [16, 1], strides = [1, 1]} : vector<32x1xf32> to vector<16x1xf32>
    %133 = arith.mulf %131, %131 : vector<16x1xf32>
    %134 = arith.subf %132, %133 : vector<16x1xf32>
    %c8_83 = arith.constant 8 : index
    %c1_84 = arith.constant 1 : index
    %135 = vector.load %arg10[%c8_83, %c1_84] : memref<120x4xf32, #tpu.memory_space<vmem>>, vector<16x1xf32>
    %136 = vector.broadcast %131 : vector<16x1xf32> to vector<16x32xf32>
    %137 = arith.subf %124, %136 : vector<16x32xf32>
    %138 = vector.broadcast %135 : vector<16x1xf32> to vector<16x32xf32>
    %139 = arith.mulf %138, %137 : vector<16x32xf32>
    %cst_85 = arith.constant 9.99999974E-6 : f32
    %140 = vector.broadcast %cst_85 : f32 to vector<16x1xf32>
    %141 = arith.addf %134, %140 : vector<16x1xf32>
    %142 = math.rsqrt %141 : vector<16x1xf32>
    %143 = vector.broadcast %142 : vector<16x1xf32> to vector<16x32xf32>
    %144 = arith.mulf %139, %143 : vector<16x32xf32>
    %c8_86 = arith.constant 8 : index
    %c2_87 = arith.constant 2 : index
    %145 = vector.load %arg10[%c8_86, %c2_87] : memref<120x4xf32, #tpu.memory_space<vmem>>, vector<16x1xf32>
    %146 = vector.broadcast %145 : vector<16x1xf32> to vector<16x32xf32>
    %147 = arith.addf %144, %146 : vector<16x32xf32>
    %cst_88 = arith.constant 0.000000e+00 : f32
    %148 = vector.broadcast %cst_88 : f32 to vector<16x32xf32>
    %149 = arith.cmpf oge, %147, %148 : vector<16x32xf32>
    %cst_89 = arith.constant 2.000000e-01 : f32
    %150 = vector.broadcast %cst_89 : f32 to vector<16x32xf32>
    %151 = arith.mulf %150, %147 : vector<16x32xf32>
    %152 = arith.select %149, %147, %151 : vector<16x32xi1>, vector<16x32xf32>
    %c16_90 = arith.constant 16 : index
    %c0_91 = arith.constant 0 : index
    %153 = vector.load %arg4[%c16_90, %c0_91] : memref<168x256xbf16, #tpu.memory_space<vmem>>, vector<16x16xbf16>
    %154 = arith.truncf %152 : vector<16x32xf32> to vector<16x32xbf16>
    %cst_92 = arith.constant dense<0.000000e+00> : vector<16x32xf32>
    %155 = tpu.matmul %153, %154, %cst_92 {dimension_numbers = #tpu.dot_dimension_numbers<[1], [0], [0], [1], [0, 0, 1, 1], [], []>} : vector<16x16xbf16>, vector<16x32xbf16>, vector<16x32xf32> -> vector<16x32xf32>
    %c24_93 = arith.constant 24 : index
    %c0_94 = arith.constant 0 : index
    %156 = vector.load %arg10[%c24_93, %c0_94] : memref<120x4xf32, #tpu.memory_space<vmem>>, vector<16x1xf32>
    %157 = vector.broadcast %156 : vector<16x1xf32> to vector<16x32xf32>
    %158 = arith.addf %155, %157 : vector<16x32xf32>
    %159 = arith.mulf %158, %158 : vector<16x32xf32>
    %160 = tpu.concatenate %158, %159 in 0 : vector<16x32xf32>, vector<16x32xf32> -> vector<32x32xf32>
    %cst_95 = arith.constant dense<0.000000e+00> : vector<32xf32>
    %161 = vector.multi_reduction <add>, %160, %cst_95 [1] : vector<32x32xf32> to vector<32xf32>
    %162 = vector.shape_cast %161 : vector<32xf32> to vector<32x1xf32>
    %cst_96 = arith.constant 3.125000e-02 : f32
    %163 = vector.broadcast %cst_96 : f32 to vector<32x1xf32>
    %164 = arith.mulf %162, %163 : vector<32x1xf32>
    %165 = vector.extract_strided_slice %164 {offsets = [0, 0], sizes = [16, 1], strides = [1, 1]} : vector<32x1xf32> to vector<16x1xf32>
    %166 = vector.extract_strided_slice %164 {offsets = [16, 0], sizes = [16, 1], strides = [1, 1]} : vector<32x1xf32> to vector<16x1xf32>
    %167 = arith.mulf %165, %165 : vector<16x1xf32>
    %168 = arith.subf %166, %167 : vector<16x1xf32>
    %c24_97 = arith.constant 24 : index
    %c1_98 = arith.constant 1 : index
    %169 = vector.load %arg10[%c24_97, %c1_98] : memref<120x4xf32, #tpu.memory_space<vmem>>, vector<16x1xf32>
    %170 = vector.broadcast %165 : vector<16x1xf32> to vector<16x32xf32>
    %171 = arith.subf %158, %170 : vector<16x32xf32>
    %172 = vector.broadcast %169 : vector<16x1xf32> to vector<16x32xf32>
    %173 = arith.mulf %172, %171 : vector<16x32xf32>
    %cst_99 = arith.constant 9.99999974E-6 : f32
    %174 = vector.broadcast %cst_99 : f32 to vector<16x1xf32>
    %175 = arith.addf %168, %174 : vector<16x1xf32>
    %176 = math.rsqrt %175 : vector<16x1xf32>
    %177 = vector.broadcast %176 : vector<16x1xf32> to vector<16x32xf32>
    %178 = arith.mulf %173, %177 : vector<16x32xf32>
    %c24_100 = arith.constant 24 : index
    %c2_101 = arith.constant 2 : index
    %179 = vector.load %arg10[%c24_100, %c2_101] : memref<120x4xf32, #tpu.memory_space<vmem>>, vector<16x1xf32>
    %180 = vector.broadcast %179 : vector<16x1xf32> to vector<16x32xf32>
    %181 = arith.addf %178, %180 : vector<16x32xf32>
    %cst_102 = arith.constant 0.000000e+00 : f32
    %182 = vector.broadcast %cst_102 : f32 to vector<16x32xf32>
    %183 = arith.cmpf oge, %181, %182 : vector<16x32xf32>
    %cst_103 = arith.constant 2.000000e-01 : f32
    %184 = vector.broadcast %cst_103 : f32 to vector<16x32xf32>
    %185 = arith.mulf %184, %181 : vector<16x32xf32>
    %186 = arith.select %183, %181, %185 : vector<16x32xi1>, vector<16x32xf32>
    %187 = arith.truncf %186 : vector<16x32xf32> to vector<16x32xbf16>
    %c32_104 = arith.constant 32 : index
    %c0_105 = arith.constant 0 : index
    %188 = vector.load %arg4[%c32_104, %c0_105] : memref<168x256xbf16, #tpu.memory_space<vmem>>, vector<32x32xbf16>
    %cst_106 = arith.constant dense<0.000000e+00> : vector<16x32xf32>
    %189 = tpu.matmul %187, %188, %cst_106 {dimension_numbers = #tpu.dot_dimension_numbers<[1], [0], [0], [1], [0, 0, 1, 1], [], []>} : vector<16x32xbf16>, vector<32x32xbf16>, vector<16x32xf32> -> vector<16x32xf32>
    %190 = arith.truncf %189 : vector<16x32xf32> to vector<16x32xbf16>
    %191 = vector.extract_strided_slice %190 {offsets = [0, 0], sizes = [16, 2], strides = [1, 1]} : vector<16x32xbf16> to vector<16x2xbf16>
    %c0_107 = arith.constant 0 : index
    %c0_108 = arith.constant 0 : index
    %192 = vector.load %arg15[%c0_107, %c0_108] : memref<256x2xbf16, #tpu.memory_space<vmem>>, vector<16x2xbf16>
    tpu.vector_store %arg15[%c0_107, %c0_108], %191 {strides = array<i32>} : memref<256x2xbf16, #tpu.memory_space<vmem>>, vector<16x2xbf16>,
    %193 = vector.extract_strided_slice %190 {offsets = [0, 2], sizes = [16, 2], strides = [1, 1]} : vector<16x32xbf16> to vector<16x2xbf16>
    %c16_109 = arith.constant 16 : index
    %c0_110 = arith.constant 0 : index
    %194 = vector.load %arg15[%c16_109, %c0_110] : memref<256x2xbf16, #tpu.memory_space<vmem>>, vector<16x2xbf16>
    tpu.vector_store %arg15[%c16_109, %c0_110], %193 {strides = array<i32>} : memref<256x2xbf16, #tpu.memory_space<vmem>>, vector<16x2xbf16>,
    %195 = vector.extract_strided_slice %190 {offsets = [0, 4], sizes = [16, 2], strides = [1, 1]} : vector<16x32xbf16> to vector<16x2xbf16>
    %c32_111 = arith.constant 32 : index
    %c0_112 = arith.constant 0 : index
    %196 = vector.load %arg15[%c32_111, %c0_112] : memref<256x2xbf16, #tpu.memory_space<vmem>>, vector<16x2xbf16>
    tpu.vector_store %arg15[%c32_111, %c0_112], %195 {strides = array<i32>} : memref<256x2xbf16, #tpu.memory_space<vmem>>, vector<16x2xbf16>,
    %197 = vector.extract_strided_slice %190 {offsets = [0, 6], sizes = [16, 2], strides = [1, 1]} : vector<16x32xbf16> to vector<16x2xbf16>
    %c48_113 = arith.constant 48 : index
    %c0_114 = arith.constant 0 : index
    %198 = vector.load %arg15[%c48_113, %c0_114] : memref<256x2xbf16, #tpu.memory_space<vmem>>, vector<16x2xbf16>
    tpu.vector_store %arg15[%c48_113, %c0_114], %197 {strides = array<i32>} : memref<256x2xbf16, #tpu.memory_space<vmem>>, vector<16x2xbf16>,
    %199 = vector.extract_strided_slice %190 {offsets = [0, 8], sizes = [16, 2], strides = [1, 1]} : vector<16x32xbf16> to vector<16x2xbf16>
    %c64_115 = arith.constant 64 : index
    %c0_116 = arith.constant 0 : index
    %200 = vector.load %arg15[%c64_115, %c0_116] : memref<256x2xbf16, #tpu.memory_space<vmem>>, vector<16x2xbf16>
    tpu.vector_store %arg15[%c64_115, %c0_116], %199 {strides = array<i32>} : memref<256x2xbf16, #tpu.memory_space<vmem>>, vector<16x2xbf16>,
    %201 = vector.extract_strided_slice %190 {offsets = [0, 10], sizes = [16, 2], strides = [1, 1]} : vector<16x32xbf16> to vector<16x2xbf16>
    %c80 = arith.constant 80 : index
    %c0_117 = arith.constant 0 : index
    %202 = vector.load %arg15[%c80, %c0_117] : memref<256x2xbf16, #tpu.memory_space<vmem>>, vector<16x2xbf16>
    tpu.vector_store %arg15[%c80, %c0_117], %201 {strides = array<i32>} : memref<256x2xbf16, #tpu.memory_space<vmem>>, vector<16x2xbf16>,
    %203 = vector.extract_strided_slice %190 {offsets = [0, 12], sizes = [16, 2], strides = [1, 1]} : vector<16x32xbf16> to vector<16x2xbf16>
    %c96 = arith.constant 96 : index
    %c0_118 = arith.constant 0 : index
    %204 = vector.load %arg15[%c96, %c0_118] : memref<256x2xbf16, #tpu.memory_space<vmem>>, vector<16x2xbf16>
    tpu.vector_store %arg15[%c96, %c0_118], %203 {strides = array<i32>} : memref<256x2xbf16, #tpu.memory_space<vmem>>, vector<16x2xbf16>,
    %205 = vector.extract_strided_slice %190 {offsets = [0, 14], sizes = [16, 2], strides = [1, 1]} : vector<16x32xbf16> to vector<16x2xbf16>
    %c112 = arith.constant 112 : index
    %c0_119 = arith.constant 0 : index
    %206 = vector.load %arg15[%c112, %c0_119] : memref<256x2xbf16, #tpu.memory_space<vmem>>, vector<16x2xbf16>
    tpu.vector_store %arg15[%c112, %c0_119], %205 {strides = array<i32>} : memref<256x2xbf16, #tpu.memory_space<vmem>>, vector<16x2xbf16>,
    %207 = vector.extract_strided_slice %190 {offsets = [0, 16], sizes = [16, 2], strides = [1, 1]} : vector<16x32xbf16> to vector<16x2xbf16>
    %c128 = arith.constant 128 : index
    %c0_120 = arith.constant 0 : index
    %208 = vector.load %arg15[%c128, %c0_120] : memref<256x2xbf16, #tpu.memory_space<vmem>>, vector<16x2xbf16>
    tpu.vector_store %arg15[%c128, %c0_120], %207 {strides = array<i32>} : memref<256x2xbf16, #tpu.memory_space<vmem>>, vector<16x2xbf16>,
    %209 = vector.extract_strided_slice %190 {offsets = [0, 18], sizes = [16, 2], strides = [1, 1]} : vector<16x32xbf16> to vector<16x2xbf16>
    %c144 = arith.constant 144 : index
    %c0_121 = arith.constant 0 : index
    %210 = vector.load %arg15[%c144, %c0_121] : memref<256x2xbf16, #tpu.memory_space<vmem>>, vector<16x2xbf16>
    tpu.vector_store %arg15[%c144, %c0_121], %209 {strides = array<i32>} : memref<256x2xbf16, #tpu.memory_space<vmem>>, vector<16x2xbf16>,
    %211 = vector.extract_strided_slice %190 {offsets = [0, 20], sizes = [16, 2], strides = [1, 1]} : vector<16x32xbf16> to vector<16x2xbf16>
    %c160 = arith.constant 160 : index
    %c0_122 = arith.constant 0 : index
    %212 = vector.load %arg15[%c160, %c0_122] : memref<256x2xbf16, #tpu.memory_space<vmem>>, vector<16x2xbf16>
    tpu.vector_store %arg15[%c160, %c0_122], %211 {strides = array<i32>} : memref<256x2xbf16, #tpu.memory_space<vmem>>, vector<16x2xbf16>,
    %213 = vector.extract_strided_slice %190 {offsets = [0, 22], sizes = [16, 2], strides = [1, 1]} : vector<16x32xbf16> to vector<16x2xbf16>
    %c176 = arith.constant 176 : index
    %c0_123 = arith.constant 0 : index
    %214 = vector.load %arg15[%c176, %c0_123] : memref<256x2xbf16, #tpu.memory_space<vmem>>, vector<16x2xbf16>
    tpu.vector_store %arg15[%c176, %c0_123], %213 {strides = array<i32>} : memref<256x2xbf16, #tpu.memory_space<vmem>>, vector<16x2xbf16>,
    %215 = vector.extract_strided_slice %190 {offsets = [0, 24], sizes = [16, 2], strides = [1, 1]} : vector<16x32xbf16> to vector<16x2xbf16>
    %c192 = arith.constant 192 : index
    %c0_124 = arith.constant 0 : index
    %216 = vector.load %arg15[%c192, %c0_124] : memref<256x2xbf16, #tpu.memory_space<vmem>>, vector<16x2xbf16>
    tpu.vector_store %arg15[%c192, %c0_124], %215 {strides = array<i32>} : memref<256x2xbf16, #tpu.memory_space<vmem>>, vector<16x2xbf16>,
    %217 = vector.extract_strided_slice %190 {offsets = [0, 26], sizes = [16, 2], strides = [1, 1]} : vector<16x32xbf16> to vector<16x2xbf16>
    %c208 = arith.constant 208 : index
    %c0_125 = arith.constant 0 : index
    %218 = vector.load %arg15[%c208, %c0_125] : memref<256x2xbf16, #tpu.memory_space<vmem>>, vector<16x2xbf16>
    tpu.vector_store %arg15[%c208, %c0_125], %217 {strides = array<i32>} : memref<256x2xbf16, #tpu.memory_space<vmem>>, vector<16x2xbf16>,
    %219 = vector.extract_strided_slice %190 {offsets = [0, 28], sizes = [16, 2], strides = [1, 1]} : vector<16x32xbf16> to vector<16x2xbf16>
    %c224 = arith.constant 224 : index
    %c0_126 = arith.constant 0 : index
    %220 = vector.load %arg15[%c224, %c0_126] : memref<256x2xbf16, #tpu.memory_space<vmem>>, vector<16x2xbf16>
    tpu.vector_store %arg15[%c224, %c0_126], %219 {strides = array<i32>} : memref<256x2xbf16, #tpu.memory_space<vmem>>, vector<16x2xbf16>,
    %221 = vector.extract_strided_slice %190 {offsets = [0, 30], sizes = [16, 2], strides = [1, 1]} : vector<16x32xbf16> to vector<16x2xbf16>
    %c240 = arith.constant 240 : index
    %c0_127 = arith.constant 0 : index
    %222 = vector.load %arg15[%c240, %c0_127] : memref<256x2xbf16, #tpu.memory_space<vmem>>, vector<16x2xbf16>
    tpu.vector_store %arg15[%c240, %c0_127], %221 {strides = array<i32>} : memref<256x2xbf16, #tpu.memory_space<vmem>>, vector<16x2xbf16>,
    %c64_128 = arith.constant 64 : index
    %c0_129 = arith.constant 0 : index
    %223 = vector.load %arg4[%c64_128, %c0_129] : memref<168x256xbf16, #tpu.memory_space<vmem>>, vector<16x256xbf16>
    %c0_130 = arith.constant 0 : index
    %c0_131 = arith.constant 0 : index
    %224 = vector.load %arg15[%c0_130, %c0_131] : memref<256x2xbf16, #tpu.memory_space<vmem>>, vector<256x2xbf16>
    %cst_132 = arith.constant dense<0.000000e+00> : vector<16x2xf32>
    %225 = tpu.matmul %223, %224, %cst_132 {dimension_numbers = #tpu.dot_dimension_numbers<[1], [0], [0], [1], [0, 0, 1, 1], [], []>} : vector<16x256xbf16>, vector<256x2xbf16>, vector<16x2xf32> -> vector<16x2xf32>
    %c40_133 = arith.constant 40 : index
    %c0_134 = arith.constant 0 : index
    %226 = vector.load %arg10[%c40_133, %c0_134] : memref<120x4xf32, #tpu.memory_space<vmem>>, vector<16x1xf32>
    %227 = vector.broadcast %226 : vector<16x1xf32> to vector<16x2xf32>
    %228 = arith.addf %225, %227 : vector<16x2xf32>
    %229 = arith.mulf %228, %228 : vector<16x2xf32>
    %230 = tpu.concatenate %228, %229 in 0 : vector<16x2xf32>, vector<16x2xf32> -> vector<32x2xf32>
    %cst_135 = arith.constant dense<0.000000e+00> : vector<32xf32>
    %231 = vector.multi_reduction <add>, %230, %cst_135 [1] : vector<32x2xf32> to vector<32xf32>
    %232 = vector.shape_cast %231 : vector<32xf32> to vector<32x1xf32>
    %cst_136 = arith.constant 5.000000e-01 : f32
    %233 = vector.broadcast %cst_136 : f32 to vector<32x1xf32>
    %234 = arith.mulf %232, %233 : vector<32x1xf32>
    %235 = vector.extract_strided_slice %234 {offsets = [0, 0], sizes = [16, 1], strides = [1, 1]} : vector<32x1xf32> to vector<16x1xf32>
    %236 = vector.extract_strided_slice %234 {offsets = [16, 0], sizes = [16, 1], strides = [1, 1]} : vector<32x1xf32> to vector<16x1xf32>
    %237 = arith.mulf %235, %235 : vector<16x1xf32>
    %238 = arith.subf %236, %237 : vector<16x1xf32>
    %c40_137 = arith.constant 40 : index
    %c1_138 = arith.constant 1 : index
    %239 = vector.load %arg10[%c40_137, %c1_138] : memref<120x4xf32, #tpu.memory_space<vmem>>, vector<16x1xf32>
    %240 = vector.broadcast %235 : vector<16x1xf32> to vector<16x2xf32>
    %241 = arith.subf %228, %240 : vector<16x2xf32>
    %242 = vector.broadcast %239 : vector<16x1xf32> to vector<16x2xf32>
    %243 = arith.mulf %242, %241 : vector<16x2xf32>
    %cst_139 = arith.constant 9.99999974E-6 : f32
    %244 = vector.broadcast %cst_139 : f32 to vector<16x1xf32>
    %245 = arith.addf %238, %244 : vector<16x1xf32>
    %246 = math.rsqrt %245 : vector<16x1xf32>
    %247 = vector.broadcast %246 : vector<16x1xf32> to vector<16x2xf32>
    %248 = arith.mulf %243, %247 : vector<16x2xf32>
    %c40_140 = arith.constant 40 : index
    %c2_141 = arith.constant 2 : index
    %249 = vector.load %arg10[%c40_140, %c2_141] : memref<120x4xf32, #tpu.memory_space<vmem>>, vector<16x1xf32>
    %250 = vector.broadcast %249 : vector<16x1xf32> to vector<16x2xf32>
    %251 = arith.addf %248, %250 : vector<16x2xf32>
    %cst_142 = arith.constant 0.000000e+00 : f32
    %252 = vector.broadcast %cst_142 : f32 to vector<16x2xf32>
    %253 = arith.cmpf oge, %251, %252 : vector<16x2xf32>
    %cst_143 = arith.constant 2.000000e-01 : f32
    %254 = vector.broadcast %cst_143 : f32 to vector<16x2xf32>
    %255 = arith.mulf %254, %251 : vector<16x2xf32>
    %256 = arith.select %253, %251, %255 : vector<16x2xi1>, vector<16x2xf32>
    %c80_144 = arith.constant 80 : index
    %c0_145 = arith.constant 0 : index
    %257 = vector.load %arg4[%c80_144, %c0_145] : memref<168x256xbf16, #tpu.memory_space<vmem>>, vector<16x16xbf16>
    %258 = arith.truncf %256 : vector<16x2xf32> to vector<16x2xbf16>
    %cst_146 = arith.constant dense<0.000000e+00> : vector<16x2xf32>
    %259 = tpu.matmul %257, %258, %cst_146 {dimension_numbers = #tpu.dot_dimension_numbers<[1], [0], [0], [1], [0, 0, 1, 1], [], []>} : vector<16x16xbf16>, vector<16x2xbf16>, vector<16x2xf32> -> vector<16x2xf32>
    %c96_147 = arith.constant 96 : index
    %c0_148 = arith.constant 0 : index
    %260 = vector.load %arg10[%c96_147, %c0_148] : memref<120x4xf32, #tpu.memory_space<vmem>>, vector<16x1xf32>
    %261 = vector.broadcast %260 : vector<16x1xf32> to vector<16x2xf32>
    %262 = arith.addf %259, %261 : vector<16x2xf32>
    %c0_149 = arith.constant 0 : index
    %c0_150 = arith.constant 0 : index
    %263 = vector.load %arg12[%c0_149, %c0_150] : memref<16x2xf32, #tpu.memory_space<vmem>>, vector<16x2xf32>
    tpu.vector_store %arg12[%c0_149, %c0_150], %262 {strides = array<i32>} : memref<16x2xf32, #tpu.memory_space<vmem>>, vector<16x2xf32>,
    %264 = vector.extract_strided_slice %262 {offsets = [0, 0], sizes = [8, 2], strides = [1, 1]} : vector<16x2xf32> to vector<8x2xf32>
    %265 = vector.extract_strided_slice %262 {offsets = [8, 0], sizes = [8, 2], strides = [1, 1]} : vector<16x2xf32> to vector<8x2xf32>
    %c0_151 = arith.constant 0 : index
    %c0_152 = arith.constant 0 : index
    %266 = vector.load %arg1[%c0_151, %c0_152] : memref<8x2xf32, #tpu.memory_space<vmem>>, vector<8x2xf32>
    %cst_153 = arith.constant 5.000000e-01 : f32
    %267 = vector.broadcast %cst_153 : f32 to vector<8x2xf32>
    %268 = arith.mulf %267, %265 : vector<8x2xf32>
    %269 = math.exp %268 : vector<8x2xf32>
    %270 = arith.mulf %266, %269 : vector<8x2xf32>
    %271 = arith.addf %264, %270 : vector<8x2xf32>
    %c0_154 = arith.constant 0 : index
    %c0_155 = arith.constant 0 : index
    %272 = vector.load %arg5[%c0_154, %c0_155] : memref<1024x8xbf16, #tpu.memory_space<vmem>>, vector<1024x8xbf16>
    %273 = arith.truncf %271 : vector<8x2xf32> to vector<8x2xbf16>
    %cst_156 = arith.constant dense<0.000000e+00> : vector<1024x2xf32>
    %274 = tpu.matmul %272, %273, %cst_156 {dimension_numbers = #tpu.dot_dimension_numbers<[1], [0], [0], [1], [0, 0, 1, 1], [], []>} : vector<1024x8xbf16>, vector<8x2xbf16>, vector<1024x2xf32> -> vector<1024x2xf32>
    %c0_157 = arith.constant 0 : index
    %c0_158 = arith.constant 0 : index
    %275 = vector.load %arg6[%c0_157, %c0_158] : memref<1024x1xf32, #tpu.memory_space<vmem>>, vector<1024x1xf32>
    %276 = vector.broadcast %275 : vector<1024x1xf32> to vector<1024x2xf32>
    %277 = arith.addf %274, %276 : vector<1024x2xf32>
    %cst_159 = arith.constant 0.000000e+00 : f32
    %278 = vector.broadcast %cst_159 : f32 to vector<1024x2xf32>
    %279 = arith.maximumf %277, %278 : vector<1024x2xf32>
    %280 = arith.truncf %279 : vector<1024x2xf32> to vector<1024x2xbf16>
    %281 = vector.extract_strided_slice %280 {offsets = [0, 0], sizes = [64, 2], strides = [1, 1]} : vector<1024x2xbf16> to vector<64x2xbf16>
    %c0_160 = arith.constant 0 : index
    %c0_161 = arith.constant 0 : index
    %282 = vector.load %arg16[%c0_160, %c0_161] : memref<64x32xbf16, #tpu.memory_space<vmem>>, vector<64x2xbf16>
    tpu.vector_store %arg16[%c0_160, %c0_161], %281 {strides = array<i32>} : memref<64x32xbf16, #tpu.memory_space<vmem>>, vector<64x2xbf16>,
    %283 = vector.extract_strided_slice %280 {offsets = [64, 0], sizes = [64, 2], strides = [1, 1]} : vector<1024x2xbf16> to vector<64x2xbf16>
    %c0_162 = arith.constant 0 : index
    %c2_163 = arith.constant 2 : index
    %284 = vector.load %arg16[%c0_162, %c2_163] : memref<64x32xbf16, #tpu.memory_space<vmem>>, vector<64x2xbf16>
    tpu.vector_store %arg16[%c0_162, %c2_163], %283 {strides = array<i32>} : memref<64x32xbf16, #tpu.memory_space<vmem>>, vector<64x2xbf16>,
    %285 = vector.extract_strided_slice %280 {offsets = [128, 0], sizes = [64, 2], strides = [1, 1]} : vector<1024x2xbf16> to vector<64x2xbf16>
    %c0_164 = arith.constant 0 : index
    %c4_165 = arith.constant 4 : index
    %286 = vector.load %arg16[%c0_164, %c4_165] : memref<64x32xbf16, #tpu.memory_space<vmem>>, vector<64x2xbf16>
    tpu.vector_store %arg16[%c0_164, %c4_165], %285 {strides = array<i32>} : memref<64x32xbf16, #tpu.memory_space<vmem>>, vector<64x2xbf16>,
    %287 = vector.extract_strided_slice %280 {offsets = [192, 0], sizes = [64, 2], strides = [1, 1]} : vector<1024x2xbf16> to vector<64x2xbf16>
    %c0_166 = arith.constant 0 : index
    %c6_167 = arith.constant 6 : index
    %288 = vector.load %arg16[%c0_166, %c6_167] : memref<64x32xbf16, #tpu.memory_space<vmem>>, vector<64x2xbf16>
    tpu.vector_store %arg16[%c0_166, %c6_167], %287 {strides = array<i32>} : memref<64x32xbf16, #tpu.memory_space<vmem>>, vector<64x2xbf16>,
    %289 = vector.extract_strided_slice %280 {offsets = [256, 0], sizes = [64, 2], strides = [1, 1]} : vector<1024x2xbf16> to vector<64x2xbf16>
    %c0_168 = arith.constant 0 : index
    %c8_169 = arith.constant 8 : index
    %290 = vector.load %arg16[%c0_168, %c8_169] : memref<64x32xbf16, #tpu.memory_space<vmem>>, vector<64x2xbf16>
    tpu.vector_store %arg16[%c0_168, %c8_169], %289 {strides = array<i32>} : memref<64x32xbf16, #tpu.memory_space<vmem>>, vector<64x2xbf16>,
    %291 = vector.extract_strided_slice %280 {offsets = [320, 0], sizes = [64, 2], strides = [1, 1]} : vector<1024x2xbf16> to vector<64x2xbf16>
    %c0_170 = arith.constant 0 : index
    %c10 = arith.constant 10 : index
    %292 = vector.load %arg16[%c0_170, %c10] : memref<64x32xbf16, #tpu.memory_space<vmem>>, vector<64x2xbf16>
    tpu.vector_store %arg16[%c0_170, %c10], %291 {strides = array<i32>} : memref<64x32xbf16, #tpu.memory_space<vmem>>, vector<64x2xbf16>,
    %293 = vector.extract_strided_slice %280 {offsets = [384, 0], sizes = [64, 2], strides = [1, 1]} : vector<1024x2xbf16> to vector<64x2xbf16>
    %c0_171 = arith.constant 0 : index
    %c12 = arith.constant 12 : index
    %294 = vector.load %arg16[%c0_171, %c12] : memref<64x32xbf16, #tpu.memory_space<vmem>>, vector<64x2xbf16>
    tpu.vector_store %arg16[%c0_171, %c12], %293 {strides = array<i32>} : memref<64x32xbf16, #tpu.memory_space<vmem>>, vector<64x2xbf16>,
    %295 = vector.extract_strided_slice %280 {offsets = [448, 0], sizes = [64, 2], strides = [1, 1]} : vector<1024x2xbf16> to vector<64x2xbf16>
    %c0_172 = arith.constant 0 : index
    %c14 = arith.constant 14 : index
    %296 = vector.load %arg16[%c0_172, %c14] : memref<64x32xbf16, #tpu.memory_space<vmem>>, vector<64x2xbf16>
    tpu.vector_store %arg16[%c0_172, %c14], %295 {strides = array<i32>} : memref<64x32xbf16, #tpu.memory_space<vmem>>, vector<64x2xbf16>,
    %297 = vector.extract_strided_slice %280 {offsets = [512, 0], sizes = [64, 2], strides = [1, 1]} : vector<1024x2xbf16> to vector<64x2xbf16>
    %c0_173 = arith.constant 0 : index
    %c16_174 = arith.constant 16 : index
    %298 = vector.load %arg16[%c0_173, %c16_174] : memref<64x32xbf16, #tpu.memory_space<vmem>>, vector<64x2xbf16>
    tpu.vector_store %arg16[%c0_173, %c16_174], %297 {strides = array<i32>} : memref<64x32xbf16, #tpu.memory_space<vmem>>, vector<64x2xbf16>,
    %299 = vector.extract_strided_slice %280 {offsets = [576, 0], sizes = [64, 2], strides = [1, 1]} : vector<1024x2xbf16> to vector<64x2xbf16>
    %c0_175 = arith.constant 0 : index
    %c18 = arith.constant 18 : index
    %300 = vector.load %arg16[%c0_175, %c18] : memref<64x32xbf16, #tpu.memory_space<vmem>>, vector<64x2xbf16>
    tpu.vector_store %arg16[%c0_175, %c18], %299 {strides = array<i32>} : memref<64x32xbf16, #tpu.memory_space<vmem>>, vector<64x2xbf16>,
    %301 = vector.extract_strided_slice %280 {offsets = [640, 0], sizes = [64, 2], strides = [1, 1]} : vector<1024x2xbf16> to vector<64x2xbf16>
    %c0_176 = arith.constant 0 : index
    %c20 = arith.constant 20 : index
    %302 = vector.load %arg16[%c0_176, %c20] : memref<64x32xbf16, #tpu.memory_space<vmem>>, vector<64x2xbf16>
    tpu.vector_store %arg16[%c0_176, %c20], %301 {strides = array<i32>} : memref<64x32xbf16, #tpu.memory_space<vmem>>, vector<64x2xbf16>,
    %303 = vector.extract_strided_slice %280 {offsets = [704, 0], sizes = [64, 2], strides = [1, 1]} : vector<1024x2xbf16> to vector<64x2xbf16>
    %c0_177 = arith.constant 0 : index
    %c22 = arith.constant 22 : index
    %304 = vector.load %arg16[%c0_177, %c22] : memref<64x32xbf16, #tpu.memory_space<vmem>>, vector<64x2xbf16>
    tpu.vector_store %arg16[%c0_177, %c22], %303 {strides = array<i32>} : memref<64x32xbf16, #tpu.memory_space<vmem>>, vector<64x2xbf16>,
    %305 = vector.extract_strided_slice %280 {offsets = [768, 0], sizes = [64, 2], strides = [1, 1]} : vector<1024x2xbf16> to vector<64x2xbf16>
    %c0_178 = arith.constant 0 : index
    %c24_179 = arith.constant 24 : index
    %306 = vector.load %arg16[%c0_178, %c24_179] : memref<64x32xbf16, #tpu.memory_space<vmem>>, vector<64x2xbf16>
    tpu.vector_store %arg16[%c0_178, %c24_179], %305 {strides = array<i32>} : memref<64x32xbf16, #tpu.memory_space<vmem>>, vector<64x2xbf16>,
    %307 = vector.extract_strided_slice %280 {offsets = [832, 0], sizes = [64, 2], strides = [1, 1]} : vector<1024x2xbf16> to vector<64x2xbf16>
    %c0_180 = arith.constant 0 : index
    %c26 = arith.constant 26 : index
    %308 = vector.load %arg16[%c0_180, %c26] : memref<64x32xbf16, #tpu.memory_space<vmem>>, vector<64x2xbf16>
    tpu.vector_store %arg16[%c0_180, %c26], %307 {strides = array<i32>} : memref<64x32xbf16, #tpu.memory_space<vmem>>, vector<64x2xbf16>,
    %309 = vector.extract_strided_slice %280 {offsets = [896, 0], sizes = [64, 2], strides = [1, 1]} : vector<1024x2xbf16> to vector<64x2xbf16>
    %c0_181 = arith.constant 0 : index
    %c28 = arith.constant 28 : index
    %310 = vector.load %arg16[%c0_181, %c28] : memref<64x32xbf16, #tpu.memory_space<vmem>>, vector<64x2xbf16>
    tpu.vector_store %arg16[%c0_181, %c28], %309 {strides = array<i32>} : memref<64x32xbf16, #tpu.memory_space<vmem>>, vector<64x2xbf16>,
    %311 = vector.extract_strided_slice %280 {offsets = [960, 0], sizes = [64, 2], strides = [1, 1]} : vector<1024x2xbf16> to vector<64x2xbf16>
    %c0_182 = arith.constant 0 : index
    %c30 = arith.constant 30 : index
    %312 = vector.load %arg16[%c0_182, %c30] : memref<64x32xbf16, #tpu.memory_space<vmem>>, vector<64x2xbf16>
    tpu.vector_store %arg16[%c0_182, %c30], %311 {strides = array<i32>} : memref<64x32xbf16, #tpu.memory_space<vmem>>, vector<64x2xbf16>,
    %c0_183 = arith.constant 0 : index
    %c0_184 = arith.constant 0 : index
    %313 = vector.load %arg16[%c0_183, %c0_184] : memref<64x32xbf16, #tpu.memory_space<vmem>>, vector<64x32xbf16>
    %c96_185 = arith.constant 96 : index
    %c0_186 = arith.constant 0 : index
    %314 = vector.load %arg4[%c96_185, %c0_186] : memref<168x256xbf16, #tpu.memory_space<vmem>>, vector<32x32xbf16>
    %cst_187 = arith.constant dense<0.000000e+00> : vector<64x32xf32>
    %315 = tpu.matmul %313, %314, %cst_187 {dimension_numbers = #tpu.dot_dimension_numbers<[1], [0], [0], [1], [0, 0, 1, 1], [], []>} : vector<64x32xbf16>, vector<32x32xbf16>, vector<64x32xf32> -> vector<64x32xf32>
    %316 = arith.truncf %315 : vector<64x32xf32> to vector<64x32xbf16>
    %c0_188 = arith.constant 0 : index
    %c0_189 = arith.constant 0 : index
    %317 = vector.load %arg7[%c0_188, %c0_189] : memref<16x1024xi8, #tpu.memory_space<vmem>>, vector<16x1024xi8>
    %318 = arith.sitofp %317 : vector<16x1024xi8> to vector<16x1024xf32>
    %319 = arith.truncf %318 : vector<16x1024xf32> to vector<16x1024xbf16>
    %320 = vector.extract_strided_slice %316 {offsets = [0, 0], sizes = [64, 16], strides = [1, 1]} : vector<64x32xbf16> to vector<64x16xbf16>
    %cst_190 = arith.constant dense<0.000000e+00> : vector<64x1024xf32>
    %321 = tpu.matmul %320, %319, %cst_190 {dimension_numbers = #tpu.dot_dimension_numbers<[1], [0], [0], [1], [0, 0, 1, 1], [], []>} : vector<64x16xbf16>, vector<16x1024xbf16>, vector<64x1024xf32> -> vector<64x1024xf32>
    %322 = arith.truncf %321 : vector<64x1024xf32> to vector<64x1024xbf16>
    %323 = vector.extract_strided_slice %322 {offsets = [0, 0], sizes = [64, 64], strides = [1, 1]} : vector<64x1024xbf16> to vector<64x64xbf16>
    %c0_191 = arith.constant 0 : index
    %c0_192 = arith.constant 0 : index
    %324 = vector.load %arg17[%c0_191, %c0_192] : memref<1024x128xbf16, #tpu.memory_space<vmem>>, vector<64x64xbf16>
    tpu.vector_store %arg17[%c0_191, %c0_192], %323 {strides = array<i32>} : memref<1024x128xbf16, #tpu.memory_space<vmem>>, vector<64x64xbf16>,
    %325 = vector.extract_strided_slice %322 {offsets = [0, 64], sizes = [64, 64], strides = [1, 1]} : vector<64x1024xbf16> to vector<64x64xbf16>
    %c64_193 = arith.constant 64 : index
    %c0_194 = arith.constant 0 : index
    %326 = vector.load %arg17[%c64_193, %c0_194] : memref<1024x128xbf16, #tpu.memory_space<vmem>>, vector<64x64xbf16>
    tpu.vector_store %arg17[%c64_193, %c0_194], %325 {strides = array<i32>} : memref<1024x128xbf16, #tpu.memory_space<vmem>>, vector<64x64xbf16>,
    %327 = vector.extract_strided_slice %322 {offsets = [0, 128], sizes = [64, 64], strides = [1, 1]} : vector<64x1024xbf16> to vector<64x64xbf16>
    %c128_195 = arith.constant 128 : index
    %c0_196 = arith.constant 0 : index
    %328 = vector.load %arg17[%c128_195, %c0_196] : memref<1024x128xbf16, #tpu.memory_space<vmem>>, vector<64x64xbf16>
    tpu.vector_store %arg17[%c128_195, %c0_196], %327 {strides = array<i32>} : memref<1024x128xbf16, #tpu.memory_space<vmem>>, vector<64x64xbf16>,
    %329 = vector.extract_strided_slice %322 {offsets = [0, 192], sizes = [64, 64], strides = [1, 1]} : vector<64x1024xbf16> to vector<64x64xbf16>
    %c192_197 = arith.constant 192 : index
    %c0_198 = arith.constant 0 : index
    %330 = vector.load %arg17[%c192_197, %c0_198] : memref<1024x128xbf16, #tpu.memory_space<vmem>>, vector<64x64xbf16>
    tpu.vector_store %arg17[%c192_197, %c0_198], %329 {strides = array<i32>} : memref<1024x128xbf16, #tpu.memory_space<vmem>>, vector<64x64xbf16>,
    %331 = vector.extract_strided_slice %322 {offsets = [0, 256], sizes = [64, 64], strides = [1, 1]} : vector<64x1024xbf16> to vector<64x64xbf16>
    %c256 = arith.constant 256 : index
    %c0_199 = arith.constant 0 : index
    %332 = vector.load %arg17[%c256, %c0_199] : memref<1024x128xbf16, #tpu.memory_space<vmem>>, vector<64x64xbf16>
    tpu.vector_store %arg17[%c256, %c0_199], %331 {strides = array<i32>} : memref<1024x128xbf16, #tpu.memory_space<vmem>>, vector<64x64xbf16>,
    %333 = vector.extract_strided_slice %322 {offsets = [0, 320], sizes = [64, 64], strides = [1, 1]} : vector<64x1024xbf16> to vector<64x64xbf16>
    %c320 = arith.constant 320 : index
    %c0_200 = arith.constant 0 : index
    %334 = vector.load %arg17[%c320, %c0_200] : memref<1024x128xbf16, #tpu.memory_space<vmem>>, vector<64x64xbf16>
    tpu.vector_store %arg17[%c320, %c0_200], %333 {strides = array<i32>} : memref<1024x128xbf16, #tpu.memory_space<vmem>>, vector<64x64xbf16>,
    %335 = vector.extract_strided_slice %322 {offsets = [0, 384], sizes = [64, 64], strides = [1, 1]} : vector<64x1024xbf16> to vector<64x64xbf16>
    %c384 = arith.constant 384 : index
    %c0_201 = arith.constant 0 : index
    %336 = vector.load %arg17[%c384, %c0_201] : memref<1024x128xbf16, #tpu.memory_space<vmem>>, vector<64x64xbf16>
    tpu.vector_store %arg17[%c384, %c0_201], %335 {strides = array<i32>} : memref<1024x128xbf16, #tpu.memory_space<vmem>>, vector<64x64xbf16>,
    %337 = vector.extract_strided_slice %322 {offsets = [0, 448], sizes = [64, 64], strides = [1, 1]} : vector<64x1024xbf16> to vector<64x64xbf16>
    %c448 = arith.constant 448 : index
    %c0_202 = arith.constant 0 : index
    %338 = vector.load %arg17[%c448, %c0_202] : memref<1024x128xbf16, #tpu.memory_space<vmem>>, vector<64x64xbf16>
    tpu.vector_store %arg17[%c448, %c0_202], %337 {strides = array<i32>} : memref<1024x128xbf16, #tpu.memory_space<vmem>>, vector<64x64xbf16>,
    %339 = vector.extract_strided_slice %322 {offsets = [0, 512], sizes = [64, 64], strides = [1, 1]} : vector<64x1024xbf16> to vector<64x64xbf16>
    %c512 = arith.constant 512 : index
    %c0_203 = arith.constant 0 : index
    %340 = vector.load %arg17[%c512, %c0_203] : memref<1024x128xbf16, #tpu.memory_space<vmem>>, vector<64x64xbf16>
    tpu.vector_store %arg17[%c512, %c0_203], %339 {strides = array<i32>} : memref<1024x128xbf16, #tpu.memory_space<vmem>>, vector<64x64xbf16>,
    %341 = vector.extract_strided_slice %322 {offsets = [0, 576], sizes = [64, 64], strides = [1, 1]} : vector<64x1024xbf16> to vector<64x64xbf16>
    %c576 = arith.constant 576 : index
    %c0_204 = arith.constant 0 : index
    %342 = vector.load %arg17[%c576, %c0_204] : memref<1024x128xbf16, #tpu.memory_space<vmem>>, vector<64x64xbf16>
    tpu.vector_store %arg17[%c576, %c0_204], %341 {strides = array<i32>} : memref<1024x128xbf16, #tpu.memory_space<vmem>>, vector<64x64xbf16>,
    %343 = vector.extract_strided_slice %322 {offsets = [0, 640], sizes = [64, 64], strides = [1, 1]} : vector<64x1024xbf16> to vector<64x64xbf16>
    %c640 = arith.constant 640 : index
    %c0_205 = arith.constant 0 : index
    %344 = vector.load %arg17[%c640, %c0_205] : memref<1024x128xbf16, #tpu.memory_space<vmem>>, vector<64x64xbf16>
    tpu.vector_store %arg17[%c640, %c0_205], %343 {strides = array<i32>} : memref<1024x128xbf16, #tpu.memory_space<vmem>>, vector<64x64xbf16>,
    %345 = vector.extract_strided_slice %322 {offsets = [0, 704], sizes = [64, 64], strides = [1, 1]} : vector<64x1024xbf16> to vector<64x64xbf16>
    %c704 = arith.constant 704 : index
    %c0_206 = arith.constant 0 : index
    %346 = vector.load %arg17[%c704, %c0_206] : memref<1024x128xbf16, #tpu.memory_space<vmem>>, vector<64x64xbf16>
    tpu.vector_store %arg17[%c704, %c0_206], %345 {strides = array<i32>} : memref<1024x128xbf16, #tpu.memory_space<vmem>>, vector<64x64xbf16>,
    %347 = vector.extract_strided_slice %322 {offsets = [0, 768], sizes = [64, 64], strides = [1, 1]} : vector<64x1024xbf16> to vector<64x64xbf16>
    %c768 = arith.constant 768 : index
    %c0_207 = arith.constant 0 : index
    %348 = vector.load %arg17[%c768, %c0_207] : memref<1024x128xbf16, #tpu.memory_space<vmem>>, vector<64x64xbf16>
    tpu.vector_store %arg17[%c768, %c0_207], %347 {strides = array<i32>} : memref<1024x128xbf16, #tpu.memory_space<vmem>>, vector<64x64xbf16>,
    %349 = vector.extract_strided_slice %322 {offsets = [0, 832], sizes = [64, 64], strides = [1, 1]} : vector<64x1024xbf16> to vector<64x64xbf16>
    %c832 = arith.constant 832 : index
    %c0_208 = arith.constant 0 : index
    %350 = vector.load %arg17[%c832, %c0_208] : memref<1024x128xbf16, #tpu.memory_space<vmem>>, vector<64x64xbf16>
    tpu.vector_store %arg17[%c832, %c0_208], %349 {strides = array<i32>} : memref<1024x128xbf16, #tpu.memory_space<vmem>>, vector<64x64xbf16>,
    %351 = vector.extract_strided_slice %322 {offsets = [0, 896], sizes = [64, 64], strides = [1, 1]} : vector<64x1024xbf16> to vector<64x64xbf16>
    %c896 = arith.constant 896 : index
    %c0_209 = arith.constant 0 : index
    %352 = vector.load %arg17[%c896, %c0_209] : memref<1024x128xbf16, #tpu.memory_space<vmem>>, vector<64x64xbf16>
    tpu.vector_store %arg17[%c896, %c0_209], %351 {strides = array<i32>} : memref<1024x128xbf16, #tpu.memory_space<vmem>>, vector<64x64xbf16>,
    %353 = vector.extract_strided_slice %322 {offsets = [0, 960], sizes = [64, 64], strides = [1, 1]} : vector<64x1024xbf16> to vector<64x64xbf16>
    %c960 = arith.constant 960 : index
    %c0_210 = arith.constant 0 : index
    %354 = vector.load %arg17[%c960, %c0_210] : memref<1024x128xbf16, #tpu.memory_space<vmem>>, vector<64x64xbf16>
    tpu.vector_store %arg17[%c960, %c0_210], %353 {strides = array<i32>} : memref<1024x128xbf16, #tpu.memory_space<vmem>>, vector<64x64xbf16>,
    %355 = vector.extract_strided_slice %316 {offsets = [0, 16], sizes = [64, 16], strides = [1, 1]} : vector<64x32xbf16> to vector<64x16xbf16>
    %cst_211 = arith.constant dense<0.000000e+00> : vector<64x1024xf32>
    %356 = tpu.matmul %355, %319, %cst_211 {dimension_numbers = #tpu.dot_dimension_numbers<[1], [0], [0], [1], [0, 0, 1, 1], [], []>} : vector<64x16xbf16>, vector<16x1024xbf16>, vector<64x1024xf32> -> vector<64x1024xf32>
    %357 = arith.truncf %356 : vector<64x1024xf32> to vector<64x1024xbf16>
    %358 = vector.extract_strided_slice %357 {offsets = [0, 0], sizes = [64, 64], strides = [1, 1]} : vector<64x1024xbf16> to vector<64x64xbf16>
    %c0_212 = arith.constant 0 : index
    %c64_213 = arith.constant 64 : index
    %359 = vector.load %arg17[%c0_212, %c64_213] : memref<1024x128xbf16, #tpu.memory_space<vmem>>, vector<64x64xbf16>
    tpu.vector_store %arg17[%c0_212, %c64_213], %358 {strides = array<i32>} : memref<1024x128xbf16, #tpu.memory_space<vmem>>, vector<64x64xbf16>,
    %360 = vector.extract_strided_slice %357 {offsets = [0, 64], sizes = [64, 64], strides = [1, 1]} : vector<64x1024xbf16> to vector<64x64xbf16>
    %c64_214 = arith.constant 64 : index
    %c64_215 = arith.constant 64 : index
    %361 = vector.load %arg17[%c64_214, %c64_215] : memref<1024x128xbf16, #tpu.memory_space<vmem>>, vector<64x64xbf16>
    tpu.vector_store %arg17[%c64_214, %c64_215], %360 {strides = array<i32>} : memref<1024x128xbf16, #tpu.memory_space<vmem>>, vector<64x64xbf16>,
    %362 = vector.extract_strided_slice %357 {offsets = [0, 128], sizes = [64, 64], strides = [1, 1]} : vector<64x1024xbf16> to vector<64x64xbf16>
    %c128_216 = arith.constant 128 : index
    %c64_217 = arith.constant 64 : index
    %363 = vector.load %arg17[%c128_216, %c64_217] : memref<1024x128xbf16, #tpu.memory_space<vmem>>, vector<64x64xbf16>
    tpu.vector_store %arg17[%c128_216, %c64_217], %362 {strides = array<i32>} : memref<1024x128xbf16, #tpu.memory_space<vmem>>, vector<64x64xbf16>,
    %364 = vector.extract_strided_slice %357 {offsets = [0, 192], sizes = [64, 64], strides = [1, 1]} : vector<64x1024xbf16> to vector<64x64xbf16>
    %c192_218 = arith.constant 192 : index
    %c64_219 = arith.constant 64 : index
    %365 = vector.load %arg17[%c192_218, %c64_219] : memref<1024x128xbf16, #tpu.memory_space<vmem>>, vector<64x64xbf16>
    tpu.vector_store %arg17[%c192_218, %c64_219], %364 {strides = array<i32>} : memref<1024x128xbf16, #tpu.memory_space<vmem>>, vector<64x64xbf16>,
    %366 = vector.extract_strided_slice %357 {offsets = [0, 256], sizes = [64, 64], strides = [1, 1]} : vector<64x1024xbf16> to vector<64x64xbf16>
    %c256_220 = arith.constant 256 : index
    %c64_221 = arith.constant 64 : index
    %367 = vector.load %arg17[%c256_220, %c64_221] : memref<1024x128xbf16, #tpu.memory_space<vmem>>, vector<64x64xbf16>
    tpu.vector_store %arg17[%c256_220, %c64_221], %366 {strides = array<i32>} : memref<1024x128xbf16, #tpu.memory_space<vmem>>, vector<64x64xbf16>,
    %368 = vector.extract_strided_slice %357 {offsets = [0, 320], sizes = [64, 64], strides = [1, 1]} : vector<64x1024xbf16> to vector<64x64xbf16>
    %c320_222 = arith.constant 320 : index
    %c64_223 = arith.constant 64 : index
    %369 = vector.load %arg17[%c320_222, %c64_223] : memref<1024x128xbf16, #tpu.memory_space<vmem>>, vector<64x64xbf16>
    tpu.vector_store %arg17[%c320_222, %c64_223], %368 {strides = array<i32>} : memref<1024x128xbf16, #tpu.memory_space<vmem>>, vector<64x64xbf16>,
    %370 = vector.extract_strided_slice %357 {offsets = [0, 384], sizes = [64, 64], strides = [1, 1]} : vector<64x1024xbf16> to vector<64x64xbf16>
    %c384_224 = arith.constant 384 : index
    %c64_225 = arith.constant 64 : index
    %371 = vector.load %arg17[%c384_224, %c64_225] : memref<1024x128xbf16, #tpu.memory_space<vmem>>, vector<64x64xbf16>
    tpu.vector_store %arg17[%c384_224, %c64_225], %370 {strides = array<i32>} : memref<1024x128xbf16, #tpu.memory_space<vmem>>, vector<64x64xbf16>,
    %372 = vector.extract_strided_slice %357 {offsets = [0, 448], sizes = [64, 64], strides = [1, 1]} : vector<64x1024xbf16> to vector<64x64xbf16>
    %c448_226 = arith.constant 448 : index
    %c64_227 = arith.constant 64 : index
    %373 = vector.load %arg17[%c448_226, %c64_227] : memref<1024x128xbf16, #tpu.memory_space<vmem>>, vector<64x64xbf16>
    tpu.vector_store %arg17[%c448_226, %c64_227], %372 {strides = array<i32>} : memref<1024x128xbf16, #tpu.memory_space<vmem>>, vector<64x64xbf16>,
    %374 = vector.extract_strided_slice %357 {offsets = [0, 512], sizes = [64, 64], strides = [1, 1]} : vector<64x1024xbf16> to vector<64x64xbf16>
    %c512_228 = arith.constant 512 : index
    %c64_229 = arith.constant 64 : index
    %375 = vector.load %arg17[%c512_228, %c64_229] : memref<1024x128xbf16, #tpu.memory_space<vmem>>, vector<64x64xbf16>
    tpu.vector_store %arg17[%c512_228, %c64_229], %374 {strides = array<i32>} : memref<1024x128xbf16, #tpu.memory_space<vmem>>, vector<64x64xbf16>,
    %376 = vector.extract_strided_slice %357 {offsets = [0, 576], sizes = [64, 64], strides = [1, 1]} : vector<64x1024xbf16> to vector<64x64xbf16>
    %c576_230 = arith.constant 576 : index
    %c64_231 = arith.constant 64 : index
    %377 = vector.load %arg17[%c576_230, %c64_231] : memref<1024x128xbf16, #tpu.memory_space<vmem>>, vector<64x64xbf16>
    tpu.vector_store %arg17[%c576_230, %c64_231], %376 {strides = array<i32>} : memref<1024x128xbf16, #tpu.memory_space<vmem>>, vector<64x64xbf16>,
    %378 = vector.extract_strided_slice %357 {offsets = [0, 640], sizes = [64, 64], strides = [1, 1]} : vector<64x1024xbf16> to vector<64x64xbf16>
    %c640_232 = arith.constant 640 : index
    %c64_233 = arith.constant 64 : index
    %379 = vector.load %arg17[%c640_232, %c64_233] : memref<1024x128xbf16, #tpu.memory_space<vmem>>, vector<64x64xbf16>
    tpu.vector_store %arg17[%c640_232, %c64_233], %378 {strides = array<i32>} : memref<1024x128xbf16, #tpu.memory_space<vmem>>, vector<64x64xbf16>,
    %380 = vector.extract_strided_slice %357 {offsets = [0, 704], sizes = [64, 64], strides = [1, 1]} : vector<64x1024xbf16> to vector<64x64xbf16>
    %c704_234 = arith.constant 704 : index
    %c64_235 = arith.constant 64 : index
    %381 = vector.load %arg17[%c704_234, %c64_235] : memref<1024x128xbf16, #tpu.memory_space<vmem>>, vector<64x64xbf16>
    tpu.vector_store %arg17[%c704_234, %c64_235], %380 {strides = array<i32>} : memref<1024x128xbf16, #tpu.memory_space<vmem>>, vector<64x64xbf16>,
    %382 = vector.extract_strided_slice %357 {offsets = [0, 768], sizes = [64, 64], strides = [1, 1]} : vector<64x1024xbf16> to vector<64x64xbf16>
    %c768_236 = arith.constant 768 : index
    %c64_237 = arith.constant 64 : index
    %383 = vector.load %arg17[%c768_236, %c64_237] : memref<1024x128xbf16, #tpu.memory_space<vmem>>, vector<64x64xbf16>
    tpu.vector_store %arg17[%c768_236, %c64_237], %382 {strides = array<i32>} : memref<1024x128xbf16, #tpu.memory_space<vmem>>, vector<64x64xbf16>,
    %384 = vector.extract_strided_slice %357 {offsets = [0, 832], sizes = [64, 64], strides = [1, 1]} : vector<64x1024xbf16> to vector<64x64xbf16>
    %c832_238 = arith.constant 832 : index
    %c64_239 = arith.constant 64 : index
    %385 = vector.load %arg17[%c832_238, %c64_239] : memref<1024x128xbf16, #tpu.memory_space<vmem>>, vector<64x64xbf16>
    tpu.vector_store %arg17[%c832_238, %c64_239], %384 {strides = array<i32>} : memref<1024x128xbf16, #tpu.memory_space<vmem>>, vector<64x64xbf16>,
    %386 = vector.extract_strided_slice %357 {offsets = [0, 896], sizes = [64, 64], strides = [1, 1]} : vector<64x1024xbf16> to vector<64x64xbf16>
    %c896_240 = arith.constant 896 : index
    %c64_241 = arith.constant 64 : index
    %387 = vector.load %arg17[%c896_240, %c64_241] : memref<1024x128xbf16, #tpu.memory_space<vmem>>, vector<64x64xbf16>
    tpu.vector_store %arg17[%c896_240, %c64_241], %386 {strides = array<i32>} : memref<1024x128xbf16, #tpu.memory_space<vmem>>, vector<64x64xbf16>,
    %388 = vector.extract_strided_slice %357 {offsets = [0, 960], sizes = [64, 64], strides = [1, 1]} : vector<64x1024xbf16> to vector<64x64xbf16>
    %c960_242 = arith.constant 960 : index
    %c64_243 = arith.constant 64 : index
    %389 = vector.load %arg17[%c960_242, %c64_243] : memref<1024x128xbf16, #tpu.memory_space<vmem>>, vector<64x64xbf16>
    tpu.vector_store %arg17[%c960_242, %c64_243], %388 {strides = array<i32>} : memref<1024x128xbf16, #tpu.memory_space<vmem>>, vector<64x64xbf16>,
    %c0_244 = arith.constant 0 : index
    %c0_245 = arith.constant 0 : index
    %390 = vector.load %arg8[%c0_244, %c0_245] : memref<8x1024xbf16, #tpu.memory_space<vmem>>, vector<8x1024xbf16>
    %c0_246 = arith.constant 0 : index
    %c0_247 = arith.constant 0 : index
    %391 = vector.load %arg17[%c0_246, %c0_247] : memref<1024x128xbf16, #tpu.memory_space<vmem>>, vector<1024x128xbf16>
    %cst_248 = arith.constant dense<0.000000e+00> : vector<8x128xf32>
    %392 = tpu.matmul %390, %391, %cst_248 {dimension_numbers = #tpu.dot_dimension_numbers<[1], [0], [0], [1], [0, 0, 1, 1], [], []>} : vector<8x1024xbf16>, vector<1024x128xbf16>, vector<8x128xf32> -> vector<8x128xf32>
    %c56_249 = arith.constant 56 : index
    %c0_250 = arith.constant 0 : index
    %393 = vector.load %arg10[%c56_249, %c0_250] : memref<120x4xf32, #tpu.memory_space<vmem>>, vector<8x1xf32>
    %394 = vector.broadcast %393 : vector<8x1xf32> to vector<8x128xf32>
    %395 = arith.addf %392, %394 : vector<8x128xf32>
    %396 = arith.mulf %395, %395 : vector<8x128xf32>
    %397 = tpu.concatenate %395, %396 in 0 : vector<8x128xf32>, vector<8x128xf32> -> vector<16x128xf32>
    %cst_251 = arith.constant dense<0.000000e+00> : vector<16xf32>
    %398 = vector.multi_reduction <add>, %397, %cst_251 [1] : vector<16x128xf32> to vector<16xf32>
    %399 = vector.shape_cast %398 : vector<16xf32> to vector<16x1xf32>
    %cst_252 = arith.constant 7.812500e-03 : f32
    %400 = vector.broadcast %cst_252 : f32 to vector<16x1xf32>
    %401 = arith.mulf %399, %400 : vector<16x1xf32>
    %402 = vector.extract_strided_slice %401 {offsets = [0, 0], sizes = [8, 1], strides = [1, 1]} : vector<16x1xf32> to vector<8x1xf32>
    %403 = vector.extract_strided_slice %401 {offsets = [8, 0], sizes = [8, 1], strides = [1, 1]} : vector<16x1xf32> to vector<8x1xf32>
    %404 = arith.mulf %402, %402 : vector<8x1xf32>
    %405 = arith.subf %403, %404 : vector<8x1xf32>
    %c56_253 = arith.constant 56 : index
    %c1_254 = arith.constant 1 : index
    %406 = vector.load %arg10[%c56_253, %c1_254] : memref<120x4xf32, #tpu.memory_space<vmem>>, vector<8x1xf32>
    %407 = vector.broadcast %402 : vector<8x1xf32> to vector<8x128xf32>
    %408 = arith.subf %395, %407 : vector<8x128xf32>
    %409 = vector.broadcast %406 : vector<8x1xf32> to vector<8x128xf32>
    %410 = arith.mulf %409, %408 : vector<8x128xf32>
    %cst_255 = arith.constant 9.99999974E-6 : f32
    %411 = vector.broadcast %cst_255 : f32 to vector<8x1xf32>
    %412 = arith.addf %405, %411 : vector<8x1xf32>
    %413 = math.rsqrt %412 : vector<8x1xf32>
    %414 = vector.broadcast %413 : vector<8x1xf32> to vector<8x128xf32>
    %415 = arith.mulf %410, %414 : vector<8x128xf32>
    %c56_256 = arith.constant 56 : index
    %c2_257 = arith.constant 2 : index
    %416 = vector.load %arg10[%c56_256, %c2_257] : memref<120x4xf32, #tpu.memory_space<vmem>>, vector<8x1xf32>
    %417 = vector.broadcast %416 : vector<8x1xf32> to vector<8x128xf32>
    %418 = arith.addf %415, %417 : vector<8x128xf32>
    %cst_258 = arith.constant 0.000000e+00 : f32
    %419 = vector.broadcast %cst_258 : f32 to vector<8x128xf32>
    %420 = arith.cmpf oge, %418, %419 : vector<8x128xf32>
    %cst_259 = arith.constant 2.000000e-01 : f32
    %421 = vector.broadcast %cst_259 : f32 to vector<8x128xf32>
    %422 = arith.mulf %421, %418 : vector<8x128xf32>
    %423 = arith.select %420, %418, %422 : vector<8x128xi1>, vector<8x128xf32>
    %c128_260 = arith.constant 128 : index
    %c0_261 = arith.constant 0 : index
    %424 = vector.load %arg4[%c128_260, %c0_261] : memref<168x256xbf16, #tpu.memory_space<vmem>>, vector<16x8xbf16>
    %425 = arith.truncf %423 : vector<8x128xf32> to vector<8x128xbf16>
    %cst_262 = arith.constant dense<0.000000e+00> : vector<16x128xf32>
    %426 = tpu.matmul %424, %425, %cst_262 {dimension_numbers = #tpu.dot_dimension_numbers<[1], [0], [0], [1], [0, 0, 1, 1], [], []>} : vector<16x8xbf16>, vector<8x128xbf16>, vector<16x128xf32> -> vector<16x128xf32>
    %c64_263 = arith.constant 64 : index
    %c0_264 = arith.constant 0 : index
    %427 = vector.load %arg10[%c64_263, %c0_264] : memref<120x4xf32, #tpu.memory_space<vmem>>, vector<16x1xf32>
    %428 = vector.broadcast %427 : vector<16x1xf32> to vector<16x128xf32>
    %429 = arith.addf %426, %428 : vector<16x128xf32>
    %430 = arith.mulf %429, %429 : vector<16x128xf32>
    %431 = tpu.concatenate %429, %430 in 0 : vector<16x128xf32>, vector<16x128xf32> -> vector<32x128xf32>
    %cst_265 = arith.constant dense<0.000000e+00> : vector<32xf32>
    %432 = vector.multi_reduction <add>, %431, %cst_265 [1] : vector<32x128xf32> to vector<32xf32>
    %433 = vector.shape_cast %432 : vector<32xf32> to vector<32x1xf32>
    %cst_266 = arith.constant 7.812500e-03 : f32
    %434 = vector.broadcast %cst_266 : f32 to vector<32x1xf32>
    %435 = arith.mulf %433, %434 : vector<32x1xf32>
    %436 = vector.extract_strided_slice %435 {offsets = [0, 0], sizes = [16, 1], strides = [1, 1]} : vector<32x1xf32> to vector<16x1xf32>
    %437 = vector.extract_strided_slice %435 {offsets = [16, 0], sizes = [16, 1], strides = [1, 1]} : vector<32x1xf32> to vector<16x1xf32>
    %438 = arith.mulf %436, %436 : vector<16x1xf32>
    %439 = arith.subf %437, %438 : vector<16x1xf32>
    %c64_267 = arith.constant 64 : index
    %c1_268 = arith.constant 1 : index
    %440 = vector.load %arg10[%c64_267, %c1_268] : memref<120x4xf32, #tpu.memory_space<vmem>>, vector<16x1xf32>
    %441 = vector.broadcast %436 : vector<16x1xf32> to vector<16x128xf32>
    %442 = arith.subf %429, %441 : vector<16x128xf32>
    %443 = vector.broadcast %440 : vector<16x1xf32> to vector<16x128xf32>
    %444 = arith.mulf %443, %442 : vector<16x128xf32>
    %cst_269 = arith.constant 9.99999974E-6 : f32
    %445 = vector.broadcast %cst_269 : f32 to vector<16x1xf32>
    %446 = arith.addf %439, %445 : vector<16x1xf32>
    %447 = math.rsqrt %446 : vector<16x1xf32>
    %448 = vector.broadcast %447 : vector<16x1xf32> to vector<16x128xf32>
    %449 = arith.mulf %444, %448 : vector<16x128xf32>
    %c64_270 = arith.constant 64 : index
    %c2_271 = arith.constant 2 : index
    %450 = vector.load %arg10[%c64_270, %c2_271] : memref<120x4xf32, #tpu.memory_space<vmem>>, vector<16x1xf32>
    %451 = vector.broadcast %450 : vector<16x1xf32> to vector<16x128xf32>
    %452 = arith.addf %449, %451 : vector<16x128xf32>
    %cst_272 = arith.constant 0.000000e+00 : f32
    %453 = vector.broadcast %cst_272 : f32 to vector<16x128xf32>
    %454 = arith.cmpf oge, %452, %453 : vector<16x128xf32>
    %cst_273 = arith.constant 2.000000e-01 : f32
    %455 = vector.broadcast %cst_273 : f32 to vector<16x128xf32>
    %456 = arith.mulf %455, %452 : vector<16x128xf32>
    %457 = arith.select %454, %452, %456 : vector<16x128xi1>, vector<16x128xf32>
    %c0_i32_274 = arith.constant 0 : i32
    %458 = tpu.memref_slice %arg20[%c0_i32_274] : memref<1x!tpu.dma_semaphore, #tpu.memory_space<semaphore_mem>> -> memref<1x!tpu.dma_semaphore, #tpu.memory_space<semaphore_mem>>
    %459 = tpu.memref_squeeze %458 : memref<1x!tpu.dma_semaphore, #tpu.memory_space<semaphore_mem>> -> memref<!tpu.dma_semaphore, #tpu.memory_space<semaphore_mem>>
    tpu.wait_dma2 semaphore(%459 : memref<!tpu.dma_semaphore, #tpu.memory_space<semaphore_mem>>) src(%arg9 : memref<64x4096xi8, #tpu.memory_space<any>>) dst(%arg19 : memref<64x4096xi8, #tpu.memory_space<vmem>>)
    %c0_275 = arith.constant 0 : index
    %c0_276 = arith.constant 0 : index
    %460 = vector.load %arg19[%c0_275, %c0_276] : memref<64x4096xi8, #tpu.memory_space<vmem>>, vector<64x4096xi8>
    %461 = arith.sitofp %460 : vector<64x4096xi8> to vector<64x4096xf32>
    %462 = arith.truncf %461 : vector<64x4096xf32> to vector<64x4096xbf16>
    %463 = arith.truncf %457 : vector<16x128xf32> to vector<16x128xbf16>
    %464 = vector.extract_strided_slice %463 {offsets = [0, 0], sizes = [16, 64], strides = [1, 1]} : vector<16x128xbf16> to vector<16x64xbf16>
    %cst_277 = arith.constant dense<0.000000e+00> : vector<16x4096xf32>
    %465 = tpu.matmul %464, %462, %cst_277 {dimension_numbers = #tpu.dot_dimension_numbers<[1], [0], [0], [1], [0, 0, 1, 1], [], []>} : vector<16x64xbf16>, vector<64x4096xbf16>, vector<16x4096xf32> -> vector<16x4096xf32>
    %466 = arith.truncf %465 : vector<16x4096xf32> to vector<16x4096xbf16>
    %467 = vector.extract_strided_slice %466 {offsets = [0, 0], sizes = [16, 256], strides = [1, 1]} : vector<16x4096xbf16> to vector<16x256xbf16>
    %c0_278 = arith.constant 0 : index
    %c0_279 = arith.constant 0 : index
    %468 = vector.load %arg18[%c0_278, %c0_279] : memref<256x512xbf16, #tpu.memory_space<vmem>>, vector<16x256xbf16>
    tpu.vector_store %arg18[%c0_278, %c0_279], %467 {strides = array<i32>} : memref<256x512xbf16, #tpu.memory_space<vmem>>, vector<16x256xbf16>,
    %469 = vector.extract_strided_slice %466 {offsets = [0, 256], sizes = [16, 256], strides = [1, 1]} : vector<16x4096xbf16> to vector<16x256xbf16>
    %c16_280 = arith.constant 16 : index
    %c0_281 = arith.constant 0 : index
    %470 = vector.load %arg18[%c16_280, %c0_281] : memref<256x512xbf16, #tpu.memory_space<vmem>>, vector<16x256xbf16>
    tpu.vector_store %arg18[%c16_280, %c0_281], %469 {strides = array<i32>} : memref<256x512xbf16, #tpu.memory_space<vmem>>, vector<16x256xbf16>,
    %471 = vector.extract_strided_slice %466 {offsets = [0, 512], sizes = [16, 256], strides = [1, 1]} : vector<16x4096xbf16> to vector<16x256xbf16>
    %c32_282 = arith.constant 32 : index
    %c0_283 = arith.constant 0 : index
    %472 = vector.load %arg18[%c32_282, %c0_283] : memref<256x512xbf16, #tpu.memory_space<vmem>>, vector<16x256xbf16>
    tpu.vector_store %arg18[%c32_282, %c0_283], %471 {strides = array<i32>} : memref<256x512xbf16, #tpu.memory_space<vmem>>, vector<16x256xbf16>,
    %473 = vector.extract_strided_slice %466 {offsets = [0, 768], sizes = [16, 256], strides = [1, 1]} : vector<16x4096xbf16> to vector<16x256xbf16>
    %c48_284 = arith.constant 48 : index
    %c0_285 = arith.constant 0 : index
    %474 = vector.load %arg18[%c48_284, %c0_285] : memref<256x512xbf16, #tpu.memory_space<vmem>>, vector<16x256xbf16>
    tpu.vector_store %arg18[%c48_284, %c0_285], %473 {strides = array<i32>} : memref<256x512xbf16, #tpu.memory_space<vmem>>, vector<16x256xbf16>,
    %475 = vector.extract_strided_slice %466 {offsets = [0, 1024], sizes = [16, 256], strides = [1, 1]} : vector<16x4096xbf16> to vector<16x256xbf16>
    %c64_286 = arith.constant 64 : index
    %c0_287 = arith.constant 0 : index
    %476 = vector.load %arg18[%c64_286, %c0_287] : memref<256x512xbf16, #tpu.memory_space<vmem>>, vector<16x256xbf16>
    tpu.vector_store %arg18[%c64_286, %c0_287], %475 {strides = array<i32>} : memref<256x512xbf16, #tpu.memory_space<vmem>>, vector<16x256xbf16>,
    %477 = vector.extract_strided_slice %466 {offsets = [0, 1280], sizes = [16, 256], strides = [1, 1]} : vector<16x4096xbf16> to vector<16x256xbf16>
    %c80_288 = arith.constant 80 : index
    %c0_289 = arith.constant 0 : index
    %478 = vector.load %arg18[%c80_288, %c0_289] : memref<256x512xbf16, #tpu.memory_space<vmem>>, vector<16x256xbf16>
    tpu.vector_store %arg18[%c80_288, %c0_289], %477 {strides = array<i32>} : memref<256x512xbf16, #tpu.memory_space<vmem>>, vector<16x256xbf16>,
    %479 = vector.extract_strided_slice %466 {offsets = [0, 1536], sizes = [16, 256], strides = [1, 1]} : vector<16x4096xbf16> to vector<16x256xbf16>
    %c96_290 = arith.constant 96 : index
    %c0_291 = arith.constant 0 : index
    %480 = vector.load %arg18[%c96_290, %c0_291] : memref<256x512xbf16, #tpu.memory_space<vmem>>, vector<16x256xbf16>
    tpu.vector_store %arg18[%c96_290, %c0_291], %479 {strides = array<i32>} : memref<256x512xbf16, #tpu.memory_space<vmem>>, vector<16x256xbf16>,
    %481 = vector.extract_strided_slice %466 {offsets = [0, 1792], sizes = [16, 256], strides = [1, 1]} : vector<16x4096xbf16> to vector<16x256xbf16>
    %c112_292 = arith.constant 112 : index
    %c0_293 = arith.constant 0 : index
    %482 = vector.load %arg18[%c112_292, %c0_293] : memref<256x512xbf16, #tpu.memory_space<vmem>>, vector<16x256xbf16>
    tpu.vector_store %arg18[%c112_292, %c0_293], %481 {strides = array<i32>} : memref<256x512xbf16, #tpu.memory_space<vmem>>, vector<16x256xbf16>,
    %483 = vector.extract_strided_slice %466 {offsets = [0, 2048], sizes = [16, 256], strides = [1, 1]} : vector<16x4096xbf16> to vector<16x256xbf16>
    %c128_294 = arith.constant 128 : index
    %c0_295 = arith.constant 0 : index
    %484 = vector.load %arg18[%c128_294, %c0_295] : memref<256x512xbf16, #tpu.memory_space<vmem>>, vector<16x256xbf16>
    tpu.vector_store %arg18[%c128_294, %c0_295], %483 {strides = array<i32>} : memref<256x512xbf16, #tpu.memory_space<vmem>>, vector<16x256xbf16>,
    %485 = vector.extract_strided_slice %466 {offsets = [0, 2304], sizes = [16, 256], strides = [1, 1]} : vector<16x4096xbf16> to vector<16x256xbf16>
    %c144_296 = arith.constant 144 : index
    %c0_297 = arith.constant 0 : index
    %486 = vector.load %arg18[%c144_296, %c0_297] : memref<256x512xbf16, #tpu.memory_space<vmem>>, vector<16x256xbf16>
    tpu.vector_store %arg18[%c144_296, %c0_297], %485 {strides = array<i32>} : memref<256x512xbf16, #tpu.memory_space<vmem>>, vector<16x256xbf16>,
    %487 = vector.extract_strided_slice %466 {offsets = [0, 2560], sizes = [16, 256], strides = [1, 1]} : vector<16x4096xbf16> to vector<16x256xbf16>
    %c160_298 = arith.constant 160 : index
    %c0_299 = arith.constant 0 : index
    %488 = vector.load %arg18[%c160_298, %c0_299] : memref<256x512xbf16, #tpu.memory_space<vmem>>, vector<16x256xbf16>
    tpu.vector_store %arg18[%c160_298, %c0_299], %487 {strides = array<i32>} : memref<256x512xbf16, #tpu.memory_space<vmem>>, vector<16x256xbf16>,
    %489 = vector.extract_strided_slice %466 {offsets = [0, 2816], sizes = [16, 256], strides = [1, 1]} : vector<16x4096xbf16> to vector<16x256xbf16>
    %c176_300 = arith.constant 176 : index
    %c0_301 = arith.constant 0 : index
    %490 = vector.load %arg18[%c176_300, %c0_301] : memref<256x512xbf16, #tpu.memory_space<vmem>>, vector<16x256xbf16>
    tpu.vector_store %arg18[%c176_300, %c0_301], %489 {strides = array<i32>} : memref<256x512xbf16, #tpu.memory_space<vmem>>, vector<16x256xbf16>,
    %491 = vector.extract_strided_slice %466 {offsets = [0, 3072], sizes = [16, 256], strides = [1, 1]} : vector<16x4096xbf16> to vector<16x256xbf16>
    %c192_302 = arith.constant 192 : index
    %c0_303 = arith.constant 0 : index
    %492 = vector.load %arg18[%c192_302, %c0_303] : memref<256x512xbf16, #tpu.memory_space<vmem>>, vector<16x256xbf16>
    tpu.vector_store %arg18[%c192_302, %c0_303], %491 {strides = array<i32>} : memref<256x512xbf16, #tpu.memory_space<vmem>>, vector<16x256xbf16>,
    %493 = vector.extract_strided_slice %466 {offsets = [0, 3328], sizes = [16, 256], strides = [1, 1]} : vector<16x4096xbf16> to vector<16x256xbf16>
    %c208_304 = arith.constant 208 : index
    %c0_305 = arith.constant 0 : index
    %494 = vector.load %arg18[%c208_304, %c0_305] : memref<256x512xbf16, #tpu.memory_space<vmem>>, vector<16x256xbf16>
    tpu.vector_store %arg18[%c208_304, %c0_305], %493 {strides = array<i32>} : memref<256x512xbf16, #tpu.memory_space<vmem>>, vector<16x256xbf16>,
    %495 = vector.extract_strided_slice %466 {offsets = [0, 3584], sizes = [16, 256], strides = [1, 1]} : vector<16x4096xbf16> to vector<16x256xbf16>
    %c224_306 = arith.constant 224 : index
    %c0_307 = arith.constant 0 : index
    %496 = vector.load %arg18[%c224_306, %c0_307] : memref<256x512xbf16, #tpu.memory_space<vmem>>, vector<16x256xbf16>
    tpu.vector_store %arg18[%c224_306, %c0_307], %495 {strides = array<i32>} : memref<256x512xbf16, #tpu.memory_space<vmem>>, vector<16x256xbf16>,
    %497 = vector.extract_strided_slice %466 {offsets = [0, 3840], sizes = [16, 256], strides = [1, 1]} : vector<16x4096xbf16> to vector<16x256xbf16>
    %c240_308 = arith.constant 240 : index
    %c0_309 = arith.constant 0 : index
    %498 = vector.load %arg18[%c240_308, %c0_309] : memref<256x512xbf16, #tpu.memory_space<vmem>>, vector<16x256xbf16>
    tpu.vector_store %arg18[%c240_308, %c0_309], %497 {strides = array<i32>} : memref<256x512xbf16, #tpu.memory_space<vmem>>, vector<16x256xbf16>,
    %499 = vector.extract_strided_slice %463 {offsets = [0, 64], sizes = [16, 64], strides = [1, 1]} : vector<16x128xbf16> to vector<16x64xbf16>
    %cst_310 = arith.constant dense<0.000000e+00> : vector<16x4096xf32>
    %500 = tpu.matmul %499, %462, %cst_310 {dimension_numbers = #tpu.dot_dimension_numbers<[1], [0], [0], [1], [0, 0, 1, 1], [], []>} : vector<16x64xbf16>, vector<64x4096xbf16>, vector<16x4096xf32> -> vector<16x4096xf32>
    %501 = arith.truncf %500 : vector<16x4096xf32> to vector<16x4096xbf16>
    %502 = vector.extract_strided_slice %501 {offsets = [0, 0], sizes = [16, 256], strides = [1, 1]} : vector<16x4096xbf16> to vector<16x256xbf16>
    %c0_311 = arith.constant 0 : index
    %c256_312 = arith.constant 256 : index
    %503 = vector.load %arg18[%c0_311, %c256_312] : memref<256x512xbf16, #tpu.memory_space<vmem>>, vector<16x256xbf16>
    tpu.vector_store %arg18[%c0_311, %c256_312], %502 {strides = array<i32>} : memref<256x512xbf16, #tpu.memory_space<vmem>>, vector<16x256xbf16>,
    %504 = vector.extract_strided_slice %501 {offsets = [0, 256], sizes = [16, 256], strides = [1, 1]} : vector<16x4096xbf16> to vector<16x256xbf16>
    %c16_313 = arith.constant 16 : index
    %c256_314 = arith.constant 256 : index
    %505 = vector.load %arg18[%c16_313, %c256_314] : memref<256x512xbf16, #tpu.memory_space<vmem>>, vector<16x256xbf16>
    tpu.vector_store %arg18[%c16_313, %c256_314], %504 {strides = array<i32>} : memref<256x512xbf16, #tpu.memory_space<vmem>>, vector<16x256xbf16>,
    %506 = vector.extract_strided_slice %501 {offsets = [0, 512], sizes = [16, 256], strides = [1, 1]} : vector<16x4096xbf16> to vector<16x256xbf16>
    %c32_315 = arith.constant 32 : index
    %c256_316 = arith.constant 256 : index
    %507 = vector.load %arg18[%c32_315, %c256_316] : memref<256x512xbf16, #tpu.memory_space<vmem>>, vector<16x256xbf16>
    tpu.vector_store %arg18[%c32_315, %c256_316], %506 {strides = array<i32>} : memref<256x512xbf16, #tpu.memory_space<vmem>>, vector<16x256xbf16>,
    %508 = vector.extract_strided_slice %501 {offsets = [0, 768], sizes = [16, 256], strides = [1, 1]} : vector<16x4096xbf16> to vector<16x256xbf16>
    %c48_317 = arith.constant 48 : index
    %c256_318 = arith.constant 256 : index
    %509 = vector.load %arg18[%c48_317, %c256_318] : memref<256x512xbf16, #tpu.memory_space<vmem>>, vector<16x256xbf16>
    tpu.vector_store %arg18[%c48_317, %c256_318], %508 {strides = array<i32>} : memref<256x512xbf16, #tpu.memory_space<vmem>>, vector<16x256xbf16>,
    %510 = vector.extract_strided_slice %501 {offsets = [0, 1024], sizes = [16, 256], strides = [1, 1]} : vector<16x4096xbf16> to vector<16x256xbf16>
    %c64_319 = arith.constant 64 : index
    %c256_320 = arith.constant 256 : index
    %511 = vector.load %arg18[%c64_319, %c256_320] : memref<256x512xbf16, #tpu.memory_space<vmem>>, vector<16x256xbf16>
    tpu.vector_store %arg18[%c64_319, %c256_320], %510 {strides = array<i32>} : memref<256x512xbf16, #tpu.memory_space<vmem>>, vector<16x256xbf16>,
    %512 = vector.extract_strided_slice %501 {offsets = [0, 1280], sizes = [16, 256], strides = [1, 1]} : vector<16x4096xbf16> to vector<16x256xbf16>
    %c80_321 = arith.constant 80 : index
    %c256_322 = arith.constant 256 : index
    %513 = vector.load %arg18[%c80_321, %c256_322] : memref<256x512xbf16, #tpu.memory_space<vmem>>, vector<16x256xbf16>
    tpu.vector_store %arg18[%c80_321, %c256_322], %512 {strides = array<i32>} : memref<256x512xbf16, #tpu.memory_space<vmem>>, vector<16x256xbf16>,
    %514 = vector.extract_strided_slice %501 {offsets = [0, 1536], sizes = [16, 256], strides = [1, 1]} : vector<16x4096xbf16> to vector<16x256xbf16>
    %c96_323 = arith.constant 96 : index
    %c256_324 = arith.constant 256 : index
    %515 = vector.load %arg18[%c96_323, %c256_324] : memref<256x512xbf16, #tpu.memory_space<vmem>>, vector<16x256xbf16>
    tpu.vector_store %arg18[%c96_323, %c256_324], %514 {strides = array<i32>} : memref<256x512xbf16, #tpu.memory_space<vmem>>, vector<16x256xbf16>,
    %516 = vector.extract_strided_slice %501 {offsets = [0, 1792], sizes = [16, 256], strides = [1, 1]} : vector<16x4096xbf16> to vector<16x256xbf16>
    %c112_325 = arith.constant 112 : index
    %c256_326 = arith.constant 256 : index
    %517 = vector.load %arg18[%c112_325, %c256_326] : memref<256x512xbf16, #tpu.memory_space<vmem>>, vector<16x256xbf16>
    tpu.vector_store %arg18[%c112_325, %c256_326], %516 {strides = array<i32>} : memref<256x512xbf16, #tpu.memory_space<vmem>>, vector<16x256xbf16>,
    %518 = vector.extract_strided_slice %501 {offsets = [0, 2048], sizes = [16, 256], strides = [1, 1]} : vector<16x4096xbf16> to vector<16x256xbf16>
    %c128_327 = arith.constant 128 : index
    %c256_328 = arith.constant 256 : index
    %519 = vector.load %arg18[%c128_327, %c256_328] : memref<256x512xbf16, #tpu.memory_space<vmem>>, vector<16x256xbf16>
    tpu.vector_store %arg18[%c128_327, %c256_328], %518 {strides = array<i32>} : memref<256x512xbf16, #tpu.memory_space<vmem>>, vector<16x256xbf16>,
    %520 = vector.extract_strided_slice %501 {offsets = [0, 2304], sizes = [16, 256], strides = [1, 1]} : vector<16x4096xbf16> to vector<16x256xbf16>
    %c144_329 = arith.constant 144 : index
    %c256_330 = arith.constant 256 : index
    %521 = vector.load %arg18[%c144_329, %c256_330] : memref<256x512xbf16, #tpu.memory_space<vmem>>, vector<16x256xbf16>
    tpu.vector_store %arg18[%c144_329, %c256_330], %520 {strides = array<i32>} : memref<256x512xbf16, #tpu.memory_space<vmem>>, vector<16x256xbf16>,
    %522 = vector.extract_strided_slice %501 {offsets = [0, 2560], sizes = [16, 256], strides = [1, 1]} : vector<16x4096xbf16> to vector<16x256xbf16>
    %c160_331 = arith.constant 160 : index
    %c256_332 = arith.constant 256 : index
    %523 = vector.load %arg18[%c160_331, %c256_332] : memref<256x512xbf16, #tpu.memory_space<vmem>>, vector<16x256xbf16>
    tpu.vector_store %arg18[%c160_331, %c256_332], %522 {strides = array<i32>} : memref<256x512xbf16, #tpu.memory_space<vmem>>, vector<16x256xbf16>,
    %524 = vector.extract_strided_slice %501 {offsets = [0, 2816], sizes = [16, 256], strides = [1, 1]} : vector<16x4096xbf16> to vector<16x256xbf16>
    %c176_333 = arith.constant 176 : index
    %c256_334 = arith.constant 256 : index
    %525 = vector.load %arg18[%c176_333, %c256_334] : memref<256x512xbf16, #tpu.memory_space<vmem>>, vector<16x256xbf16>
    tpu.vector_store %arg18[%c176_333, %c256_334], %524 {strides = array<i32>} : memref<256x512xbf16, #tpu.memory_space<vmem>>, vector<16x256xbf16>,
    %526 = vector.extract_strided_slice %501 {offsets = [0, 3072], sizes = [16, 256], strides = [1, 1]} : vector<16x4096xbf16> to vector<16x256xbf16>
    %c192_335 = arith.constant 192 : index
    %c256_336 = arith.constant 256 : index
    %527 = vector.load %arg18[%c192_335, %c256_336] : memref<256x512xbf16, #tpu.memory_space<vmem>>, vector<16x256xbf16>
    tpu.vector_store %arg18[%c192_335, %c256_336], %526 {strides = array<i32>} : memref<256x512xbf16, #tpu.memory_space<vmem>>, vector<16x256xbf16>,
    %528 = vector.extract_strided_slice %501 {offsets = [0, 3328], sizes = [16, 256], strides = [1, 1]} : vector<16x4096xbf16> to vector<16x256xbf16>
    %c208_337 = arith.constant 208 : index
    %c256_338 = arith.constant 256 : index
    %529 = vector.load %arg18[%c208_337, %c256_338] : memref<256x512xbf16, #tpu.memory_space<vmem>>, vector<16x256xbf16>
    tpu.vector_store %arg18[%c208_337, %c256_338], %528 {strides = array<i32>} : memref<256x512xbf16, #tpu.memory_space<vmem>>, vector<16x256xbf16>,
    %530 = vector.extract_strided_slice %501 {offsets = [0, 3584], sizes = [16, 256], strides = [1, 1]} : vector<16x4096xbf16> to vector<16x256xbf16>
    %c224_339 = arith.constant 224 : index
    %c256_340 = arith.constant 256 : index
    %531 = vector.load %arg18[%c224_339, %c256_340] : memref<256x512xbf16, #tpu.memory_space<vmem>>, vector<16x256xbf16>
    tpu.vector_store %arg18[%c224_339, %c256_340], %530 {strides = array<i32>} : memref<256x512xbf16, #tpu.memory_space<vmem>>, vector<16x256xbf16>,
    %532 = vector.extract_strided_slice %501 {offsets = [0, 3840], sizes = [16, 256], strides = [1, 1]} : vector<16x4096xbf16> to vector<16x256xbf16>
    %c240_341 = arith.constant 240 : index
    %c256_342 = arith.constant 256 : index
    %533 = vector.load %arg18[%c240_341, %c256_342] : memref<256x512xbf16, #tpu.memory_space<vmem>>, vector<16x256xbf16>
    tpu.vector_store %arg18[%c240_341, %c256_342], %532 {strides = array<i32>} : memref<256x512xbf16, #tpu.memory_space<vmem>>, vector<16x256xbf16>,
    %c144_343 = arith.constant 144 : index
    %c0_344 = arith.constant 0 : index
    %534 = vector.load %arg4[%c144_343, %c0_344] : memref<168x256xbf16, #tpu.memory_space<vmem>>, vector<16x256xbf16>
    %c0_345 = arith.constant 0 : index
    %c0_346 = arith.constant 0 : index
    %535 = vector.load %arg18[%c0_345, %c0_346] : memref<256x512xbf16, #tpu.memory_space<vmem>>, vector<256x512xbf16>
    %cst_347 = arith.constant dense<0.000000e+00> : vector<16x512xf32>
    %536 = tpu.matmul %534, %535, %cst_347 {dimension_numbers = #tpu.dot_dimension_numbers<[1], [0], [0], [1], [0, 0, 1, 1], [], []>} : vector<16x256xbf16>, vector<256x512xbf16>, vector<16x512xf32> -> vector<16x512xf32>
    %c80_348 = arith.constant 80 : index
    %c0_349 = arith.constant 0 : index
    %537 = vector.load %arg10[%c80_348, %c0_349] : memref<120x4xf32, #tpu.memory_space<vmem>>, vector<16x1xf32>
    %538 = vector.broadcast %537 : vector<16x1xf32> to vector<16x512xf32>
    %539 = arith.addf %536, %538 : vector<16x512xf32>
    %540 = arith.mulf %539, %539 : vector<16x512xf32>
    %541 = tpu.concatenate %539, %540 in 0 : vector<16x512xf32>, vector<16x512xf32> -> vector<32x512xf32>
    %cst_350 = arith.constant dense<0.000000e+00> : vector<32xf32>
    %542 = vector.multi_reduction <add>, %541, %cst_350 [1] : vector<32x512xf32> to vector<32xf32>
    %543 = vector.shape_cast %542 : vector<32xf32> to vector<32x1xf32>
    %cst_351 = arith.constant 0.001953125 : f32
    %544 = vector.broadcast %cst_351 : f32 to vector<32x1xf32>
    %545 = arith.mulf %543, %544 : vector<32x1xf32>
    %546 = vector.extract_strided_slice %545 {offsets = [0, 0], sizes = [16, 1], strides = [1, 1]} : vector<32x1xf32> to vector<16x1xf32>
    %547 = vector.extract_strided_slice %545 {offsets = [16, 0], sizes = [16, 1], strides = [1, 1]} : vector<32x1xf32> to vector<16x1xf32>
    %548 = arith.mulf %546, %546 : vector<16x1xf32>
    %549 = arith.subf %547, %548 : vector<16x1xf32>
    %c80_352 = arith.constant 80 : index
    %c1_353 = arith.constant 1 : index
    %550 = vector.load %arg10[%c80_352, %c1_353] : memref<120x4xf32, #tpu.memory_space<vmem>>, vector<16x1xf32>
    %551 = vector.broadcast %546 : vector<16x1xf32> to vector<16x512xf32>
    %552 = arith.subf %539, %551 : vector<16x512xf32>
    %553 = vector.broadcast %550 : vector<16x1xf32> to vector<16x512xf32>
    %554 = arith.mulf %553, %552 : vector<16x512xf32>
    %cst_354 = arith.constant 9.99999974E-6 : f32
    %555 = vector.broadcast %cst_354 : f32 to vector<16x1xf32>
    %556 = arith.addf %549, %555 : vector<16x1xf32>
    %557 = math.rsqrt %556 : vector<16x1xf32>
    %558 = vector.broadcast %557 : vector<16x1xf32> to vector<16x512xf32>
    %559 = arith.mulf %554, %558 : vector<16x512xf32>
    %c80_355 = arith.constant 80 : index
    %c2_356 = arith.constant 2 : index
    %560 = vector.load %arg10[%c80_355, %c2_356] : memref<120x4xf32, #tpu.memory_space<vmem>>, vector<16x1xf32>
    %561 = vector.broadcast %560 : vector<16x1xf32> to vector<16x512xf32>
    %562 = arith.addf %559, %561 : vector<16x512xf32>
    %cst_357 = arith.constant 0.000000e+00 : f32
    %563 = vector.broadcast %cst_357 : f32 to vector<16x512xf32>
    %564 = arith.cmpf oge, %562, %563 : vector<16x512xf32>
    %cst_358 = arith.constant 2.000000e-01 : f32
    %565 = vector.broadcast %cst_358 : f32 to vector<16x512xf32>
    %566 = arith.mulf %565, %562 : vector<16x512xf32>
    %567 = arith.select %564, %562, %566 : vector<16x512xi1>, vector<16x512xf32>
    %c160_359 = arith.constant 160 : index
    %c0_360 = arith.constant 0 : index
    %568 = vector.load %arg4[%c160_359, %c0_360] : memref<168x256xbf16, #tpu.memory_space<vmem>>, vector<1x16xbf16>
    %569 = arith.truncf %567 : vector<16x512xf32> to vector<16x512xbf16>
    %cst_361 = arith.constant dense<0.000000e+00> : vector<1x512xf32>
    %570 = tpu.matmul %568, %569, %cst_361 {dimension_numbers = #tpu.dot_dimension_numbers<[1], [0], [0], [1], [0, 0, 1, 1], [], []>} : vector<1x16xbf16>, vector<16x512xbf16>, vector<1x512xf32> -> vector<1x512xf32>
    %c112_362 = arith.constant 112 : index
    %c0_363 = arith.constant 0 : index
    %571 = vector.load %arg10[%c112_362, %c0_363] : memref<120x4xf32, #tpu.memory_space<vmem>>, vector<1x1xf32>
    %572 = vector.broadcast %571 : vector<1x1xf32> to vector<1x512xf32>
    %573 = arith.addf %570, %572 : vector<1x512xf32>
    %c0_364 = arith.constant 0 : index
    %c0_365 = arith.constant 0 : index
    %574 = vector.load %arg11[%c0_364, %c0_365] : memref<1x512xf32, #tpu.memory_space<vmem>>, vector<1x512xf32>
    tpu.vector_store %arg11[%c0_364, %c0_365], %573 {strides = array<i32>} : memref<1x512xf32, #tpu.memory_space<vmem>>, vector<1x512xf32>,
    return
  }
}

</mosaic_0001>

<bundles_post_ra>
// kernel: _fwd.1
= control target key start
LH: loop header
LB: loop body
LE: loop exit
PB: predicated region body
PF: predicated region fallthrough
CT: control target
= control target key end

     0   :  { %s16467_s0 = inlined_call_operand.vmem [shape: f32[1,512], index: 0, kind: input, shape index: {}]   ;;  %s16468_s1 = inlined_call_operand.vmem [shape: f32[8,2], index: 1, kind: input, shape index: {}]   ;;  %s16469_s2 = inlined_call_operand.vmem [shape: bf16[256,512], index: 2, kind: input, shape index: {}]   ;;  %s16470_s3 = inlined_call_operand.vmem [shape: s8[64,144], index: 3, kind: input, shape index: {}]   ;;  %s16471_s4 = inlined_call_operand.vmem [shape: bf16[168,256], index: 4, kind: input, shape index: {}]   ;;  %s16472_s5 = inlined_call_operand.vmem [shape: bf16[1024,8], index: 5, kind: input, shape index: {}]   ;;  %s16473_s6 = inlined_call_operand.vmem [shape: f32[1024,1], index: 6, kind: input, shape index: {}]   ;;  %s16474_s7 = inlined_call_operand.vmem [shape: s8[16,1024], index: 7, kind: input, shape index: {}]   ;;  %s16475_s8 = inlined_call_operand.vmem [shape: bf16[8,1024], index: 8, kind: input, shape index: {}]   ;;  %s16476_s9 = inlined_call_operand.vmem [shape: s8[64,4096], index: 9, kind: input, shape index: {}]   ;;  %s16477_s10 = inlined_call_operand.vmem [shape: f32[120,4], index: 10, kind: input, shape index: {}]   ;;  %s16478_s11 = inlined_call_operand.vmem [shape: f32[1,512], index: 11, kind: output, shape index: {0}]   ;;  %s16479_s12 = inlined_call_operand.vmem [shape: f32[16,2], index: 12, kind: output, shape index: {1}]  }
   0x1   :  { %v12444_v0 = vld [vmem:[%s16476_s9] sm:$0xff]  ;;  %v12449_v1 = vld [vmem:[%s16476_s9 + $0x8] sm:$0xff]  ;;  %v12454_v2 = vld [vmem:[%s16476_s9 + $0x10] sm:$0xff] }
   0x2   :  { %16693 = vst [vmem:[#allocation12_spill] sm:$0xff] %v12444_v0  ;;  %16694 = vst [vmem:[#allocation13_spill] sm:$0xff] %v12449_v1  ;;  %v12459_v3 = vld [vmem:[%s16476_s9 + $0x18] sm:$0xff]  ;;  %v12464_v4 = vld [vmem:[%s16476_s9 + $0x20] sm:$0xff] }
   0x3   :  { %16695 = vst [vmem:[#allocation14_spill] sm:$0xff] %v12454_v2  ;;  %16696 = vst [vmem:[#allocation15_spill] sm:$0xff] %v12459_v3  ;;  %v12469_v5 = vld [vmem:[%s16476_s9 + $0x28] sm:$0xff]  ;;  %v12474_v6 = vld [vmem:[%s16476_s9 + $0x30] sm:$0xff] }
   0x4   :  { %16697 = vst [vmem:[#allocation16_spill] sm:$0xff] %v12464_v4  ;;  %16698 = vst [vmem:[#allocation17_spill] sm:$0xff] %v12469_v5  ;;  %v12479_v7 = vld [vmem:[%s16476_s9 + $0x38] sm:$0xff]  ;;  %v12484_v8 = vld [vmem:[%s16476_s9 + $0x40] sm:$0xff] }
   0x5   :  { %16699 = vst [vmem:[#allocation18_spill] sm:$0xff] %v12474_v6  ;;  %16700 = vst [vmem:[#allocation19_spill] sm:$0xff] %v12479_v7  ;;  %v12489_v9 = vld [vmem:[%s16476_s9 + $0x48] sm:$0xff]  ;;  %v12494_v10 = vld [vmem:[%s16476_s9 + $0x50] sm:$0xff] }
   0x6   :  { %16701 = vst [vmem:[#allocation20_spill] sm:$0xff] %v12484_v8  ;;  %16702 = vst [vmem:[#allocation21_spill] sm:$0xff] %v12489_v9  ;;  %v12499_v11 = vld [vmem:[%s16476_s9 + $0x58] sm:$0xff]  ;;  %v12504_v12 = vld [vmem:[%s16476_s9 + $0x60] sm:$0xff] }
   0x7   :  { %16703 = vst [vmem:[#allocation22_spill] sm:$0xff] %v12494_v10  ;;  %16704 = vst [vmem:[#allocation23_spill] sm:$0xff] %v12499_v11  ;;  %v12509_v13 = vld [vmem:[%s16476_s9 + $0x68] sm:$0xff]  ;;  %v12514_v14 = vld [vmem:[%s16476_s9 + $0x70] sm:$0xff] }
   0x8   :  { %16705 = vst [vmem:[#allocation24_spill] sm:$0xff] %v12504_v12  ;;  %16706 = vst [vmem:[#allocation25_spill] sm:$0xff] %v12509_v13  ;;  %v12519_v15 = vld [vmem:[%s16476_s9 + $0x78] sm:$0xff]  ;;  %v12524_v16 = vld [vmem:[%s16476_s9 + $0x80] sm:$0xff] }
   0x9   :  { %16707 = vst [vmem:[#allocation26_spill] sm:$0xff] %v12514_v14  ;;  %16708 = vst [vmem:[#allocation27_spill] sm:$0xff] %v12519_v15  ;;  %v12529_v17 = vld [vmem:[%s16476_s9 + $0x88] sm:$0xff]  ;;  %v12534_v18 = vld [vmem:[%s16476_s9 + $0x90] sm:$0xff] }
   0xa   :  { %16709 = vst [vmem:[#allocation28_spill] sm:$0xff] %v12524_v16  ;;  %16710 = vst [vmem:[#allocation29_spill] sm:$0xff] %v12529_v17  ;;  %v12539_v19 = vld [vmem:[%s16476_s9 + $0x98] sm:$0xff]  ;;  %v12544_v20 = vld [vmem:[%s16476_s9 + $0xa0] sm:$0xff] }
   0xb   :  { %16711 = vst [vmem:[#allocation30_spill] sm:$0xff] %v12534_v18  ;;  %16712 = vst [vmem:[#allocation31_spill] sm:$0xff] %v12539_v19  ;;  %v12549_v21 = vld [vmem:[%s16476_s9 + $0xa8] sm:$0xff]  ;;  %v12554_v22 = vld [vmem:[%s16476_s9 + $0xb0] sm:$0xff] }
   0xc   :  { %16713 = vst [vmem:[#allocation32_spill] sm:$0xff] %v12544_v20  ;;  %16714 = vst [vmem:[#allocation33_spill] sm:$0xff] %v12549_v21  ;;  %v12559_v23 = vld [vmem:[%s16476_s9 + $0xb8] sm:$0xff]  ;;  %v12564_v24 = vld [vmem:[%s16476_s9 + $0xc0] sm:$0xff] }
   0xd   :  { %16715 = vst [vmem:[#allocation34_spill] sm:$0xff] %v12554_v22  ;;  %16716 = vst [vmem:[#allocation35_spill] sm:$0xff] %v12559_v23  ;;  %v12569_v25 = vld [vmem:[%s16476_s9 + $0xc8] sm:$0xff]  ;;  %v12574_v26 = vld [vmem:[%s16476_s9 + $0xd0] sm:$0xff] }
   0xe   :  { %16717 = vst [vmem:[#allocation36_spill] sm:$0xff] %v12564_v24  ;;  %16718 = vst [vmem:[#allocation37_spill] sm:$0xff] %v12569_v25  ;;  %v12579_v27 = vld [vmem:[%s16476_s9 + $0xd8] sm:$0xff]  ;;  %v12584_v28 = vld [vmem:[%s16476_s9 + $0xe0] sm:$0xff] }
   0xf   :  { %16719 = vst [vmem:[#allocation38_spill] sm:$0xff] %v12574_v26  ;;  %16720 = vst [vmem:[#allocation39_spill] sm:$0xff] %v12579_v27  ;;  %v12589_v29 = vld [vmem:[%s16476_s9 + $0xe8] sm:$0xff]  ;;  %v12594_v30 = vld [vmem:[%s16476_s9 + $0xf0] sm:$0xff] }
  0x10   :  { %16721 = vst [vmem:[#allocation40_spill] sm:$0xff] %v12584_v28  ;;  %16722 = vst [vmem:[#allocation41_spill] sm:$0xff] %v12589_v29  ;;  %v12599_v31 = vld [vmem:[%s16476_s9 + $0xf8] sm:$0xff]  ;;  %v12604_v32 = vld [vmem:[%s16476_s9 + $0x100] sm:$0xff] }
  0x11   :  { %16723 = vst [vmem:[#allocation42_spill] sm:$0xff] %v12594_v30  ;;  %16724 = vst [vmem:[#allocation43_spill] sm:$0xff] %v12599_v31  ;;  %v12609_v33 = vld [vmem:[%s16476_s9 + $0x108] sm:$0xff]  ;;  %v12614_v34 = vld [vmem:[%s16476_s9 + $0x110] sm:$0xff] }
  0x12   :  { %16725 = vst [vmem:[#allocation44_spill] sm:$0xff] %v12604_v32  ;;  %16726 = vst [vmem:[#allocation45_spill] sm:$0xff] %v12609_v33  ;;  %v12619_v35 = vld [vmem:[%s16476_s9 + $0x118] sm:$0xff]  ;;  %v12624_v36 = vld [vmem:[%s16476_s9 + $0x120] sm:$0xff] }
  0x13   :  { %16727 = vst [vmem:[#allocation46_spill] sm:$0xff] %v12614_v34  ;;  %16728 = vst [vmem:[#allocation47_spill] sm:$0xff] %v12619_v35  ;;  %v12629_v37 = vld [vmem:[%s16476_s9 + $0x128] sm:$0xff]  ;;  %v12634_v38 = vld [vmem:[%s16476_s9 + $0x130] sm:$0xff] }
  0x14   :  { %16729 = vst [vmem:[#allocation48_spill] sm:$0xff] %v12624_v36  ;;  %16730 = vst [vmem:[#allocation49_spill] sm:$0xff] %v12629_v37  ;;  %v12639_v39 = vld [vmem:[%s16476_s9 + $0x138] sm:$0xff]  ;;  %v12644_v40 = vld [vmem:[%s16476_s9 + $0x140] sm:$0xff] }
  0x15   :  { %16731 = vst [vmem:[#allocation50_spill] sm:$0xff] %v12634_v38  ;;  %16732 = vst [vmem:[#allocation51_spill] sm:$0xff] %v12639_v39  ;;  %v12649_v41 = vld [vmem:[%s16476_s9 + $0x148] sm:$0xff]  ;;  %v12654_v42 = vld [vmem:[%s16476_s9 + $0x150] sm:$0xff] }
  0x16   :  { %16733 = vst [vmem:[#allocation52_spill] sm:$0xff] %v12644_v40  ;;  %16734 = vst [vmem:[#allocation53_spill] sm:$0xff] %v12649_v41  ;;  %v12659_v43 = vld [vmem:[%s16476_s9 + $0x158] sm:$0xff]  ;;  %v12664_v44 = vld [vmem:[%s16476_s9 + $0x160] sm:$0xff] }
  0x17   :  { %16735 = vst [vmem:[#allocation54_spill] sm:$0xff] %v12654_v42  ;;  %16736 = vst [vmem:[#allocation55_spill] sm:$0xff] %v12659_v43  ;;  %v12669_v45 = vld [vmem:[%s16476_s9 + $0x168] sm:$0xff]  ;;  %v12674_v46 = vld [vmem:[%s16476_s9 + $0x170] sm:$0xff] }
  0x18   :  { %16737 = vst [vmem:[#allocation56_spill] sm:$0xff] %v12664_v44  ;;  %16738 = vst [vmem:[#allocation57_spill] sm:$0xff] %v12669_v45  ;;  %v12679_v47 = vld [vmem:[%s16476_s9 + $0x178] sm:$0xff]  ;;  %v12684_v48 = vld [vmem:[%s16476_s9 + $0x180] sm:$0xff] }
  0x19   :  { %16739 = vst [vmem:[#allocation58_spill] sm:$0xff] %v12674_v46  ;;  %16740 = vst [vmem:[#allocation59_spill] sm:$0xff] %v12679_v47  ;;  %v12689_v49 = vld [vmem:[%s16476_s9 + $0x188] sm:$0xff]  ;;  %v12694_v50 = vld [vmem:[%s16476_s9 + $0x190] sm:$0xff] }
  0x1a   :  { %16741 = vst [vmem:[#allocation60_spill] sm:$0xff] %v12684_v48  ;;  %16742 = vst [vmem:[#allocation61_spill] sm:$0xff] %v12689_v49  ;;  %v12699_v51 = vld [vmem:[%s16476_s9 + $0x198] sm:$0xff]  ;;  %v12704_v52 = vld [vmem:[%s16476_s9 + $0x1a0] sm:$0xff] }
  0x1b   :  { %16743 = vst [vmem:[#allocation62_spill] sm:$0xff] %v12694_v50  ;;  %16744 = vst [vmem:[#allocation63_spill] sm:$0xff] %v12699_v51  ;;  %v12709_v53 = vld [vmem:[%s16476_s9 + $0x1a8] sm:$0xff]  ;;  %v12714_v54 = vld [vmem:[%s16476_s9 + $0x1b0] sm:$0xff] }
  0x1c   :  { %16745 = vst [vmem:[#allocation64_spill] sm:$0xff] %v12704_v52  ;;  %16746 = vst [vmem:[#allocation65_spill] sm:$0xff] %v12709_v53  ;;  %v12719_v55 = vld [vmem:[%s16476_s9 + $0x1b8] sm:$0xff]  ;;  %v12724_v56 = vld [vmem:[%s16476_s9 + $0x1c0] sm:$0xff] }
  0x1d   :  { %16747 = vst [vmem:[#allocation66_spill] sm:$0xff] %v12714_v54  ;;  %16748 = vst [vmem:[#allocation67_spill] sm:$0xff] %v12719_v55  ;;  %v12729_v57 = vld [vmem:[%s16476_s9 + $0x1c8] sm:$0xff]  ;;  %v12734_v58 = vld [vmem:[%s16476_s9 + $0x1d0] sm:$0xff] }
  0x1e   :  { %16749 = vst [vmem:[#allocation68_spill] sm:$0xff] %v12724_v56  ;;  %16750 = vst [vmem:[#allocation69_spill] sm:$0xff] %v12729_v57  ;;  %v12739_v59 = vld [vmem:[%s16476_s9 + $0x1d8] sm:$0xff]  ;;  %v12744_v60 = vld [vmem:[%s16476_s9 + $0x1e0] sm:$0xff] }
  0x1f   :  { %16751 = vst [vmem:[#allocation70_spill] sm:$0xff] %v12734_v58  ;;  %16752 = vst [vmem:[#allocation71_spill] sm:$0xff] %v12739_v59  ;;  %v12749_v61 = vld [vmem:[%s16476_s9 + $0x1e8] sm:$0xff]  ;;  %v12754_v62 = vld [vmem:[%s16476_s9 + $0x1f0] sm:$0xff] }
  0x20   :  { %16753 = vst [vmem:[#allocation72_spill] sm:$0xff] %v12744_v60  ;;  %16754 = vst [vmem:[#allocation73_spill] sm:$0xff] %v12749_v61  ;;  %v12759_v63 = vld [vmem:[%s16476_s9 + $0x1f8] sm:$0xff] }
  0x21   :  { %16755 = vst [vmem:[#allocation74_spill] sm:$0xff] %v12754_v62  ;;  %16756 = vst [vmem:[#allocation75_spill] sm:$0xff] %v12759_v63 }
  0x22   :  { %207 = vsyncadd [#allocation9], 8192  ;;  %v12764_v30 = vld [vmem:[%s16469_s2 + $0xe4] ss:$16 sps:$4 sm:$0xff]   ;;  %v12769_v31 = vld [vmem:[%s16469_s2 + $0xec] ss:$16 sps:$4 sm:$0xff]   ;;  %v16757_v43 = vlaneseq }
  0x23   :  { %v12774_v62 = vld [vmem:[%s16469_s2 + $0xe0] ss:$16 sps:$4 sm:$0xff]   ;;  %v12779_v63 = vld [vmem:[%s16469_s2 + $0xe8] ss:$16 sps:$4 sm:$0xff]   ;;  %618 = vmatprep.subr.bf16.mxu0 %v12764_v30  ;;  %v12785_v26 = vld [vmem:[%s16469_s2 + $0xc4] ss:$16 sps:$4 sm:$0xff]   ;;  %659 = vmatprep.subr.bf16.mxu1 %v12769_v31 }
  0x24   :  { %619 = vmatpush1.bf16.msra.mxu0 %v12774_v62  ;;  %v12792_v27 = vld [vmem:[%s16469_s2 + $0xcc] ss:$16 sps:$4 sm:$0xff]   ;;  %660 = vmatpush1.bf16.msra.mxu1 %v12779_v63  ;;  %v12799_v58 = vld [vmem:[%s16469_s2 + $0xc0] ss:$16 sps:$4 sm:$0xff]   ;;  %v12804_v59 = vld [vmem:[%s16469_s2 + $0xc8] ss:$16 sps:$4 sm:$0xff]  }
  0x25   :  { %620 = vmatprep.subr.bf16.mxu0 %v12785_v26  ;;  %661 = vmatprep.subr.bf16.mxu1 %v12792_v27  ;;  %v12810_v28 = vld [vmem:[%s16469_s2 + $0xa4] ss:$16 sps:$4 sm:$0xff]   ;;  %v12815_v22 = vld [vmem:[%s16469_s2 + $0xac] ss:$16 sps:$4 sm:$0xff]   ;;  %v12820_v29 = vld [vmem:[%s16469_s2 + $0xa0] ss:$16 sps:$4 sm:$0xff]  }
  0x26   :  { %v12826_v23 = vld [vmem:[%s16469_s2 + $0xa8] ss:$16 sps:$4 sm:$0xff]   ;;  %v12833_v60 = vld [vmem:[%s16469_s2 + $0x84] ss:$16 sps:$4 sm:$0xff]   ;;  %v12839_v54 = vld [vmem:[%s16469_s2 + $0x8c] ss:$16 sps:$4 sm:$0xff]  }
  0x27   :  { %v12845_v61 = vld [vmem:[%s16469_s2 + $0x80] ss:$16 sps:$4 sm:$0xff]   ;;  %v12852_v55 = vld [vmem:[%s16469_s2 + $0x88] ss:$16 sps:$4 sm:$0xff]   ;;  %v12857_v24 = vld [vmem:[%s16469_s2 + $0x64] ss:$16 sps:$4 sm:$0xff]  }
  0x28   :  { %621 = vmatpush1.bf16.msra.mxu0 %v12799_v58  ;;  %662 = vmatpush1.bf16.msra.mxu1 %v12804_v59  ;;  %v12863_v18 = vld [vmem:[%s16469_s2 + $0x6c] ss:$16 sps:$4 sm:$0xff]   ;;  %v12868_v25 = vld [vmem:[%s16469_s2 + $0x60] ss:$16 sps:$4 sm:$0xff]   ;;  %v12874_v19 = vld [vmem:[%s16469_s2 + $0x68] ss:$16 sps:$4 sm:$0xff]  }
  0x29   :  { %622 = vmatprep.subr.bf16.mxu0 %v12810_v28  ;;  %663 = vmatprep.subr.bf16.mxu1 %v12815_v22  ;;  %v12881_v56 = vld [vmem:[%s16469_s2 + $0x44] ss:$16 sps:$4 sm:$0xff]   ;;  %v12887_v50 = vld [vmem:[%s16469_s2 + $0x4c] ss:$16 sps:$4 sm:$0xff]   ;;  %v12893_v57 = vld [vmem:[%s16469_s2 + $0x40] ss:$16 sps:$4 sm:$0xff]  }
  0x2a   :  { %v12900_v51 = vld [vmem:[%s16469_s2 + $0x48] ss:$16 sps:$4 sm:$0xff]   ;;  %v12905_v20 = vld [vmem:[%s16469_s2 + $0x24] ss:$16 sps:$4 sm:$0xff]   ;;  %v12911_v14 = vld [vmem:[%s16469_s2 + $0x2c] ss:$16 sps:$4 sm:$0xff]  }
  0x2b   :  { %v12916_v21 = vld [vmem:[%s16469_s2 + $0x20] ss:$16 sps:$4 sm:$0xff]   ;;  %v12922_v15 = vld [vmem:[%s16469_s2 + $0x28] ss:$16 sps:$4 sm:$0xff]   ;;  %v12929_v52 = vld [vmem:[%s16469_s2 + $0x4] ss:$16 sps:$4 sm:$0xff]  }
  0x2c   :  { %623 = vmatpush1.bf16.msra.mxu0 %v12820_v29  ;;  %664 = vmatpush1.bf16.msra.mxu1 %v12826_v23  ;;  %v12935_v46 = vld [vmem:[%s16469_s2 + $0xc] ss:$16 sps:$4 sm:$0xff]   ;;  %v12941_v53 = vld [vmem:[%s16469_s2] ss:$16 sps:$4 sm:$0xff]   ;;  %v12948_v47 = vld [vmem:[%s16469_s2 + $0x8] ss:$16 sps:$4 sm:$0xff]  }
  0x2d   :  { %624 = vmatprep.subr.bf16.mxu0 %v12833_v60  ;;  %665 = vmatprep.subr.bf16.mxu1 %v12839_v54  ;;  %v12953_v16 = vld [vmem:[%s16469_s2 + $0x1e4] ss:$16 sps:$4 sm:$0xff]   ;;  %v12959_v10 = vld [vmem:[%s16469_s2 + $0x1ec] ss:$16 sps:$4 sm:$0xff]   ;;  %v12964_v17 = vld [vmem:[%s16469_s2 + $0x1e0] ss:$16 sps:$4 sm:$0xff]  }
  0x2e   :  { %v12970_v11 = vld [vmem:[%s16469_s2 + $0x1e8] ss:$16 sps:$4 sm:$0xff]   ;;  %v12977_v42 = vld [vmem:[%s16469_s2 + $0x1c4] ss:$16 sps:$4 sm:$0xff]   ;;  %v12983_v49 = vld [vmem:[%s16469_s2 + $0x1cc] ss:$16 sps:$4 sm:$0xff]  }
  0x2f   :  { %v12989_v48 = vld [vmem:[%s16469_s2 + $0x1c0] ss:$16 sps:$4 sm:$0xff]   ;;  %v12992_v12 = vshrl.u32 %v16757_v43, 7  ;;  %v12999_v6 = vld [vmem:[%s16469_s2 + $0x1c8] ss:$16 sps:$4 sm:$0xff]   ;;  %vm700_vm0 = vcmask 516096  }
  0x30   :  { %625 = vmatpush1.bf16.msra.mxu0 %v12845_v61  ;;  %666 = vmatpush1.bf16.msra.mxu1 %v12852_v55  ;;  %v13004_v13 = vld [vmem:[%s16469_s2 + $0x1a4] ss:$16 sps:$4 sm:$0xff]   ;;  %v13010_v43 = vld [vmem:[%s16469_s2 + $0x1ac] ss:$16 sps:$4 sm:$0xff]   ;;  %v13015_v7 = vld [vmem:[%s16469_s2 + $0x1a0] ss:$16 sps:$4 sm:$0xff]  }
  0x31   :  { %626 = vmatprep.subr.bf16.mxu0 %v12857_v24  ;;  %667 = vmatprep.subr.bf16.mxu1 %v12863_v18  ;;  %16758 = vst [vmem:[#allocation76_spill] sm:$0xff] %v12992_v12  ;;  %v13021_v44 = vld [vmem:[%s16469_s2 + $0x1a8] ss:$16 sps:$4 sm:$0xff]   ;;  %v216_v38 = vsub.s32 1, %v12992_v12  ;;  %v220_v45 = vsub.s32 2, %v12992_v12  ;;  %v212_v5 = vsub.s32 0, %v12992_v12 }
  0x32   :  { %v13030_v39 = vld [vmem:[%s16469_s2 + $0x184] ss:$16 sps:$4 sm:$0xff]   ;;  %v13036_v8 = vld [vmem:[%s16469_s2 + $0x18c] ss:$16 sps:$4 sm:$0xff]   ;;  %v13041_v2 = vld [vmem:[%s16469_s2 + $0x180] ss:$16 sps:$4 sm:$0xff]  }
  0x33   :  { %v13046_v9 = vld [vmem:[%s16469_s2 + $0x188] ss:$16 sps:$4 sm:$0xff]   ;;  %v13051_v3 = vld [vmem:[%s16469_s2 + $0x164] ss:$16 sps:$4 sm:$0xff]   ;;  %v208_v40 = vld [vmem:[%s16467_s0] sm:$0xf] }
  0x34   :  { %627 = vmatpush1.bf16.msra.mxu0 %v12868_v25  ;;  %668 = vmatpush1.bf16.msra.mxu1 %v12874_v19  ;;  %v13060_v34 = vld [vmem:[%s16469_s2 + $0x16c] ss:$16 sps:$4 sm:$0xff]   ;;  %v217_v41 = vrot.slane %v208_v40, %v216_v38  ;;  %v13062_v35 = vrot.slane %v208_v40, %v220_v45  ;;  %v13070_v4 = vld [vmem:[%s16469_s2 + $0x160] ss:$16 sps:$4 sm:$0xff]   ;;  %v224_v1 = vsub.s32 3, %v12992_v12  ;;  %vm811_vm1 = vcmask 1040896  }
  0x35   :  { %628 = vmatprep.subr.bf16.mxu0 %v12881_v56  ;;  %669 = vmatprep.subr.bf16.mxu1 %v12887_v50  ;;  %v13077_v38 = vld [vmem:[%s16469_s2 + $0x168] ss:$16 sps:$4 sm:$0xff]   ;;  %v13082_v45 = vld [vmem:[%s16469_s2 + $0x144] ss:$16 sps:$4 sm:$0xff]   ;;  %v13096_v12 = vld [vmem:[%s16469_s2 + $0x140] ss:$16 sps:$4 sm:$0xff]  }
  0x36   :  { %16759 = vst [vmem:[#allocation77_spill] sm:$0xff] %v13062_v35  ;;  %v231_v0 = vpack.c.bf16 %v217_v41, %v217_v41  ;;  %16760 = vst [vmem:[#allocation78_spill] sm:$0xff] %v13077_v38  ;;  %v13088_v41 = vld [vmem:[%s16469_s2 + $0x14c] ss:$16 sps:$4 sm:$0xff]   ;;  %v13101_v36 = vld [vmem:[%s16469_s2 + $0x148] ss:$16 sps:$4 sm:$0xff]  }
  0x37   :  { %16761 = vst [vmem:[#allocation79_spill] sm:$0xff] %v13082_v45  ;;  %16762 = vst [vmem:[#allocation80_spill] sm:$0xff] %v13088_v41  ;;  %v13106_v32 = vld [vmem:[%s16469_s2 + $0x124] ss:$16 sps:$4 sm:$0xff]   ;;  %v13112_v37 = vld [vmem:[%s16469_s2 + $0x12c] ss:$16 sps:$4 sm:$0xff]  }
  0x38   :  { %629 = vmatpush1.bf16.msra.mxu0 %v12893_v57  ;;  %670 = vmatpush1.bf16.msra.mxu1 %v12900_v51  ;;  %16763 = vst [vmem:[#allocation81_spill] sm:$0xff] %v13096_v12  ;;  %16764 = vst [vmem:[#allocation82_spill] sm:$0xff] %v13101_v36  ;;  %v13125_v33 = vld [vmem:[%s16469_s2 + $0x128] ss:$16 sps:$4 sm:$0xff]   ;;  %v13130_v35 = vld [vmem:[%s16469_s2 + $0x104] ss:$16 sps:$4 sm:$0xff]  }
  0x39   :  { %630 = vmatprep.subr.bf16.mxu0 %v12905_v20  ;;  %671 = vmatprep.subr.bf16.mxu1 %v12911_v14  ;;  %16765 = vst [vmem:[#allocation83_spill] sm:$0xff] %v13106_v32  ;;  %16766 = vst [vmem:[#allocation84_spill] sm:$0xff] %v13112_v37  ;;  %vm879_vm3 = vcmask 523264   ;;  %vm926_vm4 = vcmask 125952   ;;  %s12340_s28 = smov 16   ;;  %s12341_s29 = smov 80  }
  0x3a   :  { %650 = vmatprep.mubr.bf16.mxu0 %v231_v0  ;;  %691 = vmatprep.mubr.bf16.mxu1 %v231_v0  ;;  %v13120_v0 = vld [vmem:[%s16469_s2 + $0x120] ss:$16 sps:$4 sm:$0xff]   ;;  %s12342_s30 = smov 48   ;;  %s12343_s9 = smov 96   ;;  %vm12346_vm5 = vmmov 0   ;;  %vm1015_vm6 = vcmask 257152  }
  0x3b   :  { %s12345_s0 = smov 112   ;;  %vm1108_vm7 = vcmask 1043456   ;;  %vm1104_vm8 = vcmask 588800   ;;  %vm1155_vm9 = vcmask 261120   ;;  %vm1230_vm12 = vcmask 130048   ;;  %s12350_s13 = smov 116  }
  0x3c   :  { %631 = vmatpush1.bf16.msra.mxu0 %v12916_v21  ;;  %672 = vmatpush1.bf16.msra.mxu1 %v12922_v15  ;;  %vm1400_vm15 = vcmask 11264   ;;  %s12351_s14 = smov 102   ;;  %s12352_s15 = smov 118  }
  0x3d   :  { %632 = vmatprep.subr.bf16.mxu0 %v12929_v52  ;;  %673 = vmatprep.subr.bf16.mxu1 %v12935_v46  ;;  %s12353_s16 = smov 104   ;;  %s12354_s17 = smov 120  }
  0x3e   :  { %s12355_s18 = smov 106   ;;  %s12356_s19 = smov 122  }
  0x3f   :  { %s12357_s20 = smov 108   ;;  %s12358_s21 = smov 124  }
  0x40   :  { %633 = vmatpush1.bf16.msra.mxu0 %v12941_v53  ;;  %674 = vmatpush1.bf16.msra.mxu1 %v12948_v47  ;;  %s12359_s22 = smov 110   ;;  %s12360_s23 = smov 126  }
  0x41   :  { %634 = vmatprep.subr.bf16.mxu0 %v12953_v16  ;;  %675 = vmatprep.subr.bf16.mxu1 %v12959_v10  ;;  %s12362_s25 = smov 4  }
  0x44   :  { %635 = vmatpush2.bf16.msra.mxu0 %v12964_v17  ;;  %676 = vmatpush2.bf16.msra.mxu1 %v12970_v11 }
  0x45   :  { %636 = vmatprep.subr.bf16.mxu0 %v12977_v42  ;;  %677 = vmatprep.subr.bf16.mxu1 %v12983_v49 }
  0x48   :  { %637 = vmatpush2.bf16.msra.mxu0 %v12989_v48  ;;  %678 = vmatpush2.bf16.msra.mxu1 %v12999_v6 }
  0x49   :  { %638 = vmatprep.subr.bf16.mxu0 %v13004_v13  ;;  %679 = vmatprep.subr.bf16.mxu1 %v13010_v43 }
  0x4c   :  { %639 = vmatpush2.bf16.msra.mxu0 %v13015_v7  ;;  %680 = vmatpush2.bf16.msra.mxu1 %v13021_v44 }
  0x4d   :  { %640 = vmatprep.subr.bf16.mxu0 %v13030_v39  ;;  %681 = vmatprep.subr.bf16.mxu1 %v13036_v8 }
  0x50   :  { %641 = vmatpush2.bf16.msra.mxu0 %v13041_v2  ;;  %682 = vmatpush2.bf16.msra.mxu1 %v13046_v9 }
  0x51   :  { %642 = vmatprep.subr.bf16.mxu0 %v13051_v3  ;;  %683 = vmatprep.subr.bf16.mxu1 %v13060_v34 }
  0x54   :  { %643 = vmatpush2.bf16.msra.mxu0 %v13070_v4  ;;  %684 = vmatpush2.bf16.msra.mxu1 %v13077_v38  ;;  %v213_v38 = vrot.slane %v208_v40, %v212_v5  ;;  %v16768_v5 = vld [vmem:[#allocation79_spill] sm:$0xff] }
  0x55   :  { %644 = vmatprep.subr.bf16.mxu0 %v13082_v45  ;;  %685 = vmatprep.subr.bf16.mxu1 %v13088_v41  ;;  %v13136_v41 = vld [vmem:[%s16469_s2 + $0x10c] ss:$16 sps:$4 sm:$0xff]   ;;  %v13144_v45 = vld [vmem:[%s16469_s2 + $0x100] ss:$16 sps:$4 sm:$0xff]  }
  0x58   :  { %645 = vmatpush2.bf16.msra.mxu0 %v13096_v12  ;;  %686 = vmatpush2.bf16.msra.mxu1 %v13101_v36  ;;  %v13149_v12 = vld [vmem:[%s16469_s2 + $0x108] ss:$16 sps:$4 sm:$0xff]   ;;  %s12336_s2 = smov 64  }
  0x59   :  { %646 = vmatprep.subr.bf16.mxu0 %v13106_v32  ;;  %687 = vmatprep.subr.bf16.mxu1 %v13112_v37  ;;  %v225_v37 = vrot.slane %v208_v40, %v224_v1  ;;  %v230_v32 = vpack.c.bf16 %v213_v38, %v213_v38  ;;  %v16767_v1 = vld [vmem:[#allocation78_spill] sm:$0xff] }
  0x5b   :  { %v233_v36 = vpack.c.bf16 %v225_v37, %v225_v37 }
  0x5c   :  { %647 = vmatpush2.bf16.msra.mxu0 %v13120_v0  ;;  %688 = vmatpush2.bf16.msra.mxu1 %v13125_v33 }
  0x5d   :  { %648 = vmatprep.subr.bf16.mxu0 %v13130_v35  ;;  %689 = vmatprep.subr.bf16.mxu1 %v13136_v41 }
  0x60   :  { %649 = vmatpush2.bf16.msra.mxu0 %v13144_v45  ;;  %690 = vmatpush2.bf16.msra.mxu1 %v13149_v12 }
  0x61   :  { %725 = vmatprep.subr.bf16.mxu0 %v12764_v30  ;;  %766 = vmatprep.subr.bf16.mxu1 %v12769_v31 }
  0x63   :  { %651 = vmatmul.mubr.bf16.vlgmr.msra.gmra.mxu0 %v230_v32  ;;  %692 = vmatmul.mubr.bf16.vlgmr.msra.gmra.mxu1 %v230_v32 }
  0x64   :  { %726 = vmatpush1.bf16.msra.mxu0 %v12774_v62  ;;  %767 = vmatpush1.bf16.msra.mxu1 %v12779_v63 }
  0x65   :  { %727 = vmatprep.subr.bf16.mxu0 %v12785_v26  ;;  %768 = vmatprep.subr.bf16.mxu1 %v12792_v27  ;;  %v833_v26 = vld [vmem:[%s16477_s10] sm:$0xff] }
  0x66   :  { %757 = vmatprep.mubr.bf16.mxu0 %v233_v36  ;;  %798 = vmatprep.mubr.bf16.mxu1 %v233_v36 }
  0x68   :  { %728 = vmatpush1.bf16.msra.mxu0 %v12799_v58  ;;  %769 = vmatpush1.bf16.msra.mxu1 %v12804_v59 }
  0x69   :  { %729 = vmatprep.subr.bf16.mxu0 %v12810_v28  ;;  %770 = vmatprep.subr.bf16.mxu1 %v12815_v22  ;;  %v16557_v28 = vmov 1  }
  0x6a   :  { %12006 = vset.pattern.permute.xlu1 %v16557_v28 }
  0x6c   :  { %730 = vmatpush1.bf16.msra.mxu0 %v12820_v29  ;;  %771 = vmatpush1.bf16.msra.mxu1 %v12826_v23  ;;  %v16553_v29 = vmov 2  }
  0x6d   :  { %731 = vmatprep.subr.bf16.mxu0 %v12833_v60  ;;  %772 = vmatprep.subr.bf16.mxu1 %v12839_v54 }
  0x70   :  { %732 = vmatpush1.bf16.msra.mxu0 %v12845_v61  ;;  %773 = vmatpush1.bf16.msra.mxu1 %v12852_v55 }
  0x71   :  { %733 = vmatprep.subr.bf16.mxu0 %v12857_v24  ;;  %774 = vmatprep.subr.bf16.mxu1 %v12863_v18 }
  0x74   :  { %734 = vmatpush1.bf16.msra.mxu0 %v12868_v25  ;;  %775 = vmatpush1.bf16.msra.mxu1 %v12874_v19 }
  0x75   :  { %735 = vmatprep.subr.bf16.mxu0 %v12881_v56  ;;  %776 = vmatprep.subr.bf16.mxu1 %v12887_v50  ;;  %v868_v50 = vld [vmem:[%s16470_s3 + $0x8] sm:$0xff] }
  0x76   :  { %v872_v55 = vunpack.c.l.s8.bf16 %v868_v50 }
  0x78   :  { %736 = vmatpush1.bf16.msra.mxu0 %v12893_v57  ;;  %777 = vmatpush1.bf16.msra.mxu1 %v12900_v51 }
  0x79   :  { %737 = vmatprep.subr.bf16.mxu0 %v12905_v20  ;;  %778 = vmatprep.subr.bf16.mxu1 %v12911_v14 }
  0x7c   :  { %738 = vmatpush1.bf16.msra.mxu0 %v12916_v21  ;;  %779 = vmatpush1.bf16.msra.mxu1 %v12922_v15 }
  0x7d   :  { %739 = vmatprep.subr.bf16.mxu0 %v12929_v52  ;;  %780 = vmatprep.subr.bf16.mxu1 %v12935_v46  ;;  %v869_v46 = vld [vmem:[%s16470_s3 + $0x10] sm:$0xff]  ;;  %v874_v52 = vunpack.c.h.s8.bf16 %v868_v50  ;;  %v12130_v50 = vld [vmem:[%s16471_s4] ss:$8 sps:$4 sm:$0xff]  }
  0x7e   :  { %v875_v51 = vunpack.c.l.s8.bf16 %v869_v46 }
  0x80   :  { %740 = vmatpush1.bf16.msra.mxu0 %v12941_v53  ;;  %781 = vmatpush1.bf16.msra.mxu1 %v12948_v47  ;;  %v867_v53 = vld [vmem:[%s16470_s3] sm:$0xff] }
  0x81   :  { %741 = vmatprep.subr.bf16.mxu0 %v12953_v16  ;;  %782 = vmatprep.subr.bf16.mxu1 %v12959_v10  ;;  %v16771_v10 = vld [vmem:[#allocation82_spill] sm:$0xff]  ;;  %v873_v54 = vunpack.c.h.s8.bf16 %v867_v53  ;;  %v871_v56 = vunpack.c.l.s8.bf16 %v867_v53 }
  0x84   :  { %742 = vmatpush2.bf16.msra.mxu0 %v12964_v17  ;;  %783 = vmatpush2.bf16.msra.mxu1 %v12970_v11 }
  0x85   :  { %743 = vmatprep.subr.bf16.mxu0 %v12977_v42  ;;  %784 = vmatprep.subr.bf16.mxu1 %v12983_v49 }
  0x88   :  { %744 = vmatpush2.bf16.msra.mxu0 %v12989_v48  ;;  %785 = vmatpush2.bf16.msra.mxu1 %v12999_v6  ;;  %v16769_v6 = vld [vmem:[#allocation80_spill] sm:$0xff]  ;;  %v877_v48 = vunpack.c.h.s8.bf16 %v869_v46 }
  0x89   :  { %745 = vmatprep.subr.bf16.mxu0 %v13004_v13  ;;  %786 = vmatprep.subr.bf16.mxu1 %v13010_v43 }
  0x8c   :  { %746 = vmatpush2.bf16.msra.mxu0 %v13015_v7  ;;  %787 = vmatpush2.bf16.msra.mxu1 %v13021_v44  ;;  %v16770_v7 = vld [vmem:[#allocation81_spill] sm:$0xff] }
  0x8d   :  { %747 = vmatprep.subr.bf16.mxu0 %v13030_v39  ;;  %788 = vmatprep.subr.bf16.mxu1 %v13036_v8  ;;  %v16772_v8 = vld [vmem:[#allocation83_spill] sm:$0xff]  ;;  %v870_v44 = vld [vmem:[%s16470_s3 + $0x18] sm:$0xff]  ;;  %s12339_s3 = smov 32  }
  0x8e   :  { %v878_v47 = vunpack.c.h.s8.bf16 %v870_v44  ;;  %v876_v49 = vunpack.c.l.s8.bf16 %v870_v44 }
  0x90   :  { %748 = vmatpush2.bf16.msra.mxu0 %v13041_v2  ;;  %789 = vmatpush2.bf16.msra.mxu1 %v13046_v9  ;;  %v16773_v2 = vld [vmem:[#allocation84_spill] sm:$0xff]  ;;  %v16559_v9 = vmov 0  }
  0x91   :  { %749 = vmatprep.subr.bf16.mxu0 %v13051_v3  ;;  %790 = vmatprep.subr.bf16.mxu1 %v13060_v34  ;;  %v16774_v3 = vld [vmem:[#allocation77_spill] sm:$0xff] }
  0x92   :  { %12005 = vset.pattern.permute.xlu0 %v16559_v9 }
  0x94   :  { %750 = vmatpush2.bf16.msra.mxu0 %v13070_v4  ;;  %791 = vmatpush2.bf16.msra.mxu1 %v16767_v1  ;;  %v232_v4 = vpack.c.bf16 %v16774_v3, %v16774_v3 }
  0x95   :  { %751 = vmatprep.subr.bf16.mxu0 %v16768_v5  ;;  %792 = vmatprep.subr.bf16.mxu1 %v16769_v6 }
  0x98   :  { %752 = vmatpush2.bf16.msra.mxu0 %v16770_v7  ;;  %793 = vmatpush2.bf16.msra.mxu1 %v16771_v10 }
  0x99   :  { %753 = vmatprep.subr.bf16.mxu0 %v16772_v8  ;;  %794 = vmatprep.subr.bf16.mxu1 %v16773_v2 }
  0x9c   :  { %754 = vmatpush2.bf16.msra.mxu0 %v13120_v0  ;;  %795 = vmatpush2.bf16.msra.mxu1 %v13125_v33 }
  0x9d   :  { %755 = vmatprep.subr.bf16.mxu0 %v13130_v35  ;;  %796 = vmatprep.subr.bf16.mxu1 %v13136_v41 }
  0xa0   :  { %756 = vmatpush2.bf16.msra.mxu0 %v13144_v45  ;;  %797 = vmatpush2.bf16.msra.mxu1 %v13149_v12 }
  0xa1   :  { %891 = vmatprep.subr.bf16.mxu0 %v878_v47  ;;  %974 = vmatprep.subr.bf16.mxu1 %v878_v47 }
  0xa3   :  { %758 = vmatmul.mubr.bf16.vlgmr.msra.gmra.mxu0 %v232_v4  ;;  %799 = vmatmul.mubr.bf16.vlgmr.msra.gmra.mxu1 %v232_v4 }
  0xa4   :  { %915 = vmatprep.mubr.bf16.mxu0 %v16559_v9  ;;  %998 = vmatprep.mubr.bf16.mxu1 %v16559_v9 }
  0xa5   :  { %892 = vmatpush1.bf16.msra.mxu0 %v877_v48  ;;  %975 = vmatpush1.bf16.msra.mxu1 %v877_v48 }
  0xa6   :  { %893 = vmatprep.subr.bf16.mxu0 %v876_v49  ;;  %976 = vmatprep.subr.bf16.mxu1 %v876_v49 }
  0xa9   :  { %894 = vmatpush1.bf16.msra.mxu0 %v875_v51  ;;  %977 = vmatpush1.bf16.msra.mxu1 %v875_v51 }
  0xaa   :  { %895 = vmatprep.subr.bf16.mxu0 %v874_v52  ;;  %978 = vmatprep.subr.bf16.mxu1 %v874_v52 }
  0xad   :  { %896 = vmatpush1.bf16.msra.mxu0 %v873_v54  ;;  %979 = vmatpush1.bf16.msra.mxu1 %v873_v54 }
  0xae   :  { %897 = vmatprep.subr.bf16.mxu0 %v872_v55  ;;  %980 = vmatprep.subr.bf16.mxu1 %v872_v55 }
  0xb1   :  { %898 = vmatpush1.bf16.msra.mxu0 %v871_v56  ;;  %981 = vmatpush1.bf16.msra.mxu1 %v871_v56 }
 0x123   :  { %v652_v11 = vpop.f32.mrf.mxu0  ;;  %v693_v13 = vpop.f32.mrf.mxu1 }
 0x124   :  { %701 = vst.msk [vmem:[#allocation2] sm:$0x1] %vm700_vm0, %v652_v11  ;;  %703 = vrot.lane.b32.xlu0 %v652_v11, %s12336_s2  ;;  %713 = vst.msk [vmem:[#allocation2 + $0x4] sm:$0x1] %vm700_vm0, %v693_v13  ;;  %715 = vrot.lane.b32.xlu1 %v693_v13, %s12336_s2 }
 0x125   :  { %v654_v12 = vpop.f32.mrf.mxu0  ;;  %v695_v14 = vpop.f32.mrf.mxu1 }
 0x126   :  { %707 = vst.msk [vmem:[#allocation2 + $0x2] sm:$0x1] %vm700_vm0, %v654_v12  ;;  %719 = vst.msk [vmem:[#allocation2 + $0x6] sm:$0x1] %vm700_vm0, %v695_v14 }
 0x127   :  { %v656_v15 = vpop.f32.mrf.mxu0  ;;  %v697_v16 = vpop.f32.mrf.mxu1 }
 0x128   :  { %709 = vrot.lane.b32.xlu0 %v654_v12, %s12336_s2  ;;  %721 = vrot.lane.b32.xlu1 %v695_v14, %s12336_s2 }
 0x129   :  { %v657_v17 = vpop.f32.mrf.mxu0  ;;  %v698_v18 = vpop.f32.mrf.mxu1 }
 0x163   :  { %v759_v19 = vpop.f32.mrf.mxu0  ;;  %v800_v20 = vpop.f32.mrf.mxu1 }
 0x164   :  { %808 = vrot.lane.b32.xlu0 %v759_v19, %s12336_s2 }
 0x165   :  { %v761_v21 = vpop.f32.mrf.mxu0  ;;  %v802_v22 = vpop.f32.mrf.mxu1 }
 0x166   :  { %815 = vrot.lane.b32.xlu1 %v761_v21, %s12336_s2 }
 0x167   :  { %v763_v23 = vpop.f32.mrf.mxu0  ;;  %v804_v24 = vpop.f32.mrf.mxu1 }
 0x168   :  { %821 = vrot.lane.b32.xlu0 %v800_v20, %s12336_s2 }
 0x169   :  { %v764_v25 = vpop.f32.mrf.mxu0  ;;  %v805_v27 = vpop.f32.mrf.mxu1 }
 0x16a   :  { %827 = vrot.lane.b32.xlu1 %v802_v22, %s12336_s2  ;;  %v13292_v25 = vld [vmem:[%s16477_s10 + $0x8] sm:$0xff] }
 0x16c   :  { %836 = vperm.xlu0 %12005, %v833_v26  }
 0x170   :  { %12007 = vset.pattern.permute.xlu0 %v16553_v29 }
 0x196   :  { %v704_v30 = vpop.permute.xlu0 %703  ;;  %v716_v31 = vpop.permute.xlu1 %715 }
 0x197   :  { %706 = vst.msk [vmem:[#allocation2 + $0x1] sm:$0x1] %vm700_vm0, %v704_v30  ;;  %718 = vst.msk [vmem:[#allocation2 + $0x5] sm:$0x1] %vm700_vm0, %v716_v31 }
 0x198   :  { %813 = vst.msk [vmem:[#allocation2 + $0x1] sm:$0x1] %vm811_vm1, %v759_v19  ;;  %825 = vst.msk [vmem:[#allocation2 + $0x5] sm:$0x1] %vm811_vm1, %v800_v20 }
 0x19a   :  { %v710_v32 = vpop.permute.xlu0 %709  ;;  %v722_v33 = vpop.permute.xlu1 %721 }
 0x19b   :  { %712 = vst.msk [vmem:[#allocation2 + $0x3] sm:$0x1] %vm700_vm0, %v710_v32  ;;  %724 = vst.msk [vmem:[#allocation2 + $0x7] sm:$0x1] %vm700_vm0, %v722_v33  ;;  %vm1718_vm0 = vcmask 15360  }
 0x19c   :  { %819 = vst.msk [vmem:[#allocation2 + $0x3] sm:$0x1] %vm811_vm1, %v761_v21  ;;  %831 = vst.msk [vmem:[#allocation2 + $0x7] sm:$0x1] %vm811_vm1, %v802_v22  ;;  %v16555_v22 = vmov 0.0  }
 0x19d   :  { %11781 = vmatprep.subr.bf16.mxu0 %v16555_v22  ;;  %11795 = vmatprep.subr.bf16.mxu1 %v16555_v22 }
 0x1d6   :  { %v809_v34 = vpop.permute.xlu0 %808 }
 0x1d7   :  { %812 = vst.msk [vmem:[#allocation2] sm:$0x1] %vm811_vm1, %v809_v34 }
 0x1d8   :  { %v816_v35 = vpop.permute.xlu1 %815 }
 0x1d9   :  { %818 = vst.msk [vmem:[#allocation2 + $0x2] sm:$0x1] %vm811_vm1, %v816_v35 }
 0x1da   :  { %v822_v36 = vpop.permute.xlu0 %821 }
 0x1db   :  { %824 = vst.msk [vmem:[#allocation2 + $0x4] sm:$0x1] %vm811_vm1, %v822_v36 }
 0x1dc   :  { %v828_v37 = vpop.permute.xlu1 %827 }
 0x1dd   :  { %830 = vst.msk [vmem:[#allocation2 + $0x6] sm:$0x1] %vm811_vm1, %v828_v37 }
 0x1e4   :  { %v832_v40 = vld [vmem:[#allocation2] sm:$0xff] }
 0x1e7   :  { %v837_v39 = vpop.permute.xlu0 %836 }
 0x1e8   :  { %v839_v42 = vadd.f32 %v837_v39, %v832_v40 }
 0x1ea   :  { %841 = vadd.xlane.f32.xlu1 %v839_v42  ;;  %v840_v43 = vmul.f32 %v839_v42, %v839_v42 }
 0x1ec   :  { %843 = vadd.xlane.f32.xlu0 %v840_v43 }
 0x1fb   :  { %851 = vperm.xlu1 %12006, %v833_v26  }
 0x1ff   :  { %12009 = vset.pattern.permute.xlu1 %v16559_v9 }
 0x202   :  { %859 = vperm.xlu0 %12007, %v833_v26   ;;  %v13299_v26 = vld [vmem:[%s16477_s10 + $0x10] sm:$0xff] }
 0x206   :  { %12008 = vset.pattern.permute.xlu0 %v16559_v9 }
 0x273   :  { %v842_v57 = vpop.xlane.xlu1 %841 }
 0x274   :  { %v845_v58 = vmul.f32 0.0078125, %v842_v57 }
 0x275   :  { %v844_v59 = vpop.xlane.xlu0 %843 }
 0x276   :  { %v847_v60 = vmul.f32 %v845_v58, %v845_v58  ;;  %v846_v61 = vmul.f32 0.0078125, %v844_v59  ;;  %v849_v38 = vsub.f32 %v839_v42, %v845_v58 }
 0x277   :  { %v852_v45 = vpop.permute.xlu1 %851 }
 0x278   :  { %v848_v62 = vsub.f32 %v846_v61, %v847_v60  ;;  %v854_v41 = vmul.f32 %v852_v45, %v849_v38  ;;  %v13341_v45 = vld [vmem:[%s16477_s10 + $0x18] sm:$0xff] }
 0x27a   :  { %v855_v63 = vadd.f32 1e-05, %v848_v62 }
 0x27c   :  { %12297 = vrsqrt.f32 %v855_v63 }
 0x27d   :  { %v860_v1 = vpop.permute.xlu0 %859 }
 0x289   :  { %v12298_v0 = vpop.eup %12297 }
 0x28a   :  { %v857_v5 = vmul.f32 %v12298_v0, %v854_v41  ;;  %v13347_v41 = vld [vmem:[%s16477_s10 + $0x20] sm:$0xff] }
 0x28c   :  { %v862_v6 = vadd.f32 %v860_v1, %v857_v5 }
 0x28e   :  { %vm863_vm2 = vcmp.ge.f32.partialorder %v862_v6, 0.0  ;;  %v864_v7 = vmul.f32 0.2, %v862_v6 }
 0x290   :  { %v865_v10 = vsel %vm863_vm2, %v862_v6, %v864_v7 }
 0x291   :  { %v866_v8 = vpack.c.bf16 %v865_v10, %v865_v10 }
 0x293   :  { %961 = vrot.lane.b32.xlu1 %v866_v8, %s12336_s2  ;;  %10484 = vmatmul.mubr.msk.bf16.vlgmr.msra.gmra.mxu0 %vm879_vm3, %v866_v8 }
 0x294   :  { %11791 = vmatprep.mubr.msk.bf16.mxu0 %vm12346_vm5, %v16555_v22 }
 0x305   :  { %v962_v2 = vpop.permute.xlu1 %961 }
 0x306   :  { %10486 = vmatmul.mubr.msk.bf16.vlgmr.msra.gmra.mxu1 %vm879_vm3, %v962_v2 }
 0x307   :  { %11797 = vmatprep.mubr.msk.bf16.mxu1 %vm12346_vm5, %v16555_v22 }
 0x353   :  { %v917_v3 = vpop.f32.mrf.mxu0 }
 0x354   :  { %v924_v4 = vpack.c.bf16 %v917_v3, %v917_v3 }
 0x355   :  { %v919_v11 = vpop.f32.mrf.mxu0 }
 0x356   :  { %v925_v13 = vpack.c.bf16 %v919_v11, %v919_v11  ;;  %927 = vst.msk [vmem:[#allocation3] sm:$0xf] %vm926_vm4, %v924_v4  ;;  %951 = vrot.lane.b32.xlu1 %v924_v4, %s12339_s3 }
 0x357   :  { %v921_v12 = vpop.f32.mrf.mxu0 }
 0x358   :  { %959 = vst.msk [vmem:[#allocation3 + $0x20] sm:$0xf] %vm926_vm4, %v925_v13 }
 0x359   :  { %v922_v14 = vpop.f32.mrf.mxu0 }
 0x35a   :  { %955 = vrot.lane.b32.xlu1 %v924_v4, %s12340_s28 }
 0x35e   :  { %943 = vrot.lane.b32.xlu1 %v924_v4, %s12336_s2 }
 0x3c6   :  { %v1000_v15 = vpop.f32.mrf.mxu1 }
 0x3c7   :  { %v1007_v16 = vpack.c.bf16 %v1000_v15, %v1000_v15 }
 0x3c8   :  { %v1002_v17 = vpop.f32.mrf.mxu1  ;;  %v952_v18 = vpop.permute.xlu1 %951 }
 0x3c9   :  { %954 = vst.msk [vmem:[#allocation3 + $0x18] sm:$0xf] %vm926_vm4, %v952_v18  ;;  %1026 = vrot.lane.b32.xlu0 %v1007_v16, %s12341_s29  ;;  %1034 = vrot.lane.b32.xlu1 %v1007_v16, %s12342_s30  ;;  %v11198_v23 = vpack.c.bf16 %v1002_v17, %v1002_v17 }
 0x3ca   :  { %v1004_v19 = vpop.f32.mrf.mxu1 }
 0x3cc   :  { %v1005_v20 = vpop.f32.mrf.mxu1  ;;  %v956_v21 = vpop.permute.xlu1 %955 }
 0x3cd   :  { %958 = vst.msk [vmem:[#allocation3 + $0x1c] sm:$0xf] %vm926_vm4, %v956_v21  ;;  %935 = vrot.lane.b32.xlu0 %v924_v4, %s12343_s9  ;;  %1038 = vrot.lane.b32.xlu1 %v1007_v16, %s12339_s3 }
 0x3d0   :  { %v944_v24 = vpop.permute.xlu1 %943 }
 0x3d1   :  { %946 = vst.msk [vmem:[#allocation3 + $0x10] sm:$0xf] %vm926_vm4, %v944_v24  ;;  %1018 = vrot.lane.b32.xlu0 %v1007_v16, %s12345_s0  ;;  %1045 = vrot.lane.b32.xlu1 %v11198_v23, %s12340_s28 }
 0x3d5   :  { %931 = vrot.lane.b32.xlu0 %v924_v4, %s12345_s0  ;;  %947 = vrot.lane.b32.xlu1 %v924_v4, %s12342_s30  ;;  %s12348_s30 = smov 114  }
 0x3d9   :  { %1030 = vrot.lane.b32.xlu1 %v1007_v16, %s12336_s2  ;;  %1064 = vperm.xlu0 %12008, %v13292_v25  }
 0x3dd   :  { %939 = vrot.lane.b32.xlu1 %v924_v4, %s12341_s29  ;;  %12010 = vset.pattern.permute.xlu0 %v16557_v28  ;;  %s12347_s29 = smov 98  }
 0x3e1   :  { %1022 = vrot.lane.b32.xlu1 %v1007_v16, %s12343_s9  ;;  %s12349_s9 = smov 100  }
 0x3e5   :  { %1012 = vrot.lane.b32.xlu1 %v1007_v16, %s12340_s28 }
 0x3e9   :  { %1069 = vperm.xlu1 %12009, %v13299_v26  }
 0x3ed   :  { %12011 = vset.pattern.permute.xlu1 %v16557_v28 }
 0x43b   :  { %v1027_v27 = vpop.permute.xlu0 %1026  ;;  %v1035_v30 = vpop.permute.xlu1 %1034 }
 0x43c   :  { %1029 = vst.msk [vmem:[#allocation3 + $0x10] sm:$0xf] %vm1015_vm6, %v1027_v27  ;;  %1037 = vst.msk [vmem:[#allocation3 + $0x18] sm:$0xf] %vm1015_vm6, %v1035_v30 }
 0x43f   :  { %v936_v31 = vpop.permute.xlu0 %935  ;;  %v1039_v32 = vpop.permute.xlu1 %1038 }
 0x440   :  { %938 = vst.msk [vmem:[#allocation3 + $0x8] sm:$0xf] %vm926_vm4, %v936_v31 }
 0x441   :  { %1041 = vst.msk [vmem:[#allocation3 + $0x1c] sm:$0xf] %vm1015_vm6, %v1039_v32 }
 0x443   :  { %v1019_v33 = vpop.permute.xlu0 %1018  ;;  %v1046_v34 = vpop.permute.xlu1 %1045 }
 0x444   :  { %1021 = vst.msk [vmem:[#allocation3 + $0x8] sm:$0xf] %vm1015_vm6, %v1019_v33  ;;  %1048 = vst.msk [vmem:[#allocation3 + $0x20] sm:$0xf] %vm1015_vm6, %v1046_v34 }
 0x447   :  { %v932_v35 = vpop.permute.xlu0 %931  ;;  %v948_v36 = vpop.permute.xlu1 %947 }
 0x448   :  { %934 = vst.msk [vmem:[#allocation3 + $0x4] sm:$0xf] %vm926_vm4, %v932_v35  ;;  %950 = vst.msk [vmem:[#allocation3 + $0x14] sm:$0xf] %vm926_vm4, %v948_v36  ;;  %v12126_v43 = vld [vmem:[#allocation3 + $0x18] sm:$0xff]  }
 0x449   :  { %1017 = vst.msk [vmem:[#allocation3 + $0x4] sm:$0xf] %vm1015_vm6, %v1007_v16 }
 0x44b   :  { %v1031_v37 = vpop.permute.xlu1 %1030  ;;  %v12125_v39 = vld [vmem:[#allocation3 + $0x20] ss:$0 sps:$4 sm:$0xff]  }
 0x44c   :  { %1033 = vst.msk [vmem:[#allocation3 + $0x14] sm:$0xf] %vm1015_vm6, %v1031_v37  ;;  %v1110_v40 = vsel %vm1108_vm7, %v12125_v39, 0  ;;  %v12131_v37 = vld [vmem:[%s16471_s4 + $0x10] ss:$8 sps:$4 sm:$0xff]  }
 0x44d   :  { %11782 = vmatpush3.bf16.msra.mxu0 %v1110_v40 }
 0x44e   :  { %11783 = vmatprep.subr.bf16.mxu0 %v16555_v22 }
 0x44f   :  { %v940_v42 = vpop.permute.xlu1 %939 }
 0x450   :  { %942 = vst.msk [vmem:[#allocation3 + $0xc] sm:$0xf] %vm926_vm4, %v940_v42  ;;  %vm3062_vm4 = vcmask 64512  }
 0x451   :  { %11784 = vmatpush3.bf16.msra.mxu0 %v12126_v43 }
 0x452   :  { %11785 = vmatprep.subr.bf16.mxu0 %v16555_v22 }
 0x453   :  { %v1023_v44 = vpop.permute.xlu1 %1022  ;;  %v12127_v46 = vld [vmem:[#allocation3 + $0x10] sm:$0xff]  }
 0x454   :  { %1025 = vst.msk [vmem:[#allocation3 + $0xc] sm:$0xf] %vm1015_vm6, %v1023_v44  ;;  %v1065_v51 = vpop.permute.xlu0 %1064 }
 0x455   :  { %11786 = vmatpush3.bf16.msra.mxu0 %v12127_v46 }
 0x456   :  { %11787 = vmatprep.subr.bf16.mxu0 %v16555_v22 }
 0x457   :  { %v1013_v47 = vpop.permute.xlu1 %1012 }
 0x458   :  { %1016 = vst.msk [vmem:[#allocation3] sm:$0xf] %vm1015_vm6, %v1013_v47  ;;  %vm4075_vm6 = vcmask 27664  }
 0x45b   :  { %v12128_v48 = vld [vmem:[#allocation3 + $0x8] sm:$0xff]  }
 0x45c   :  { %11788 = vmatpush3.bf16.msra.mxu0 %v12128_v48 }
 0x45d   :  { %11789 = vmatprep.subr.bf16.mxu0 %v16555_v22 }
 0x45f   :  { %v12129_v49 = vld [vmem:[#allocation3] sm:$0xff]  }
 0x460   :  { %11790 = vmatpush3.bf16.msra.mxu0 %v12129_v49 }
 0x461   :  { %11809 = vmatprep.subr.bf16.mxu0 %v16555_v22 }
 0x463   :  { %11792 = vmatmul.mubr.msk.bf16.vlgmr.msra.gmra.mxu0 %vm1104_vm8, %v12130_v50  ;;  %vm4128_vm8 = vcmask 44064  }
 0x464   :  { %11811 = vmatprep.mubr.msk.bf16.mxu0 %vm12346_vm5, %v16555_v22  ;;  %v1070_v55 = vpop.permute.xlu1 %1069 }
 0x523   :  { %v1146_v52 = vpop.f32.mrf.mxu0 }
 0x524   :  { %v1147_v53 = vadd.f32 %v1146_v52, %v1065_v51 }
 0x525   :  { %v11793_v54 = vpop.f32.mrf.mxu0 }
 0x526   :  { %v1156_v56 = vsel %vm1155_vm9, %v1147_v53, 0.0  ;;  %v1153_v57 = vmul.f32 %v1147_v53, %v1147_v53 }
 0x527   :  { %1157 = vadd.xlane.f32.xlu1 %v1156_v56  ;;  %v1149_v58 = vpop.f32.mrf.mxu0  ;;  %v12133_v56 = vld [vmem:[%s16471_s4 + $0x20] ss:$8 sps:$4 sm:$0xff]  }
 0x528   :  { %v1150_v59 = vadd.f32 %v1149_v58, %v1070_v55  ;;  %v1162_v60 = vsel %vm1155_vm9, %v1153_v57, 0.0  ;;  %v12132_v55 = vld [vmem:[%s16471_s4 + $0x30] ss:$8 sps:$4 sm:$0xff]  }
 0x529   :  { %1163 = vadd.xlane.f32.xlu0 %v1162_v60  ;;  %v11794_v61 = vpop.f32.mrf.mxu0 }
 0x52a   :  { %v1159_v62 = vsel %vm1155_vm9, %v1150_v59, 0.0  ;;  %v1154_v63 = vmul.f32 %v1150_v59, %v1150_v59 }
 0x52c   :  { %v1165_v38 = vsel %vm1155_vm9, %v1154_v63, 0.0 }
 0x52d   :  { %1160 = vadd.xlane.f32.xlu0 %v1159_v62 }
 0x538   :  { %1183 = vperm.xlu1 %12011, %v13299_v26  }
 0x53c   :  { %12012 = vset.pattern.permute.xlu1 %v16553_v29 }
 0x53d   :  { %1195 = vperm.xlu1 %12012, %v13292_v25  }
 0x543   :  { %1179 = vperm.xlu0 %12010, %v13292_v25  }
 0x561   :  { %1166 = vadd.xlane.f32.xlu1 %v1165_v38 }
 0x572   :  { %1199 = vperm.xlu1 %12012, %v13299_v26  }
 0x576   :  { %12013 = vset.pattern.permute.xlu1 %v16559_v9 }
 0x577   :  { %1217 = vperm.xlu1 %12013, %v13341_v45  }
 0x57b   :  { %1222 = vperm.xlu1 %12013, %v13347_v41  }
 0x57f   :  { %12014 = vset.pattern.permute.xlu1 %v16557_v28 }
 0x580   :  { %1300 = vperm.xlu1 %12014, %v13341_v45  }
 0x584   :  { %12015 = vset.pattern.permute.xlu1 %v16553_v29 }
 0x5b0   :  { %v1158_v0 = vpop.xlane.xlu1 %1157 }
 0x5b1   :  { %v1168_v1 = vmul.f32 0.03125, %v1158_v0 }
 0x5b2   :  { %v1164_v5 = vpop.xlane.xlu0 %1163 }
 0x5b3   :  { %v1172_v6 = vmul.f32 %v1168_v1, %v1168_v1  ;;  %v1170_v7 = vmul.f32 0.03125, %v1164_v5  ;;  %v1176_v18 = vsub.f32 %v1147_v53, %v1168_v1 }
 0x5b4   :  { %v1184_v10 = vpop.permute.xlu1 %1183 }
 0x5b5   :  { %v1174_v8 = vsub.f32 %v1170_v7, %v1172_v6 }
 0x5b6   :  { %v1161_v2 = vpop.xlane.xlu0 %1160 }
 0x5b7   :  { %v1188_v3 = vadd.f32 1e-05, %v1174_v8  ;;  %v1169_v11 = vmul.f32 0.03125, %v1161_v2 }
 0x5b8   :  { %v1196_v4 = vpop.permute.xlu1 %1195 }
 0x5b9   :  { %12299 = vrsqrt.f32 %v1188_v3  ;;  %v1173_v12 = vmul.f32 %v1169_v11, %v1169_v11  ;;  %v1177_v21 = vsub.f32 %v1150_v59, %v1169_v11 }
 0x5bb   :  { %v1187_v25 = vmul.f32 %v1184_v10, %v1177_v21 }
 0x5be   :  { %v1180_v17 = vpop.permute.xlu0 %1179 }
 0x5bf   :  { %v1186_v20 = vmul.f32 %v1180_v17, %v1176_v18 }
 0x5c6   :  { %v12300_v19 = vpop.eup %12299 }
 0x5c7   :  { %v1192_v23 = vmul.f32 %v12300_v19, %v1186_v20 }
 0x5c9   :  { %v1202_v24 = vadd.f32 %v1196_v4, %v1192_v23 }
 0x5cb   :  { %v1206_v31 = vmul.f32 0.2, %v1202_v24  ;;  %vm1204_vm10 = vcmp.ge.f32.partialorder %v1202_v24, 0.0 }
 0x5cd   :  { %v1208_v34 = vsel %vm1204_vm10, %v1202_v24, %v1206_v31  ;;  %vm4181_vm10 = vcmask 60464  }
 0x5ea   :  { %v1167_v13 = vpop.xlane.xlu1 %1166 }
 0x5eb   :  { %v1171_v14 = vmul.f32 0.03125, %v1167_v13 }
 0x5ed   :  { %v1175_v15 = vsub.f32 %v1171_v14, %v1173_v12 }
 0x5ee   :  { %v1200_v30 = vpop.permute.xlu1 %1199 }
 0x5ef   :  { %v1189_v16 = vadd.f32 1e-05, %v1175_v15 }
 0x5f1   :  { %12301 = vrsqrt.f32 %v1189_v16 }
 0x5f2   :  { %v1218_v39 = vpop.permute.xlu1 %1217 }
 0x5f6   :  { %v1223_v47 = vpop.permute.xlu1 %1222 }
 0x5fb   :  { %v1301_v57 = vpop.permute.xlu1 %1300 }
 0x5fe   :  { %v12302_v26 = vpop.eup %12301 }
 0x5ff   :  { %v1193_v27 = vmul.f32 %v12302_v26, %v1187_v25 }
 0x601   :  { %v1203_v32 = vadd.f32 %v1200_v30, %v1193_v27 }
 0x603   :  { %vm1205_vm11 = vcmp.ge.f32.partialorder %v1203_v32, 0.0  ;;  %v1207_v33 = vmul.f32 0.2, %v1203_v32 }
 0x605   :  { %v1209_v35 = vsel %vm1205_vm11, %v1203_v32, %v1207_v33  ;;  %v12152_v33 = vld [vmem:[%s16471_s4 + $0x44] ss:$8 sps:$4 sm:$0xff]   ;;  %vm4234_vm11 = vcmask 76864  }
 0x606   :  { %v1212_v36 = vpack.c.bf16 %v1209_v35, %v1208_v34  ;;  %v13387_v34 = vld [vmem:[%s16477_s10 + $0x28] sm:$0xff]  ;;  %v13393_v35 = vld [vmem:[%s16477_s10 + $0x30] sm:$0xff] }
 0x608   :  { %11796 = vmatpush3.bf16.msra.mxu1 %v1212_v36 }
 0x609   :  { %11801 = vmatprep.subr.bf16.mxu1 %v16555_v22 }
 0x60b   :  { %11798 = vmatmul.mubr.msk.bf16.vlgmr.msra.gmra.mxu1 %vm1230_vm12, %v12131_v37 }
 0x60c   :  { %11805 = vmatprep.mubr.msk.bf16.mxu1 %vm12346_vm5, %v16555_v22  ;;  %11802 = vmatpush3.bf16.msra.mxu1 %v12132_v55 }
 0x60d   :  { %11803 = vmatprep.subr.bf16.mxu1 %v16555_v22 }
 0x610   :  { %11804 = vmatpush3.bf16.msra.mxu1 %v12133_v56 }
 0x6cb   :  { %v1268_v40 = vpop.f32.mrf.mxu1 }
 0x6cc   :  { %v1269_v42 = vadd.f32 %v1268_v40, %v1218_v39 }
 0x6cd   :  { %v11799_v43 = vpop.f32.mrf.mxu1 }
 0x6ce   :  { %v1277_v44 = vsel %vm1155_vm9, %v1269_v42, 0.0  ;;  %v1275_v46 = vmul.f32 %v1269_v42, %v1269_v42 }
 0x6cf   :  { %v1271_v48 = vpop.f32.mrf.mxu1  ;;  %1278 = vadd.xlane.f32.xlu1 %v1277_v44 }
 0x6d0   :  { %v1272_v49 = vadd.f32 %v1271_v48, %v1223_v47  ;;  %v1283_v51 = vsel %vm1155_vm9, %v1275_v46, 0.0 }
 0x6d1   :  { %v11800_v50 = vpop.f32.mrf.mxu1 }
 0x6d2   :  { %v1280_v52 = vsel %vm1155_vm9, %v1272_v49, 0.0  ;;  %v1276_v53 = vmul.f32 %v1272_v49, %v1272_v49 }
 0x6d3   :  { %1284 = vadd.xlane.f32.xlu1 %v1283_v51  ;;  %1281 = vadd.xlane.f32.xlu0 %v1280_v52 }
 0x6d4   :  { %v1286_v54 = vsel %vm1155_vm9, %v1276_v53, 0.0 }
 0x6d7   :  { %1287 = vadd.xlane.f32.xlu0 %v1286_v54 }
 0x6e4   :  { %1316 = vperm.xlu1 %12015, %v13341_v45  }
 0x6e8   :  { %1320 = vperm.xlu1 %12015, %v13347_v41  }
 0x6ec   :  { %12017 = vset.pattern.permute.xlu1 %v16559_v9 }
 0x6ed   :  { %1304 = vperm.xlu0 %12010, %v13347_v41  }
 0x6f1   :  { %12016 = vset.pattern.permute.xlu0 %v16559_v9 }
 0x758   :  { %v1279_v58 = vpop.xlane.xlu1 %1278 }
 0x759   :  { %v1289_v59 = vmul.f32 0.03125, %v1279_v58 }
 0x75b   :  { %v1293_v62 = vmul.f32 %v1289_v59, %v1289_v59  ;;  %v1297_v10 = vsub.f32 %v1269_v42, %v1289_v59 }
 0x75c   :  { %v1282_v60 = vpop.xlane.xlu0 %1281  ;;  %v1285_v61 = vpop.xlane.xlu1 %1284 }
 0x75d   :  { %v1290_v63 = vmul.f32 0.03125, %v1282_v60  ;;  %v1291_v38 = vmul.f32 0.03125, %v1285_v61  ;;  %v1307_v8 = vmul.f32 %v1301_v57, %v1297_v10 }
 0x75f   :  { %v1295_v45 = vsub.f32 %v1291_v38, %v1293_v62  ;;  %v1294_v0 = vmul.f32 %v1290_v63, %v1290_v63  ;;  %v1298_v11 = vsub.f32 %v1272_v49, %v1290_v63 }
 0x760   :  { %v1288_v41 = vpop.xlane.xlu0 %1287  ;;  %v1317_v4 = vpop.permute.xlu1 %1316 }
 0x761   :  { %v1309_v1 = vadd.f32 1e-05, %v1295_v45  ;;  %v1292_v5 = vmul.f32 0.03125, %v1288_v41 }
 0x763   :  { %12303 = vrsqrt.f32 %v1309_v1  ;;  %v1296_v6 = vsub.f32 %v1292_v5, %v1294_v0 }
 0x764   :  { %v1321_v17 = vpop.permute.xlu1 %1320 }
 0x765   :  { %v1310_v7 = vadd.f32 1e-05, %v1296_v6 }
 0x767   :  { %12305 = vrsqrt.f32 %v1310_v7 }
 0x768   :  { %v1305_v3 = vpop.permute.xlu0 %1304 }
 0x769   :  { %v1308_v12 = vmul.f32 %v1305_v3, %v1298_v11 }
 0x770   :  { %v12304_v2 = vpop.eup %12303 }
 0x771   :  { %v1313_v13 = vmul.f32 %v12304_v2, %v1307_v8 }
 0x773   :  { %v1323_v14 = vadd.f32 %v1317_v4, %v1313_v13 }
 0x774   :  { %v12306_v15 = vpop.eup %12305 }
 0x775   :  { %v1314_v16 = vmul.f32 %v12306_v15, %v1308_v12  ;;  %v1327_v18 = vmul.f32 0.2, %v1323_v14  ;;  %vm1325_vm13 = vcmp.ge.f32.partialorder %v1323_v14, 0.0 }
 0x777   :  { %v1324_v19 = vadd.f32 %v1321_v17, %v1314_v16  ;;  %v1329_v21 = vsel %vm1325_vm13, %v1323_v14, %v1327_v18  ;;  %vm4287_vm13 = vcmask 93264  }
 0x779   :  { %vm1326_vm14 = vcmp.ge.f32.partialorder %v1324_v19, 0.0  ;;  %v1328_v20 = vmul.f32 0.2, %v1324_v19 }
 0x77b   :  { %v1330_v23 = vsel %vm1326_vm14, %v1324_v19, %v1328_v20  ;;  %v12150_v19 = vld [vmem:[%s16471_s4 + $0x40] ss:$8 sps:$4 sm:$0xff]   ;;  %vm4340_vm14 = vcmask 109664  }
 0x77c   :  { %v1331_v24 = vpack.c.bf16 %v1330_v23, %v1329_v21 }
 0x77e   :  { %11806 = vmatmul.mubr.msk.bf16.vlgmr.msra.gmra.mxu1 %vm1155_vm9, %v1331_v24 }
 0x77f   :  { %1707 = vmatprep.mubr.bf16.mxu1 %v12152_v33 }
 0x83e   :  { %v1385_v25 = vpop.f32.mrf.mxu1 }
 0x83f   :  { %v11199_v26 = vpack.c.bf16 %v1385_v25, %v1385_v25 }
 0x840   :  { %v11807_v27 = vpop.f32.mrf.mxu1 }
 0x841   :  { %1515 = vrot.lane.b32.xlu0 %v11199_v26, %s12347_s29  ;;  %1401 = vst.msk [vmem:[#allocation4] sm:$0xf] %vm1400_vm15, %v11199_v26 }
 0x842   :  { %v1388_v30 = vpop.f32.mrf.mxu1 }
 0x843   :  { %v11200_v31 = vpack.c.bf16 %v1388_v30, %v1388_v30 }
 0x844   :  { %v11808_v32 = vpop.f32.mrf.mxu1 }
 0x845   :  { %1451 = vrot.lane.b32.xlu0 %v11199_v26, %s12348_s30  ;;  %1517 = vrot.lane.b32.xlu1 %v11200_v31, %s12347_s29  ;;  %1402 = vst.msk [vmem:[#allocation4 + $0x4] sm:$0xf] %vm1400_vm15, %v11200_v31 }
 0x849   :  { %1507 = vrot.lane.b32.xlu0 %v11199_v26, %s12349_s9  ;;  %1453 = vrot.lane.b32.xlu1 %v11200_v31, %s12348_s30 }
 0x84c   :  { %v12149_v18 = vld [vmem:[#allocation4] sm:$0xff]  }
 0x84d   :  { %1443 = vrot.lane.b32.xlu0 %v11199_v26, %s12350_s13  ;;  %1509 = vrot.lane.b32.xlu1 %v11200_v31, %s12349_s9  ;;  %s12363_s9 = smov 6  }
 0x851   :  { %1499 = vrot.lane.b32.xlu0 %v11199_v26, %s12351_s14  ;;  %1445 = vrot.lane.b32.xlu1 %v11200_v31, %s12350_s13  ;;  %s12365_s13 = smov 10  }
 0x855   :  { %1435 = vrot.lane.b32.xlu0 %v11199_v26, %s12352_s15  ;;  %1501 = vrot.lane.b32.xlu1 %v11200_v31, %s12351_s14  ;;  %s12366_s14 = smov 12  }
 0x859   :  { %1491 = vrot.lane.b32.xlu0 %v11199_v26, %s12353_s16  ;;  %1437 = vrot.lane.b32.xlu1 %v11200_v31, %s12352_s15  ;;  %s12367_s15 = smov 14  }
 0x85d   :  { %1427 = vrot.lane.b32.xlu0 %v11199_v26, %s12354_s17  ;;  %1493 = vrot.lane.b32.xlu1 %v11200_v31, %s12353_s16  ;;  %s12370_s16 = smov 22  }
 0x861   :  { %1483 = vrot.lane.b32.xlu0 %v11199_v26, %s12355_s18  ;;  %1429 = vrot.lane.b32.xlu1 %v11200_v31, %s12354_s17  ;;  %s12372_s17 = smov 26  }
 0x865   :  { %1419 = vrot.lane.b32.xlu0 %v11199_v26, %s12356_s19  ;;  %1485 = vrot.lane.b32.xlu1 %v11200_v31, %s12355_s18  ;;  %s12373_s18 = smov 28  }
 0x869   :  { %1475 = vrot.lane.b32.xlu0 %v11199_v26, %s12357_s20  ;;  %1421 = vrot.lane.b32.xlu1 %v11200_v31, %s12356_s19 }
 0x86d   :  { %1411 = vrot.lane.b32.xlu0 %v11199_v26, %s12358_s21  ;;  %1477 = vrot.lane.b32.xlu1 %v11200_v31, %s12357_s20 }
 0x871   :  { %1467 = vrot.lane.b32.xlu0 %v11199_v26, %s12359_s22  ;;  %1413 = vrot.lane.b32.xlu1 %v11200_v31, %s12358_s21 }
 0x875   :  { %1403 = vrot.lane.b32.xlu0 %v11199_v26, %s12360_s23  ;;  %1469 = vrot.lane.b32.xlu1 %v11200_v31, %s12359_s22 }
 0x879   :  { %1459 = vrot.lane.b32.xlu0 %v11199_v26, %s12345_s0  ;;  %1405 = vrot.lane.b32.xlu1 %v11200_v31, %s12360_s23  ;;  %s12374_s23 = smov 30  }
 0x87d   :  { %1461 = vrot.lane.b32.xlu1 %v11200_v31, %s12345_s0  ;;  %1561 = vperm.xlu0 %12016, %v13387_v34  }
 0x881   :  { %1566 = vperm.xlu1 %12017, %v13393_v35   ;;  %12018 = vset.pattern.permute.xlu0 %v16557_v28 }
 0x885   :  { %12019 = vset.pattern.permute.xlu1 %v16557_v28 }
 0x8b3   :  { %v1516_v36 = vpop.permute.xlu0 %1515 }
 0x8b4   :  { %1521 = vst.msk [vmem:[#allocation4 + $0x78] sm:$0xf] %vm1400_vm15, %v1516_v36 }
 0x8b7   :  { %v1452_v37 = vpop.permute.xlu0 %1451  ;;  %v1518_v39 = vpop.permute.xlu1 %1517 }
 0x8b8   :  { %1457 = vst.msk [vmem:[#allocation4 + $0x38] sm:$0xf] %vm1400_vm15, %v1452_v37  ;;  %1522 = vst.msk [vmem:[#allocation4 + $0x7c] sm:$0xf] %vm1400_vm15, %v1518_v39 }
 0x8bb   :  { %v1508_v40 = vpop.permute.xlu0 %1507  ;;  %v1454_v42 = vpop.permute.xlu1 %1453 }
 0x8bc   :  { %1513 = vst.msk [vmem:[#allocation4 + $0x70] sm:$0xf] %vm1400_vm15, %v1508_v40  ;;  %1458 = vst.msk [vmem:[#allocation4 + $0x3c] sm:$0xf] %vm1400_vm15, %v1454_v42  ;;  %v1985_v42 = vld [vmem:[%s16473_s6 + $0x58] sm:$0xff] }
 0x8bf   :  { %v1444_v43 = vpop.permute.xlu0 %1443  ;;  %v1510_v44 = vpop.permute.xlu1 %1509  ;;  %v12134_v46 = vld [vmem:[#allocation4 + $0x78] sm:$0xff]  }
 0x8c0   :  { %1449 = vst.msk [vmem:[#allocation4 + $0x30] sm:$0xf] %vm1400_vm15, %v1444_v43  ;;  %1514 = vst.msk [vmem:[#allocation4 + $0x74] sm:$0xf] %vm1400_vm15, %v1510_v44  ;;  %11596 = vmatprep.subr.bf16.mxu1 %v12134_v46  ;;  %v1992_v44 = vld [vmem:[%s16473_s6 + $0x90] sm:$0xff] }
 0x8c1   :  { %v2000_v46 = vld [vmem:[%s16473_s6 + $0xd0] sm:$0xff] }
 0x8c3   :  { %v1500_v47 = vpop.permute.xlu0 %1499  ;;  %v1446_v48 = vpop.permute.xlu1 %1445  ;;  %v12135_v49 = vld [vmem:[#allocation4 + $0x38] sm:$0xff]  }
 0x8c4   :  { %1505 = vst.msk [vmem:[#allocation4 + $0x68] sm:$0xf] %vm1400_vm15, %v1500_v47  ;;  %1450 = vst.msk [vmem:[#allocation4 + $0x34] sm:$0xf] %vm1400_vm15, %v1446_v48  ;;  %11597 = vmatpush3.bf16.msra.mxu1 %v12135_v49  ;;  %v2006_v47 = vld [vmem:[%s16473_s6 + $0x100] sm:$0xff]  ;;  %v1777_v48 = vld [vmem:[%s16477_s10 + $0x68] sm:$0xff] }
 0x8c5   :  { %v2008_v49 = vld [vmem:[%s16473_s6 + $0x110] sm:$0xff] }
 0x8c7   :  { %v1436_v50 = vpop.permute.xlu0 %1435  ;;  %v1502_v51 = vpop.permute.xlu1 %1501  ;;  %v12136_v52 = vld [vmem:[#allocation4 + $0x70] sm:$0xff]  }
 0x8c8   :  { %1441 = vst.msk [vmem:[#allocation4 + $0x28] sm:$0xf] %vm1400_vm15, %v1436_v50  ;;  %1506 = vst.msk [vmem:[#allocation4 + $0x6c] sm:$0xf] %vm1400_vm15, %v1502_v51  ;;  %11598 = vmatprep.subr.bf16.mxu1 %v12136_v52  ;;  %v1776_v50 = vld [vmem:[%s16477_s10 + $0x60] sm:$0xff]  ;;  %v2016_v52 = vld [vmem:[%s16473_s6 + $0x150] sm:$0xff] }
 0x8c9   :  { %v1982_v51 = vld [vmem:[%s16473_s6 + $0x40] sm:$0xff] }
 0x8cb   :  { %v1492_v53 = vpop.permute.xlu0 %1491  ;;  %v1438_v54 = vpop.permute.xlu1 %1437  ;;  %v12137_v55 = vld [vmem:[#allocation4 + $0x30] sm:$0xff]  }
 0x8cc   :  { %1497 = vst.msk [vmem:[#allocation4 + $0x60] sm:$0xf] %vm1400_vm15, %v1492_v53  ;;  %1442 = vst.msk [vmem:[#allocation4 + $0x2c] sm:$0xf] %vm1400_vm15, %v1438_v54  ;;  %11599 = vmatpush3.bf16.msra.mxu1 %v12137_v55  ;;  %v1983_v53 = vld [vmem:[%s16473_s6 + $0x48] sm:$0xff]  ;;  %v2022_v54 = vld [vmem:[%s16473_s6 + $0x180] sm:$0xff] }
 0x8cd   :  { %v1984_v55 = vld [vmem:[%s16473_s6 + $0x50] sm:$0xff] }
 0x8cf   :  { %v1428_v56 = vpop.permute.xlu0 %1427  ;;  %v1494_v57 = vpop.permute.xlu1 %1493  ;;  %v12138_v58 = vld [vmem:[#allocation4 + $0x68] sm:$0xff]  }
 0x8d0   :  { %1433 = vst.msk [vmem:[#allocation4 + $0x20] sm:$0xf] %vm1400_vm15, %v1428_v56  ;;  %1498 = vst.msk [vmem:[#allocation4 + $0x64] sm:$0xf] %vm1400_vm15, %v1494_v57  ;;  %11600 = vmatprep.subr.bf16.mxu1 %v12138_v58  ;;  %v2024_v56 = vld [vmem:[%s16473_s6 + $0x190] sm:$0xff]  ;;  %v2030_v57 = vld [vmem:[%s16473_s6 + $0x1c0] sm:$0xff] }
 0x8d1   :  { %v1990_v58 = vld [vmem:[%s16473_s6 + $0x80] sm:$0xff] }
 0x8d3   :  { %v1484_v59 = vpop.permute.xlu0 %1483  ;;  %v1430_v60 = vpop.permute.xlu1 %1429  ;;  %v12139_v61 = vld [vmem:[#allocation4 + $0x28] sm:$0xff]  }
 0x8d4   :  { %1489 = vst.msk [vmem:[#allocation4 + $0x58] sm:$0xf] %vm1400_vm15, %v1484_v59  ;;  %1434 = vst.msk [vmem:[#allocation4 + $0x24] sm:$0xf] %vm1400_vm15, %v1430_v60  ;;  %11601 = vmatpush3.bf16.msra.mxu1 %v12139_v61  ;;  %v2032_v59 = vld [vmem:[%s16473_s6 + $0x1d0] sm:$0xff]  ;;  %v1991_v60 = vld [vmem:[%s16473_s6 + $0x88] sm:$0xff] }
 0x8d5   :  { %v2038_v61 = vld [vmem:[%s16473_s6 + $0x200] sm:$0xff] }
 0x8d7   :  { %v1420_v62 = vpop.permute.xlu0 %1419  ;;  %v1486_v63 = vpop.permute.xlu1 %1485  ;;  %v12140_v38 = vld [vmem:[#allocation4 + $0x60] sm:$0xff]  }
 0x8d8   :  { %1425 = vst.msk [vmem:[#allocation4 + $0x18] sm:$0xf] %vm1400_vm15, %v1420_v62  ;;  %1490 = vst.msk [vmem:[#allocation4 + $0x5c] sm:$0xf] %vm1400_vm15, %v1486_v63  ;;  %11602 = vmatprep.subr.bf16.mxu1 %v12140_v38  ;;  %v1993_v62 = vld [vmem:[%s16473_s6 + $0x98] sm:$0xff]  ;;  %v2040_v63 = vld [vmem:[%s16473_s6 + $0x210] sm:$0xff] }
 0x8d9   :  { %v1999_v38 = vld [vmem:[%s16473_s6 + $0xc8] sm:$0xff] }
 0x8db   :  { %v1476_v45 = vpop.permute.xlu0 %1475  ;;  %v1422_v41 = vpop.permute.xlu1 %1421  ;;  %v12141_v0 = vld [vmem:[#allocation4 + $0x20] sm:$0xff]  }
 0x8dc   :  { %1481 = vst.msk [vmem:[#allocation4 + $0x50] sm:$0xf] %vm1400_vm15, %v1476_v45  ;;  %1426 = vst.msk [vmem:[#allocation4 + $0x1c] sm:$0xf] %vm1400_vm15, %v1422_v41  ;;  %11603 = vmatpush3.bf16.msra.mxu1 %v12141_v0  ;;  %v2046_v45 = vld [vmem:[%s16473_s6 + $0x240] sm:$0xff]  ;;  %v2001_v41 = vld [vmem:[%s16473_s6 + $0xd8] sm:$0xff] }
 0x8dd   :  { %v2048_v0 = vld [vmem:[%s16473_s6 + $0x250] sm:$0xff] }
 0x8df   :  { %v1412_v1 = vpop.permute.xlu0 %1411  ;;  %v1478_v5 = vpop.permute.xlu1 %1477  ;;  %v12142_v6 = vld [vmem:[#allocation4 + $0x58] sm:$0xff]  }
 0x8e0   :  { %1417 = vst.msk [vmem:[#allocation4 + $0x10] sm:$0xf] %vm1400_vm15, %v1412_v1  ;;  %1482 = vst.msk [vmem:[#allocation4 + $0x54] sm:$0xf] %vm1400_vm15, %v1478_v5  ;;  %11604 = vmatprep.subr.bf16.mxu1 %v12142_v6  ;;  %v2007_v1 = vld [vmem:[%s16473_s6 + $0x108] sm:$0xff]  ;;  %v2054_v5 = vld [vmem:[%s16473_s6 + $0x280] sm:$0xff] }
 0x8e1   :  { %v2009_v6 = vld [vmem:[%s16473_s6 + $0x118] sm:$0xff] }
 0x8e3   :  { %v1468_v7 = vpop.permute.xlu0 %1467  ;;  %v1414_v10 = vpop.permute.xlu1 %1413  ;;  %v12143_v8 = vld [vmem:[#allocation4 + $0x18] sm:$0xff]  }
 0x8e4   :  { %1473 = vst.msk [vmem:[#allocation4 + $0x48] sm:$0xf] %vm1400_vm15, %v1468_v7  ;;  %1418 = vst.msk [vmem:[#allocation4 + $0x14] sm:$0xf] %vm1400_vm15, %v1414_v10  ;;  %11605 = vmatpush3.bf16.msra.mxu1 %v12143_v8  ;;  %v2056_v7 = vld [vmem:[%s16473_s6 + $0x290] sm:$0xff]  ;;  %v2015_v10 = vld [vmem:[%s16473_s6 + $0x148] sm:$0xff] }
 0x8e5   :  { %v2062_v8 = vld [vmem:[%s16473_s6 + $0x2c0] sm:$0xff] }
 0x8e7   :  { %v1404_v2 = vpop.permute.xlu0 %1403  ;;  %v1470_v3 = vpop.permute.xlu1 %1469  ;;  %v12144_v4 = vld [vmem:[#allocation4 + $0x50] sm:$0xff]  }
 0x8e8   :  { %1409 = vst.msk [vmem:[#allocation4 + $0x8] sm:$0xf] %vm1400_vm15, %v1404_v2  ;;  %1474 = vst.msk [vmem:[#allocation4 + $0x4c] sm:$0xf] %vm1400_vm15, %v1470_v3  ;;  %11606 = vmatprep.subr.bf16.mxu1 %v12144_v4  ;;  %v2017_v2 = vld [vmem:[%s16473_s6 + $0x158] sm:$0xff]  ;;  %v2064_v3 = vld [vmem:[%s16473_s6 + $0x2d0] sm:$0xff] }
 0x8e9   :  { %v2023_v4 = vld [vmem:[%s16473_s6 + $0x188] sm:$0xff] }
 0x8eb   :  { %v1460_v11 = vpop.permute.xlu0 %1459  ;;  %v1406_v13 = vpop.permute.xlu1 %1405  ;;  %v12145_v12 = vld [vmem:[#allocation4 + $0x10] sm:$0xff]  }
 0x8ec   :  { %1465 = vst.msk [vmem:[#allocation4 + $0x40] sm:$0xf] %vm1400_vm15, %v1460_v11  ;;  %1410 = vst.msk [vmem:[#allocation4 + $0xc] sm:$0xf] %vm1400_vm15, %v1406_v13  ;;  %11607 = vmatpush3.bf16.msra.mxu1 %v12145_v12  ;;  %v2070_v11 = vld [vmem:[%s16473_s6 + $0x300] sm:$0xff]  ;;  %v2025_v13 = vld [vmem:[%s16473_s6 + $0x198] sm:$0xff] }
 0x8ed   :  { %v2072_v12 = vld [vmem:[%s16473_s6 + $0x310] sm:$0xff] }
 0x8ef   :  { %v1462_v14 = vpop.permute.xlu1 %1461  ;;  %v12146_v15 = vld [vmem:[#allocation4 + $0x48] sm:$0xff]  }
 0x8f0   :  { %1466 = vst.msk [vmem:[#allocation4 + $0x44] sm:$0xf] %vm1400_vm15, %v1462_v14  ;;  %11608 = vmatprep.subr.bf16.mxu1 %v12146_v15  ;;  %v2031_v14 = vld [vmem:[%s16473_s6 + $0x1c8] sm:$0xff]  ;;  %v2078_v15 = vld [vmem:[%s16473_s6 + $0x340] sm:$0xff] }
 0x8f3   :  { %v12147_v16 = vld [vmem:[#allocation4 + $0x8] sm:$0xff]  }
 0x8f4   :  { %11609 = vmatpush3.bf16.msra.mxu1 %v12147_v16  ;;  %v2033_v16 = vld [vmem:[%s16473_s6 + $0x1d8] sm:$0xff] }
 0x8f7   :  { %v12148_v17 = vld [vmem:[#allocation4 + $0x40] sm:$0xff]  }
 0x8f8   :  { %11610 = vmatprep.subr.bf16.mxu1 %v12148_v17  ;;  %v1562_v23 = vpop.permute.xlu0 %1561  ;;  %v2080_v17 = vld [vmem:[%s16473_s6 + $0x350] sm:$0xff] }
 0x8f9   :  { %11611 = vmatpush3.bf16.msra.mxu1 %v12149_v18  ;;  %v2039_v18 = vld [vmem:[%s16473_s6 + $0x208] sm:$0xff] }
 0x8fc   :  { %1708 = vmatmul.mubr.bf16.vlgmr.msra.gmra.mxu1 %v12150_v19  ;;  %v1567_v30 = vpop.permute.xlu1 %1566  ;;  %v2086_v19 = vld [vmem:[%s16473_s6 + $0x380] sm:$0xff] }
 0x9bc   :  { %v11612_v20 = vpop.f32.mrf.mxu1 }
 0x9be   :  { %v11613_v21 = vpop.f32.mrf.mxu1 }
 0x9bf   :  { %v11614_v24 = vadd.f32 %v11613_v21, %v11612_v20  ;;  %v2041_v20 = vld [vmem:[%s16473_s6 + $0x218] sm:$0xff]  ;;  %v2088_v21 = vld [vmem:[%s16473_s6 + $0x390] sm:$0xff] }
 0x9c0   :  { %v11615_v25 = vpop.f32.mrf.mxu1 }
 0x9c1   :  { %v13431_v26 = vadd.f32 %v11614_v24, %v1562_v23  ;;  %v2047_v23 = vld [vmem:[%s16473_s6 + $0x248] sm:$0xff]  ;;  %v2094_v24 = vld [vmem:[%s16473_s6 + $0x3c0] sm:$0xff] }
 0x9c2   :  { %v11616_v27 = vpop.f32.mrf.mxu1 }
 0x9c3   :  { %v11617_v31 = vadd.f32 %v11616_v27, %v11615_v25  ;;  %v1719_v32 = vsel %vm1718_vm0, %v13431_v26, 0.0  ;;  %v1716_v33 = vmul.f32 %v13431_v26, %v13431_v26  ;;  %v2049_v25 = vld [vmem:[%s16473_s6 + $0x258] sm:$0xff]  ;;  %v2096_v27 = vld [vmem:[%s16473_s6 + $0x3d0] sm:$0xff] }
 0x9c4   :  { %1720 = vadd.xlane.f32.xlu1 %v1719_v32  ;;  %v2057_v32 = vld [vmem:[%s16473_s6 + $0x298] sm:$0xff] }
 0x9c5   :  { %v13437_v36 = vadd.f32 %v11617_v31, %v1567_v30  ;;  %v1725_v37 = vsel %vm1718_vm0, %v1716_v33, 0.0  ;;  %v2055_v30 = vld [vmem:[%s16473_s6 + $0x288] sm:$0xff]  ;;  %v1986_v31 = vld [vmem:[%s16473_s6 + $0x60] sm:$0xff]  ;;  %v1988_v33 = vld [vmem:[%s16473_s6 + $0x70] sm:$0xff] }
 0x9c6   :  { %1726 = vadd.xlane.f32.xlu0 %v1725_v37  ;;  %v2063_v37 = vld [vmem:[%s16473_s6 + $0x2c8] sm:$0xff] }
 0x9c7   :  { %v1722_v39 = vsel %vm1718_vm0, %v13437_v36, 0.0  ;;  %v1717_v40 = vmul.f32 %v13437_v36, %v13437_v36 }
 0x9c9   :  { %v1728_v43 = vsel %vm1718_vm0, %v1717_v40, 0.0  ;;  %v1994_v40 = vld [vmem:[%s16473_s6 + $0xa0] sm:$0xff] }
 0x9ca   :  { %1723 = vadd.xlane.f32.xlu0 %v1722_v39 }
 0x9d5   :  { %1746 = vperm.xlu1 %12019, %v13393_v35  }
 0x9d9   :  { %12020 = vset.pattern.permute.xlu1 %v16553_v29 }
 0x9da   :  { %1758 = vperm.xlu1 %12020, %v13387_v34  }
 0x9e0   :  { %1742 = vperm.xlu0 %12018, %v13387_v34   ;;  %v1998_v34 = vld [vmem:[%s16473_s6 + $0xc0] sm:$0xff] }
 0x9e4   :  { %12022 = vset.pattern.permute.xlu0 %v16559_v9 }
 0x9e5   :  { %2159 = vperm.xlu0 %12022, %v1985_v42   ;;  %v2065_v42 = vld [vmem:[%s16473_s6 + $0x2d8] sm:$0xff] }
 0x9e9   :  { %2194 = vperm.xlu0 %12022, %v1992_v44  }
 0x9ed   :  { %2224 = vperm.xlu0 %12022, %v1998_v34   ;;  %v1996_v34 = vld [vmem:[%s16473_s6 + $0xb0] sm:$0xff] }
 0x9f1   :  { %2234 = vperm.xlu0 %12022, %v2000_v46   ;;  %v2071_v46 = vld [vmem:[%s16473_s6 + $0x308] sm:$0xff] }
 0x9f5   :  { %2264 = vperm.xlu0 %12022, %v2006_v47  }
 0x9f9   :  { %2274 = vperm.xlu0 %12022, %v2008_v49   ;;  %v2002_v49 = vld [vmem:[%s16473_s6 + $0xe0] sm:$0xff] }
 0x9fe   :  { %1729 = vadd.xlane.f32.xlu1 %v1728_v43 }
 0xa0f   :  { %1762 = vperm.xlu1 %12020, %v13393_v35   ;;  %v2014_v35 = vld [vmem:[%s16473_s6 + $0x140] sm:$0xff] }
 0xa10   :  { %2304 = vperm.xlu0 %12022, %v2014_v35   ;;  %v2073_v35 = vld [vmem:[%s16473_s6 + $0x318] sm:$0xff] }
 0xa13   :  { %12021 = vset.pattern.permute.xlu1 %v16559_v9 }
 0xa14   :  { %1785 = vperm.xlu1 %12021, %v1777_v48   ;;  %2314 = vperm.xlu0 %12022, %v2016_v52   ;;  %v2004_v52 = vld [vmem:[%s16473_s6 + $0xf0] sm:$0xff] }
 0xa18   :  { %1780 = vperm.xlu1 %12021, %v1776_v50   ;;  %2344 = vperm.xlu0 %12022, %v2022_v54   ;;  %v2079_v54 = vld [vmem:[%s16473_s6 + $0x348] sm:$0xff] }
 0xa1c   :  { %2144 = vperm.xlu1 %12021, %v1982_v51   ;;  %2354 = vperm.xlu0 %12022, %v2024_v56  }
 0xa20   :  { %2149 = vperm.xlu1 %12021, %v1983_v53   ;;  %2384 = vperm.xlu0 %12022, %v2030_v57  }
 0xa24   :  { %2154 = vperm.xlu1 %12021, %v1984_v55   ;;  %2394 = vperm.xlu0 %12022, %v2032_v59   ;;  %v2081_v59 = vld [vmem:[%s16473_s6 + $0x358] sm:$0xff] }
 0xa28   :  { %2184 = vperm.xlu1 %12021, %v1990_v58   ;;  %2424 = vperm.xlu0 %12022, %v2038_v61   ;;  %v2010_v58 = vld [vmem:[%s16473_s6 + $0x120] sm:$0xff] }
 0xa2c   :  { %2189 = vperm.xlu1 %12021, %v1991_v60   ;;  %2434 = vperm.xlu0 %12022, %v2040_v63   ;;  %v2012_v63 = vld [vmem:[%s16473_s6 + $0x130] sm:$0xff] }
 0xa30   :  { %2199 = vperm.xlu1 %12021, %v1993_v62   ;;  %2464 = vperm.xlu0 %12022, %v2046_v45  }
 0xa34   :  { %2229 = vperm.xlu1 %12021, %v1999_v38   ;;  %2474 = vperm.xlu0 %12022, %v2048_v0   ;;  %v2087_v38 = vld [vmem:[%s16473_s6 + $0x388] sm:$0xff]  ;;  %v2018_v0 = vld [vmem:[%s16473_s6 + $0x160] sm:$0xff] }
 0xa38   :  { %2239 = vperm.xlu1 %12021, %v2001_v41   ;;  %2504 = vperm.xlu0 %12022, %v2054_v5   ;;  %v2020_v5 = vld [vmem:[%s16473_s6 + $0x170] sm:$0xff] }
 0xa3c   :  { %2269 = vperm.xlu1 %12021, %v2007_v1   ;;  %2514 = vperm.xlu0 %12022, %v2056_v7   ;;  %v2089_v1 = vld [vmem:[%s16473_s6 + $0x398] sm:$0xff]  ;;  %v2095_v7 = vld [vmem:[%s16473_s6 + $0x3c8] sm:$0xff] }
 0xa40   :  { %2279 = vperm.xlu1 %12021, %v2009_v6   ;;  %2544 = vperm.xlu0 %12022, %v2062_v8  }
 0xa44   :  { %2309 = vperm.xlu1 %12021, %v2015_v10   ;;  %2554 = vperm.xlu0 %12022, %v2064_v3   ;;  %v2026_v3 = vld [vmem:[%s16473_s6 + $0x1a0] sm:$0xff] }
 0xa48   :  { %2319 = vperm.xlu1 %12021, %v2017_v2   ;;  %2584 = vperm.xlu0 %12022, %v2070_v11  }
 0xa4c   :  { %2349 = vperm.xlu1 %12021, %v2023_v4   ;;  %2594 = vperm.xlu0 %12022, %v2072_v12   ;;  %v2097_v4 = vld [vmem:[%s16473_s6 + $0x3d8] sm:$0xff]  ;;  %v1987_v12 = vld [vmem:[%s16473_s6 + $0x68] sm:$0xff] }
 0xa4d   :  { %v1721_v39 = vpop.xlane.xlu1 %1720 }
 0xa4e   :  { %v1731_v43 = vmul.f32 0.5, %v1721_v39  ;;  %v2044_v39 = vld [vmem:[%s16473_s6 + $0x230] sm:$0xff] }
 0xa4f   :  { %v1727_v44 = vpop.xlane.xlu0 %1726 }
 0xa50   :  { %2359 = vperm.xlu1 %12021, %v2025_v13   ;;  %2624 = vperm.xlu0 %12022, %v2078_v15   ;;  %v1735_v47 = vmul.f32 %v1731_v43, %v1731_v43  ;;  %v1733_v48 = vmul.f32 0.5, %v1727_v44  ;;  %v1739_v10 = vsub.f32 %v13431_v26, %v1731_v43  ;;  %v2028_v26 = vld [vmem:[%s16473_s6 + $0x1b0] sm:$0xff]  ;;  %v2050_v43 = vld [vmem:[%s16473_s6 + $0x260] sm:$0xff]  ;;  %v2005_v44 = vld [vmem:[%s16473_s6 + $0xf8] sm:$0xff] }
 0xa51   :  { %v1747_v50 = vpop.permute.xlu1 %1746 }
 0xa52   :  { %v1737_v51 = vsub.f32 %v1733_v48, %v1735_v47  ;;  %v2011_v47 = vld [vmem:[%s16473_s6 + $0x128] sm:$0xff]  ;;  %v2058_v48 = vld [vmem:[%s16473_s6 + $0x2a0] sm:$0xff] }
 0xa53   :  { %v1724_v53 = vpop.xlane.xlu0 %1723 }
 0xa54   :  { %2389 = vperm.xlu1 %12021, %v2031_v14   ;;  %2634 = vperm.xlu0 %12022, %v2080_v17   ;;  %v1751_v55 = vadd.f32 1e-05, %v1737_v51  ;;  %v1732_v57 = vmul.f32 0.5, %v1724_v53  ;;  %v2060_v51 = vld [vmem:[%s16473_s6 + $0x2b0] sm:$0xff] }
 0xa55   :  { %v1759_v56 = vpop.permute.xlu1 %1758 }
 0xa56   :  { %12307 = vrsqrt.f32 %v1751_v55  ;;  %v1736_v61 = vmul.f32 %v1732_v57, %v1732_v57  ;;  %v1740_v11 = vsub.f32 %v13437_v36, %v1732_v57  ;;  %v2034_v36 = vld [vmem:[%s16473_s6 + $0x1e0] sm:$0xff]  ;;  %v2068_v57 = vld [vmem:[%s16473_s6 + $0x2f0] sm:$0xff] }
 0xa58   :  { %2399 = vperm.xlu1 %12021, %v2033_v16   ;;  %2664 = vperm.xlu0 %12022, %v2086_v19   ;;  %v1750_v15 = vmul.f32 %v1747_v50, %v1740_v11  ;;  %v1989_v19 = vld [vmem:[%s16473_s6 + $0x78] sm:$0xff]  ;;  %v2092_v11 = vld [vmem:[%s16473_s6 + $0x3b0] sm:$0xff] }
 0xa59   :  { %v2013_v50 = vld [vmem:[%s16473_s6 + $0x138] sm:$0xff] }
 0xa5b   :  { %v1743_v6 = vpop.permute.xlu0 %1742 }
 0xa5c   :  { %2429 = vperm.xlu1 %12021, %v2039_v18   ;;  %2674 = vperm.xlu0 %12022, %v2088_v21   ;;  %v1749_v2 = vmul.f32 %v1743_v6, %v1739_v10  ;;  %v2043_v10 = vld [vmem:[%s16473_s6 + $0x228] sm:$0xff] }
 0xa60   :  { %2439 = vperm.xlu1 %12021, %v2041_v20   ;;  %2704 = vperm.xlu0 %12022, %v2094_v24   ;;  %v2036_v24 = vld [vmem:[%s16473_s6 + $0x1f0] sm:$0xff] }
 0xa63   :  { %v12308_v8 = vpop.eup %12307 }
 0xa64   :  { %2469 = vperm.xlu1 %12021, %v2047_v23   ;;  %2714 = vperm.xlu0 %12022, %v2096_v27   ;;  %v1755_v13 = vmul.f32 %v12308_v8, %v1749_v2  ;;  %v2090_v2 = vld [vmem:[%s16473_s6 + $0x3a0] sm:$0xff] }
 0xa66   :  { %v1765_v14 = vadd.f32 %v1759_v56, %v1755_v13  ;;  %v2021_v56 = vld [vmem:[%s16473_s6 + $0x178] sm:$0xff] }
 0xa68   :  { %2479 = vperm.xlu1 %12021, %v2049_v25   ;;  %2164 = vperm.xlu0 %12022, %v1986_v31   ;;  %v1769_v20 = vmul.f32 0.2, %v1765_v14  ;;  %vm1767_vm1 = vcmp.ge.f32.partialorder %v1765_v14, 0.0  ;;  %v1995_v25 = vld [vmem:[%s16473_s6 + $0xa8] sm:$0xff] }
 0xa6a   :  { %v1771_v27 = vsel %vm1767_vm1, %v1765_v14, %v1769_v20  ;;  %v2098_v14 = vld [vmem:[%s16473_s6 + $0x3e0] sm:$0xff]  ;;  %vm4499_vm1 = vcmask 158864  }
 0xa6c   :  { %2509 = vperm.xlu1 %12021, %v2055_v30   ;;  %2174 = vperm.xlu0 %12022, %v1988_v33   ;;  %v12153_v33 = vld [vmem:[%s16471_s4 + $0x50] ss:$8 sps:$4 sm:$0xff]  }
 0xa70   :  { %2519 = vperm.xlu1 %12021, %v2057_v32   ;;  %2204 = vperm.xlu0 %12022, %v1994_v40   ;;  %v2042_v32 = vld [vmem:[%s16473_s6 + $0x220] sm:$0xff]  ;;  %v2003_v40 = vld [vmem:[%s16473_s6 + $0xe8] sm:$0xff] }
 0xa74   :  { %2549 = vperm.xlu1 %12021, %v2063_v37   ;;  %2214 = vperm.xlu0 %12022, %v1996_v34   ;;  %v1997_v37 = vld [vmem:[%s16473_s6 + $0xb8] sm:$0xff]  ;;  %v2052_v34 = vld [vmem:[%s16473_s6 + $0x270] sm:$0xff] }
 0xa78   :  { %2559 = vperm.xlu1 %12021, %v2065_v42   ;;  %2244 = vperm.xlu0 %12022, %v2002_v49   ;;  %v13707_v42 = vpop.permute.xlu0 %2159 }
 0xa7c   :  { %2589 = vperm.xlu1 %12021, %v2071_v46   ;;  %2254 = vperm.xlu0 %12022, %v2004_v52   ;;  %v13718_v46 = vpop.permute.xlu0 %2194  ;;  %v2019_v52 = vld [vmem:[%s16473_s6 + $0x168] sm:$0xff] }
 0xa80   :  { %2599 = vperm.xlu1 %12021, %v2073_v35   ;;  %2284 = vperm.xlu0 %12022, %v2010_v58   ;;  %v13731_v35 = vpop.permute.xlu0 %2224 }
 0xa84   :  { %2629 = vperm.xlu1 %12021, %v2079_v54   ;;  %2294 = vperm.xlu0 %12022, %v2012_v63   ;;  %v2066_v54 = vld [vmem:[%s16473_s6 + $0x2e0] sm:$0xff]  ;;  %v13744_v55 = vpop.permute.xlu0 %2234 }
 0xa87   :  { %v1730_v60 = vpop.xlane.xlu1 %1729 }
 0xa88   :  { %v1734_v62 = vmul.f32 0.5, %v1730_v60  ;;  %2639 = vperm.xlu1 %12021, %v2081_v59   ;;  %2324 = vperm.xlu0 %12022, %v2018_v0   ;;  %v2027_v59 = vld [vmem:[%s16473_s6 + $0x1a8] sm:$0xff]  ;;  %v13757_v60 = vpop.permute.xlu0 %2264  ;;  %v2082_v0 = vld [vmem:[%s16473_s6 + $0x360] sm:$0xff] }
 0xa8a   :  { %v1738_v45 = vsub.f32 %v1734_v62, %v1736_v61  ;;  %v2074_v61 = vld [vmem:[%s16473_s6 + $0x320] sm:$0xff]  ;;  %v2029_v62 = vld [vmem:[%s16473_s6 + $0x1b8] sm:$0xff] }
 0xa8b   :  { %v1763_v18 = vpop.permute.xlu1 %1762 }
 0xa8c   :  { %v1752_v41 = vadd.f32 1e-05, %v1738_v45  ;;  %2669 = vperm.xlu1 %12021, %v2087_v38   ;;  %2334 = vperm.xlu0 %12022, %v2020_v5   ;;  %v2076_v38 = vld [vmem:[%s16473_s6 + $0x330] sm:$0xff]  ;;  %v13770_v45 = vpop.permute.xlu0 %2274  ;;  %v2037_v5 = vld [vmem:[%s16473_s6 + $0x1f8] sm:$0xff] }
 0xa8e   :  { %12309 = vrsqrt.f32 %v1752_v41  ;;  %v2035_v41 = vld [vmem:[%s16473_s6 + $0x1e8] sm:$0xff] }
 0xa8f   :  { %v13726_v49 = vpop.permute.xlu1 %1785 }
 0xa90   :  { %2679 = vperm.xlu1 %12021, %v2089_v1   ;;  %2364 = vperm.xlu0 %12022, %v2026_v3   ;;  %v13783_v6 = vpop.permute.xlu0 %2304 }
 0xa93   :  { %v13739_v53 = vpop.permute.xlu1 %1780 }
 0xa94   :  { %2709 = vperm.xlu1 %12021, %v2095_v7   ;;  %2374 = vperm.xlu0 %12022, %v2028_v26   ;;  %v2084_v7 = vld [vmem:[%s16473_s6 + $0x370] sm:$0xff]  ;;  %v13796_v3 = vpop.permute.xlu0 %2314  ;;  %v2051_v26 = vld [vmem:[%s16473_s6 + $0x268] sm:$0xff] }
 0xa97   :  { %v13752_v58 = vpop.permute.xlu1 %2144 }
 0xa98   :  { %2719 = vperm.xlu1 %12021, %v2097_v4   ;;  %2404 = vperm.xlu0 %12022, %v2034_v36   ;;  %v2045_v4 = vld [vmem:[%s16473_s6 + $0x238] sm:$0xff] }
 0xa9b   :  { %v12310_v16 = vpop.eup %12309  ;;  %v13765_v63 = vpop.permute.xlu1 %2149 }
 0xa9c   :  { %v1756_v17 = vmul.f32 %v12310_v16, %v1750_v15  ;;  %2169 = vperm.xlu1 %12021, %v1987_v12   ;;  %2414 = vperm.xlu0 %12022, %v2036_v24   ;;  %v13809_v12 = vpop.permute.xlu0 %2344  ;;  %v2053_v15 = vld [vmem:[%s16473_s6 + $0x278] sm:$0xff]  ;;  %v2067_v24 = vld [vmem:[%s16473_s6 + $0x2e8] sm:$0xff] }
 0xa9e   :  { %v1766_v21 = vadd.f32 %v1763_v18, %v1756_v17  ;;  %v2100_v17 = vld [vmem:[%s16473_s6 + $0x3f0] sm:$0xff]  ;;  %v2059_v18 = vld [vmem:[%s16473_s6 + $0x2a8] sm:$0xff] }
 0xa9f   :  { %v13778_v1 = vpop.permute.xlu1 %2154 }
 0xaa0   :  { %vm1768_vm2 = vcmp.ge.f32.partialorder %v1766_v21, 0.0  ;;  %v1770_v23 = vmul.f32 0.2, %v1766_v21  ;;  %2179 = vperm.xlu1 %12021, %v1989_v19   ;;  %2444 = vperm.xlu0 %12022, %v2042_v32   ;;  %v13822_v36 = vpop.permute.xlu0 %2354  ;;  %v1974_v19 = vld [vmem:[%s16473_s6] sm:$0xff] }
 0xaa1   :  { %v1978_v32 = vld [vmem:[%s16473_s6 + $0x20] sm:$0xff] }
 0xaa2   :  { %v1772_v30 = vsel %vm1768_vm2, %v1766_v21, %v1770_v23  ;;  %v2061_v21 = vld [vmem:[%s16473_s6 + $0x2b8] sm:$0xff]  ;;  %vm4552_vm2 = vcmask 175264  }
 0xaa3   :  { %v1775_v31 = vpack.c.bf16 %v1772_v30, %v1771_v27  ;;  %v13791_v8 = vpop.permute.xlu1 %2184 }
 0xaa4   :  { %2209 = vperm.xlu1 %12021, %v1995_v25   ;;  %2454 = vperm.xlu0 %12022, %v2044_v39   ;;  %v13835_v23 = vpop.permute.xlu0 %2384  ;;  %v1976_v25 = vld [vmem:[%s16473_s6 + $0x10] sm:$0xff] }
 0xaa5   :  { %11810 = vmatpush3.bf16.msra.mxu0 %v1775_v31  ;;  %16775 = vst [vmem:[#allocation78_spill] sm:$0xff] %v13835_v23  ;;  %v2069_v31 = vld [vmem:[%s16473_s6 + $0x2f8] sm:$0xff]  ;;  %v1980_v39 = vld [vmem:[%s16473_s6 + $0x30] sm:$0xff] }
 0xaa7   :  { %v13804_v13 = vpop.permute.xlu1 %2189 }
 0xaa8   :  { %2219 = vperm.xlu1 %12021, %v1997_v37   ;;  %11812 = vmatmul.mubr.msk.bf16.vlgmr.msra.gmra.mxu0 %vm1230_vm12, %v12153_v33  ;;  %v13845_v30 = vpop.permute.xlu0 %2394  ;;  %v2075_v37 = vld [vmem:[%s16473_s6 + $0x328] sm:$0xff] }
 0xaa9   :  { %2484 = vperm.xlu0 %12022, %v2050_v43   ;;  %16776 = vst [vmem:[#allocation79_spill] sm:$0xff] %v13845_v30  ;;  %v2077_v43 = vld [vmem:[%s16473_s6 + $0x338] sm:$0xff] }
 0xaab   :  { %v13817_v16 = vpop.permute.xlu1 %2199 }
 0xaac   :  { %2249 = vperm.xlu1 %12021, %v2003_v40   ;;  %v13861_v40 = vpop.permute.xlu0 %2424 }
 0xaad   :  { %2494 = vperm.xlu0 %12022, %v2052_v34   ;;  %16777 = vst [vmem:[#allocation80_spill] sm:$0xff] %v13861_v40  ;;  %v2083_v34 = vld [vmem:[%s16473_s6 + $0x368] sm:$0xff]  ;;  %v12180_v40 = vld [vmem:[%s16472_s5 + $0xd0] sm:$0xff]  }
 0xaaf   :  { %v13830_v20 = vpop.permute.xlu1 %2229 }
 0xab0   :  { %2259 = vperm.xlu1 %12021, %v2005_v44  }
 0xab1   :  { %2524 = vperm.xlu0 %12022, %v2058_v48   ;;  %v2085_v48 = vld [vmem:[%s16473_s6 + $0x378] sm:$0xff] }
 0xab3   :  { %v13843_v27 = vpop.permute.xlu1 %2239 }
 0xab4   :  { %2289 = vperm.xlu1 %12021, %v2011_v47  }
 0xab5   :  { %2534 = vperm.xlu0 %12022, %v2060_v51  }
 0xab7   :  { %v13853_v33 = vpop.permute.xlu1 %2269 }
 0xab8   :  { %2299 = vperm.xlu1 %12021, %v2013_v50   ;;  %v2091_v50 = vld [vmem:[%s16473_s6 + $0x3a8] sm:$0xff] }
 0xab9   :  { %2564 = vperm.xlu0 %12022, %v2066_v54  }
 0xabb   :  { %v13866_v44 = vpop.permute.xlu1 %2279 }
 0xabc   :  { %2329 = vperm.xlu1 %12021, %v2019_v52   ;;  %v2093_v52 = vld [vmem:[%s16473_s6 + $0x3b8] sm:$0xff] }
 0xabd   :  { %2574 = vperm.xlu0 %12022, %v2068_v57   ;;  %v2099_v57 = vld [vmem:[%s16473_s6 + $0x3e8] sm:$0xff] }
 0xabf   :  { %v13871_v47 = vpop.permute.xlu1 %2309 }
 0xac0   :  { %2339 = vperm.xlu1 %12021, %v2021_v56   ;;  %v12154_v56 = vld [vmem:[%s16472_s5] sm:$0xff]  }
 0xac1   :  { %2604 = vperm.xlu0 %12022, %v2074_v61   ;;  %11817 = vmatprep.mubr.msk.bf16.mxu0 %vm3062_vm4, %v12154_v56 }
 0xac3   :  { %v13879_v51 = vpop.permute.xlu1 %2319 }
 0xac4   :  { %2369 = vperm.xlu1 %12021, %v2027_v59   ;;  %v2101_v59 = vld [vmem:[%s16473_s6 + $0x3f8] sm:$0xff] }
 0xac5   :  { %2614 = vperm.xlu0 %12022, %v2076_v38  }
 0xac7   :  { %v13884_v54 = vpop.permute.xlu1 %2349 }
 0xac8   :  { %2379 = vperm.xlu1 %12021, %v2029_v62   ;;  %v1975_v62 = vld [vmem:[%s16473_s6 + $0x8] sm:$0xff] }
 0xac9   :  { %2644 = vperm.xlu0 %12022, %v2082_v0   ;;  %v1979_v0 = vld [vmem:[%s16473_s6 + $0x28] sm:$0xff] }
 0xacb   :  { %v13896_v61 = vpop.permute.xlu1 %2359 }
 0xacc   :  { %2409 = vperm.xlu1 %12021, %v2035_v41   ;;  %v1977_v41 = vld [vmem:[%s16473_s6 + $0x18] sm:$0xff] }
 0xacd   :  { %2654 = vperm.xlu0 %12022, %v2084_v7   ;;  %v1981_v7 = vld [vmem:[%s16473_s6 + $0x38] sm:$0xff] }
 0xacf   :  { %v13901_v38 = vpop.permute.xlu1 %2389 }
 0xad0   :  { %2419 = vperm.xlu1 %12021, %v2037_v5   ;;  %16778 = vst [vmem:[#allocation81_spill] sm:$0xff] %v13901_v38 }
 0xad1   :  { %2684 = vperm.xlu0 %12022, %v2090_v2   ;;  %v13917_v2 = vpop.permute.xlu0 %2434 }
 0xad2   :  { %16781 = vst [vmem:[#allocation84_spill] sm:$0xff] %v13917_v2 }
 0xad3   :  { %v13909_v5 = vpop.permute.xlu1 %2399 }
 0xad4   :  { %2449 = vperm.xlu1 %12021, %v2043_v10   ;;  %16779 = vst [vmem:[#allocation82_spill] sm:$0xff] %v13909_v5  ;;  %v12205_v5 = vld [vmem:[%s16472_s5 + $0x198] sm:$0xff]  }
 0xad5   :  { %2694 = vperm.xlu0 %12022, %v2092_v11   ;;  %v13921_v11 = vpop.permute.xlu0 %2464 }
 0xad6   :  { %16783 = vst [vmem:[#allocation85_spill] sm:$0xff] %v13921_v11 }
 0xad7   :  { %v13914_v10 = vpop.permute.xlu1 %2429 }
 0xad8   :  { %2459 = vperm.xlu1 %12021, %v2045_v4   ;;  %16780 = vst [vmem:[#allocation83_spill] sm:$0xff] %v13914_v10 }
 0xad9   :  { %2724 = vperm.xlu0 %12022, %v2098_v14   ;;  %v13925_v14 = vpop.permute.xlu0 %2474 }
 0xada   :  { %16785 = vst [vmem:[#allocation87_spill] sm:$0xff] %v13925_v14  ;;  %v12178_v14 = vld [vmem:[%s16472_s5 + $0xc0] sm:$0xff]  }
 0xadb   :  { %v13919_v4 = vpop.permute.xlu1 %2439 }
 0xadc   :  { %2489 = vperm.xlu1 %12021, %v2051_v26   ;;  %16782 = vst [vmem:[#allocation77_spill] sm:$0xff] %v13919_v4 }
 0xadd   :  { %2734 = vperm.xlu0 %12022, %v2100_v17   ;;  %v13929_v17 = vpop.permute.xlu0 %2504 }
 0xade   :  { %16787 = vst [vmem:[#allocation89_spill] sm:$0xff] %v13929_v17  ;;  %v12174_v17 = vld [vmem:[%s16472_s5 + $0xa0] sm:$0xff]  }
 0xadf   :  { %v13923_v26 = vpop.permute.xlu1 %2469 }
 0xae0   :  { %2499 = vperm.xlu1 %12021, %v2053_v15   ;;  %16784 = vst [vmem:[#allocation86_spill] sm:$0xff] %v13923_v26  ;;  %v12176_v26 = vld [vmem:[%s16472_s5 + $0xb0] sm:$0xff]  }
 0xae1   :  { %2104 = vperm.xlu0 %12022, %v1974_v19   ;;  %v13933_v19 = vpop.permute.xlu0 %2514 }
 0xae2   :  { %16789 = vst [vmem:[#allocation91_spill] sm:$0xff] %v13933_v19 }
 0xae3   :  { %v13927_v15 = vpop.permute.xlu1 %2479 }
 0xae4   :  { %2529 = vperm.xlu1 %12021, %v2059_v18   ;;  %16786 = vst [vmem:[#allocation88_spill] sm:$0xff] %v13927_v15 }
 0xae5   :  { %2114 = vperm.xlu0 %12022, %v1976_v25  }
 0xae7   :  { %v13931_v18 = vpop.permute.xlu1 %2509 }
 0xae8   :  { %2539 = vperm.xlu1 %12021, %v2061_v21   ;;  %16788 = vst [vmem:[#allocation90_spill] sm:$0xff] %v13931_v18 }
 0xae9   :  { %2124 = vperm.xlu0 %12022, %v1978_v32  }
 0xaeb   :  { %v13935_v21 = vpop.permute.xlu1 %2519 }
 0xaec   :  { %2569 = vperm.xlu1 %12021, %v2067_v24   ;;  %16790 = vst [vmem:[#allocation92_spill] sm:$0xff] %v13935_v21  ;;  %v13937_v24 = vpop.permute.xlu0 %2544 }
 0xaed   :  { %2134 = vperm.xlu0 %12022, %v1980_v39   ;;  %16791 = vst [vmem:[#allocation93_spill] sm:$0xff] %v13937_v24 }
 0xaef   :  { %v13939_v25 = vpop.permute.xlu1 %2549 }
 0xaf0   :  { %2579 = vperm.xlu1 %12021, %v2069_v31   ;;  %16792 = vst [vmem:[#allocation94_spill] sm:$0xff] %v13939_v25  ;;  %v13941_v31 = vpop.permute.xlu0 %2554  ;;  %v12170_v25 = vld [vmem:[%s16472_s5 + $0x80] sm:$0xff]  }
 0xaf1   :  { %16793 = vst [vmem:[#allocation95_spill] sm:$0xff] %v13941_v31  ;;  %v12172_v31 = vld [vmem:[%s16472_s5 + $0x90] sm:$0xff]  }
 0xaf3   :  { %v13943_v32 = vpop.permute.xlu1 %2559 }
 0xaf4   :  { %2609 = vperm.xlu1 %12021, %v2075_v37   ;;  %16794 = vst [vmem:[#allocation96_spill] sm:$0xff] %v13943_v32  ;;  %v13945_v37 = vpop.permute.xlu0 %2584 }
 0xaf5   :  { %16795 = vst [vmem:[#allocation97_spill] sm:$0xff] %v13945_v37  ;;  %v12168_v37 = vld [vmem:[%s16472_s5 + $0x70] sm:$0xff]  }
 0xaf7   :  { %v13947_v39 = vpop.permute.xlu1 %2589 }
 0xaf8   :  { %2619 = vperm.xlu1 %12021, %v2077_v43   ;;  %16796 = vst [vmem:[#allocation98_spill] sm:$0xff] %v13947_v39  ;;  %v13949_v43 = vpop.permute.xlu0 %2594 }
 0xaf9   :  { %16797 = vst [vmem:[#allocation99_spill] sm:$0xff] %v13949_v43 }
 0xafc   :  { %2649 = vperm.xlu1 %12021, %v2083_v34   ;;  %v13951_v34 = vpop.permute.xlu1 %2599 }
 0xafd   :  { %16798 = vst [vmem:[#allocation100_spill] sm:$0xff] %v13951_v34 }
 0xb00   :  { %2659 = vperm.xlu1 %12021, %v2085_v48  }
 0xb04   :  { %2689 = vperm.xlu1 %12021, %v2091_v50   ;;  %v13953_v50 = vpop.permute.xlu0 %2624 }
 0xb05   :  { %16799 = vst [vmem:[#allocation101_spill] sm:$0xff] %v13953_v50 }
 0xb08   :  { %2699 = vperm.xlu1 %12021, %v2093_v52  }
 0xb0c   :  { %2729 = vperm.xlu1 %12021, %v2099_v57  }
 0xb10   :  { %2739 = vperm.xlu1 %12021, %v2101_v59   ;;  %v13960_v59 = vpop.permute.xlu1 %2629 }
 0xb11   :  { %16800 = vst [vmem:[#allocation102_spill] sm:$0xff] %v13960_v59 }
 0xb14   :  { %2109 = vperm.xlu1 %12021, %v1975_v62  }
 0xb18   :  { %2119 = vperm.xlu1 %12021, %v1977_v41  }
 0xb1c   :  { %2129 = vperm.xlu1 %12021, %v1979_v0   ;;  %v13963_v0 = vpop.permute.xlu0 %2634 }
 0xb1d   :  { %16801 = vst [vmem:[#allocation103_spill] sm:$0xff] %v13963_v0  ;;  %v12166_v0 = vld [vmem:[%s16472_s5 + $0x60] sm:$0xff]  }
 0xb20   :  { %2139 = vperm.xlu1 %12021, %v1981_v7  }
 0xb24   :  { %12024 = vset.pattern.permute.xlu1 %v16553_v29 }
 0xb68   :  { %v1830_v48 = vpop.f32.mrf.mxu0 }
 0xb69   :  { %v1831_v52 = vadd.f32 %v1830_v48, %v13739_v53  ;;  %v13969_v48 = vpop.permute.xlu1 %2639 }
 0xb6a   :  { %v11813_v56 = vpop.f32.mrf.mxu0  ;;  %16802 = vst [vmem:[#allocation104_spill] sm:$0xff] %v13969_v48 }
 0xb6b   :  { %1837 = vst.msk [vmem:[%s16479_s12] sm:$0xff] %vm1718_vm0, %v1831_v52  ;;  %v13971_v56 = vpop.permute.xlu0 %2664 }
 0xb6c   :  { %v1833_v57 = vpop.f32.mrf.mxu0  ;;  %16803 = vst [vmem:[#allocation105_spill] sm:$0xff] %v13971_v56  ;;  %v12155_v56 = vld [vmem:[%s16472_s5 + $0x8] sm:$0xff]  }
 0xb6d   :  { %v1834_v62 = vadd.f32 %v1833_v57, %v13726_v49  ;;  %v13973_v29 = vpop.permute.xlu1 %2669  ;;  %v1839_v49 = vld [vmem:[%s16468_s1] sm:$0xff]  ;;  %s12361_s1 = smov 2  }
 0xb6e   :  { %v11814_v41 = vpop.f32.mrf.mxu0  ;;  %16804 = vst [vmem:[#allocation106_spill] sm:$0xff] %v13973_v29 }
 0xb6f   :  { %1838 = vst.msk [vmem:[%s16479_s12 + $0x8] sm:$0xff] %vm1718_vm0, %v1834_v62  ;;  %v1840_v53 = vmul.f32 0.5, %v1834_v62  ;;  %v13975_v22 = vpop.permute.xlu0 %2674  ;;  %s12368_s12 = smov 18   ;;  %vm4446_vm0 = vcmask 142464  }
 0xb70   :  { %16805 = vst [vmem:[#allocation107_spill] sm:$0xff] %v13975_v22  ;;  %v12164_v22 = vld [vmem:[%s16472_s5 + $0x50] sm:$0xff]  }
 0xb71   :  { %v1841_v7 = vmul.f32 1.442695, %v1840_v53  ;;  %v13980_v57 = vpop.permute.xlu1 %2679 }
 0xb72   :  { %16806 = vst [vmem:[#allocation108_spill] sm:$0xff] %v13980_v57 }
 0xb73   :  { %12311 = vpow2.f32 %v1841_v7  ;;  %v13982_v28 = vpop.permute.xlu0 %2704 }
 0xb74   :  { %16807 = vst [vmem:[#allocation109_spill] sm:$0xff] %v13982_v28  ;;  %v12156_v28 = vld [vmem:[%s16472_s5 + $0x10] sm:$0xff]  }
 0xb75   :  { %v13984_v9 = vpop.permute.xlu1 %2709 }
 0xb76   :  { %16808 = vst [vmem:[#allocation110_spill] sm:$0xff] %v13984_v9 }
 0xb77   :  { %v13986_v59 = vpop.permute.xlu0 %2714 }
 0xb78   :  { %16809 = vst [vmem:[#allocation111_spill] sm:$0xff] %v13986_v59  ;;  %v12162_v59 = vld [vmem:[%s16472_s5 + $0x40] sm:$0xff]  }
 0xb80   :  { %v12312_v41 = vpop.eup %12311 }
 0xb81   :  { %v1843_v62 = vmul.f32 %v12312_v41, %v1839_v49  ;;  %v13996_v49 = vpop.permute.xlu1 %2719  ;;  %v12157_v41 = vld [vmem:[%s16472_s5 + $0x18] sm:$0xff]  }
 0xb82   :  { %16810 = vst [vmem:[#allocation112_spill] sm:$0xff] %v13996_v49 }
 0xb83   :  { %v1844_v53 = vadd.f32 %v1843_v62, %v1831_v52  ;;  %v14000_v52 = vpop.permute.xlu0 %2164 }
 0xb85   :  { %v1973_v7 = vpack.c.bf16 %v1844_v53, %v1844_v53  ;;  %v14008_v62 = vpop.permute.xlu1 %2169 }
 0xb87   :  { %11963 = vmatprep.subr.msk.bf16.mxu0 %vm1108_vm7, %v1973_v7  ;;  %v3256_v29 = vsel %vm1108_vm7, %v1973_v7, 0  ;;  %v14010_v53 = vpop.permute.xlu0 %2174  ;;  %v12160_v7 = vld [vmem:[%s16472_s5 + $0x30] sm:$0xff]  }
 0xb88   :  { %11816 = vmatpush3.bf16.msra.mxu0 %v3256_v29  ;;  %v12158_v29 = vld [vmem:[%s16472_s5 + $0x20] sm:$0xff]  }
 0xb8b   :  { %11818 = vmatmul.mubr.msk.bf16.vlgmr.msra.gmra.mxu0 %vm3062_vm4, %v12155_v56  ;;  %v14014_v56 = vpop.permute.xlu1 %2179  ;;  %v14022_v9 = vpop.permute.xlu0 %2204 }
 0xb8c   :  { %11821 = vmatprep.mubr.msk.bf16.mxu0 %vm3062_vm4, %v12156_v28  ;;  %v12159_v28 = vld [vmem:[%s16472_s5 + $0x28] sm:$0xff]  }
 0xb8f   :  { %v14026_v49 = vpop.permute.xlu1 %2209 }
 0xb93   :  { %11822 = vmatmul.mubr.msk.bf16.gmra.mxu0 %vm3062_vm4, %v12157_v41  ;;  %v14028_v41 = vpop.permute.xlu0 %2214  ;;  %v14036_v57 = vpop.permute.xlu1 %2219 }
 0xb94   :  { %11825 = vmatprep.mubr.msk.bf16.mxu0 %vm3062_vm4, %v12158_v29  ;;  %v12161_v29 = vld [vmem:[%s16472_s5 + $0x38] sm:$0xff]  }
 0xb97   :  { %v14048_v48 = vpop.permute.xlu1 %2249 }
 0xb9b   :  { %11826 = vmatmul.mubr.msk.bf16.gmra.mxu0 %vm3062_vm4, %v12159_v28  ;;  %v14040_v28 = vpop.permute.xlu0 %2244 }
 0xb9c   :  { %11829 = vmatprep.mubr.msk.bf16.mxu0 %vm3062_vm4, %v12160_v7  ;;  %v12163_v7 = vld [vmem:[%s16472_s5 + $0x48] sm:$0xff]  }
 0xb9f   :  { %v14050_v50 = vpop.permute.xlu0 %2254 }
 0xba3   :  { %11830 = vmatmul.mubr.msk.bf16.gmra.mxu0 %vm3062_vm4, %v12161_v29  ;;  %v14054_v29 = vpop.permute.xlu1 %2259  ;;  %v14062_v39 = vpop.permute.xlu0 %2284 }
 0xba4   :  { %11833 = vmatprep.mubr.msk.bf16.mxu0 %vm3062_vm4, %v12162_v59  ;;  %v12165_v59 = vld [vmem:[%s16472_s5 + $0x58] sm:$0xff]  }
 0xba7   :  { %v14066_v34 = vpop.permute.xlu1 %2289 }
 0xbab   :  { %11834 = vmatmul.mubr.msk.bf16.gmra.mxu0 %vm3062_vm4, %v12163_v7  ;;  %v14068_v7 = vpop.permute.xlu0 %2294  ;;  %v14076_v43 = vpop.permute.xlu1 %2299 }
 0xbac   :  { %11837 = vmatprep.mubr.msk.bf16.mxu0 %vm3062_vm4, %v12164_v22  ;;  %v12167_v22 = vld [vmem:[%s16472_s5 + $0x68] sm:$0xff]  }
 0xbaf   :  { %v14088_v32 = vpop.permute.xlu1 %2329 }
 0xbb3   :  { %11838 = vmatmul.mubr.msk.bf16.gmra.mxu0 %vm3062_vm4, %v12165_v59  ;;  %v14080_v59 = vpop.permute.xlu0 %2324 }
 0xbb4   :  { %11841 = vmatprep.mubr.msk.bf16.mxu0 %vm3062_vm4, %v12166_v0  ;;  %v12169_v0 = vld [vmem:[%s16472_s5 + $0x78] sm:$0xff]  }
 0xbb7   :  { %v14090_v24 = vpop.permute.xlu0 %2334 }
 0xbbb   :  { %11842 = vmatmul.mubr.msk.bf16.gmra.mxu0 %vm3062_vm4, %v12167_v22  ;;  %v14094_v22 = vpop.permute.xlu1 %2339  ;;  %v14102_v18 = vpop.permute.xlu0 %2364 }
 0xbbc   :  { %11845 = vmatprep.mubr.msk.bf16.mxu0 %vm3062_vm4, %v12168_v37  ;;  %v12171_v37 = vld [vmem:[%s16472_s5 + $0x88] sm:$0xff]   ;;  %16811 = vst [vmem:[#allocation113_spill] sm:$0xff] %v14102_v18 }
 0xbbf   :  { %v14106_v21 = vpop.permute.xlu1 %2369 }
 0xbc0   :  { %16812 = vst [vmem:[#allocation114_spill] sm:$0xff] %v14106_v21 }
 0xbc3   :  { %11846 = vmatmul.mubr.msk.bf16.gmra.mxu0 %vm3062_vm4, %v12169_v0  ;;  %v14108_v0 = vpop.permute.xlu0 %2374  ;;  %v14116_v19 = vpop.permute.xlu1 %2379 }
 0xbc4   :  { %11849 = vmatprep.mubr.msk.bf16.mxu0 %vm3062_vm4, %v12170_v25  ;;  %16813 = vst [vmem:[#allocation115_spill] sm:$0xff] %v14108_v0  ;;  %v12173_v25 = vld [vmem:[%s16472_s5 + $0x98] sm:$0xff]   ;;  %16814 = vst [vmem:[#allocation116_spill] sm:$0xff] %v14116_v19  ;;  %v12206_v19 = vld [vmem:[%s16472_s5 + $0x1a0] sm:$0xff]  }
 0xbc7   :  { %v14128_v15 = vpop.permute.xlu1 %2409 }
 0xbc8   :  { %16816 = vst [vmem:[#allocation118_spill] sm:$0xff] %v14128_v15 }
 0xbcb   :  { %11850 = vmatmul.mubr.msk.bf16.gmra.mxu0 %vm3062_vm4, %v12171_v37  ;;  %v14120_v37 = vpop.permute.xlu0 %2404 }
 0xbcc   :  { %11853 = vmatprep.mubr.msk.bf16.mxu0 %vm3062_vm4, %v12172_v31  ;;  %16815 = vst [vmem:[#allocation117_spill] sm:$0xff] %v14120_v37  ;;  %v12175_v31 = vld [vmem:[%s16472_s5 + $0xa8] sm:$0xff]  }
 0xbcf   :  { %v14130_v11 = vpop.permute.xlu0 %2414 }
 0xbd0   :  { %16817 = vst [vmem:[#allocation119_spill] sm:$0xff] %v14130_v11 }
 0xbd3   :  { %11854 = vmatmul.mubr.msk.bf16.gmra.mxu0 %vm3062_vm4, %v12173_v25  ;;  %v14134_v25 = vpop.permute.xlu1 %2419  ;;  %v14142_v10 = vpop.permute.xlu0 %2444 }
 0xbd4   :  { %11857 = vmatprep.mubr.msk.bf16.mxu0 %vm3062_vm4, %v12174_v17  ;;  %16818 = vst [vmem:[#allocation120_spill] sm:$0xff] %v14134_v25  ;;  %v12177_v17 = vld [vmem:[%s16472_s5 + $0xb8] sm:$0xff]   ;;  %16819 = vst [vmem:[#allocation121_spill] sm:$0xff] %v14142_v10 }
 0xbd7   :  { %v14146_v4 = vpop.permute.xlu1 %2449 }
 0xbd8   :  { %16820 = vst [vmem:[#allocation122_spill] sm:$0xff] %v14146_v4  ;;  %v12182_v4 = vld [vmem:[%s16472_s5 + $0xe0] sm:$0xff]  }
 0xbdb   :  { %11858 = vmatmul.mubr.msk.bf16.gmra.mxu0 %vm3062_vm4, %v12175_v31  ;;  %v14148_v31 = vpop.permute.xlu0 %2454  ;;  %v14156_v2 = vpop.permute.xlu1 %2459 }
 0xbdc   :  { %11861 = vmatprep.mubr.msk.bf16.mxu0 %vm3062_vm4, %v12176_v26  ;;  %16821 = vst [vmem:[#allocation123_spill] sm:$0xff] %v14148_v31  ;;  %v12179_v26 = vld [vmem:[%s16472_s5 + $0xc8] sm:$0xff]   ;;  %16822 = vst [vmem:[#allocation124_spill] sm:$0xff] %v14156_v2 }
 0xbdf   :  { %v14168_v10 = vpop.permute.xlu1 %2489 }
 0xbe0   :  { %16824 = vst [vmem:[#allocation126_spill] sm:$0xff] %v14168_v10 }
 0xbe3   :  { %11862 = vmatmul.mubr.msk.bf16.gmra.mxu0 %vm3062_vm4, %v12177_v17  ;;  %v14160_v17 = vpop.permute.xlu0 %2484 }
 0xbe4   :  { %11865 = vmatprep.mubr.msk.bf16.mxu0 %vm3062_vm4, %v12178_v14  ;;  %16823 = vst [vmem:[#allocation125_spill] sm:$0xff] %v14160_v17  ;;  %v12181_v14 = vld [vmem:[%s16472_s5 + $0xd8] sm:$0xff]   ;;  %v12184_v17 = vld [vmem:[%s16472_s5 + $0xf0] sm:$0xff]  }
 0xbe7   :  { %v14170_v31 = vpop.permute.xlu0 %2494 }
 0xbe8   :  { %16825 = vst [vmem:[#allocation127_spill] sm:$0xff] %v14170_v31 }
 0xbeb   :  { %11866 = vmatmul.mubr.msk.bf16.gmra.mxu0 %vm3062_vm4, %v12179_v26  ;;  %v14174_v26 = vpop.permute.xlu1 %2499  ;;  %v14182_v2 = vpop.permute.xlu0 %2524 }
 0xbec   :  { %11869 = vmatprep.mubr.msk.bf16.mxu0 %vm3062_vm4, %v12180_v40  ;;  %16826 = vst [vmem:[#allocation128_spill] sm:$0xff] %v14174_v26  ;;  %v12183_v40 = vld [vmem:[%s16472_s5 + $0xe8] sm:$0xff]   ;;  %16827 = vst [vmem:[#allocation129_spill] sm:$0xff] %v14182_v2  ;;  %v12186_v26 = vld [vmem:[%s16472_s5 + $0x100] sm:$0xff]  }
 0xbef   :  { %v14186_v10 = vpop.permute.xlu1 %2529 }
 0xbf0   :  { %16828 = vst [vmem:[#allocation130_spill] sm:$0xff] %v14186_v10  ;;  %v12188_v10 = vld [vmem:[%s16472_s5 + $0x110] sm:$0xff]  }
 0xbf3   :  { %11870 = vmatmul.mubr.msk.bf16.gmra.mxu0 %vm3062_vm4, %v12181_v14  ;;  %v14188_v14 = vpop.permute.xlu0 %2534  ;;  %v14196_v31 = vpop.permute.xlu1 %2539 }
 0xbf4   :  { %11873 = vmatprep.mubr.msk.bf16.mxu0 %vm3062_vm4, %v12182_v4  ;;  %16829 = vst [vmem:[#allocation131_spill] sm:$0xff] %v14188_v14  ;;  %v12185_v4 = vld [vmem:[%s16472_s5 + $0xf8] sm:$0xff]   ;;  %16830 = vst [vmem:[#allocation132_spill] sm:$0xff] %v14196_v31 }
 0xbf7   :  { %v14208_v2 = vpop.permute.xlu1 %2569 }
 0xbf8   :  { %16832 = vst [vmem:[#allocation134_spill] sm:$0xff] %v14208_v2 }
 0xbfb   :  { %11874 = vmatmul.mubr.msk.bf16.gmra.mxu0 %vm3062_vm4, %v12183_v40  ;;  %v14200_v40 = vpop.permute.xlu0 %2564 }
 0xbfc   :  { %11877 = vmatprep.mubr.msk.bf16.mxu0 %vm3062_vm4, %v12184_v17  ;;  %16831 = vst [vmem:[#allocation133_spill] sm:$0xff] %v14200_v40  ;;  %v12187_v17 = vld [vmem:[%s16472_s5 + $0x108] sm:$0xff]   ;;  %v12190_v40 = vld [vmem:[%s16472_s5 + $0x120] sm:$0xff]  }
 0xbff   :  { %v14210_v14 = vpop.permute.xlu0 %2574 }
 0xc00   :  { %16833 = vst [vmem:[#allocation135_spill] sm:$0xff] %v14210_v14 }
 0xc03   :  { %11878 = vmatmul.mubr.msk.bf16.gmra.mxu0 %vm3062_vm4, %v12185_v4  ;;  %v14214_v4 = vpop.permute.xlu1 %2579  ;;  %v14222_v31 = vpop.permute.xlu0 %2604 }
 0xc04   :  { %11881 = vmatprep.mubr.msk.bf16.mxu0 %vm3062_vm4, %v12186_v26  ;;  %16834 = vst [vmem:[#allocation136_spill] sm:$0xff] %v14214_v4  ;;  %v12189_v26 = vld [vmem:[%s16472_s5 + $0x118] sm:$0xff]   ;;  %16835 = vst [vmem:[#allocation137_spill] sm:$0xff] %v14222_v31  ;;  %v12192_v4 = vld [vmem:[%s16472_s5 + $0x130] sm:$0xff]  }
 0xc07   :  { %v14226_v2 = vpop.permute.xlu1 %2609 }
 0xc08   :  { %16836 = vst [vmem:[#allocation138_spill] sm:$0xff] %v14226_v2  ;;  %v12194_v2 = vld [vmem:[%s16472_s5 + $0x140] sm:$0xff]  }
 0xc0b   :  { %11882 = vmatmul.mubr.msk.bf16.gmra.mxu0 %vm3062_vm4, %v12187_v17  ;;  %v14228_v17 = vpop.permute.xlu0 %2614  ;;  %v14236_v14 = vpop.permute.xlu1 %2619 }
 0xc0c   :  { %11885 = vmatprep.mubr.msk.bf16.mxu0 %vm3062_vm4, %v12188_v10  ;;  %16837 = vst [vmem:[#allocation139_spill] sm:$0xff] %v14228_v17  ;;  %v12191_v10 = vld [vmem:[%s16472_s5 + $0x128] sm:$0xff]   ;;  %16838 = vst [vmem:[#allocation140_spill] sm:$0xff] %v14236_v14 }
 0xc0f   :  { %v14248_v31 = vpop.permute.xlu1 %2649 }
 0xc10   :  { %16840 = vst [vmem:[#allocation142_spill] sm:$0xff] %v14248_v31 }
 0xc13   :  { %11886 = vmatmul.mubr.msk.bf16.gmra.mxu0 %vm3062_vm4, %v12189_v26  ;;  %v14240_v26 = vpop.permute.xlu0 %2644 }
 0xc14   :  { %11889 = vmatprep.mubr.msk.bf16.mxu0 %vm3062_vm4, %v12190_v40  ;;  %16839 = vst [vmem:[#allocation141_spill] sm:$0xff] %v14240_v26  ;;  %v12193_v40 = vld [vmem:[%s16472_s5 + $0x138] sm:$0xff]   ;;  %v12196_v26 = vld [vmem:[%s16472_s5 + $0x150] sm:$0xff]  }
 0xc17   :  { %v14250_v17 = vpop.permute.xlu0 %2654 }
 0xc18   :  { %16841 = vst [vmem:[#allocation143_spill] sm:$0xff] %v14250_v17 }
 0xc1b   :  { %11890 = vmatmul.mubr.msk.bf16.gmra.mxu0 %vm3062_vm4, %v12191_v10  ;;  %v14254_v10 = vpop.permute.xlu1 %2659  ;;  %v14262_v14 = vpop.permute.xlu0 %2684 }
 0xc1c   :  { %11893 = vmatprep.mubr.msk.bf16.mxu0 %vm3062_vm4, %v12192_v4  ;;  %16842 = vst [vmem:[#allocation144_spill] sm:$0xff] %v14254_v10  ;;  %v12195_v4 = vld [vmem:[%s16472_s5 + $0x148] sm:$0xff]   ;;  %16843 = vst [vmem:[#allocation145_spill] sm:$0xff] %v14262_v14  ;;  %v12198_v10 = vld [vmem:[%s16472_s5 + $0x160] sm:$0xff]  }
 0xc1f   :  { %v14266_v17 = vpop.permute.xlu1 %2689 }
 0xc20   :  { %16844 = vst [vmem:[#allocation146_spill] sm:$0xff] %v14266_v17  ;;  %v12200_v17 = vld [vmem:[%s16472_s5 + $0x170] sm:$0xff]  }
 0xc23   :  { %11894 = vmatmul.mubr.msk.bf16.gmra.mxu0 %vm3062_vm4, %v12193_v40  ;;  %v14268_v40 = vpop.permute.xlu0 %2694  ;;  %v14276_v31 = vpop.permute.xlu1 %2699 }
 0xc24   :  { %11897 = vmatprep.mubr.msk.bf16.mxu0 %vm3062_vm4, %v12194_v2  ;;  %16845 = vst [vmem:[#allocation147_spill] sm:$0xff] %v14268_v40  ;;  %v12197_v2 = vld [vmem:[%s16472_s5 + $0x158] sm:$0xff]   ;;  %16846 = vst [vmem:[#allocation148_spill] sm:$0xff] %v14276_v31 }
 0xc27   :  { %v14288_v40 = vpop.permute.xlu1 %2729 }
 0xc28   :  { %16848 = vst [vmem:[#allocation150_spill] sm:$0xff] %v14288_v40 }
 0xc2b   :  { %11898 = vmatmul.mubr.msk.bf16.gmra.mxu0 %vm3062_vm4, %v12195_v4  ;;  %v14280_v4 = vpop.permute.xlu0 %2724 }
 0xc2c   :  { %11901 = vmatprep.mubr.msk.bf16.mxu0 %vm3062_vm4, %v12196_v26  ;;  %16847 = vst [vmem:[#allocation149_spill] sm:$0xff] %v14280_v4  ;;  %v12199_v26 = vld [vmem:[%s16472_s5 + $0x168] sm:$0xff]   ;;  %v12202_v4 = vld [vmem:[%s16472_s5 + $0x180] sm:$0xff]  }
 0xc2f   :  { %v14290_v14 = vpop.permute.xlu0 %2734 }
 0xc30   :  { %16849 = vst [vmem:[#allocation151_spill] sm:$0xff] %v14290_v14 }
 0xc33   :  { %11902 = vmatmul.mubr.msk.bf16.gmra.mxu0 %vm3062_vm4, %v12197_v2  ;;  %v14294_v2 = vpop.permute.xlu1 %2739  ;;  %v2105_v31 = vpop.permute.xlu0 %2104 }
 0xc34   :  { %11905 = vmatprep.mubr.msk.bf16.mxu0 %vm3062_vm4, %v12198_v10  ;;  %16850 = vst [vmem:[#allocation152_spill] sm:$0xff] %v14294_v2  ;;  %v12201_v10 = vld [vmem:[%s16472_s5 + $0x178] sm:$0xff]  }
 0xc37   :  { %v2110_v40 = vpop.permute.xlu1 %2109  ;;  %v2115_v14 = vpop.permute.xlu0 %2114 }
 0xc3b   :  { %11906 = vmatmul.mubr.msk.bf16.gmra.mxu0 %vm3062_vm4, %v12199_v26  ;;  %v12204_v26 = vld [vmem:[%s16472_s5 + $0x190] sm:$0xff]   ;;  %v2120_v2 = vpop.permute.xlu1 %2119 }
 0xc3c   :  { %11909 = vmatprep.mubr.msk.bf16.mxu0 %vm3062_vm4, %v12200_v17  ;;  %v12203_v17 = vld [vmem:[%s16472_s5 + $0x188] sm:$0xff]  }
 0xc43   :  { %11910 = vmatmul.mubr.msk.bf16.gmra.mxu0 %vm3062_vm4, %v12201_v10  ;;  %v2125_v10 = vpop.permute.xlu0 %2124 }
 0xc44   :  { %11913 = vmatprep.mubr.msk.bf16.mxu0 %vm3062_vm4, %v12202_v4 }
 0xc4b   :  { %v11819_v15 = vpop.f32.mrf.mxu0  ;;  %11914 = vmatmul.mubr.msk.bf16.gmra.mxu0 %vm3062_vm4, %v12203_v17  ;;  %v2130_v17 = vpop.permute.xlu1 %2129 }
 0xc4c   :  { %v3301_v25 = vadd.f32 %v11819_v15, %v2115_v14  ;;  %11917 = vmatprep.mubr.msk.bf16.mxu0 %vm3062_vm4, %v12204_v26 }
 0xc4d   :  { %v3292_v37 = vpop.f32.mrf.mxu0 }
 0xc4e   :  { %v3805_v4 = vmax.f32 %v3301_v25, 0.0  ;;  %v3293_v11 = vadd.f32 %v3292_v37, %v2105_v31  ;;  %v2135_v37 = vpop.permute.xlu0 %2134 }
 0xc4f   :  { %v11820_v38 = vpop.f32.mrf.mxu0 }
 0xc50   :  { %v11203_v23 = vpack.c.bf16 %v3805_v4, %v3805_v4  ;;  %v3803_v30 = vmax.f32 %v3293_v11, 0.0  ;;  %v3304_v21 = vadd.f32 %v11820_v38, %v2120_v2 }
 0xc51   :  { %v3295_v15 = vpop.f32.mrf.mxu0 }
 0xc52   :  { %4025 = vst.msk [vmem:[#allocation5 + $0x8] sm:$0xf] %vm1400_vm15, %v11203_v23  ;;  %v11201_v14 = vpack.c.bf16 %v3803_v30, %v3803_v30  ;;  %v3806_v26 = vmax.f32 %v3304_v21, 0.0  ;;  %v3296_v25 = vadd.f32 %v3295_v15, %v2110_v40  ;;  %v2140_v30 = vpop.permute.xlu1 %2139  ;;  %v12207_v40 = vld [vmem:[%s16472_s5 + $0x1a8] sm:$0xff]  }
 0xc53   :  { %v11823_v31 = vpop.f32.mrf.mxu0  ;;  %11918 = vmatmul.mubr.msk.bf16.gmra.mxu0 %vm3062_vm4, %v12205_v5 }
 0xc54   :  { %4023 = vst.msk [vmem:[#allocation5] sm:$0xf] %vm1400_vm15, %v11201_v14  ;;  %v11204_v4 = vpack.c.bf16 %v3806_v26, %v3806_v26  ;;  %v3804_v11 = vmax.f32 %v3296_v25, 0.0  ;;  %v3317_v38 = vadd.f32 %v11823_v31, %v2135_v37  ;;  %11921 = vmatprep.mubr.msk.bf16.mxu0 %vm3062_vm4, %v12206_v19  ;;  %v12208_v19 = vld [vmem:[%s16472_s5 + $0x1b0] sm:$0xff]  }
 0xc55   :  { %v3308_v2 = vpop.f32.mrf.mxu0 }
 0xc56   :  { %4026 = vst.msk [vmem:[#allocation5 + $0xc] sm:$0xf] %vm1400_vm15, %v11204_v4  ;;  %v11202_v18 = vpack.c.bf16 %v3804_v11, %v3804_v11  ;;  %v3809_v0 = vmax.f32 %v3317_v38, 0.0  ;;  %v3309_v23 = vadd.f32 %v3308_v2, %v2125_v10 }
 0xc57   :  { %v11824_v21 = vpop.f32.mrf.mxu0 }
 0xc58   :  { %4024 = vst.msk [vmem:[#allocation5 + $0x4] sm:$0xf] %vm1400_vm15, %v11202_v18  ;;  %v11207_v5 = vpack.c.bf16 %v3809_v0, %v3809_v0  ;;  %v3807_v15 = vmax.f32 %v3309_v23, 0.0  ;;  %v3320_v14 = vadd.f32 %v11824_v21, %v2140_v30 }
 0xc59   :  { %v3311_v26 = vpop.f32.mrf.mxu0 }
 0xc5a   :  { %4029 = vst.msk [vmem:[#allocation5 + $0x18] sm:$0xf] %vm1400_vm15, %v11207_v5  ;;  %v11205_v25 = vpack.c.bf16 %v3807_v15, %v3807_v15  ;;  %v3810_v10 = vmax.f32 %v3320_v14, 0.0  ;;  %v3312_v37 = vadd.f32 %v3311_v26, %v2130_v17  ;;  %v12209_v17 = vld [vmem:[%s16472_s5 + $0x1b8] sm:$0xff]   ;;  %v12210_v5 = vld [vmem:[%s16472_s5 + $0x1c0] sm:$0xff]  }
 0xc5b   :  { %v11827_v31 = vpop.f32.mrf.mxu0  ;;  %11922 = vmatmul.mubr.msk.bf16.gmra.mxu0 %vm3062_vm4, %v12207_v40 }
 0xc5c   :  { %4027 = vst.msk [vmem:[#allocation5 + $0x10] sm:$0xf] %vm1400_vm15, %v11205_v25  ;;  %v11208_v4 = vpack.c.bf16 %v3810_v10, %v3810_v10  ;;  %v3808_v18 = vmax.f32 %v3312_v37, 0.0  ;;  %v3333_v0 = vadd.f32 %v11827_v31, %v13778_v1  ;;  %11925 = vmatprep.mubr.msk.bf16.mxu0 %vm3062_vm4, %v12208_v19 }
 0xc5d   :  { %v3324_v11 = vpop.f32.mrf.mxu0 }
 0xc5e   :  { %4030 = vst.msk [vmem:[#allocation5 + $0x1c] sm:$0xf] %vm1400_vm15, %v11208_v4  ;;  %v11206_v38 = vpack.c.bf16 %v3808_v18, %v3808_v18  ;;  %v3813_v2 = vmax.f32 %v3333_v0, 0.0  ;;  %v3325_v23 = vadd.f32 %v3324_v11, %v13752_v58  ;;  %v12211_v18 = vld [vmem:[%s16472_s5 + $0x1c8] sm:$0xff]  }
 0xc5f   :  { %v11828_v30 = vpop.f32.mrf.mxu0 }
 0xc60   :  { %4028 = vst.msk [vmem:[#allocation5 + $0x14] sm:$0xf] %vm1400_vm15, %v11206_v38  ;;  %v11211_v21 = vpack.c.bf16 %v3813_v2, %v3813_v2  ;;  %v3811_v40 = vmax.f32 %v3325_v23, 0.0  ;;  %v3336_v1 = vadd.f32 %v11828_v30, %v13707_v42  ;;  %v12212_v2 = vld [vmem:[%s16472_s5 + $0x1d0] sm:$0xff]   ;;  %vm4393_vm15 = vcmask 126064  }
 0xc61   :  { %v3327_v15 = vpop.f32.mrf.mxu0 }
 0xc62   :  { %v3814_v14 = vmax.f32 %v3336_v1, 0.0  ;;  %v3328_v19 = vadd.f32 %v3327_v15, %v13765_v63  ;;  %4055 = vrot.lane.b32.xlu0 %v11211_v21, %s12361_s1  ;;  %v11209_v26 = vpack.c.bf16 %v3811_v40, %v3811_v40 }
 0xc63   :  { %v11831_v58 = vpop.f32.mrf.mxu0  ;;  %11926 = vmatmul.mubr.msk.bf16.gmra.mxu0 %vm3062_vm4, %v12209_v17 }
 0xc64   :  { %v11212_v25 = vpack.c.bf16 %v3814_v14, %v3814_v14  ;;  %v3812_v10 = vmax.f32 %v3328_v19, 0.0  ;;  %v3349_v37 = vadd.f32 %v11831_v58, %v14010_v53  ;;  %11929 = vmatprep.mubr.msk.bf16.mxu0 %vm3062_vm4, %v12210_v5  ;;  %v12213_v19 = vld [vmem:[%s16472_s5 + $0x1d8] sm:$0xff]  }
 0xc65   :  { %v3340_v42 = vpop.f32.mrf.mxu0 }
 0xc66   :  { %v3817_v31 = vmax.f32 %v3349_v37, 0.0  ;;  %v3341_v4 = vadd.f32 %v3340_v42, %v14000_v52  ;;  %4057 = vrot.lane.b32.xlu1 %v11212_v25, %s12361_s1  ;;  %4051 = vrot.lane.b32.xlu0 %v11209_v26, %s12361_s1  ;;  %v11210_v0 = vpack.c.bf16 %v3812_v10, %v3812_v10  ;;  %v12214_v10 = vld [vmem:[%s16472_s5 + $0x1e0] sm:$0xff]  }
 0xc67   :  { %v11832_v63 = vpop.f32.mrf.mxu0 }
 0xc68   :  { %v11215_v11 = vpack.c.bf16 %v3817_v31, %v3817_v31  ;;  %v3815_v38 = vmax.f32 %v3341_v4, 0.0  ;;  %v3352_v53 = vadd.f32 %v11832_v63, %v14014_v56 }
 0xc69   :  { %v3343_v23 = vpop.f32.mrf.mxu0 }
 0xc6a   :  { %v3818_v52 = vmax.f32 %v3352_v53, 0.0  ;;  %v3344_v30 = vadd.f32 %v3343_v23, %v14008_v62  ;;  %4053 = vrot.lane.b32.xlu1 %v11210_v0, %s12361_s1  ;;  %4063 = vrot.lane.b32.xlu0 %v11215_v11, %s12361_s1  ;;  %v11213_v21 = vpack.c.bf16 %v3815_v38, %v3815_v38  ;;  %v12215_v53 = vld [vmem:[%s16472_s5 + $0x1e8] sm:$0xff]  }
 0xc6b   :  { %v11835_v17 = vpop.f32.mrf.mxu0  ;;  %11930 = vmatmul.mubr.msk.bf16.gmra.mxu0 %vm3062_vm4, %v12211_v18 }
 0xc6c   :  { %v11216_v40 = vpack.c.bf16 %v3818_v52, %v3818_v52  ;;  %v3816_v1 = vmax.f32 %v3344_v30, 0.0  ;;  %v3365_v56 = vadd.f32 %v11835_v17, %v13718_v46  ;;  %11933 = vmatprep.mubr.msk.bf16.mxu0 %vm3062_vm4, %v12212_v2  ;;  %v12216_v30 = vld [vmem:[%s16472_s5 + $0x1f0] sm:$0xff]  }
 0xc6d   :  { %v3356_v5 = vpop.f32.mrf.mxu0 }
 0xc6e   :  { %v3821_v15 = vmax.f32 %v3365_v56, 0.0  ;;  %v3357_v14 = vadd.f32 %v3356_v5, %v13791_v8  ;;  %4065 = vrot.lane.b32.xlu1 %v11216_v40, %s12361_s1  ;;  %4059 = vrot.lane.b32.xlu0 %v11213_v21, %s12361_s1  ;;  %v11214_v58 = vpack.c.bf16 %v3816_v1, %v3816_v1 }
 0xc6f   :  { %v11836_v62 = vpop.f32.mrf.mxu0 }
 0xc70   :  { %v11219_v26 = vpack.c.bf16 %v3821_v15, %v3821_v15  ;;  %v3819_v25 = vmax.f32 %v3357_v14, 0.0  ;;  %v3368_v46 = vadd.f32 %v11836_v62, %v13817_v16 }
 0xc71   :  { %v3359_v37 = vpop.f32.mrf.mxu0 }
 0xc72   :  { %v3822_v8 = vmax.f32 %v3368_v46, 0.0  ;;  %v3360_v42 = vadd.f32 %v3359_v37, %v13804_v13  ;;  %4061 = vrot.lane.b32.xlu1 %v11214_v58, %s12361_s1  ;;  %4108 = vrot.lane.b32.xlu0 %v11219_v26, %s12362_s25  ;;  %v11217_v4 = vpack.c.bf16 %v3819_v25, %v3819_v25  ;;  %s12371_s1 = smov 24  }
 0xc73   :  { %v11839_v31 = vpop.f32.mrf.mxu0  ;;  %11934 = vmatmul.mubr.msk.bf16.gmra.mxu0 %vm3062_vm4, %v12213_v19  ;;  %v12217_v19 = vld [vmem:[%s16472_s5 + $0x1f8] sm:$0xff]   ;;  %s12364_s5 = smov 8  }
 0xc74   :  { %v11220_v63 = vpack.c.bf16 %v3822_v8, %v3822_v8  ;;  %v3820_v18 = vmax.f32 %v3360_v42, 0.0  ;;  %v3381_v16 = vadd.f32 %v11839_v31, %v14028_v41  ;;  %11937 = vmatprep.mubr.msk.bf16.mxu0 %vm3062_vm4, %v12214_v10 }
 0xc75   :  { %v3372_v0 = vpop.f32.mrf.mxu0 }
 0xc76   :  { %v3825_v11 = vmax.f32 %v3381_v16, 0.0  ;;  %v3373_v38 = vadd.f32 %v3372_v0, %v14022_v9  ;;  %4110 = vrot.lane.b32.xlu1 %v11220_v63, %s12362_s25  ;;  %4104 = vrot.lane.b32.xlu0 %v11217_v4, %s12362_s25  ;;  %v11218_v2 = vpack.c.bf16 %v3820_v18, %v3820_v18  ;;  %v16851_v63 = vmov 0  }
 0xc77   :  { %v11840_v13 = vpop.f32.mrf.mxu0 }
 0xc78   :  { %v11223_v23 = vpack.c.bf16 %v3825_v11, %v3825_v11  ;;  %v3823_v52 = vmax.f32 %v3373_v38, 0.0  ;;  %v3384_v41 = vadd.f32 %v11840_v13, %v14036_v57 }
 0xc79   :  { %v3375_v17 = vpop.f32.mrf.mxu0 }
 0xc7a   :  { %v3826_v9 = vmax.f32 %v3384_v41, 0.0  ;;  %v3376_v21 = vadd.f32 %v3375_v17, %v14026_v49  ;;  %4106 = vrot.lane.b32.xlu1 %v11218_v2, %s12362_s25  ;;  %4116 = vrot.lane.b32.xlu0 %v11223_v23, %s12362_s25  ;;  %v11221_v1 = vpack.c.bf16 %v3823_v52, %v3823_v52 }
 0xc7b   :  { %v11843_v40 = vpop.f32.mrf.mxu0  ;;  %11938 = vmatmul.mubr.msk.bf16.gmra.mxu0 %vm3062_vm4, %v12215_v53 }
 0xc7c   :  { %v11224_v56 = vpack.c.bf16 %v3826_v9, %v3826_v9  ;;  %v3824_v5 = vmax.f32 %v3376_v21, 0.0  ;;  %v3397_v57 = vadd.f32 %v11843_v40, %v13744_v55  ;;  %11941 = vmatprep.mubr.msk.bf16.mxu0 %vm3062_vm4, %v12216_v30 }
 0xc7d   :  { %v3388_v15 = vpop.f32.mrf.mxu0 }
 0xc7e   :  { %v3829_v14 = vmax.f32 %v3397_v57, 0.0  ;;  %v3389_v62 = vadd.f32 %v3388_v15, %v13731_v35  ;;  %4118 = vrot.lane.b32.xlu1 %v11224_v56, %s12362_s25  ;;  %4112 = vrot.lane.b32.xlu0 %v11221_v1, %s12362_s25  ;;  %v11222_v58 = vpack.c.bf16 %v3824_v5, %v3824_v5 }
 0xc7f   :  { %v11844_v49 = vpop.f32.mrf.mxu0 }
 0xc80   :  { %v11227_v26 = vpack.c.bf16 %v3829_v14, %v3829_v14  ;;  %v3827_v25 = vmax.f32 %v3389_v62, 0.0  ;;  %v3400_v55 = vadd.f32 %v11844_v49, %v13843_v27 }
 0xc81   :  { %v3391_v46 = vpop.f32.mrf.mxu0 }
 0xc82   :  { %v3830_v10 = vmax.f32 %v3400_v55, 0.0  ;;  %v3392_v37 = vadd.f32 %v3391_v46, %v13830_v20  ;;  %4114 = vrot.lane.b32.xlu1 %v11222_v58, %s12362_s25  ;;  %4161 = vrot.lane.b32.xlu0 %v11227_v26, %s12363_s9  ;;  %v11225_v8 = vpack.c.bf16 %v3827_v25, %v3827_v25 }
 0xc83   :  { %v11847_v35 = vpop.f32.mrf.mxu0  ;;  %11942 = vmatmul.mubr.msk.bf16.gmra.mxu0 %vm3062_vm4, %v12217_v19 }
 0xc84   :  { %v11228_v42 = vpack.c.bf16 %v3830_v10, %v3830_v10  ;;  %v3828_v31 = vmax.f32 %v3392_v37, 0.0  ;;  %v3413_v4 = vadd.f32 %v11847_v35, %v14050_v50  ;;  %6159 = vmatprep.mubr.bf16.mxu0 %v16851_v63 }
 0xc85   :  { %v3404_v27 = vpop.f32.mrf.mxu0 }
 0xc86   :  { %v3833_v18 = vmax.f32 %v3413_v4, 0.0  ;;  %v3405_v16 = vadd.f32 %v3404_v27, %v14040_v28  ;;  %4163 = vrot.lane.b32.xlu1 %v11228_v42, %s12363_s9  ;;  %4157 = vrot.lane.b32.xlu0 %v11225_v8, %s12363_s9  ;;  %v11226_v0 = vpack.c.bf16 %v3828_v31, %v3828_v31 }
 0xc87   :  { %v11848_v20 = vpop.f32.mrf.mxu0 }
 0xc88   :  { %v11231_v11 = vpack.c.bf16 %v3833_v18, %v3833_v18  ;;  %v3831_v38 = vmax.f32 %v3405_v16, 0.0  ;;  %v3416_v13 = vadd.f32 %v11848_v20, %v14054_v29 }
 0xc89   :  { %v3407_v53 = vpop.f32.mrf.mxu0 }
 0xc8a   :  { %v3834_v2 = vmax.f32 %v3416_v13, 0.0  ;;  %v3408_v50 = vadd.f32 %v3407_v53, %v14048_v48  ;;  %4159 = vrot.lane.b32.xlu1 %v11226_v0, %s12363_s9  ;;  %4169 = vrot.lane.b32.xlu0 %v11231_v11, %s12363_s9  ;;  %v11229_v28 = vpack.c.bf16 %v3831_v38, %v3831_v38 }
 0xc8b   :  { %v11851_v23 = vpop.f32.mrf.mxu0 }
 0xc8c   :  { %v11232_v52 = vpack.c.bf16 %v3834_v2, %v3834_v2  ;;  %v3832_v41 = vmax.f32 %v3408_v50, 0.0  ;;  %v3429_v30 = vadd.f32 %v11851_v23, %v13770_v45 }
 0xc8d   :  { %v3420_v17 = vpop.f32.mrf.mxu0 }
 0xc8e   :  { %v3837_v9 = vmax.f32 %v3429_v30, 0.0  ;;  %v3421_v21 = vadd.f32 %v3420_v17, %v13757_v60  ;;  %4171 = vrot.lane.b32.xlu1 %v11232_v52, %s12363_s9  ;;  %4165 = vrot.lane.b32.xlu0 %v11229_v28, %s12363_s9  ;;  %v11230_v48 = vpack.c.bf16 %v3832_v41, %v3832_v41 }
 0xc8f   :  { %v11852_v29 = vpop.f32.mrf.mxu0 }
 0xc90   :  { %v11235_v40 = vpack.c.bf16 %v3837_v9, %v3837_v9  ;;  %v3835_v1 = vmax.f32 %v3421_v21, 0.0  ;;  %v3432_v56 = vadd.f32 %v11852_v29, %v13866_v44 }
 0xc91   :  { %v3423_v5 = vpop.f32.mrf.mxu0 }
 0xc92   :  { %v3838_v57 = vmax.f32 %v3432_v56, 0.0  ;;  %v3424_v15 = vadd.f32 %v3423_v5, %v13853_v33  ;;  %4167 = vrot.lane.b32.xlu1 %v11230_v48, %s12363_s9  ;;  %4214 = vrot.lane.b32.xlu0 %v11235_v40, %s12364_s5  ;;  %v11233_v45 = vpack.c.bf16 %v3835_v1, %v3835_v1 }
 0xc93   :  { %v11855_v60 = vpop.f32.mrf.mxu0 }
 0xc94   :  { %v11236_v14 = vpack.c.bf16 %v3838_v57, %v3838_v57  ;;  %v3836_v62 = vmax.f32 %v3424_v15, 0.0  ;;  %v3445_v49 = vadd.f32 %v11855_v60, %v14068_v7 }
 0xc95   :  { %v3436_v19 = vpop.f32.mrf.mxu0 }
 0xc96   :  { %v3841_v58 = vmax.f32 %v3445_v49, 0.0  ;;  %v3437_v26 = vadd.f32 %v3436_v19, %v14062_v39  ;;  %4216 = vrot.lane.b32.xlu1 %v11236_v14, %s12364_s5  ;;  %4210 = vrot.lane.b32.xlu0 %v11233_v45, %s12364_s5  ;;  %v11234_v44 = vpack.c.bf16 %v3836_v62, %v3836_v62 }
 0xc97   :  { %v11856_v33 = vpop.f32.mrf.mxu0 }
 0xc98   :  { %v11239_v25 = vpack.c.bf16 %v3841_v58, %v3841_v58  ;;  %v3839_v55 = vmax.f32 %v3437_v26, 0.0  ;;  %v3448_v46 = vadd.f32 %v11856_v33, %v14076_v43  ;;  %v16852_v26 = vld [vmem:[#allocation115_spill] sm:$0xff] }
 0xc99   :  { %v3439_v10 = vpop.f32.mrf.mxu0 }
 0xc9a   :  { %v3842_v37 = vmax.f32 %v3448_v46, 0.0  ;;  %v3440_v35 = vadd.f32 %v3439_v10, %v14066_v34  ;;  %4212 = vrot.lane.b32.xlu1 %v11234_v44, %s12364_s5  ;;  %4222 = vrot.lane.b32.xlu0 %v11239_v25, %s12364_s5  ;;  %v11237_v39 = vpack.c.bf16 %v3839_v55, %v3839_v55  ;;  %v16853_v55 = vld [vmem:[#allocation113_spill] sm:$0xff] }
 0xc9b   :  { %v11859_v7 = vpop.f32.mrf.mxu0 }
 0xc9c   :  { %v11240_v8 = vpack.c.bf16 %v3842_v37, %v3842_v37  ;;  %v3840_v42 = vmax.f32 %v3440_v35, 0.0  ;;  %v3461_v31 = vadd.f32 %v11859_v7, %v13796_v3  ;;  %v16854_v35 = vld [vmem:[#allocation116_spill] sm:$0xff] }
 0xc9d   :  { %v3452_v4 = vpop.f32.mrf.mxu0 }
 0xc9e   :  { %v3845_v27 = vmax.f32 %v3461_v31, 0.0  ;;  %v3453_v18 = vadd.f32 %v3452_v4, %v13783_v6  ;;  %4224 = vrot.lane.b32.xlu1 %v11240_v8, %s12364_s5  ;;  %4218 = vrot.lane.b32.xlu0 %v11237_v39, %s12364_s5  ;;  %v11238_v34 = vpack.c.bf16 %v3840_v42, %v3840_v42  ;;  %v16855_v42 = vld [vmem:[#allocation114_spill] sm:$0xff] }
 0xc9f   :  { %v11860_v43 = vpop.f32.mrf.mxu0 }
 0xca0   :  { %v11243_v16 = vpack.c.bf16 %v3845_v27, %v3845_v27  ;;  %v3843_v20 = vmax.f32 %v3453_v18, 0.0  ;;  %v3464_v0 = vadd.f32 %v11860_v43, %v13879_v51 }
 0xca1   :  { %v3455_v11 = vpop.f32.mrf.mxu0 }
 0xca2   :  { %v3846_v38 = vmax.f32 %v3464_v0, 0.0  ;;  %v3456_v13 = vadd.f32 %v3455_v11, %v13871_v47  ;;  %4220 = vrot.lane.b32.xlu1 %v11238_v34, %s12364_s5  ;;  %4267 = vrot.lane.b32.xlu0 %v11243_v16, %s12365_s13  ;;  %v11241_v3 = vpack.c.bf16 %v3843_v20, %v3843_v20  ;;  %v16856_v34 = vld [vmem:[#allocation79_spill] sm:$0xff]  ;;  %v16857_v11 = vld [vmem:[#allocation78_spill] sm:$0xff] }
 0xca3   :  { %v11863_v6 = vpop.f32.mrf.mxu0 }
 0xca4   :  { %v11244_v53 = vpack.c.bf16 %v3846_v38, %v3846_v38  ;;  %v3844_v2 = vmax.f32 %v3456_v13, 0.0  ;;  %v3477_v50 = vadd.f32 %v11863_v6, %v14090_v24 }
 0xca5   :  { %v3468_v23 = vpop.f32.mrf.mxu0 }
 0xca6   :  { %v3849_v28 = vmax.f32 %v3477_v50, 0.0  ;;  %v3469_v52 = vadd.f32 %v3468_v23, %v14080_v59  ;;  %4269 = vrot.lane.b32.xlu1 %v11244_v53, %s12365_s13  ;;  %4263 = vrot.lane.b32.xlu0 %v11241_v3, %s12365_s13  ;;  %v11242_v51 = vpack.c.bf16 %v3844_v2, %v3844_v2  ;;  %v16858_v2 = vld [vmem:[#allocation82_spill] sm:$0xff] }
 0xca7   :  { %v11864_v47 = vpop.f32.mrf.mxu0 }
 0xca8   :  { %v11247_v41 = vpack.c.bf16 %v3849_v28, %v3849_v28  ;;  %v3847_v30 = vmax.f32 %v3469_v52, 0.0  ;;  %v3480_v17 = vadd.f32 %v11864_v47, %v14094_v22  ;;  %v16859_v52 = vld [vmem:[#allocation81_spill] sm:$0xff] }
 0xca9   :  { %v3471_v9 = vpop.f32.mrf.mxu0 }
 0xcaa   :  { %v3850_v21 = vmax.f32 %v3480_v17, 0.0  ;;  %v3472_v29 = vadd.f32 %v3471_v9, %v14088_v32  ;;  %4265 = vrot.lane.b32.xlu1 %v11242_v51, %s12365_s13  ;;  %4275 = vrot.lane.b32.xlu0 %v11247_v41, %s12365_s13  ;;  %v11245_v59 = vpack.c.bf16 %v3847_v30, %v3847_v30  ;;  %v16860_v9 = vld [vmem:[#allocation119_spill] sm:$0xff] }
 0xcab   :  { %v11867_v24 = vpop.f32.mrf.mxu0 }
 0xcac   :  { %v11248_v48 = vpack.c.bf16 %v3850_v21, %v3850_v21  ;;  %v3848_v40 = vmax.f32 %v3472_v29, 0.0  ;;  %v3493_v1 = vadd.f32 %v11867_v24, %v13822_v36 }
 0xcad   :  { %v3484_v56 = vpop.f32.mrf.mxu0 }
 0xcae   :  { %v3853_v5 = vmax.f32 %v3493_v1, 0.0  ;;  %v3485_v57 = vadd.f32 %v3484_v56, %v13809_v12  ;;  %4277 = vrot.lane.b32.xlu1 %v11248_v48, %s12365_s13  ;;  %4271 = vrot.lane.b32.xlu0 %v11245_v59, %s12365_s13  ;;  %v11246_v32 = vpack.c.bf16 %v3848_v40, %v3848_v40  ;;  %v16861_v59 = vld [vmem:[#allocation117_spill] sm:$0xff] }
 0xcaf   :  { %v11868_v22 = vpop.f32.mrf.mxu0 }
 0xcb0   :  { %v11251_v15 = vpack.c.bf16 %v3853_v5, %v3853_v5  ;;  %v3851_v60 = vmax.f32 %v3485_v57, 0.0  ;;  %v3496_v45 = vadd.f32 %v11868_v22, %v13896_v61  ;;  %v16862_v57 = vld [vmem:[#allocation120_spill] sm:$0xff] }
 0xcb1   :  { %v3487_v14 = vpop.f32.mrf.mxu0 }
 0xcb2   :  { %v3854_v62 = vmax.f32 %v3496_v45, 0.0  ;;  %v3488_v49 = vadd.f32 %v3487_v14, %v13884_v54  ;;  %4273 = vrot.lane.b32.xlu1 %v11246_v32, %s12365_s13  ;;  %4320 = vrot.lane.b32.xlu0 %v11251_v15, %s12366_s14  ;;  %v11249_v36 = vpack.c.bf16 %v3851_v60, %v3851_v60  ;;  %v16863_v60 = vld [vmem:[#allocation118_spill] sm:$0xff] }
 0xcb3   :  { %v11871_v12 = vpop.f32.mrf.mxu0 }
 0xcb4   :  { %v11252_v19 = vpack.c.bf16 %v3854_v62, %v3854_v62  ;;  %v3852_v58 = vmax.f32 %v3488_v49, 0.0  ;;  %v3509_v33 = vadd.f32 %v11871_v12, %v16852_v26 }
 0xcb5   :  { %v3500_v44 = vpop.f32.mrf.mxu0 }
 0xcb6   :  { %v3857_v25 = vmax.f32 %v3509_v33, 0.0  ;;  %v3501_v46 = vadd.f32 %v3500_v44, %v16853_v55  ;;  %4322 = vrot.lane.b32.xlu1 %v11252_v19, %s12366_s14  ;;  %4316 = vrot.lane.b32.xlu0 %v11249_v36, %s12366_s14  ;;  %v11250_v61 = vpack.c.bf16 %v3852_v58, %v3852_v58  ;;  %v16864_v36 = vld [vmem:[#allocation84_spill] sm:$0xff] }
 0xcb7   :  { %v11872_v54 = vpop.f32.mrf.mxu0  ;;  %v16865_v33 = vld [vmem:[#allocation80_spill] sm:$0xff] }
 0xcb8   :  { %v11255_v10 = vpack.c.bf16 %v3857_v25, %v3857_v25  ;;  %v3855_v37 = vmax.f32 %v3501_v46, 0.0  ;;  %v3512_v7 = vadd.f32 %v11872_v54, %v16854_v35 }
 0xcb9   :  { %v3503_v39 = vpop.f32.mrf.mxu0 }
 0xcba   :  { %v3858_v8 = vmax.f32 %v3512_v7, 0.0  ;;  %v3504_v31 = vadd.f32 %v3503_v39, %v16855_v42  ;;  %4318 = vrot.lane.b32.xlu1 %v11250_v61, %s12366_s14  ;;  %4328 = vrot.lane.b32.xlu0 %v11255_v10, %s12366_s14  ;;  %v11253_v27 = vpack.c.bf16 %v3855_v37, %v3855_v37  ;;  %v16866_v61 = vld [vmem:[#allocation77_spill] sm:$0xff]  ;;  %v16867_v7 = vld [vmem:[#allocation83_spill] sm:$0xff] }
 0xcbb   :  { %v11875_v4 = vpop.f32.mrf.mxu0 }
 0xcbc   :  { %v11256_v18 = vpack.c.bf16 %v3858_v8, %v3858_v8  ;;  %v3856_v43 = vmax.f32 %v3504_v31, 0.0  ;;  %v3525_v16 = vadd.f32 %v11875_v4, %v16856_v34 }
 0xcbd   :  { %v3516_v20 = vpop.f32.mrf.mxu0 }
 0xcbe   :  { %v3861_v0 = vmax.f32 %v3525_v16, 0.0  ;;  %v3517_v38 = vadd.f32 %v3516_v20, %v16857_v11  ;;  %4330 = vrot.lane.b32.xlu1 %v11256_v18, %s12366_s14  ;;  %4324 = vrot.lane.b32.xlu0 %v11253_v27, %s12366_s14  ;;  %v11254_v6 = vpack.c.bf16 %v3856_v43, %v3856_v43  ;;  %v16868_v27 = vld [vmem:[#allocation123_spill] sm:$0xff]  ;;  %v16869_v20 = vld [vmem:[#allocation121_spill] sm:$0xff] }
 0xcbf   :  { %v11876_v13 = vpop.f32.mrf.mxu0 }
 0xcc0   :  { %v11259_v3 = vpack.c.bf16 %v3861_v0, %v3861_v0  ;;  %v3859_v53 = vmax.f32 %v3517_v38, 0.0  ;;  %v3528_v50 = vadd.f32 %v11876_v13, %v16858_v2 }
 0xcc1   :  { %v3519_v23 = vpop.f32.mrf.mxu0 }
 0xcc2   :  { %v3862_v28 = vmax.f32 %v3528_v50, 0.0  ;;  %v3520_v47 = vadd.f32 %v3519_v23, %v16859_v52  ;;  %4326 = vrot.lane.b32.xlu1 %v11254_v6, %s12366_s14  ;;  %4373 = vrot.lane.b32.xlu0 %v11259_v3, %s12367_s15  ;;  %v11257_v41 = vpack.c.bf16 %v3859_v53, %v3859_v53  ;;  %v16870_v3 = vld [vmem:[#allocation124_spill] sm:$0xff]  ;;  %v16871_v52 = vld [vmem:[#allocation122_spill] sm:$0xff] }
 0xcc3   :  { %v11879_v51 = vpop.f32.mrf.mxu0 }
 0xcc4   :  { %v11260_v30 = vpack.c.bf16 %v3862_v28, %v3862_v28  ;;  %v3860_v17 = vmax.f32 %v3520_v47, 0.0  ;;  %v3541_v21 = vadd.f32 %v11879_v51, %v16860_v9  ;;  %v16872_v9 = vld [vmem:[#allocation87_spill] sm:$0xff] }
 0xcc5   :  { %v3532_v29 = vpop.f32.mrf.mxu0 }
 0xcc6   :  { %v3865_v24 = vmax.f32 %v3541_v21, 0.0  ;;  %v3533_v48 = vadd.f32 %v3532_v29, %v16861_v59  ;;  %4375 = vrot.lane.b32.xlu1 %v11260_v30, %s12367_s15  ;;  %4369 = vrot.lane.b32.xlu0 %v11257_v41, %s12367_s15  ;;  %v11258_v1 = vpack.c.bf16 %v3860_v17, %v3860_v17 }
 0xcc7   :  { %v11880_v40 = vpop.f32.mrf.mxu0 }
 0xcc8   :  { %v11263_v56 = vpack.c.bf16 %v3865_v24, %v3865_v24  ;;  %v3863_v5 = vmax.f32 %v3533_v48, 0.0  ;;  %v3544_v22 = vadd.f32 %v11880_v40, %v16862_v57  ;;  %v16873_v40 = vld [vmem:[#allocation85_spill] sm:$0xff] }
 0xcc9   :  { %v3535_v32 = vpop.f32.mrf.mxu0 }
 0xcca   :  { %v3866_v15 = vmax.f32 %v3544_v22, 0.0  ;;  %v3536_v45 = vadd.f32 %v3535_v32, %v16863_v60  ;;  %4371 = vrot.lane.b32.xlu1 %v11258_v1, %s12367_s15  ;;  %4381 = vrot.lane.b32.xlu0 %v11263_v56, %s12367_s15  ;;  %v11261_v62 = vpack.c.bf16 %v3863_v5, %v3863_v5  ;;  %v16874_v32 = vld [vmem:[#allocation88_spill] sm:$0xff] }
 0xccb   :  { %v11883_v14 = vpop.f32.mrf.mxu0 }
 0xccc   :  { %v11264_v49 = vpack.c.bf16 %v3866_v15, %v3866_v15  ;;  %v3864_v12 = vmax.f32 %v3536_v45, 0.0  ;;  %v3557_v19 = vadd.f32 %v11883_v14, %v16864_v36 }
 0xccd   :  { %v3548_v58 = vpop.f32.mrf.mxu0 }
 0xcce   :  { %v3869_v26 = vmax.f32 %v3557_v19, 0.0  ;;  %v3549_v44 = vadd.f32 %v3548_v58, %v16865_v33  ;;  %4383 = vrot.lane.b32.xlu1 %v11264_v49, %s12367_s15  ;;  %4377 = vrot.lane.b32.xlu0 %v11261_v62, %s12367_s15  ;;  %v11262_v55 = vpack.c.bf16 %v3864_v12, %v3864_v12  ;;  %v16875_v49 = vld [vmem:[#allocation86_spill] sm:$0xff]  ;;  %v16876_v33 = vld [vmem:[#allocation127_spill] sm:$0xff] }
 0xccf   :  { %v11884_v25 = vpop.f32.mrf.mxu0 }
 0xcd0   :  { %v11267_v46 = vpack.c.bf16 %v3869_v26, %v3869_v26  ;;  %v3867_v54 = vmax.f32 %v3549_v44, 0.0  ;;  %v3560_v10 = vadd.f32 %v11884_v25, %v16866_v61  ;;  %v16877_v61 = vld [vmem:[#allocation125_spill] sm:$0xff] }
 0xcd1   :  { %v3551_v37 = vpop.f32.mrf.mxu0 }
 0xcd2   :  { %v3870_v35 = vmax.f32 %v3560_v10, 0.0  ;;  %v3552_v39 = vadd.f32 %v3551_v37, %v16867_v7  ;;  %4379 = vrot.lane.b32.xlu1 %v11262_v55, %s12367_s15  ;;  %4426 = vrot.lane.b32.xlu0 %v11267_v46, %s12340_s28  ;;  %v11265_v42 = vpack.c.bf16 %v3867_v54, %v3867_v54 }
 0xcd3   :  { %v11887_v8 = vpop.f32.mrf.mxu0 }
 0xcd4   :  { %v11268_v31 = vpack.c.bf16 %v3870_v35, %v3870_v35  ;;  %v3868_v4 = vmax.f32 %v3552_v39, 0.0  ;;  %v3573_v18 = vadd.f32 %v11887_v8, %v16868_v27  ;;  %v4056_v43 = vpop.permute.xlu0 %4055  ;;  %v16878_v8 = vld [vmem:[#allocation128_spill] sm:$0xff] }
 0xcd5   :  { %4078 = vst.msk [vmem:[#allocation5 + $0x8] sm:$0xf] %vm4075_vm6, %v4056_v43  ;;  %v3564_v34 = vpop.f32.mrf.mxu0  ;;  %v16879_v43 = vld [vmem:[#allocation126_spill] sm:$0xff] }
 0xcd6   :  { %v3873_v16 = vmax.f32 %v3573_v18, 0.0  ;;  %v3565_v0 = vadd.f32 %v3564_v34, %v16869_v20  ;;  %4428 = vrot.lane.b32.xlu1 %v11268_v31, %s12340_s28  ;;  %4422 = vrot.lane.b32.xlu0 %v11265_v42, %s12340_s28  ;;  %v11266_v38 = vpack.c.bf16 %v3868_v4, %v3868_v4 }
 0xcd7   :  { %v11888_v11 = vpop.f32.mrf.mxu0 }
 0xcd8   :  { %v11271_v13 = vpack.c.bf16 %v3873_v16, %v3873_v16  ;;  %v3871_v6 = vmax.f32 %v3565_v0, 0.0  ;;  %v3576_v53 = vadd.f32 %v11888_v11, %v16870_v3  ;;  %v4058_v2 = vpop.permute.xlu1 %4057  ;;  %v4052_v50 = vpop.permute.xlu0 %4051 }
 0xcd9   :  { %4079 = vst.msk [vmem:[#allocation5 + $0xc] sm:$0xf] %vm4075_vm6, %v4058_v2  ;;  %4076 = vst.msk [vmem:[#allocation5] sm:$0xf] %vm4075_vm6, %v4052_v50  ;;  %v3567_v23 = vpop.f32.mrf.mxu0  ;;  %v16881_v50 = vld [vmem:[#allocation89_spill] sm:$0xff] }
 0xcda   :  { %v3874_v28 = vmax.f32 %v3576_v53, 0.0  ;;  %v3568_v47 = vadd.f32 %v3567_v23, %v16871_v52  ;;  %4424 = vrot.lane.b32.xlu1 %v11266_v38, %s12340_s28  ;;  %4434 = vrot.lane.b32.xlu0 %v11271_v13, %s12340_s28  ;;  %v11269_v41 = vpack.c.bf16 %v3871_v6, %v3871_v6  ;;  %v16880_v38 = vld [vmem:[#allocation91_spill] sm:$0xff] }
 0xcdb   :  { %v11891_v51 = vpop.f32.mrf.mxu0 }
 0xcdc   :  { %v11272_v30 = vpack.c.bf16 %v3874_v28, %v3874_v28  ;;  %v3872_v17 = vmax.f32 %v3568_v47, 0.0  ;;  %v3589_v21 = vadd.f32 %v11891_v51, %v16872_v9  ;;  %v4054_v29 = vpop.permute.xlu1 %4053  ;;  %v4064_v24 = vpop.permute.xlu0 %4063 }
 0xcdd   :  { %4077 = vst.msk [vmem:[#allocation5 + $0x4] sm:$0xf] %vm4075_vm6, %v4054_v29  ;;  %4082 = vst.msk [vmem:[#allocation5 + $0x18] sm:$0xf] %vm4075_vm6, %v4064_v24  ;;  %v3580_v59 = vpop.f32.mrf.mxu0  ;;  %v16883_v24 = vld [vmem:[#allocation90_spill] sm:$0xff] }
 0xcde   :  { %v3877_v48 = vmax.f32 %v3589_v21, 0.0  ;;  %v3581_v1 = vadd.f32 %v3580_v59, %v16873_v40  ;;  %4436 = vrot.lane.b32.xlu1 %v11272_v30, %s12340_s28  ;;  %4430 = vrot.lane.b32.xlu0 %v11269_v41, %s12340_s28  ;;  %v11270_v5 = vpack.c.bf16 %v3872_v17, %v3872_v17  ;;  %v16882_v41 = vld [vmem:[#allocation92_spill] sm:$0xff] }
 0xcdf   :  { %v11892_v56 = vpop.f32.mrf.mxu0 }
 0xce0   :  { %v11275_v57 = vpack.c.bf16 %v3877_v48, %v3877_v48  ;;  %v3875_v22 = vmax.f32 %v3581_v1, 0.0  ;;  %v3592_v15 = vadd.f32 %v11892_v56, %v16874_v32  ;;  %v4066_v60 = vpop.permute.xlu1 %4065  ;;  %v4060_v45 = vpop.permute.xlu0 %4059 }
 0xce1   :  { %4083 = vst.msk [vmem:[#allocation5 + $0x1c] sm:$0xf] %vm4075_vm6, %v4066_v60  ;;  %4080 = vst.msk [vmem:[#allocation5 + $0x10] sm:$0xf] %vm4075_vm6, %v4060_v45  ;;  %v3583_v14 = vpop.f32.mrf.mxu0  ;;  %v16885_v45 = vld [vmem:[#allocation129_spill] sm:$0xff] }
 0xce2   :  { %v3878_v62 = vmax.f32 %v3592_v15, 0.0  ;;  %v3584_v12 = vadd.f32 %v3583_v14, %v16875_v49  ;;  %4432 = vrot.lane.b32.xlu1 %v11270_v5, %s12340_s28  ;;  %4479 = vrot.lane.b32.xlu0 %v11275_v57, %s12368_s12  ;;  %v11273_v19 = vpack.c.bf16 %v3875_v22, %v3875_v22  ;;  %s12369_s28 = smov 20   ;;  %v16884_v5 = vld [vmem:[#allocation131_spill] sm:$0xff] }
 0xce3   :  { %v11895_v36 = vpop.f32.mrf.mxu0 }
 0xce4   :  { %v11276_v58 = vpack.c.bf16 %v3878_v62, %v3878_v62  ;;  %v3876_v26 = vmax.f32 %v3584_v12, 0.0  ;;  %v3605_v44 = vadd.f32 %v11895_v36, %v16876_v33  ;;  %v4062_v25 = vpop.permute.xlu1 %4061  ;;  %v4109_v55 = vpop.permute.xlu0 %4108 }
 0xce5   :  { %4081 = vst.msk [vmem:[#allocation5 + $0x14] sm:$0xf] %vm4075_vm6, %v4062_v25  ;;  %v3596_v46 = vpop.f32.mrf.mxu0  ;;  %vm4605_vm6 = vcmask 191664  }
 0xce6   :  { %4131 = vst.msk [vmem:[#allocation5 + $0x8] sm:$0xf] %vm4128_vm8, %v4109_v55  ;;  %v3881_v54 = vmax.f32 %v3605_v44, 0.0  ;;  %v3597_v10 = vadd.f32 %v3596_v46, %v16877_v61  ;;  %4481 = vrot.lane.b32.xlu1 %v11276_v58, %s12368_s12  ;;  %4475 = vrot.lane.b32.xlu0 %v11273_v19, %s12368_s12  ;;  %v11274_v35 = vpack.c.bf16 %v3876_v26, %v3876_v26  ;;  %v16886_v19 = vld [vmem:[#allocation132_spill] sm:$0xff]  ;;  %v16887_v55 = vld [vmem:[#allocation130_spill] sm:$0xff] }
 0xce7   :  { %v11896_v37 = vpop.f32.mrf.mxu0 }
 0xce8   :  { %v11279_v7 = vpack.c.bf16 %v3881_v54, %v3881_v54  ;;  %v3879_v39 = vmax.f32 %v3597_v10, 0.0  ;;  %v3608_v42 = vadd.f32 %v11896_v37, %v16878_v8  ;;  %v4111_v31 = vpop.permute.xlu1 %4110  ;;  %v4105_v4 = vpop.permute.xlu0 %4104 }
 0xce9   :  { %4132 = vst.msk [vmem:[#allocation5 + $0xc] sm:$0xf] %vm4128_vm8, %v4111_v31  ;;  %4129 = vst.msk [vmem:[#allocation5] sm:$0xf] %vm4128_vm8, %v4105_v4  ;;  %v3599_v27 = vpop.f32.mrf.mxu0  ;;  %v16889_v4 = vld [vmem:[#allocation93_spill] sm:$0xff] }
 0xcea   :  { %v3882_v18 = vmax.f32 %v3608_v42, 0.0  ;;  %v3600_v34 = vadd.f32 %v3599_v27, %v16879_v43  ;;  %4477 = vrot.lane.b32.xlu1 %v11274_v35, %s12368_s12  ;;  %4487 = vrot.lane.b32.xlu0 %v11279_v7, %s12368_s12  ;;  %v11277_v20 = vpack.c.bf16 %v3879_v39, %v3879_v39  ;;  %v16888_v35 = vld [vmem:[#allocation95_spill] sm:$0xff] }
 0xceb   :  { %v11899_v16 = vpop.f32.mrf.mxu0 }
 0xcec   :  { %v11280_v0 = vpack.c.bf16 %v3882_v18, %v3882_v18  ;;  %v3880_v11 = vmax.f32 %v3600_v34, 0.0  ;;  %v3621_v13 = vadd.f32 %v11899_v16, %v16880_v38  ;;  %v4107_v6 = vpop.permute.xlu1 %4106  ;;  %v4117_v3 = vpop.permute.xlu0 %4116 }
 0xced   :  { %4130 = vst.msk [vmem:[#allocation5 + $0x4] sm:$0xf] %vm4128_vm8, %v4107_v6  ;;  %4135 = vst.msk [vmem:[#allocation5 + $0x18] sm:$0xf] %vm4128_vm8, %v4117_v3  ;;  %v3612_v53 = vpop.f32.mrf.mxu0  ;;  %v16891_v3 = vld [vmem:[#allocation94_spill] sm:$0xff] }
 0xcee   :  { %v3885_v2 = vmax.f32 %v3621_v13, 0.0  ;;  %v3613_v23 = vadd.f32 %v3612_v53, %v16881_v50  ;;  %4489 = vrot.lane.b32.xlu1 %v11280_v0, %s12368_s12  ;;  %4483 = vrot.lane.b32.xlu0 %v11277_v20, %s12368_s12  ;;  %v11278_v52 = vpack.c.bf16 %v3880_v11, %v3880_v11  ;;  %v16890_v20 = vld [vmem:[#allocation96_spill] sm:$0xff] }
 0xcef   :  { %v11900_v28 = vpop.f32.mrf.mxu0 }
 0xcf0   :  { %v11283_v47 = vpack.c.bf16 %v3885_v2, %v3885_v2  ;;  %v3883_v51 = vmax.f32 %v3613_v23, 0.0  ;;  %v3624_v30 = vadd.f32 %v11900_v28, %v16882_v41  ;;  %v4119_v17 = vpop.permute.xlu1 %4118  ;;  %v4113_v9 = vpop.permute.xlu0 %4112 }
 0xcf1   :  { %4136 = vst.msk [vmem:[#allocation5 + $0x1c] sm:$0xf] %vm4128_vm8, %v4119_v17  ;;  %4133 = vst.msk [vmem:[#allocation5 + $0x10] sm:$0xf] %vm4128_vm8, %v4113_v9  ;;  %v3615_v21 = vpop.f32.mrf.mxu0  ;;  %v16893_v9 = vld [vmem:[#allocation133_spill] sm:$0xff] }
 0xcf2   :  { %v3886_v29 = vmax.f32 %v3624_v30, 0.0  ;;  %v3616_v59 = vadd.f32 %v3615_v21, %v16883_v24  ;;  %4485 = vrot.lane.b32.xlu1 %v11278_v52, %s12368_s12  ;;  %4532 = vrot.lane.b32.xlu0 %v11283_v47, %s12369_s28  ;;  %v11281_v40 = vpack.c.bf16 %v3883_v51, %v3883_v51  ;;  %v16892_v52 = vld [vmem:[#allocation135_spill] sm:$0xff] }
 0xcf3   :  { %v11903_v48 = vpop.f32.mrf.mxu0 }
 0xcf4   :  { %v11284_v1 = vpack.c.bf16 %v3886_v29, %v3886_v29  ;;  %v3884_v56 = vmax.f32 %v3616_v59, 0.0  ;;  %v3637_v57 = vadd.f32 %v11903_v48, %v16884_v5  ;;  %v4115_v22 = vpop.permute.xlu1 %4114  ;;  %v4162_v32 = vpop.permute.xlu0 %4161 }
 0xcf5   :  { %4134 = vst.msk [vmem:[#allocation5 + $0x14] sm:$0xf] %vm4128_vm8, %v4115_v22  ;;  %v3628_v15 = vpop.f32.mrf.mxu0  ;;  %vm4658_vm8 = vcmask 208064  }
 0xcf6   :  { %4184 = vst.msk [vmem:[#allocation5 + $0x8] sm:$0xf] %vm4181_vm10, %v4162_v32  ;;  %v3889_v60 = vmax.f32 %v3637_v57, 0.0  ;;  %v3629_v14 = vadd.f32 %v3628_v15, %v16885_v45  ;;  %4534 = vrot.lane.b32.xlu1 %v11284_v1, %s12369_s28  ;;  %4528 = vrot.lane.b32.xlu0 %v11281_v40, %s12369_s28  ;;  %v11282_v49 = vpack.c.bf16 %v3884_v56, %v3884_v56  ;;  %v16894_v40 = vld [vmem:[#allocation136_spill] sm:$0xff]  ;;  %v16895_v32 = vld [vmem:[#allocation134_spill] sm:$0xff] }
 0xcf7   :  { %v11904_v62 = vpop.f32.mrf.mxu0 }
 0xcf8   :  { %v11287_v12 = vpack.c.bf16 %v3889_v60, %v3889_v60  ;;  %v3887_v36 = vmax.f32 %v3629_v14, 0.0  ;;  %v3640_v58 = vadd.f32 %v11904_v62, %v16886_v19  ;;  %v4164_v26 = vpop.permute.xlu1 %4163  ;;  %v4158_v33 = vpop.permute.xlu0 %4157 }
 0xcf9   :  { %4185 = vst.msk [vmem:[#allocation5 + $0xc] sm:$0xf] %vm4181_vm10, %v4164_v26  ;;  %4182 = vst.msk [vmem:[#allocation5] sm:$0xf] %vm4181_vm10, %v4158_v33  ;;  %v3631_v44 = vpop.f32.mrf.mxu0  ;;  %v16897_v33 = vld [vmem:[#allocation97_spill] sm:$0xff] }
 0xcfa   :  { %v3890_v25 = vmax.f32 %v3640_v58, 0.0  ;;  %v3632_v46 = vadd.f32 %v3631_v44, %v16887_v55  ;;  %4530 = vrot.lane.b32.xlu1 %v11282_v49, %s12369_s28  ;;  %4540 = vrot.lane.b32.xlu0 %v11287_v12, %s12369_s28  ;;  %v11285_v61 = vpack.c.bf16 %v3887_v36, %v3887_v36  ;;  %v16896_v49 = vld [vmem:[#allocation99_spill] sm:$0xff] }
 0xcfb   :  { %v11907_v54 = vpop.f32.mrf.mxu0 }
 0xcfc   :  { %v11288_v10 = vpack.c.bf16 %v3890_v25, %v3890_v25  ;;  %v3888_v37 = vmax.f32 %v3632_v46, 0.0  ;;  %v3653_v7 = vadd.f32 %v11907_v54, %v16888_v35  ;;  %v4160_v39 = vpop.permute.xlu1 %4159  ;;  %v4170_v8 = vpop.permute.xlu0 %4169 }
 0xcfd   :  { %4183 = vst.msk [vmem:[#allocation5 + $0x4] sm:$0xf] %vm4181_vm10, %v4160_v39  ;;  %4188 = vst.msk [vmem:[#allocation5 + $0x18] sm:$0xf] %vm4181_vm10, %v4170_v8  ;;  %v3644_v42 = vpop.f32.mrf.mxu0  ;;  %v16899_v8 = vld [vmem:[#allocation98_spill] sm:$0xff] }
 0xcfe   :  { %v3893_v31 = vmax.f32 %v3653_v7, 0.0  ;;  %v3645_v27 = vadd.f32 %v3644_v42, %v16889_v4  ;;  %4542 = vrot.lane.b32.xlu1 %v11288_v10, %s12369_s28  ;;  %4536 = vrot.lane.b32.xlu0 %v11285_v61, %s12369_s28  ;;  %v11286_v43 = vpack.c.bf16 %v3888_v37, %v3888_v37  ;;  %v16898_v61 = vld [vmem:[#allocation100_spill] sm:$0xff] }
 0xcff   :  { %v11908_v18 = vpop.f32.mrf.mxu0 }
 0xd00   :  { %v11291_v34 = vpack.c.bf16 %v3893_v31, %v3893_v31  ;;  %v3891_v16 = vmax.f32 %v3645_v27, 0.0  ;;  %v3656_v0 = vadd.f32 %v11908_v18, %v16890_v20  ;;  %v4172_v11 = vpop.permute.xlu1 %4171  ;;  %v4166_v38 = vpop.permute.xlu0 %4165 }
 0xd01   :  { %4189 = vst.msk [vmem:[#allocation5 + $0x1c] sm:$0xf] %vm4181_vm10, %v4172_v11  ;;  %4186 = vst.msk [vmem:[#allocation5 + $0x10] sm:$0xf] %vm4181_vm10, %v4166_v38  ;;  %v3647_v13 = vpop.f32.mrf.mxu0  ;;  %v16901_v38 = vld [vmem:[#allocation137_spill] sm:$0xff] }
 0xd02   :  { %v3894_v6 = vmax.f32 %v3656_v0, 0.0  ;;  %v3648_v53 = vadd.f32 %v3647_v13, %v16891_v3  ;;  %4538 = vrot.lane.b32.xlu1 %v11286_v43, %s12369_s28  ;;  %4585 = vrot.lane.b32.xlu0 %v11291_v34, %s12370_s16  ;;  %v11289_v50 = vpack.c.bf16 %v3891_v16, %v3891_v16  ;;  %v16900_v43 = vld [vmem:[#allocation139_spill] sm:$0xff] }
 0xd03   :  { %v11911_v2 = vpop.f32.mrf.mxu0 }
 0xd04   :  { %v11292_v23 = vpack.c.bf16 %v3894_v6, %v3894_v6  ;;  %v3892_v28 = vmax.f32 %v3648_v53, 0.0  ;;  %v3669_v47 = vadd.f32 %v11911_v2, %v16892_v52  ;;  %v4168_v51 = vpop.permute.xlu1 %4167  ;;  %v4215_v41 = vpop.permute.xlu0 %4214 }
 0xd05   :  { %4187 = vst.msk [vmem:[#allocation5 + $0x14] sm:$0xf] %vm4181_vm10, %v4168_v51  ;;  %v3660_v30 = vpop.f32.mrf.mxu0  ;;  %vm4711_vm10 = vcmask 224464  }
 0xd06   :  { %4237 = vst.msk [vmem:[#allocation5 + $0x8] sm:$0xf] %vm4234_vm11, %v4215_v41  ;;  %v3897_v17 = vmax.f32 %v3669_v47, 0.0  ;;  %v3661_v21 = vadd.f32 %v3660_v30, %v16893_v9  ;;  %4587 = vrot.lane.b32.xlu1 %v11292_v23, %s12370_s16  ;;  %4581 = vrot.lane.b32.xlu0 %v11289_v50, %s12370_s16  ;;  %v11290_v24 = vpack.c.bf16 %v3892_v28, %v3892_v28  ;;  %v16902_v50 = vld [vmem:[#allocation140_spill] sm:$0xff]  ;;  %v16903_v41 = vld [vmem:[#allocation138_spill] sm:$0xff] }
 0xd07   :  { %v11912_v29 = vpop.f32.mrf.mxu0 }
 0xd08   :  { %v11295_v59 = vpack.c.bf16 %v3897_v17, %v3897_v17  ;;  %v3895_v48 = vmax.f32 %v3661_v21, 0.0  ;;  %v3672_v1 = vadd.f32 %v11912_v29, %v16894_v40  ;;  %v4217_v56 = vpop.permute.xlu1 %4216  ;;  %v4211_v5 = vpop.permute.xlu0 %4210 }
 0xd09   :  { %4238 = vst.msk [vmem:[#allocation5 + $0xc] sm:$0xf] %vm4234_vm11, %v4217_v56  ;;  %4235 = vst.msk [vmem:[#allocation5] sm:$0xf] %vm4234_vm11, %v4211_v5  ;;  %v3663_v57 = vpop.f32.mrf.mxu0  ;;  %v16905_v5 = vld [vmem:[#allocation101_spill] sm:$0xff] }
 0xd0a   :  { %v3898_v22 = vmax.f32 %v3672_v1, 0.0  ;;  %v3664_v15 = vadd.f32 %v3663_v57, %v16895_v32  ;;  %4583 = vrot.lane.b32.xlu1 %v11290_v24, %s12370_s16  ;;  %4593 = vrot.lane.b32.xlu0 %v11295_v59, %s12370_s16  ;;  %v11293_v45 = vpack.c.bf16 %v3895_v48, %v3895_v48  ;;  %v16904_v24 = vld [vmem:[#allocation103_spill] sm:$0xff] }
 0xd0b   :  { %v11915_v60 = vpop.f32.mrf.mxu0 }
 0xd0c   :  { %v11296_v14 = vpack.c.bf16 %v3898_v22, %v3898_v22  ;;  %v3896_v62 = vmax.f32 %v3664_v15, 0.0  ;;  %v3685_v12 = vadd.f32 %v11915_v60, %v16896_v49  ;;  %v4213_v36 = vpop.permute.xlu1 %4212  ;;  %v4223_v19 = vpop.permute.xlu0 %4222 }
 0xd0d   :  { %4236 = vst.msk [vmem:[#allocation5 + $0x4] sm:$0xf] %vm4234_vm11, %v4213_v36  ;;  %4241 = vst.msk [vmem:[#allocation5 + $0x18] sm:$0xf] %vm4234_vm11, %v4223_v19  ;;  %v3676_v58 = vpop.f32.mrf.mxu0  ;;  %v16907_v19 = vld [vmem:[#allocation102_spill] sm:$0xff] }
 0xd0e   :  { %v3901_v26 = vmax.f32 %v3685_v12, 0.0  ;;  %v3677_v44 = vadd.f32 %v3676_v58, %v16897_v33  ;;  %4595 = vrot.lane.b32.xlu1 %v11296_v14, %s12370_s16  ;;  %4589 = vrot.lane.b32.xlu0 %v11293_v45, %s12370_s16  ;;  %v11294_v55 = vpack.c.bf16 %v3896_v62, %v3896_v62  ;;  %v16906_v45 = vld [vmem:[#allocation104_spill] sm:$0xff] }
 0xd0f   :  { %v11916_v25 = vpop.f32.mrf.mxu0 }
 0xd10   :  { %v11299_v46 = vpack.c.bf16 %v3901_v26, %v3901_v26  ;;  %v3899_v54 = vmax.f32 %v3677_v44, 0.0  ;;  %v3688_v10 = vadd.f32 %v11916_v25, %v16898_v61  ;;  %v4225_v37 = vpop.permute.xlu1 %4224  ;;  %v4219_v35 = vpop.permute.xlu0 %4218  ;;  %v16908_v61 = vld [vmem:[#allocation141_spill] sm:$0xff] }
 0xd11   :  { %4242 = vst.msk [vmem:[#allocation5 + $0x1c] sm:$0xf] %vm4234_vm11, %v4225_v37  ;;  %4239 = vst.msk [vmem:[#allocation5 + $0x10] sm:$0xf] %vm4234_vm11, %v4219_v35  ;;  %v3679_v7 = vpop.f32.mrf.mxu0 }
 0xd12   :  { %v3902_v39 = vmax.f32 %v3688_v10, 0.0  ;;  %v3680_v42 = vadd.f32 %v3679_v7, %v16899_v8  ;;  %4591 = vrot.lane.b32.xlu1 %v11294_v55, %s12370_s16  ;;  %4638 = vrot.lane.b32.xlu0 %v11299_v46, %s12371_s1  ;;  %v11297_v4 = vpack.c.bf16 %v3899_v54, %v3899_v54 }
 0xd13   :  { %v11919_v31 = vpop.f32.mrf.mxu0 }
 0xd14   :  { %v11300_v27 = vpack.c.bf16 %v3902_v39, %v3902_v39  ;;  %v3900_v18 = vmax.f32 %v3680_v42, 0.0  ;;  %v3701_v34 = vadd.f32 %v11919_v31, %v16900_v43  ;;  %v4221_v16 = vpop.permute.xlu1 %4220  ;;  %v4268_v20 = vpop.permute.xlu0 %4267 }
 0xd15   :  { %4240 = vst.msk [vmem:[#allocation5 + $0x14] sm:$0xf] %vm4234_vm11, %v4221_v16  ;;  %v3692_v0 = vpop.f32.mrf.mxu0  ;;  %vm4764_vm11 = vcmask 240864  }
 0xd16   :  { %4290 = vst.msk [vmem:[#allocation5 + $0x8] sm:$0xf] %vm4287_vm13, %v4268_v20  ;;  %v3905_v11 = vmax.f32 %v3701_v34, 0.0  ;;  %v3693_v13 = vadd.f32 %v3692_v0, %v16901_v38  ;;  %4640 = vrot.lane.b32.xlu1 %v11300_v27, %s12371_s1  ;;  %4634 = vrot.lane.b32.xlu0 %v11297_v4, %s12371_s1  ;;  %v11298_v3 = vpack.c.bf16 %v3900_v18, %v3900_v18  ;;  %v16909_v4 = vld [vmem:[#allocation142_spill] sm:$0xff]  ;;  %v16910_v34 = vld [vmem:[#allocation107_spill] sm:$0xff] }
 0xd17   :  { %v11920_v6 = vpop.f32.mrf.mxu0 }
 0xd18   :  { %v11303_v53 = vpack.c.bf16 %v3905_v11, %v3905_v11  ;;  %v3903_v2 = vmax.f32 %v3693_v13, 0.0  ;;  %v3704_v23 = vadd.f32 %v11920_v6, %v16902_v50  ;;  %v4270_v28 = vpop.permute.xlu1 %4269  ;;  %v4264_v52 = vpop.permute.xlu0 %4263  ;;  %v16911_v6 = vld [vmem:[#allocation105_spill] sm:$0xff] }
 0xd19   :  { %4291 = vst.msk [vmem:[#allocation5 + $0xc] sm:$0xf] %vm4287_vm13, %v4270_v28  ;;  %4288 = vst.msk [vmem:[#allocation5] sm:$0xf] %vm4287_vm13, %v4264_v52  ;;  %v3695_v47 = vpop.f32.mrf.mxu0 }
 0xd1a   :  { %v3906_v51 = vmax.f32 %v3704_v23, 0.0  ;;  %v3696_v30 = vadd.f32 %v3695_v47, %v16903_v41  ;;  %4636 = vrot.lane.b32.xlu1 %v11298_v3, %s12371_s1  ;;  %4646 = vrot.lane.b32.xlu0 %v11303_v53, %s12371_s1  ;;  %v11301_v9 = vpack.c.bf16 %v3903_v2, %v3903_v2  ;;  %v16912_v23 = vld [vmem:[#allocation108_spill] sm:$0xff] }
 0xd1b   :  { %v11923_v17 = vpop.f32.mrf.mxu0 }
 0xd1c   :  { %v11304_v21 = vpack.c.bf16 %v3906_v51, %v3906_v51  ;;  %v3904_v29 = vmax.f32 %v3696_v30, 0.0  ;;  %v3717_v59 = vadd.f32 %v11923_v17, %v16904_v24  ;;  %v4266_v48 = vpop.permute.xlu1 %4265  ;;  %v4276_v40 = vpop.permute.xlu0 %4275  ;;  %v16913_v30 = vld [vmem:[#allocation106_spill] sm:$0xff] }
 0xd1d   :  { %4289 = vst.msk [vmem:[#allocation5 + $0x4] sm:$0xf] %vm4287_vm13, %v4266_v48  ;;  %4294 = vst.msk [vmem:[#allocation5 + $0x18] sm:$0xf] %vm4287_vm13, %v4276_v40  ;;  %v3708_v1 = vpop.f32.mrf.mxu0 }
 0xd1e   :  { %v3909_v56 = vmax.f32 %v3717_v59, 0.0  ;;  %v3709_v57 = vadd.f32 %v3708_v1, %v16905_v5  ;;  %4648 = vrot.lane.b32.xlu1 %v11304_v21, %s12371_s1  ;;  %4642 = vrot.lane.b32.xlu0 %v11301_v9, %s12371_s1  ;;  %v11302_v32 = vpack.c.bf16 %v3904_v29, %v3904_v29 }
 0xd1f   :  { %v11924_v22 = vpop.f32.mrf.mxu0 }
 0xd20   :  { %v11307_v15 = vpack.c.bf16 %v3909_v56, %v3909_v56  ;;  %v3907_v60 = vmax.f32 %v3709_v57, 0.0  ;;  %v3720_v14 = vadd.f32 %v11924_v22, %v16906_v45  ;;  %v4278_v62 = vpop.permute.xlu1 %4277  ;;  %v4272_v49 = vpop.permute.xlu0 %4271 }
 0xd21   :  { %4295 = vst.msk [vmem:[#allocation5 + $0x1c] sm:$0xf] %vm4287_vm13, %v4278_v62  ;;  %4292 = vst.msk [vmem:[#allocation5 + $0x10] sm:$0xf] %vm4287_vm13, %v4272_v49  ;;  %v3711_v12 = vpop.f32.mrf.mxu0  ;;  %v12218_v49 = vld [vmem:[%s16471_s4 + $0x70] ss:$8 sps:$4 sm:$0xff]  }
 0xd22   :  { %v3910_v36 = vmax.f32 %v3720_v14, 0.0  ;;  %v3712_v58 = vadd.f32 %v3711_v12, %v16907_v19  ;;  %4644 = vrot.lane.b32.xlu1 %v11302_v32, %s12371_s1  ;;  %4691 = vrot.lane.b32.xlu0 %v11307_v15, %s12372_s17  ;;  %v11305_v33 = vpack.c.bf16 %v3907_v60, %v3907_v60  ;;  %v16914_v15 = vld [vmem:[#allocation111_spill] sm:$0xff] }
 0xd23   :  { %v14609_v26 = vpop.f32.mrf.mxu0  ;;  %11945 = vmatprep.subr.bf16.mxu1 %v12218_v49 }
 0xd24   :  { %v11308_v44 = vpack.c.bf16 %v3910_v36, %v3910_v36  ;;  %v3908_v25 = vmax.f32 %v3712_v58, 0.0  ;;  %v4274_v55 = vpop.permute.xlu1 %4273  ;;  %v4321_v46 = vpop.permute.xlu0 %4320  ;;  %v16915_v36 = vld [vmem:[#allocation109_spill] sm:$0xff]  ;;  %v16916_v58 = vld [vmem:[#allocation143_spill] sm:$0xff]  ;;  %11946 = vmatpush3.bf16.msra.mxu1 %v12218_v49 }
 0xd25   :  { %4293 = vst.msk [vmem:[#allocation5 + $0x14] sm:$0xf] %vm4287_vm13, %v4274_v55  ;;  %v3724_v54 = vpop.f32.mrf.mxu0  ;;  %vm4817_vm13 = vcmask 257264  }
 0xd26   :  { %4343 = vst.msk [vmem:[#allocation5 + $0x8] sm:$0xf] %vm4340_vm14, %v4321_v46  ;;  %v3725_v10 = vadd.f32 %v3724_v54, %v16908_v61  ;;  %4693 = vrot.lane.b32.xlu1 %v11308_v44, %s12372_s17  ;;  %4687 = vrot.lane.b32.xlu0 %v11305_v33, %s12372_s17  ;;  %v11306_v35 = vpack.c.bf16 %v3908_v25, %v3908_v25  ;;  %v16917_v46 = vld [vmem:[#allocation112_spill] sm:$0xff] }
 0xd27   :  { %v14616_v37 = vpop.f32.mrf.mxu0  ;;  %v3733_v33 = vadd.f32 %v14609_v26, %v16916_v58  ;;  %v16918_v26 = vld [vmem:[#allocation110_spill] sm:$0xff] }
 0xd28   :  { %v3911_v7 = vmax.f32 %v3725_v10, 0.0  ;;  %v4323_v39 = vpop.permute.xlu1 %4322  ;;  %v4317_v8 = vpop.permute.xlu0 %4316 }
 0xd29   :  { %4344 = vst.msk [vmem:[#allocation5 + $0xc] sm:$0xf] %vm4340_vm14, %v4323_v39  ;;  %4341 = vst.msk [vmem:[#allocation5] sm:$0xf] %vm4340_vm14, %v4317_v8  ;;  %v3727_v42 = vpop.f32.mrf.mxu0 }
 0xd2a   :  { %v11309_v31 = vpack.c.bf16 %v3911_v7, %v3911_v7  ;;  %v3728_v27 = vadd.f32 %v3727_v42, %v16909_v4  ;;  %4689 = vrot.lane.b32.xlu1 %v11306_v35, %s12372_s17  ;;  %v12219_v7 = vld [vmem:[%s16471_s4 + $0x60] ss:$8 sps:$4 sm:$0xff]   ;;  %v3913_v42 = vmax.f32 %v3733_v33, 0.0 }
 0xd2b   :  { %v11931_v18 = vpop.f32.mrf.mxu0  ;;  %11947 = vmatprep.subr.bf16.mxu1 %v12219_v7 }
 0xd2c   :  { %v3912_v43 = vmax.f32 %v3728_v27, 0.0  ;;  %v3749_v16 = vadd.f32 %v11931_v18, %v16910_v34  ;;  %v4319_v20 = vpop.permute.xlu1 %4318  ;;  %4695 = vrot.lane.b32.xlu0 %v11309_v31, %s12372_s17  ;;  %v4329_v0 = vpop.permute.xlu0 %4328  ;;  %v16919_v31 = vld [vmem:[#allocation144_spill] sm:$0xff]  ;;  %v16920_v18 = vld [vmem:[#allocation145_spill] sm:$0xff]  ;;  %11948 = vmatpush3.bf16.msra.mxu1 %v12219_v7 }
 0xd2d   :  { %4342 = vst.msk [vmem:[#allocation5 + $0x4] sm:$0xf] %vm4340_vm14, %v4319_v20  ;;  %4347 = vst.msk [vmem:[#allocation5 + $0x18] sm:$0xf] %vm4340_vm14, %v4329_v0  ;;  %v3740_v11 = vpop.f32.mrf.mxu0  ;;  %v3736_v4 = vadd.f32 %v14616_v37, %v16919_v31  ;;  %v11311_v37 = vpack.c.bf16 %v3913_v42, %v3913_v42 }
 0xd2e   :  { %v11310_v38 = vpack.c.bf16 %v3912_v43, %v3912_v43  ;;  %v3917_v13 = vmax.f32 %v3749_v16, 0.0  ;;  %v3741_v3 = vadd.f32 %v3740_v11, %v16911_v6 }
 0xd2f   :  { %v11932_v53 = vpop.f32.mrf.mxu0 }
 0xd30   :  { %v11315_v2 = vpack.c.bf16 %v3917_v13, %v3917_v13  ;;  %v3915_v50 = vmax.f32 %v3741_v3, 0.0  ;;  %v3752_v28 = vadd.f32 %v11932_v53, %v16912_v23  ;;  %4697 = vrot.lane.b32.xlu1 %v11310_v38, %s12372_s17  ;;  %v4331_v52 = vpop.permute.xlu1 %4330  ;;  %v4325_v47 = vpop.permute.xlu0 %4324  ;;  %v16921_v13 = vld [vmem:[#allocation147_spill] sm:$0xff]  ;;  %v3914_v3 = vmax.f32 %v3736_v4, 0.0 }
 0xd31   :  { %4348 = vst.msk [vmem:[#allocation5 + $0x1c] sm:$0xf] %vm4340_vm14, %v4331_v52  ;;  %4345 = vst.msk [vmem:[#allocation5 + $0x10] sm:$0xf] %vm4340_vm14, %v4325_v47  ;;  %v3743_v51 = vpop.f32.mrf.mxu0 }
 0xd32   :  { %v3918_v41 = vmax.f32 %v3752_v28, 0.0  ;;  %v3744_v17 = vadd.f32 %v3743_v51, %v16913_v30  ;;  %4744 = vrot.lane.b32.xlu0 %v11315_v2, %s12373_s18  ;;  %v11313_v21 = vpack.c.bf16 %v3915_v50, %v3915_v50  ;;  %v16922_v2 = vld [vmem:[#allocation146_spill] sm:$0xff] }
 0xd33   :  { %v14633_v9 = vpop.f32.mrf.mxu0 }
 0xd34   :  { %v11316_v29 = vpack.c.bf16 %v3918_v41, %v3918_v41  ;;  %v3916_v24 = vmax.f32 %v3744_v17, 0.0  ;;  %v4327_v59 = vpop.permute.xlu1 %4326  ;;  %v4374_v48 = vpop.permute.xlu0 %4373  ;;  %v3765_v6 = vadd.f32 %v14633_v9, %v16921_v13  ;;  %v16923_v41 = vld [vmem:[#allocation148_spill] sm:$0xff]  ;;  %v11312_v17 = vpack.c.bf16 %v3914_v3, %v3914_v3 }
 0xd35   :  { %4346 = vst.msk [vmem:[#allocation5 + $0x14] sm:$0xf] %vm4340_vm14, %v4327_v59  ;;  %v3756_v40 = vpop.f32.mrf.mxu0  ;;  %vm6276_vm14 = vcmask 1043968  }
 0xd36   :  { %4396 = vst.msk [vmem:[#allocation5 + $0x8] sm:$0xf] %vm4393_vm15, %v4374_v48  ;;  %4746 = vrot.lane.b32.xlu1 %v11316_v29, %s12373_s18  ;;  %4740 = vrot.lane.b32.xlu0 %v11313_v21, %s12373_s18  ;;  %v11314_v56 = vpack.c.bf16 %v3916_v24, %v3916_v24  ;;  %v3757_v43 = vadd.f32 %v3756_v40, %v16920_v18  ;;  %v3921_v51 = vmax.f32 %v3765_v6, 0.0  ;;  %v16924_v29 = vld [vmem:[#allocation149_spill] sm:$0xff] }
 0xd37   :  { %v14639_v1 = vpop.f32.mrf.mxu0 }
 0xd38   :  { %v4376_v5 = vpop.permute.xlu1 %4375  ;;  %v4370_v57 = vpop.permute.xlu0 %4369  ;;  %v3919_v53 = vmax.f32 %v3757_v43, 0.0  ;;  %v3768_v30 = vadd.f32 %v14639_v1, %v16923_v41  ;;  %v16925_v1 = vld [vmem:[#allocation151_spill] sm:$0xff] }
 0xd39   :  { %4397 = vst.msk [vmem:[#allocation5 + $0xc] sm:$0xf] %vm4393_vm15, %v4376_v5  ;;  %4394 = vst.msk [vmem:[#allocation5] sm:$0xf] %vm4393_vm15, %v4370_v57  ;;  %v3759_v22 = vpop.f32.mrf.mxu0 }
 0xd3a   :  { %4742 = vrot.lane.b32.xlu1 %v11314_v56, %s12373_s18  ;;  %v3760_v50 = vadd.f32 %v3759_v22, %v16922_v2  ;;  %v11317_v9 = vpack.c.bf16 %v3919_v53, %v3919_v53  ;;  %v11319_v56 = vpack.c.bf16 %v3921_v51, %v3921_v51  ;;  %v3922_v5 = vmax.f32 %v3768_v30, 0.0 }
 0xd3b   :  { %v11939_v32 = vpop.f32.mrf.mxu0 }
 0xd3c   :  { %v3781_v60 = vadd.f32 %v11939_v32, %v16914_v15  ;;  %v4372_v45 = vpop.permute.xlu1 %4371  ;;  %v4382_v14 = vpop.permute.xlu0 %4381  ;;  %v3920_v21 = vmax.f32 %v3760_v50, 0.0  ;;  %v16926_v15 = vld [vmem:[#allocation150_spill] sm:$0xff] }
 0xd3d   :  { %4395 = vst.msk [vmem:[#allocation5 + $0x4] sm:$0xf] %vm4393_vm15, %v4372_v45  ;;  %4400 = vst.msk [vmem:[#allocation5 + $0x18] sm:$0xf] %vm4393_vm15, %v4382_v14  ;;  %v3772_v62 = vpop.f32.mrf.mxu0 }
 0xd3e   :  { %v3925_v12 = vmax.f32 %v3781_v60, 0.0  ;;  %v3773_v19 = vadd.f32 %v3772_v62, %v16915_v36  ;;  %v11318_v57 = vpack.c.bf16 %v3920_v21, %v3920_v21  ;;  %v11320_v62 = vpack.c.bf16 %v3922_v5, %v3922_v5  ;;  %v16927_v36 = vld [vmem:[#allocation152_spill] sm:$0xff] }
 0xd3f   :  { %v11940_v44 = vpop.f32.mrf.mxu0 }
 0xd40   :  { %v11323_v25 = vpack.c.bf16 %v3925_v12, %v3925_v12  ;;  %v3923_v55 = vmax.f32 %v3773_v19, 0.0  ;;  %v3784_v54 = vadd.f32 %v11940_v44, %v16917_v46  ;;  %v4384_v61 = vpop.permute.xlu1 %4383  ;;  %v4378_v10 = vpop.permute.xlu0 %4377 }
 0xd41   :  { %4401 = vst.msk [vmem:[#allocation5 + $0x1c] sm:$0xf] %vm4393_vm15, %v4384_v61  ;;  %4398 = vst.msk [vmem:[#allocation5 + $0x10] sm:$0xf] %vm4393_vm15, %v4378_v10  ;;  %v3775_v35 = vpop.f32.mrf.mxu0  ;;  %v14700_v10 = vld [vmem:[%s16474_s7 + $0x8] sm:$0xff] }
 0xd42   :  { %v3926_v39 = vmax.f32 %v3784_v54, 0.0  ;;  %v3776_v8 = vadd.f32 %v3775_v35, %v16918_v26  ;;  %4797 = vrot.lane.b32.xlu0 %v11323_v25, %s12374_s23  ;;  %v11321_v34 = vpack.c.bf16 %v3923_v55, %v3923_v55  ;;  %v14705_v35 = vld [vmem:[%s16474_s7 + $0x18] sm:$0xff]  ;;  %v4958_v7 = vunpack.c.h.s8.bf16 %v14700_v10 }
 0xd43   :  { %v11943_v27 = vpop.f32.mrf.mxu0 }
 0xd44   :  { %v11324_v16 = vpack.c.bf16 %v3926_v39, %v3926_v39  ;;  %v3924_v20 = vmax.f32 %v3776_v8, 0.0  ;;  %v4380_v0 = vpop.permute.xlu1 %4379  ;;  %v4427_v11 = vpop.permute.xlu0 %4426  ;;  %v3797_v22 = vadd.f32 %v11943_v27, %v16925_v1  ;;  %v4962_v39 = vunpack.c.h.s8.bf16 %v14705_v35 }
 0xd45   :  { %4399 = vst.msk [vmem:[#allocation5 + $0x14] sm:$0xf] %vm4393_vm15, %v4380_v0  ;;  %v3788_v38 = vpop.f32.mrf.mxu0 }
 0xd46   :  { %4449 = vst.msk [vmem:[#allocation5 + $0x8] sm:$0xf] %vm4446_vm0, %v4427_v11  ;;  %4799 = vrot.lane.b32.xlu1 %v11324_v16, %s12374_s23  ;;  %4793 = vrot.lane.b32.xlu0 %v11321_v34, %s12374_s23  ;;  %v11322_v23 = vpack.c.bf16 %v3924_v20, %v3924_v20  ;;  %v3789_v24 = vadd.f32 %v3788_v38, %v16924_v29  ;;  %v3929_v49 = vmax.f32 %v3797_v22, 0.0 }
 0xd47   :  { %v11944_v47 = vpop.f32.mrf.mxu0  ;;  %v14711_v31 = vcombine.high %v4958_v7, %v4962_v39  ;;  %v14714_v4 = vcombine.low %v4958_v7, %v4962_v39  ;;  %v4951_v39 = vld [vmem:[%s16474_s7] sm:$0xff] }
 0xd48   :  { %v4429_v28 = vpop.permute.xlu1 %4428  ;;  %v4423_v52 = vpop.permute.xlu0 %4422  ;;  %v3927_v32 = vmax.f32 %v3789_v24, 0.0  ;;  %v3800_v19 = vadd.f32 %v11944_v47, %v16927_v36  ;;  %v11327_v25 = vpack.c.bf16 %v3929_v49, %v3929_v49 }
 0xd49   :  { %4450 = vst.msk [vmem:[#allocation5 + $0xc] sm:$0xf] %vm4446_vm0, %v4429_v28  ;;  %4447 = vst.msk [vmem:[#allocation5] sm:$0xf] %vm4446_vm0, %v4423_v52  ;;  %v3791_v40 = vpop.f32.mrf.mxu0  ;;  %6141 = vmatprep.subr.bf16.mxu0 %v14711_v31 }
 0xd4a   :  { %4795 = vrot.lane.b32.xlu1 %v11322_v23, %s12374_s23  ;;  %4699 = vrot.lane.b32.xlu0 %v11311_v37, %s12372_s17  ;;  %v3792_v60 = vadd.f32 %v3791_v40, %v16926_v15  ;;  %v11325_v12 = vpack.c.bf16 %v3927_v32, %v3927_v32  ;;  %v3930_v55 = vmax.f32 %v3800_v19, 0.0 }
 0xd4b   :  { %6142 = vmatpush1.bf16.msra.mxu0 %v14714_v4 }
 0xd4c   :  { %v4425_v59 = vpop.permute.xlu1 %4424  ;;  %v4435_v48 = vpop.permute.xlu0 %4434  ;;  %v3928_v58 = vmax.f32 %v3792_v60, 0.0  ;;  %v11328_v26 = vpack.c.bf16 %v3930_v55, %v3930_v55 }
 0xd4d   :  { %4448 = vst.msk [vmem:[#allocation5 + $0x4] sm:$0xf] %vm4446_vm0, %v4425_v59  ;;  %4453 = vst.msk [vmem:[#allocation5 + $0x18] sm:$0xf] %vm4446_vm0, %v4435_v48 }
 0xd4e   :  { %4701 = vrot.lane.b32.xlu1 %v11312_v17, %s12372_s17  ;;  %4748 = vrot.lane.b32.xlu0 %v11317_v9, %s12373_s18  ;;  %v11326_v46 = vpack.c.bf16 %v3928_v58, %v3928_v58 }
 0xd50   :  { %v4437_v45 = vpop.permute.xlu1 %4436  ;;  %v4431_v14 = vpop.permute.xlu0 %4430 }
 0xd51   :  { %4454 = vst.msk [vmem:[#allocation5 + $0x1c] sm:$0xf] %vm4446_vm0, %v4437_v45  ;;  %4451 = vst.msk [vmem:[#allocation5 + $0x10] sm:$0xf] %vm4446_vm0, %v4431_v14 }
 0xd52   :  { %4750 = vrot.lane.b32.xlu1 %v11318_v57, %s12373_s18  ;;  %4752 = vrot.lane.b32.xlu0 %v11319_v56, %s12373_s18 }
 0xd54   :  { %v4433_v33 = vpop.permute.xlu1 %4432  ;;  %v4480_v44 = vpop.permute.xlu0 %4479 }
 0xd55   :  { %4452 = vst.msk [vmem:[#allocation5 + $0x14] sm:$0xf] %vm4446_vm0, %v4433_v33 }
 0xd56   :  { %4502 = vst.msk [vmem:[#allocation5 + $0x8] sm:$0xf] %vm4499_vm1, %v4480_v44  ;;  %4754 = vrot.lane.b32.xlu1 %v11320_v62, %s12373_s18  ;;  %4801 = vrot.lane.b32.xlu0 %v11325_v12, %s12374_s23 }
 0xd58   :  { %v4482_v54 = vpop.permute.xlu1 %4481  ;;  %v4476_v61 = vpop.permute.xlu0 %4475 }
 0xd59   :  { %4503 = vst.msk [vmem:[#allocation5 + $0xc] sm:$0xf] %vm4499_vm1, %v4482_v54  ;;  %4500 = vst.msk [vmem:[#allocation5] sm:$0xf] %vm4499_vm1, %v4476_v61 }
 0xd5a   :  { %4803 = vrot.lane.b32.xlu1 %v11326_v46, %s12374_s23  ;;  %4805 = vrot.lane.b32.xlu0 %v11327_v25, %s12374_s23 }
 0xd5c   :  { %v4478_v8 = vpop.permute.xlu1 %4477  ;;  %v4488_v42 = vpop.permute.xlu0 %4487 }
 0xd5d   :  { %4501 = vst.msk [vmem:[#allocation5 + $0x4] sm:$0xf] %vm4499_vm1, %v4478_v8  ;;  %4506 = vst.msk [vmem:[#allocation5 + $0x18] sm:$0xf] %vm4499_vm1, %v4488_v42  ;;  %v4955_v8 = vunpack.c.l.s8.bf16 %v4951_v39 }
 0xd5e   :  { %4807 = vrot.lane.b32.xlu1 %v11328_v26, %s12374_s23  ;;  %v4953_v26 = vld [vmem:[%s16474_s7 + $0x10] sm:$0xff] }
 0xd5f   :  { %v4959_v42 = vunpack.c.l.s8.bf16 %v4953_v26 }
 0xd60   :  { %v4490_v27 = vpop.permute.xlu1 %4489  ;;  %v4484_v18 = vpop.permute.xlu0 %4483 }
 0xd61   :  { %4507 = vst.msk [vmem:[#allocation5 + $0x1c] sm:$0xf] %vm4499_vm1, %v4490_v27  ;;  %4504 = vst.msk [vmem:[#allocation5 + $0x10] sm:$0xf] %vm4499_vm1, %v4484_v18  ;;  %v10790_v27 = vcombine.high %v4955_v8, %v4959_v42  ;;  %v10789_v18 = vcombine.low %v4955_v8, %v4959_v42 }
 0xd63   :  { %5029 = vmatprep.subr.bf16.mxu1 %v10790_v27 }
 0xd64   :  { %v4486_v43 = vpop.permute.xlu1 %4485  ;;  %v4533_v34 = vpop.permute.xlu0 %4532 }
 0xd65   :  { %4505 = vst.msk [vmem:[#allocation5 + $0x14] sm:$0xf] %vm4499_vm1, %v4486_v43  ;;  %v4956_v43 = vunpack.c.h.s8.bf16 %v4951_v39 }
 0xd66   :  { %4555 = vst.msk [vmem:[#allocation5 + $0x8] sm:$0xf] %vm4552_vm2, %v4533_v34  ;;  %v4960_v34 = vunpack.c.h.s8.bf16 %v4953_v26 }
 0xd68   :  { %v4535_v16 = vpop.permute.xlu1 %4534  ;;  %v4529_v20 = vpop.permute.xlu0 %4528 }
 0xd69   :  { %4556 = vst.msk [vmem:[#allocation5 + $0xc] sm:$0xf] %vm4552_vm2, %v4535_v16  ;;  %4553 = vst.msk [vmem:[#allocation5] sm:$0xf] %vm4552_vm2, %v4529_v20  ;;  %v10792_v16 = vcombine.high %v4956_v43, %v4960_v34  ;;  %v14780_v20 = vcombine.low %v4956_v43, %v4960_v34 }
 0xd6c   :  { %v4531_v0 = vpop.permute.xlu1 %4530  ;;  %v4541_v11 = vpop.permute.xlu0 %4540 }
 0xd6d   :  { %4554 = vst.msk [vmem:[#allocation5 + $0x4] sm:$0xf] %vm4552_vm2, %v4531_v0  ;;  %4559 = vst.msk [vmem:[#allocation5 + $0x18] sm:$0xf] %vm4552_vm2, %v4541_v11 }
 0xd70   :  { %v4543_v38 = vpop.permute.xlu1 %4542  ;;  %v4537_v37 = vpop.permute.xlu0 %4536 }
 0xd71   :  { %4560 = vst.msk [vmem:[#allocation5 + $0x1c] sm:$0xf] %vm4552_vm2, %v4543_v38  ;;  %4557 = vst.msk [vmem:[#allocation5 + $0x10] sm:$0xf] %vm4552_vm2, %v4537_v37  ;;  %v4957_v38 = vunpack.c.l.s8.bf16 %v14700_v10  ;;  %v4961_v37 = vunpack.c.l.s8.bf16 %v14705_v35 }
 0xd74   :  { %v4539_v13 = vpop.permute.xlu1 %4538  ;;  %v4586_v6 = vpop.permute.xlu0 %4585 }
 0xd75   :  { %4558 = vst.msk [vmem:[#allocation5 + $0x14] sm:$0xf] %vm4552_vm2, %v4539_v13 }
 0xd76   :  { %4608 = vst.msk [vmem:[#allocation5 + $0x8] sm:$0xf] %vm4605_vm6, %v4586_v6 }
 0xd78   :  { %v4588_v3 = vpop.permute.xlu1 %4587  ;;  %v4582_v53 = vpop.permute.xlu0 %4581 }
 0xd79   :  { %4609 = vst.msk [vmem:[#allocation5 + $0xc] sm:$0xf] %vm4605_vm6, %v4588_v3  ;;  %4606 = vst.msk [vmem:[#allocation5] sm:$0xf] %vm4605_vm6, %v4582_v53 }
 0xd7c   :  { %v4584_v2 = vpop.permute.xlu1 %4583  ;;  %v4594_v50 = vpop.permute.xlu0 %4593 }
 0xd7d   :  { %4607 = vst.msk [vmem:[#allocation5 + $0x4] sm:$0xf] %vm4605_vm6, %v4584_v2  ;;  %4612 = vst.msk [vmem:[#allocation5 + $0x18] sm:$0xf] %vm4605_vm6, %v4594_v50  ;;  %v10794_v2 = vcombine.high %v4957_v38, %v4961_v37 }
 0xd80   :  { %v4596_v23 = vpop.permute.xlu1 %4595  ;;  %v4590_v28 = vpop.permute.xlu0 %4589 }
 0xd81   :  { %4613 = vst.msk [vmem:[#allocation5 + $0x1c] sm:$0xf] %vm4605_vm6, %v4596_v23  ;;  %4610 = vst.msk [vmem:[#allocation5 + $0x10] sm:$0xf] %vm4605_vm6, %v4590_v28 }
 0xd84   :  { %v4592_v52 = vpop.permute.xlu1 %4591  ;;  %v4639_v47 = vpop.permute.xlu0 %4638 }
 0xd85   :  { %4611 = vst.msk [vmem:[#allocation5 + $0x14] sm:$0xf] %vm4605_vm6, %v4592_v52 }
 0xd86   :  { %4661 = vst.msk [vmem:[#allocation5 + $0x8] sm:$0xf] %vm4658_vm8, %v4639_v47  ;;  %v10793_v47 = vcombine.low %v4957_v38, %v4961_v37 }
 0xd88   :  { %v4641_v51 = vpop.permute.xlu1 %4640  ;;  %v4635_v41 = vpop.permute.xlu0 %4634 }
 0xd89   :  { %4662 = vst.msk [vmem:[#allocation5 + $0xc] sm:$0xf] %vm4658_vm8, %v4641_v51  ;;  %4659 = vst.msk [vmem:[#allocation5] sm:$0xf] %vm4658_vm8, %v4635_v41 }
 0xd8c   :  { %v4637_v30 = vpop.permute.xlu1 %4636  ;;  %v4647_v17 = vpop.permute.xlu0 %4646 }
 0xd8d   :  { %4660 = vst.msk [vmem:[#allocation5 + $0x4] sm:$0xf] %vm4658_vm8, %v4637_v30  ;;  %4665 = vst.msk [vmem:[#allocation5 + $0x18] sm:$0xf] %vm4658_vm8, %v4647_v17 }
 0xd90   :  { %v4649_v9 = vpop.permute.xlu1 %4648  ;;  %v4643_v21 = vpop.permute.xlu0 %4642 }
 0xd91   :  { %4666 = vst.msk [vmem:[#allocation5 + $0x1c] sm:$0xf] %vm4658_vm8, %v4649_v9  ;;  %4663 = vst.msk [vmem:[#allocation5 + $0x10] sm:$0xf] %vm4658_vm8, %v4643_v21 }
 0xd94   :  { %v4645_v29 = vpop.permute.xlu1 %4644  ;;  %v4692_v24 = vpop.permute.xlu0 %4691 }
 0xd95   :  { %4664 = vst.msk [vmem:[#allocation5 + $0x14] sm:$0xf] %vm4658_vm8, %v4645_v29 }
 0xd96   :  { %4714 = vst.msk [vmem:[#allocation5 + $0x8] sm:$0xf] %vm4711_vm10, %v4692_v24 }
 0xd98   :  { %v4694_v59 = vpop.permute.xlu1 %4693  ;;  %v4688_v48 = vpop.permute.xlu0 %4687 }
 0xd99   :  { %4715 = vst.msk [vmem:[#allocation5 + $0xc] sm:$0xf] %vm4711_vm10, %v4694_v59  ;;  %4712 = vst.msk [vmem:[#allocation5] sm:$0xf] %vm4711_vm10, %v4688_v48 }
 0xd9c   :  { %v4690_v40 = vpop.permute.xlu1 %4689 }
 0xd9d   :  { %4713 = vst.msk [vmem:[#allocation5 + $0x4] sm:$0xf] %vm4711_vm10, %v4690_v40 }
 0xd9e   :  { %v4696_v56 = vpop.permute.xlu0 %4695 }
 0xd9f   :  { %4716 = vst.msk [vmem:[#allocation5 + $0x10] sm:$0xf] %vm4711_vm10, %v4696_v56 }
 0xda2   :  { %v4698_v5 = vpop.permute.xlu1 %4697 }
 0xda3   :  { %4717 = vst.msk [vmem:[#allocation5 + $0x14] sm:$0xf] %vm4711_vm10, %v4698_v5 }
 0xda4   :  { %v4745_v57 = vpop.permute.xlu0 %4744 }
 0xda5   :  { %4767 = vst.msk [vmem:[#allocation5 + $0x8] sm:$0xf] %vm4764_vm11, %v4745_v57 }
 0xda8   :  { %v4747_v1 = vpop.permute.xlu1 %4746  ;;  %v4741_v22 = vpop.permute.xlu0 %4740 }
 0xda9   :  { %4768 = vst.msk [vmem:[#allocation5 + $0xc] sm:$0xf] %vm4764_vm11, %v4747_v1  ;;  %4765 = vst.msk [vmem:[#allocation5] sm:$0xf] %vm4764_vm11, %v4741_v22 }
 0xdac   :  { %v4743_v32 = vpop.permute.xlu1 %4742 }
 0xdad   :  { %4766 = vst.msk [vmem:[#allocation5 + $0x4] sm:$0xf] %vm4764_vm11, %v4743_v32 }
 0xdb4   :  { %v4798_v15 = vpop.permute.xlu0 %4797 }
 0xdb5   :  { %4820 = vst.msk [vmem:[#allocation5 + $0x8] sm:$0xf] %vm4817_vm13, %v4798_v15 }
 0xdb8   :  { %v4800_v60 = vpop.permute.xlu1 %4799  ;;  %v4794_v45 = vpop.permute.xlu0 %4793 }
 0xdb9   :  { %4821 = vst.msk [vmem:[#allocation5 + $0xc] sm:$0xf] %vm4817_vm13, %v4800_v60  ;;  %4818 = vst.msk [vmem:[#allocation5] sm:$0xf] %vm4817_vm13, %v4794_v45 }
 0xdbc   :  { %v4796_v14 = vpop.permute.xlu1 %4795  ;;  %v4700_v62 = vpop.permute.xlu0 %4699 }
 0xdbd   :  { %4819 = vst.msk [vmem:[#allocation5 + $0x4] sm:$0xf] %vm4817_vm13, %v4796_v14 }
 0xdbe   :  { %4718 = vst.msk [vmem:[#allocation5 + $0x18] sm:$0xf] %vm4711_vm10, %v4700_v62 }
 0xdc0   :  { %v4702_v49 = vpop.permute.xlu1 %4701  ;;  %v4749_v12 = vpop.permute.xlu0 %4748  ;;  %v12221_v33 = vld [vmem:[#allocation5 + $0x8] sm:$0xff]  }
 0xdc1   :  { %4719 = vst.msk [vmem:[#allocation5 + $0x1c] sm:$0xf] %vm4711_vm10, %v4702_v49 }
 0xdc2   :  { %4769 = vst.msk [vmem:[#allocation5 + $0x10] sm:$0xf] %vm4764_vm11, %v4749_v12 }
 0xdc4   :  { %v4751_v36 = vpop.permute.xlu1 %4750  ;;  %v4753_v19 = vpop.permute.xlu0 %4752  ;;  %v12220_v58 = vld [vmem:[#allocation5] sm:$0xff]  }
 0xdc5   :  { %4770 = vst.msk [vmem:[#allocation5 + $0x14] sm:$0xf] %vm4764_vm11, %v4751_v36  ;;  %4771 = vst.msk [vmem:[#allocation5 + $0x18] sm:$0xf] %vm4764_vm11, %v4753_v19  ;;  %11949 = vmatprep.mubr.msk.bf16.mxu1 %vm1155_vm9, %v12220_v58 }
 0xdc6   :  { %11950 = vmatmul.mubr.msk.bf16.vlgmr.msra.gmra.mxu1 %vm1155_vm9, %v12221_v33 }
 0xdc7   :  { %5030 = vmatpush1.bf16.msra.mxu1 %v10789_v18 }
 0xdc8   :  { %v4755_v44 = vpop.permute.xlu1 %4754  ;;  %v4802_v25 = vpop.permute.xlu0 %4801  ;;  %5102 = vmatprep.subr.bf16.mxu1 %v10792_v16 }
 0xdc9   :  { %4772 = vst.msk [vmem:[#allocation5 + $0x1c] sm:$0xf] %vm4764_vm11, %v4755_v44 }
 0xdca   :  { %4822 = vst.msk [vmem:[#allocation5 + $0x10] sm:$0xf] %vm4817_vm13, %v4802_v25 }
 0xdcc   :  { %v4804_v55 = vpop.permute.xlu1 %4803  ;;  %v4806_v46 = vpop.permute.xlu0 %4805 }
 0xdcd   :  { %4823 = vst.msk [vmem:[#allocation5 + $0x14] sm:$0xf] %vm4817_vm13, %v4804_v55  ;;  %4824 = vst.msk [vmem:[#allocation5 + $0x18] sm:$0xf] %vm4817_vm13, %v4806_v46 }
 0xdd0   :  { %v4808_v54 = vpop.permute.xlu1 %4807 }
 0xdd1   :  { %4825 = vst.msk [vmem:[#allocation5 + $0x1c] sm:$0xf] %vm4817_vm13, %v4808_v54 }
 0xdd4   :  { %v12222_v61 = vld [vmem:[#allocation5 + $0x10] sm:$0xff]  }
 0xdd5   :  { %11953 = vmatprep.mubr.msk.bf16.mxu1 %vm1155_vm9, %v12222_v61 }
 0xdd8   :  { %v12223_v7 = vld [vmem:[#allocation5 + $0x18] sm:$0xff]  }
 0xdd9   :  { %11954 = vmatmul.mubr.msk.bf16.gmra.mxu1 %vm1155_vm9, %v12223_v7  ;;  %vm5367_vm9 = vcmask 519168  }
 0xdda   :  { %5047 = vmatprep.mubr.bf16.mxu1 %v16851_v63 }
 0xe86   :  { %v11951_v0 = vpop.f32.mrf.mxu1 }
 0xe88   :  { %v4916_v11 = vpop.f32.mrf.mxu1 }
 0xe8a   :  { %v11952_v13 = vpop.f32.mrf.mxu1 }
 0xe8b   :  { %v4948_v6 = vpack.c.bf16 %v11952_v13, %v11951_v0 }
 0xe8c   :  { %v4919_v3 = vpop.f32.mrf.mxu1 }
 0xe8d   :  { %v4947_v53 = vpack.c.bf16 %v4919_v3, %v4916_v11  ;;  %5890 = vrot.lane.b32.xlu1 %v4948_v6, %s12345_s0 }
 0xe8f   :  { %5888 = vrot.lane.b32.xlu0 %v4947_v53, %s12345_s0  ;;  %10797 = vmatmul.mubr.msk.bf16.vlgmr.msra.gmra.mxu1 %vm1230_vm12, %v4947_v53 }
 0xe90   :  { %5057 = vmatprep.mubr.bf16.mxu1 %v16851_v63  ;;  %5103 = vmatpush1.bf16.msra.mxu1 %v14780_v20 }
 0xe91   :  { %5175 = vmatprep.subr.bf16.mxu1 %v10794_v2 }
 0xe97   :  { %10798 = vmatmul.mubr.msk.bf16.gmra.mxu1 %vm1230_vm12, %v4948_v6 }
 0xe98   :  { %5067 = vmatprep.mubr.bf16.mxu1 %v16851_v63 }
 0xe99   :  { %v11955_v10 = vpop.f32.mrf.mxu1 }
 0xe9b   :  { %v4932_v35 = vpop.f32.mrf.mxu1 }
 0xe9d   :  { %v11956_v50 = vpop.f32.mrf.mxu1 }
 0xe9e   :  { %v4950_v23 = vpack.c.bf16 %v11956_v50, %v11955_v10 }
 0xe9f   :  { %v4935_v28 = vpop.f32.mrf.mxu1 }
 0xea0   :  { %v4949_v52 = vpack.c.bf16 %v4935_v28, %v4932_v35  ;;  %5894 = vrot.lane.b32.xlu1 %v4950_v23, %s12345_s0 }
 0xea2   :  { %5892 = vrot.lane.b32.xlu0 %v4949_v52, %s12345_s0  ;;  %10799 = vmatmul.mubr.msk.bf16.gmra.mxu1 %vm1230_vm12, %v4949_v52 }
 0xea3   :  { %5077 = vmatprep.mubr.bf16.mxu1 %v16851_v63 }
 0xeaa   :  { %10800 = vmatmul.mubr.msk.bf16.gmra.mxu1 %vm1230_vm12, %v4950_v23 }
 0xeab   :  { %5120 = vmatprep.mubr.bf16.mxu1 %v16851_v63 }
 0xeb2   :  { %10801 = vmatmul.mubr.msk.bf16.vlgmr.msra.gmra.mxu1 %vm1230_vm12, %v4947_v53 }
 0xeb3   :  { %5176 = vmatpush1.bf16.msra.mxu1 %v10793_v47  ;;  %5130 = vmatprep.mubr.bf16.mxu1 %v16851_v63 }
 0xeb4   :  { %5248 = vmatprep.subr.bf16.mxu1 %v14711_v31 }
 0xeba   :  { %10802 = vmatmul.mubr.msk.bf16.gmra.mxu1 %vm1230_vm12, %v4948_v6 }
 0xebb   :  { %5140 = vmatprep.mubr.bf16.mxu1 %v16851_v63 }
 0xec2   :  { %10803 = vmatmul.mubr.msk.bf16.gmra.mxu1 %vm1230_vm12, %v4949_v52 }
 0xec3   :  { %5150 = vmatprep.mubr.bf16.mxu1 %v16851_v63 }
 0xeca   :  { %10804 = vmatmul.mubr.msk.bf16.gmra.mxu1 %vm1230_vm12, %v4950_v23 }
 0xecb   :  { %5193 = vmatprep.mubr.bf16.mxu1 %v16851_v63 }
 0xed2   :  { %10805 = vmatmul.mubr.msk.bf16.vlgmr.msra.gmra.mxu1 %vm1230_vm12, %v4947_v53 }
 0xed3   :  { %5249 = vmatpush1.bf16.msra.mxu1 %v14714_v4  ;;  %5203 = vmatprep.mubr.bf16.mxu1 %v16851_v63 }
 0xed4   :  { %5922 = vmatprep.subr.bf16.mxu1 %v10790_v27 }
 0xeda   :  { %10806 = vmatmul.mubr.msk.bf16.gmra.mxu1 %vm1230_vm12, %v4948_v6 }
 0xedb   :  { %5213 = vmatprep.mubr.bf16.mxu1 %v16851_v63 }
 0xee2   :  { %10807 = vmatmul.mubr.msk.bf16.gmra.mxu1 %vm1230_vm12, %v4949_v52 }
 0xee3   :  { %5223 = vmatprep.mubr.bf16.mxu1 %v16851_v63 }
 0xeea   :  { %10808 = vmatmul.mubr.msk.bf16.gmra.mxu1 %vm1230_vm12, %v4950_v23 }
 0xeeb   :  { %5266 = vmatprep.mubr.bf16.mxu1 %v16851_v63 }
 0xef2   :  { %10809 = vmatmul.mubr.msk.bf16.vlgmr.msra.gmra.mxu1 %vm1230_vm12, %v4947_v53 }
 0xef3   :  { %5923 = vmatpush1.bf16.msra.mxu1 %v10789_v18  ;;  %5276 = vmatprep.mubr.bf16.mxu1 %v16851_v63 }
 0xef4   :  { %5995 = vmatprep.subr.bf16.mxu1 %v10792_v16 }
 0xefa   :  { %10810 = vmatmul.mubr.msk.bf16.gmra.mxu1 %vm1230_vm12, %v4948_v6 }
 0xefb   :  { %5286 = vmatprep.mubr.bf16.mxu1 %v16851_v63 }
 0xeff   :  { %v5891_v4 = vpop.permute.xlu1 %5890 }
 0xf01   :  { %v5889_v31 = vpop.permute.xlu0 %5888 }
 0xf02   :  { %10811 = vmatmul.mubr.msk.bf16.gmra.mxu1 %vm1230_vm12, %v4949_v52  ;;  %10889 = vmatmul.mubr.msk.bf16.vlgmr.msra.gmra.mxu0 %vm1230_vm12, %v5889_v31 }
 0xf03   :  { %5296 = vmatprep.mubr.bf16.mxu1 %v16851_v63  ;;  %6169 = vmatprep.mubr.bf16.mxu0 %v16851_v63 }
 0xf0a   :  { %10812 = vmatmul.mubr.msk.bf16.gmra.mxu1 %vm1230_vm12, %v4950_v23  ;;  %10890 = vmatmul.mubr.msk.bf16.gmra.mxu0 %vm1230_vm12, %v5891_v4 }
 0xf0b   :  { %5940 = vmatprep.mubr.bf16.mxu1 %v16851_v63  ;;  %6179 = vmatprep.mubr.bf16.mxu0 %v16851_v63 }
 0xf12   :  { %10877 = vmatmul.mubr.msk.bf16.vlgmr.msra.gmra.mxu1 %vm1230_vm12, %v5889_v31  ;;  %v14834_v41 = vpop.permute.xlu1 %5894 }
 0xf13   :  { %5950 = vmatprep.mubr.bf16.mxu1 %v16851_v63  ;;  %5996 = vmatpush1.bf16.msra.mxu1 %v14780_v20 }
 0xf14   :  { %v5893_v51 = vpop.permute.xlu0 %5892  ;;  %6068 = vmatprep.subr.bf16.mxu1 %v10794_v2 }
 0xf15   :  { %10891 = vmatmul.mubr.msk.bf16.gmra.mxu0 %vm1230_vm12, %v5893_v51 }
 0xf16   :  { %6189 = vmatprep.mubr.bf16.mxu0 %v16851_v63 }
 0xf1a   :  { %10878 = vmatmul.mubr.msk.bf16.gmra.mxu1 %vm1230_vm12, %v5891_v4 }
 0xf1b   :  { %5960 = vmatprep.mubr.bf16.mxu1 %v16851_v63 }
 0xf1d   :  { %10892 = vmatmul.mubr.msk.bf16.gmra.mxu0 %vm1230_vm12, %v14834_v41 }
 0xf22   :  { %10879 = vmatmul.mubr.msk.bf16.gmra.mxu1 %vm1230_vm12, %v5893_v51 }
 0xf23   :  { %5970 = vmatprep.mubr.bf16.mxu1 %v16851_v63 }
 0xf2a   :  { %10880 = vmatmul.mubr.msk.bf16.gmra.mxu1 %vm1230_vm12, %v14834_v41 }
 0xf2b   :  { %6013 = vmatprep.mubr.bf16.mxu1 %v16851_v63 }
 0xf32   :  { %10881 = vmatmul.mubr.msk.bf16.vlgmr.msra.gmra.mxu1 %vm1230_vm12, %v5889_v31 }
 0xf33   :  { %6023 = vmatprep.mubr.bf16.mxu1 %v16851_v63  ;;  %6069 = vmatpush1.bf16.msra.mxu1 %v10793_v47 }
 0xf3a   :  { %10882 = vmatmul.mubr.msk.bf16.gmra.mxu1 %vm1230_vm12, %v5891_v4 }
 0xf3b   :  { %6033 = vmatprep.mubr.bf16.mxu1 %v16851_v63 }
 0xf42   :  { %10883 = vmatmul.mubr.msk.bf16.gmra.mxu1 %vm1230_vm12, %v5893_v51 }
 0xf43   :  { %6043 = vmatprep.mubr.bf16.mxu1 %v16851_v63 }
 0xf4a   :  { %10884 = vmatmul.mubr.msk.bf16.gmra.mxu1 %vm1230_vm12, %v14834_v41 }
 0xf4b   :  { %6086 = vmatprep.mubr.bf16.mxu1 %v16851_v63 }
 0xf4f   :  { %v5049_v30 = vpop.f32.mrf.mxu1 }
 0xf50   :  { %v11329_v17 = vpack.c.bf16 %v5049_v30, %v5049_v30 }
 0xf51   :  { %v5051_v9 = vpop.f32.mrf.mxu1 }
 0xf52   :  { %5368 = vst.msk [vmem:[#allocation6] sm:$0xf] %vm5367_vm9, %v11329_v17  ;;  %v11337_v21 = vpack.c.bf16 %v5051_v9, %v5051_v9  ;;  %5376 = vrot.lane.b32.xlu0 %v11329_v17, %s12336_s2  ;;  %10885 = vmatmul.mubr.msk.bf16.vlgmr.msra.gmra.mxu1 %vm1230_vm12, %v5889_v31 }
 0xf53   :  { %v5053_v29 = vpop.f32.mrf.mxu1  ;;  %6096 = vmatprep.mubr.bf16.mxu1 %v16851_v63 }
 0xf54   :  { %5436 = vst.msk [vmem:[#allocation6 + $0x40] sm:$0xf] %vm5367_vm9, %v11337_v21  ;;  %v11330_v24 = vpack.c.bf16 %v5053_v29, %v5053_v29 }
 0xf55   :  { %v5055_v59 = vpop.f32.mrf.mxu1 }
 0xf56   :  { %5369 = vst.msk [vmem:[#allocation6 + $0x4] sm:$0xf] %vm5367_vm9, %v11330_v24  ;;  %v11338_v48 = vpack.c.bf16 %v5055_v59, %v5055_v59  ;;  %5378 = vrot.lane.b32.xlu1 %v11330_v24, %s12336_s2  ;;  %5444 = vrot.lane.b32.xlu0 %v11337_v21, %s12336_s2 }
 0xf57   :  { %v5059_v40 = vpop.f32.mrf.mxu1 }
 0xf58   :  { %5437 = vst.msk [vmem:[#allocation6 + $0x44] sm:$0xf] %vm5367_vm9, %v11338_v48  ;;  %v11331_v56 = vpack.c.bf16 %v5059_v40, %v5059_v40 }
 0xf59   :  { %v5061_v5 = vpop.f32.mrf.mxu1 }
 0xf5a   :  { %5370 = vst.msk [vmem:[#allocation6 + $0x8] sm:$0xf] %vm5367_vm9, %v11331_v56  ;;  %v11339_v57 = vpack.c.bf16 %v5061_v5, %v5061_v5  ;;  %5446 = vrot.lane.b32.xlu1 %v11338_v48, %s12336_s2  ;;  %5380 = vrot.lane.b32.xlu0 %v11331_v56, %s12336_s2 }
 0xf5b   :  { %10886 = vmatmul.mubr.msk.bf16.gmra.mxu1 %vm1230_vm12, %v5891_v4  ;;  %v5063_v1 = vpop.f32.mrf.mxu1 }
 0xf5c   :  { %5438 = vst.msk [vmem:[#allocation6 + $0x48] sm:$0xf] %vm5367_vm9, %v11339_v57  ;;  %v11332_v22 = vpack.c.bf16 %v5063_v1, %v5063_v1  ;;  %6106 = vmatprep.mubr.bf16.mxu1 %v16851_v63 }
 0xf5d   :  { %v5065_v32 = vpop.f32.mrf.mxu1 }
 0xf5e   :  { %5371 = vst.msk [vmem:[#allocation6 + $0xc] sm:$0xf] %vm5367_vm9, %v11332_v22  ;;  %v11340_v15 = vpack.c.bf16 %v5065_v32, %v5065_v32  ;;  %5382 = vrot.lane.b32.xlu1 %v11332_v22, %s12336_s2  ;;  %5448 = vrot.lane.b32.xlu0 %v11339_v57, %s12336_s2 }
 0xf60   :  { %5439 = vst.msk [vmem:[#allocation6 + $0x4c] sm:$0xf] %vm5367_vm9, %v11340_v15 }
 0xf62   :  { %5450 = vrot.lane.b32.xlu1 %v11340_v15, %s12336_s2  ;;  %v5069_v60 = vpop.f32.mrf.mxu1 }
 0xf63   :  { %v11333_v45 = vpack.c.bf16 %v5069_v60, %v5069_v60  ;;  %10887 = vmatmul.mubr.msk.bf16.gmra.mxu1 %vm1230_vm12, %v5893_v51 }
 0xf64   :  { %v5071_v14 = vpop.f32.mrf.mxu1  ;;  %6116 = vmatprep.mubr.bf16.mxu1 %v16851_v63 }
 0xf65   :  { %5372 = vst.msk [vmem:[#allocation6 + $0x10] sm:$0xf] %vm5367_vm9, %v11333_v45  ;;  %v11341_v62 = vpack.c.bf16 %v5071_v14, %v5071_v14  ;;  %5384 = vrot.lane.b32.xlu0 %v11333_v45, %s12336_s2 }
 0xf66   :  { %v5073_v49 = vpop.f32.mrf.mxu1 }
 0xf67   :  { %5440 = vst.msk [vmem:[#allocation6 + $0x50] sm:$0xf] %vm5367_vm9, %v11341_v62  ;;  %v11334_v12 = vpack.c.bf16 %v5073_v49, %v5073_v49 }
 0xf68   :  { %v5075_v36 = vpop.f32.mrf.mxu1 }
 0xf69   :  { %5373 = vst.msk [vmem:[#allocation6 + $0x14] sm:$0xf] %vm5367_vm9, %v11334_v12  ;;  %v11342_v19 = vpack.c.bf16 %v5075_v36, %v5075_v36  ;;  %5452 = vrot.lane.b32.xlu0 %v11341_v62, %s12336_s2  ;;  %5386 = vrot.lane.b32.xlu1 %v11334_v12, %s12336_s2 }
 0xf6a   :  { %v5079_v58 = vpop.f32.mrf.mxu1 }
 0xf6b   :  { %5441 = vst.msk [vmem:[#allocation6 + $0x54] sm:$0xf] %vm5367_vm9, %v11342_v19  ;;  %v11335_v33 = vpack.c.bf16 %v5079_v58, %v5079_v58  ;;  %10888 = vmatmul.mubr.msk.bf16.gmra.mxu1 %vm1230_vm12, %v14834_v41 }
 0xf6c   :  { %v5081_v44 = vpop.f32.mrf.mxu1 }
 0xf6d   :  { %5374 = vst.msk [vmem:[#allocation6 + $0x18] sm:$0xf] %vm5367_vm9, %v11335_v33  ;;  %v11343_v25 = vpack.c.bf16 %v5081_v44, %v5081_v44  ;;  %5454 = vrot.lane.b32.xlu1 %v11342_v19, %s12336_s2  ;;  %5388 = vrot.lane.b32.xlu0 %v11335_v33, %s12336_s2 }
 0xf6e   :  { %v5083_v55 = vpop.f32.mrf.mxu1 }
 0xf6f   :  { %5442 = vst.msk [vmem:[#allocation6 + $0x58] sm:$0xf] %vm5367_vm9, %v11343_v25  ;;  %v11336_v46 = vpack.c.bf16 %v5083_v55, %v5083_v55 }
 0xf70   :  { %v5085_v54 = vpop.f32.mrf.mxu1 }
 0xf71   :  { %5375 = vst.msk [vmem:[#allocation6 + $0x1c] sm:$0xf] %vm5367_vm9, %v11336_v46  ;;  %v11344_v61 = vpack.c.bf16 %v5085_v54, %v5085_v54  ;;  %5456 = vrot.lane.b32.xlu0 %v11343_v25, %s12336_s2  ;;  %5390 = vrot.lane.b32.xlu1 %v11336_v46, %s12336_s2 }
 0xf72   :  { %v5122_v7 = vpop.f32.mrf.mxu1 }
 0xf73   :  { %5443 = vst.msk [vmem:[#allocation6 + $0x5c] sm:$0xf] %vm5367_vm9, %v11344_v61  ;;  %v11345_v39 = vpack.c.bf16 %v5122_v7, %v5122_v7 }
 0xf74   :  { %v5124_v26 = vpop.f32.mrf.mxu1 }
 0xf75   :  { %5504 = vst.msk [vmem:[#allocation6 + $0x80] sm:$0xf] %vm5367_vm9, %v11345_v39  ;;  %v11353_v8 = vpack.c.bf16 %v5124_v26, %v5124_v26  ;;  %5458 = vrot.lane.b32.xlu1 %v11344_v61, %s12336_s2  ;;  %5512 = vrot.lane.b32.xlu0 %v11345_v39, %s12336_s2 }
 0xf76   :  { %v5126_v42 = vpop.f32.mrf.mxu1 }
 0xf77   :  { %5572 = vst.msk [vmem:[#allocation6 + $0xc0] sm:$0xf] %vm5367_vm9, %v11353_v8  ;;  %v11346_v27 = vpack.c.bf16 %v5126_v42, %v5126_v42 }
 0xf78   :  { %v5128_v18 = vpop.f32.mrf.mxu1 }
 0xf79   :  { %5505 = vst.msk [vmem:[#allocation6 + $0x84] sm:$0xf] %vm5367_vm9, %v11346_v27  ;;  %v11354_v43 = vpack.c.bf16 %v5128_v18, %v5128_v18  ;;  %5580 = vrot.lane.b32.xlu0 %v11353_v8, %s12336_s2  ;;  %5514 = vrot.lane.b32.xlu1 %v11346_v27, %s12336_s2 }
 0xf7a   :  { %v5132_v34 = vpop.f32.mrf.mxu1 }
 0xf7b   :  { %5573 = vst.msk [vmem:[#allocation6 + $0xc4] sm:$0xf] %vm5367_vm9, %v11354_v43  ;;  %v11347_v16 = vpack.c.bf16 %v5132_v34, %v5132_v34 }
 0xf7c   :  { %v5134_v20 = vpop.f32.mrf.mxu1 }
 0xf7d   :  { %5506 = vst.msk [vmem:[#allocation6 + $0x88] sm:$0xf] %vm5367_vm9, %v11347_v16  ;;  %v11355_v0 = vpack.c.bf16 %v5134_v20, %v5134_v20  ;;  %5582 = vrot.lane.b32.xlu1 %v11354_v43, %s12336_s2  ;;  %5516 = vrot.lane.b32.xlu0 %v11347_v16, %s12336_s2 }
 0xf7e   :  { %v5136_v11 = vpop.f32.mrf.mxu1 }
 0xf7f   :  { %5574 = vst.msk [vmem:[#allocation6 + $0xc8] sm:$0xf] %vm5367_vm9, %v11355_v0  ;;  %v11348_v38 = vpack.c.bf16 %v5136_v11, %v5136_v11 }
 0xf80   :  { %v5138_v37 = vpop.f32.mrf.mxu1 }
 0xf81   :  { %5507 = vst.msk [vmem:[#allocation6 + $0x8c] sm:$0xf] %vm5367_vm9, %v11348_v38  ;;  %v11356_v13 = vpack.c.bf16 %v5138_v37, %v5138_v37  ;;  %5584 = vrot.lane.b32.xlu0 %v11355_v0, %s12336_s2  ;;  %5518 = vrot.lane.b32.xlu1 %v11348_v38, %s12336_s2 }
 0xf82   :  { %v5142_v6 = vpop.f32.mrf.mxu1 }
 0xf83   :  { %5575 = vst.msk [vmem:[#allocation6 + $0xcc] sm:$0xf] %vm5367_vm9, %v11356_v13  ;;  %v11349_v3 = vpack.c.bf16 %v5142_v6, %v5142_v6 }
 0xf84   :  { %v5144_v53 = vpop.f32.mrf.mxu1 }
 0xf85   :  { %5508 = vst.msk [vmem:[#allocation6 + $0x90] sm:$0xf] %vm5367_vm9, %v11349_v3  ;;  %v11357_v2 = vpack.c.bf16 %v5144_v53, %v5144_v53  ;;  %5586 = vrot.lane.b32.xlu1 %v11356_v13, %s12336_s2  ;;  %5520 = vrot.lane.b32.xlu0 %v11349_v3, %s12336_s2 }
 0xf86   :  { %v5146_v10 = vpop.f32.mrf.mxu1 }
 0xf87   :  { %5576 = vst.msk [vmem:[#allocation6 + $0xd0] sm:$0xf] %vm5367_vm9, %v11357_v2  ;;  %v11350_v35 = vpack.c.bf16 %v5146_v10, %v5146_v10 }
 0xf88   :  { %v5148_v50 = vpop.f32.mrf.mxu1 }
 0xf89   :  { %5509 = vst.msk [vmem:[#allocation6 + $0x94] sm:$0xf] %vm5367_vm9, %v11350_v35  ;;  %v11358_v23 = vpack.c.bf16 %v5148_v50, %v5148_v50  ;;  %5588 = vrot.lane.b32.xlu0 %v11357_v2, %s12336_s2  ;;  %5522 = vrot.lane.b32.xlu1 %v11350_v35, %s12336_s2 }
 0xf8a   :  { %v5152_v28 = vpop.f32.mrf.mxu1 }
 0xf8b   :  { %5577 = vst.msk [vmem:[#allocation6 + $0xd4] sm:$0xf] %vm5367_vm9, %v11358_v23  ;;  %v11351_v52 = vpack.c.bf16 %v5152_v28, %v5152_v28 }
 0xf8c   :  { %v5154_v47 = vpop.f32.mrf.mxu1 }
 0xf8d   :  { %5510 = vst.msk [vmem:[#allocation6 + $0x98] sm:$0xf] %vm5367_vm9, %v11351_v52  ;;  %v11359_v31 = vpack.c.bf16 %v5154_v47, %v5154_v47  ;;  %5590 = vrot.lane.b32.xlu1 %v11358_v23, %s12336_s2  ;;  %5524 = vrot.lane.b32.xlu0 %v11351_v52, %s12336_s2 }
 0xf8e   :  { %v5156_v4 = vpop.f32.mrf.mxu1 }
 0xf8f   :  { %5578 = vst.msk [vmem:[#allocation6 + $0xd8] sm:$0xf] %vm5367_vm9, %v11359_v31  ;;  %v11352_v51 = vpack.c.bf16 %v5156_v4, %v5156_v4 }
 0xf90   :  { %v5158_v41 = vpop.f32.mrf.mxu1 }
 0xf91   :  { %5511 = vst.msk [vmem:[#allocation6 + $0x9c] sm:$0xf] %vm5367_vm9, %v11352_v51  ;;  %v11360_v30 = vpack.c.bf16 %v5158_v41, %v5158_v41  ;;  %5592 = vrot.lane.b32.xlu0 %v11359_v31, %s12336_s2  ;;  %5526 = vrot.lane.b32.xlu1 %v11352_v51, %s12336_s2 }
 0xf92   :  { %v5195_v17 = vpop.f32.mrf.mxu1 }
 0xf93   :  { %5579 = vst.msk [vmem:[#allocation6 + $0xdc] sm:$0xf] %vm5367_vm9, %v11360_v30  ;;  %v11361_v9 = vpack.c.bf16 %v5195_v17, %v5195_v17 }
 0xf94   :  { %v5197_v21 = vpop.f32.mrf.mxu1 }
 0xf95   :  { %5640 = vst.msk [vmem:[#allocation6 + $0x100] sm:$0xf] %vm5367_vm9, %v11361_v9  ;;  %v11369_v29 = vpack.c.bf16 %v5197_v21, %v5197_v21  ;;  %5594 = vrot.lane.b32.xlu1 %v11360_v30, %s12336_s2  ;;  %5648 = vrot.lane.b32.xlu0 %v11361_v9, %s12336_s2 }
 0xf96   :  { %v5199_v24 = vpop.f32.mrf.mxu1 }
 0xf97   :  { %5708 = vst.msk [vmem:[#allocation6 + $0x140] sm:$0xf] %vm5367_vm9, %v11369_v29  ;;  %v11362_v59 = vpack.c.bf16 %v5199_v24, %v5199_v24 }
 0xf98   :  { %v5201_v48 = vpop.f32.mrf.mxu1 }
 0xf99   :  { %5641 = vst.msk [vmem:[#allocation6 + $0x104] sm:$0xf] %vm5367_vm9, %v11362_v59  ;;  %v11370_v40 = vpack.c.bf16 %v5201_v48, %v5201_v48  ;;  %5716 = vrot.lane.b32.xlu0 %v11369_v29, %s12336_s2  ;;  %5650 = vrot.lane.b32.xlu1 %v11362_v59, %s12336_s2 }
 0xf9a   :  { %v5205_v56 = vpop.f32.mrf.mxu1 }
 0xf9b   :  { %5709 = vst.msk [vmem:[#allocation6 + $0x144] sm:$0xf] %vm5367_vm9, %v11370_v40  ;;  %v11363_v5 = vpack.c.bf16 %v5205_v56, %v5205_v56 }
 0xf9c   :  { %v5207_v57 = vpop.f32.mrf.mxu1 }
 0xf9d   :  { %5642 = vst.msk [vmem:[#allocation6 + $0x108] sm:$0xf] %vm5367_vm9, %v11363_v5  ;;  %v11371_v1 = vpack.c.bf16 %v5207_v57, %v5207_v57  ;;  %5718 = vrot.lane.b32.xlu1 %v11370_v40, %s12336_s2  ;;  %5652 = vrot.lane.b32.xlu0 %v11363_v5, %s12336_s2 }
 0xf9e   :  { %v5209_v22 = vpop.f32.mrf.mxu1 }
 0xf9f   :  { %5710 = vst.msk [vmem:[#allocation6 + $0x148] sm:$0xf] %vm5367_vm9, %v11371_v1  ;;  %v11364_v32 = vpack.c.bf16 %v5209_v22, %v5209_v22 }
 0xfa0   :  { %v5211_v15 = vpop.f32.mrf.mxu1 }
 0xfa1   :  { %5643 = vst.msk [vmem:[#allocation6 + $0x10c] sm:$0xf] %vm5367_vm9, %v11364_v32  ;;  %v11372_v60 = vpack.c.bf16 %v5211_v15, %v5211_v15  ;;  %5720 = vrot.lane.b32.xlu0 %v11371_v1, %s12336_s2  ;;  %5654 = vrot.lane.b32.xlu1 %v11364_v32, %s12336_s2 }
 0xfa2   :  { %v5215_v45 = vpop.f32.mrf.mxu1 }
 0xfa3   :  { %5711 = vst.msk [vmem:[#allocation6 + $0x14c] sm:$0xf] %vm5367_vm9, %v11372_v60  ;;  %v11365_v14 = vpack.c.bf16 %v5215_v45, %v5215_v45 }
 0xfa4   :  { %v5217_v62 = vpop.f32.mrf.mxu1 }
 0xfa5   :  { %5644 = vst.msk [vmem:[#allocation6 + $0x110] sm:$0xf] %vm5367_vm9, %v11365_v14  ;;  %v11373_v49 = vpack.c.bf16 %v5217_v62, %v5217_v62  ;;  %5722 = vrot.lane.b32.xlu1 %v11372_v60, %s12336_s2  ;;  %5656 = vrot.lane.b32.xlu0 %v11365_v14, %s12336_s2 }
 0xfa6   :  { %v5219_v12 = vpop.f32.mrf.mxu1 }
 0xfa7   :  { %5712 = vst.msk [vmem:[#allocation6 + $0x150] sm:$0xf] %vm5367_vm9, %v11373_v49  ;;  %v11366_v36 = vpack.c.bf16 %v5219_v12, %v5219_v12 }
 0xfa8   :  { %v5221_v19 = vpop.f32.mrf.mxu1 }
 0xfa9   :  { %5645 = vst.msk [vmem:[#allocation6 + $0x114] sm:$0xf] %vm5367_vm9, %v11366_v36  ;;  %v11374_v58 = vpack.c.bf16 %v5221_v19, %v5221_v19  ;;  %5724 = vrot.lane.b32.xlu0 %v11373_v49, %s12336_s2  ;;  %5658 = vrot.lane.b32.xlu1 %v11366_v36, %s12336_s2 }
 0xfaa   :  { %v5225_v33 = vpop.f32.mrf.mxu1 }
 0xfab   :  { %5713 = vst.msk [vmem:[#allocation6 + $0x154] sm:$0xf] %vm5367_vm9, %v11374_v58  ;;  %v11367_v44 = vpack.c.bf16 %v5225_v33, %v5225_v33 }
 0xfac   :  { %v5227_v25 = vpop.f32.mrf.mxu1 }
 0xfad   :  { %5646 = vst.msk [vmem:[#allocation6 + $0x118] sm:$0xf] %vm5367_vm9, %v11367_v44  ;;  %v11375_v55 = vpack.c.bf16 %v5227_v25, %v5227_v25  ;;  %5726 = vrot.lane.b32.xlu1 %v11374_v58, %s12336_s2  ;;  %5660 = vrot.lane.b32.xlu0 %v11367_v44, %s12336_s2 }
 0xfae   :  { %v5229_v46 = vpop.f32.mrf.mxu1 }
 0xfaf   :  { %5714 = vst.msk [vmem:[#allocation6 + $0x158] sm:$0xf] %vm5367_vm9, %v11375_v55  ;;  %v11368_v54 = vpack.c.bf16 %v5229_v46, %v5229_v46 }
 0xfb0   :  { %v5231_v61 = vpop.f32.mrf.mxu1 }
 0xfb1   :  { %5647 = vst.msk [vmem:[#allocation6 + $0x11c] sm:$0xf] %vm5367_vm9, %v11368_v54  ;;  %v11376_v7 = vpack.c.bf16 %v5231_v61, %v5231_v61  ;;  %5728 = vrot.lane.b32.xlu0 %v11375_v55, %s12336_s2  ;;  %5662 = vrot.lane.b32.xlu1 %v11368_v54, %s12336_s2 }
 0xfb2   :  { %v5268_v39 = vpop.f32.mrf.mxu1 }
 0xfb3   :  { %5715 = vst.msk [vmem:[#allocation6 + $0x15c] sm:$0xf] %vm5367_vm9, %v11376_v7  ;;  %v11377_v26 = vpack.c.bf16 %v5268_v39, %v5268_v39 }
 0xfb4   :  { %v5270_v8 = vpop.f32.mrf.mxu1 }
 0xfb5   :  { %5776 = vst.msk [vmem:[#allocation6 + $0x180] sm:$0xf] %vm5367_vm9, %v11377_v26  ;;  %v11385_v42 = vpack.c.bf16 %v5270_v8, %v5270_v8  ;;  %5730 = vrot.lane.b32.xlu1 %v11376_v7, %s12336_s2  ;;  %5784 = vrot.lane.b32.xlu0 %v11377_v26, %s12336_s2 }
 0xfb6   :  { %v5272_v27 = vpop.f32.mrf.mxu1 }
 0xfb7   :  { %5844 = vst.msk [vmem:[#allocation6 + $0x1c0] sm:$0xf] %vm5367_vm9, %v11385_v42  ;;  %v11378_v18 = vpack.c.bf16 %v5272_v27, %v5272_v27 }
 0xfb8   :  { %v5274_v43 = vpop.f32.mrf.mxu1 }
 0xfb9   :  { %5777 = vst.msk [vmem:[#allocation6 + $0x184] sm:$0xf] %vm5367_vm9, %v11378_v18  ;;  %v11386_v34 = vpack.c.bf16 %v5274_v43, %v5274_v43  ;;  %5852 = vrot.lane.b32.xlu0 %v11385_v42, %s12336_s2  ;;  %5786 = vrot.lane.b32.xlu1 %v11378_v18, %s12336_s2 }
 0xfba   :  { %v5278_v16 = vpop.f32.mrf.mxu1 }
 0xfbb   :  { %5845 = vst.msk [vmem:[#allocation6 + $0x1c4] sm:$0xf] %vm5367_vm9, %v11386_v34  ;;  %v11379_v20 = vpack.c.bf16 %v5278_v16, %v5278_v16 }
 0xfbc   :  { %v5280_v0 = vpop.f32.mrf.mxu1 }
 0xfbd   :  { %5778 = vst.msk [vmem:[#allocation6 + $0x188] sm:$0xf] %vm5367_vm9, %v11379_v20  ;;  %v11387_v11 = vpack.c.bf16 %v5280_v0, %v5280_v0  ;;  %5854 = vrot.lane.b32.xlu1 %v11386_v34, %s12336_s2  ;;  %5788 = vrot.lane.b32.xlu0 %v11379_v20, %s12336_s2 }
 0xfbe   :  { %v5282_v38 = vpop.f32.mrf.mxu1 }
 0xfbf   :  { %5846 = vst.msk [vmem:[#allocation6 + $0x1c8] sm:$0xf] %vm5367_vm9, %v11387_v11  ;;  %v11380_v37 = vpack.c.bf16 %v5282_v38, %v5282_v38 }
 0xfc0   :  { %v5284_v13 = vpop.f32.mrf.mxu1 }
 0xfc1   :  { %5779 = vst.msk [vmem:[#allocation6 + $0x18c] sm:$0xf] %vm5367_vm9, %v11380_v37  ;;  %v11388_v6 = vpack.c.bf16 %v5284_v13, %v5284_v13  ;;  %5856 = vrot.lane.b32.xlu0 %v11387_v11, %s12336_s2  ;;  %5790 = vrot.lane.b32.xlu1 %v11380_v37, %s12336_s2 }
 0xfc2   :  { %v5288_v3 = vpop.f32.mrf.mxu1  ;;  %v14970_v53 = vpop.f32.mrf.mxu0 }
 0xfc3   :  { %5847 = vst.msk [vmem:[#allocation6 + $0x1cc] sm:$0xf] %vm5367_vm9, %v11388_v6  ;;  %v11381_v2 = vpack.c.bf16 %v5288_v3, %v5288_v3 }
 0xfc4   :  { %v14973_v10 = vpop.f32.mrf.mxu0  ;;  %v5377_v35 = vpop.permute.xlu0 %5376 }
 0xfc5   :  { %5780 = vst.msk [vmem:[#allocation6 + $0x190] sm:$0xf] %vm5367_vm9, %v11381_v2  ;;  %5400 = vst.msk [vmem:[#allocation6 + $0x20] sm:$0xf] %vm5367_vm9, %v5377_v35  ;;  %v5290_v50 = vpop.f32.mrf.mxu1  ;;  %5858 = vrot.lane.b32.xlu1 %v11388_v6, %s12336_s2  ;;  %5792 = vrot.lane.b32.xlu0 %v11381_v2, %s12336_s2 }
 0xfc6   :  { %v11389_v23 = vpack.c.bf16 %v5290_v50, %v5290_v50  ;;  %v14979_v28 = vpop.f32.mrf.mxu0 }
 0xfc7   :  { %v5292_v52 = vpop.f32.mrf.mxu1 }
 0xfc8   :  { %5848 = vst.msk [vmem:[#allocation6 + $0x1d0] sm:$0xf] %vm5367_vm9, %v11389_v23  ;;  %v11382_v47 = vpack.c.bf16 %v5292_v52, %v5292_v52  ;;  %v14982_v31 = vpop.f32.mrf.mxu0  ;;  %v5379_v4 = vpop.permute.xlu1 %5378 }
 0xfc9   :  { %5401 = vst.msk [vmem:[#allocation6 + $0x24] sm:$0xf] %vm5367_vm9, %v5379_v4  ;;  %v5445_v51 = vpop.permute.xlu0 %5444  ;;  %v5294_v41 = vpop.f32.mrf.mxu1  ;;  %5860 = vrot.lane.b32.xlu0 %v11389_v23, %s12336_s2 }
 0xfca   :  { %5781 = vst.msk [vmem:[#allocation6 + $0x194] sm:$0xf] %vm5367_vm9, %v11382_v47  ;;  %5468 = vst.msk [vmem:[#allocation6 + $0x60] sm:$0xf] %vm5367_vm9, %v5445_v51  ;;  %v11390_v30 = vpack.c.bf16 %v5294_v41, %v5294_v41  ;;  %5794 = vrot.lane.b32.xlu1 %v11382_v47, %s12336_s2  ;;  %v14989_v17 = vpop.f32.mrf.mxu0 }
 0xfcb   :  { %v5298_v9 = vpop.f32.mrf.mxu1 }
 0xfcc   :  { %5849 = vst.msk [vmem:[#allocation6 + $0x1d4] sm:$0xf] %vm5367_vm9, %v11390_v30  ;;  %v11383_v21 = vpack.c.bf16 %v5298_v9, %v5298_v9  ;;  %v14992_v29 = vpop.f32.mrf.mxu0  ;;  %v5447_v24 = vpop.permute.xlu1 %5446 }
 0xfcd   :  { %5469 = vst.msk [vmem:[#allocation6 + $0x64] sm:$0xf] %vm5367_vm9, %v5447_v24  ;;  %v5381_v59 = vpop.permute.xlu0 %5380  ;;  %v5300_v48 = vpop.f32.mrf.mxu1 }
 0xfce   :  { %5782 = vst.msk [vmem:[#allocation6 + $0x198] sm:$0xf] %vm5367_vm9, %v11383_v21  ;;  %5402 = vst.msk [vmem:[#allocation6 + $0x28] sm:$0xf] %vm5367_vm9, %v5381_v59  ;;  %v11391_v40 = vpack.c.bf16 %v5300_v48, %v5300_v48  ;;  %5862 = vrot.lane.b32.xlu1 %v11390_v30, %s12336_s2  ;;  %5796 = vrot.lane.b32.xlu0 %v11383_v21, %s12336_s2  ;;  %v14999_v5 = vpop.f32.mrf.mxu0 }
 0xfcf   :  { %v5302_v56 = vpop.f32.mrf.mxu1 }
 0xfd0   :  { %5850 = vst.msk [vmem:[#allocation6 + $0x1d8] sm:$0xf] %vm5367_vm9, %v11391_v40  ;;  %v11384_v57 = vpack.c.bf16 %v5302_v56, %v5302_v56  ;;  %v5383_v1 = vpop.permute.xlu1 %5382  ;;  %v15007_v60 = vpop.f32.mrf.mxu0 }
 0xfd1   :  { %5403 = vst.msk [vmem:[#allocation6 + $0x2c] sm:$0xf] %vm5367_vm9, %v5383_v1  ;;  %v5449_v22 = vpop.permute.xlu0 %5448  ;;  %v5304_v32 = vpop.f32.mrf.mxu1 }
 0xfd2   :  { %5783 = vst.msk [vmem:[#allocation6 + $0x19c] sm:$0xf] %vm5367_vm9, %v11384_v57  ;;  %5470 = vst.msk [vmem:[#allocation6 + $0x68] sm:$0xf] %vm5367_vm9, %v5449_v22  ;;  %v11392_v15 = vpack.c.bf16 %v5304_v32, %v5304_v32  ;;  %5864 = vrot.lane.b32.xlu0 %v11391_v40, %s12336_s2  ;;  %5798 = vrot.lane.b32.xlu1 %v11384_v57, %s12336_s2 }
 0xfd3   :  { %v5942_v45 = vpop.f32.mrf.mxu1 }
 0xfd4   :  { %5851 = vst.msk [vmem:[#allocation6 + $0x1dc] sm:$0xf] %vm5367_vm9, %v11392_v15  ;;  %v11393_v14 = vpack.c.bf16 %v5942_v45, %v5942_v45  ;;  %v5451_v62 = vpop.permute.xlu1 %5450 }
 0xfd5   :  { %5471 = vst.msk [vmem:[#allocation6 + $0x6c] sm:$0xf] %vm5367_vm9, %v5451_v62  ;;  %v5944_v49 = vpop.f32.mrf.mxu1  ;;  %v6181_v12 = vpop.f32.mrf.mxu0 }
 0xfd6   :  { %6293 = vst.msk [vmem:[#allocation6 + $0x20] sm:$0xf] %vm6276_vm14, %v11393_v14  ;;  %v11401_v36 = vpack.c.bf16 %v5944_v49, %v5944_v49  ;;  %6252 = vrot.lane.b32.xlu0 %v11393_v14, %s12336_s2  ;;  %5866 = vrot.lane.b32.xlu1 %v11392_v15, %s12336_s2  ;;  %v15019_v54 = vpack.c.bf16 %v6181_v12, %v6181_v12 }
 0xfd7   :  { %v5946_v19 = vpop.f32.mrf.mxu1  ;;  %v5385_v33 = vpop.permute.xlu0 %5384 }
 0xfd8   :  { %6361 = vst.msk [vmem:[#allocation6 + $0x60] sm:$0xf] %vm6276_vm14, %v11401_v36  ;;  %v11394_v58 = vpack.c.bf16 %v5946_v19, %v5946_v19  ;;  %v6183_v44 = vpop.f32.mrf.mxu0 }
 0xfd9   :  { %5404 = vst.msk [vmem:[#allocation6 + $0x30] sm:$0xf] %vm5367_vm9, %v5385_v33  ;;  %v5948_v25 = vpop.f32.mrf.mxu1  ;;  %v15028_v18 = vpack.c.bf16 %v6183_v44, %v6183_v44 }
 0xfda   :  { %6294 = vst.msk [vmem:[#allocation6 + $0x24] sm:$0xf] %vm6276_vm14, %v11394_v58  ;;  %v11402_v55 = vpack.c.bf16 %v5948_v25, %v5948_v25  ;;  %6321 = vrot.lane.b32.xlu0 %v11401_v36, %s12336_s2  ;;  %6254 = vrot.lane.b32.xlu1 %v11394_v58, %s12336_s2  ;;  %v6185_v26 = vpop.f32.mrf.mxu0 }
 0xfdb   :  { %v5952_v46 = vpop.f32.mrf.mxu1  ;;  %v5453_v7 = vpop.permute.xlu0 %5452  ;;  %v15030_v43 = vpack.c.bf16 %v6185_v26, %v6185_v26 }
 0xfdc   :  { %6362 = vst.msk [vmem:[#allocation6 + $0x64] sm:$0xf] %vm6276_vm14, %v11402_v55  ;;  %v11395_v61 = vpack.c.bf16 %v5952_v46, %v5952_v46  ;;  %v5387_v39 = vpop.permute.xlu1 %5386  ;;  %v6187_v0 = vpop.f32.mrf.mxu0 }
 0xfdd   :  { %5472 = vst.msk [vmem:[#allocation6 + $0x70] sm:$0xf] %vm5367_vm9, %v5453_v7  ;;  %5405 = vst.msk [vmem:[#allocation6 + $0x34] sm:$0xf] %vm5367_vm9, %v5387_v39  ;;  %v5954_v8 = vpop.f32.mrf.mxu1  ;;  %v15040_v13 = vpack.c.bf16 %v6187_v0, %v6187_v0 }
 0xfde   :  { %6295 = vst.msk [vmem:[#allocation6 + $0x28] sm:$0xf] %vm6276_vm14, %v11395_v61  ;;  %v11403_v42 = vpack.c.bf16 %v5954_v8, %v5954_v8  ;;  %6669 = vrot.lane.b32.xlu0 %v15019_v54, %s12336_s2  ;;  %6323 = vrot.lane.b32.xlu1 %v11402_v55, %s12336_s2  ;;  %v6191_v35 = vpop.f32.mrf.mxu0 }
 0xfdf   :  { %v5956_v27 = vpop.f32.mrf.mxu1  ;;  %v5389_v20 = vpop.permute.xlu0 %5388  ;;  %v15066_v24 = vpack.c.bf16 %v6191_v35, %v6191_v35 }
 0xfe0   :  { %6363 = vst.msk [vmem:[#allocation6 + $0x68] sm:$0xf] %vm6276_vm14, %v11403_v42  ;;  %v11396_v34 = vpack.c.bf16 %v5956_v27, %v5956_v27  ;;  %v5455_v16 = vpop.permute.xlu1 %5454  ;;  %v6193_v41 = vpop.f32.mrf.mxu0 }
 0xfe1   :  { %5473 = vst.msk [vmem:[#allocation6 + $0x74] sm:$0xf] %vm5367_vm9, %v5455_v16  ;;  %5406 = vst.msk [vmem:[#allocation6 + $0x38] sm:$0xf] %vm5367_vm9, %v5389_v20  ;;  %v5958_v11 = vpop.f32.mrf.mxu1  ;;  %v15081_v32 = vpack.c.bf16 %v6193_v41, %v6193_v41 }
 0xfe2   :  { %6296 = vst.msk [vmem:[#allocation6 + $0x2c] sm:$0xf] %vm6276_vm14, %v11396_v34  ;;  %v11404_v38 = vpack.c.bf16 %v5958_v11, %v5958_v11  ;;  %6737 = vrot.lane.b32.xlu0 %v15028_v18, %s12336_s2  ;;  %6671 = vrot.lane.b32.xlu1 %v15030_v43, %s12336_s2  ;;  %v6195_v56 = vpop.f32.mrf.mxu0 }
 0xfe3   :  { %v5962_v37 = vpop.f32.mrf.mxu1  ;;  %v5457_v3 = vpop.permute.xlu0 %5456  ;;  %v15083_v15 = vpack.c.bf16 %v6195_v56, %v6195_v56 }
 0xfe4   :  { %6364 = vst.msk [vmem:[#allocation6 + $0x6c] sm:$0xf] %vm6276_vm14, %v11404_v38  ;;  %v15043_v6 = vpack.c.bf16 %v5962_v37, %v5962_v37  ;;  %v5391_v2 = vpop.permute.xlu1 %5390  ;;  %v6197_v49 = vpop.f32.mrf.mxu0 }
 0xfe5   :  { %5474 = vst.msk [vmem:[#allocation6 + $0x78] sm:$0xf] %vm5367_vm9, %v5457_v3  ;;  %5407 = vst.msk [vmem:[#allocation6 + $0x3c] sm:$0xf] %vm5367_vm9, %v5391_v2  ;;  %v5964_v50 = vpop.f32.mrf.mxu1  ;;  %v15099_v58 = vpack.c.bf16 %v6197_v49, %v6197_v49 }
 0xfe6   :  { %6297 = vst.msk [vmem:[#allocation6 + $0x30] sm:$0xf] %vm6276_vm14, %v15043_v6  ;;  %v15049_v23 = vpack.c.bf16 %v5964_v50, %v5964_v50  ;;  %6256 = vrot.lane.b32.xlu0 %v11395_v61, %s12336_s2  ;;  %6739 = vrot.lane.b32.xlu1 %v15040_v13, %s12336_s2 }
 0xfe7   :  { %v5966_v52 = vpop.f32.mrf.mxu1  ;;  %v5513_v51 = vpop.permute.xlu0 %5512 }
 0xfe8   :  { %6365 = vst.msk [vmem:[#allocation6 + $0x70] sm:$0xf] %vm6276_vm14, %v15049_v23  ;;  %v15056_v47 = vpack.c.bf16 %v5966_v52, %v5966_v52  ;;  %v5459_v4 = vpop.permute.xlu1 %5458 }
 0xfe9   :  { %5475 = vst.msk [vmem:[#allocation6 + $0x7c] sm:$0xf] %vm5367_vm9, %v5459_v4  ;;  %5536 = vst.msk [vmem:[#allocation6 + $0xa0] sm:$0xf] %vm5367_vm9, %v5513_v51  ;;  %v5968_v30 = vpop.f32.mrf.mxu1 }
 0xfea   :  { %6298 = vst.msk [vmem:[#allocation6 + $0x34] sm:$0xf] %vm6276_vm14, %v15056_v47  ;;  %v15062_v9 = vpack.c.bf16 %v5968_v30, %v5968_v30  ;;  %6325 = vrot.lane.b32.xlu0 %v11403_v42, %s12336_s2  ;;  %6258 = vrot.lane.b32.xlu1 %v11396_v34, %s12336_s2 }
 0xfeb   :  { %v5972_v21 = vpop.f32.mrf.mxu1  ;;  %v5581_v48 = vpop.permute.xlu0 %5580  ;;  %v12228_v4 = vld [vmem:[#allocation6 + $0x68] sm:$0xff]  }
 0xfec   :  { %6366 = vst.msk [vmem:[#allocation6 + $0x74] sm:$0xf] %vm6276_vm14, %v15062_v9  ;;  %v15070_v59 = vpack.c.bf16 %v5972_v21, %v5972_v21  ;;  %v5515_v40 = vpop.permute.xlu1 %5514 }
 0xfed   :  { %5604 = vst.msk [vmem:[#allocation6 + $0xe0] sm:$0xf] %vm5367_vm9, %v5581_v48  ;;  %5537 = vst.msk [vmem:[#allocation6 + $0xa4] sm:$0xf] %vm5367_vm9, %v5515_v40  ;;  %v5974_v57 = vpop.f32.mrf.mxu1  ;;  %v12230_v40 = vld [vmem:[#allocation6 + $0x60] sm:$0xff]  }
 0xfee   :  { %6299 = vst.msk [vmem:[#allocation6 + $0x38] sm:$0xf] %vm6276_vm14, %v15070_v59  ;;  %v15076_v1 = vpack.c.bf16 %v5974_v57, %v5974_v57  ;;  %6673 = vrot.lane.b32.xlu0 %v15066_v24, %s12336_s2  ;;  %6327 = vrot.lane.b32.xlu1 %v11404_v38, %s12336_s2 }
 0xfef   :  { %v5976_v22 = vpop.f32.mrf.mxu1  ;;  %v5517_v62 = vpop.permute.xlu0 %5516 }
 0xff0   :  { %6367 = vst.msk [vmem:[#allocation6 + $0x78] sm:$0xf] %vm6276_vm14, %v15076_v1  ;;  %v15087_v45 = vpack.c.bf16 %v5976_v22, %v5976_v22  ;;  %v5583_v14 = vpop.permute.xlu1 %5582 }
 0xff1   :  { %5605 = vst.msk [vmem:[#allocation6 + $0xe4] sm:$0xf] %vm5367_vm9, %v5583_v14  ;;  %5538 = vst.msk [vmem:[#allocation6 + $0xa8] sm:$0xf] %vm5367_vm9, %v5517_v62  ;;  %v5978_v12 = vpop.f32.mrf.mxu1  ;;  %v12227_v52 = vld [vmem:[#allocation6 + $0x30] sm:$0xff]   ;;  %v12231_v14 = vld [vmem:[#allocation6 + $0x20] sm:$0xff]  }
 0xff2   :  { %6300 = vst.msk [vmem:[#allocation6 + $0x3c] sm:$0xf] %vm6276_vm14, %v15087_v45  ;;  %v15093_v36 = vpack.c.bf16 %v5978_v12, %v5978_v12  ;;  %6741 = vrot.lane.b32.xlu0 %v15081_v32, %s12336_s2  ;;  %6675 = vrot.lane.b32.xlu1 %v15083_v15, %s12336_s2 }
 0xff3   :  { %v6015_v19 = vpop.f32.mrf.mxu1  ;;  %v5585_v44 = vpop.permute.xlu0 %5584 }
 0xff4   :  { %6368 = vst.msk [vmem:[#allocation6 + $0x7c] sm:$0xf] %vm6276_vm14, %v15093_v36  ;;  %v15103_v33 = vpack.c.bf16 %v6015_v19, %v6015_v19  ;;  %v5519_v25 = vpop.permute.xlu1 %5518 }
 0xff5   :  { %5606 = vst.msk [vmem:[#allocation6 + $0xe8] sm:$0xf] %vm5367_vm9, %v5585_v44  ;;  %5539 = vst.msk [vmem:[#allocation6 + $0xac] sm:$0xf] %vm5367_vm9, %v5519_v25  ;;  %v6017_v55 = vpop.f32.mrf.mxu1 }
 0xff6   :  { %6429 = vst.msk [vmem:[#allocation6 + $0xa0] sm:$0xf] %vm6276_vm14, %v15103_v33  ;;  %v15109_v46 = vpack.c.bf16 %v6017_v55, %v6017_v55  ;;  %6260 = vrot.lane.b32.xlu0 %v15043_v6, %s12336_s2  ;;  %6743 = vrot.lane.b32.xlu1 %v15099_v58, %s12336_s2  ;;  %v12226_v6 = vld [vmem:[#allocation6 + $0x70] sm:$0xff]  }
 0xff7   :  { %v6019_v61 = vpop.f32.mrf.mxu1  ;;  %v5521_v26 = vpop.permute.xlu0 %5520  ;;  %v15196_v55 = vld [vmem:[%s16475_s8] sm:$0xff] }
 0xff8   :  { %6497 = vst.msk [vmem:[#allocation6 + $0xe0] sm:$0xf] %vm6276_vm14, %v15109_v46  ;;  %v15117_v7 = vpack.c.bf16 %v6019_v61, %v6019_v61  ;;  %v5587_v39 = vpop.permute.xlu1 %5586 }
 0xff9   :  { %5607 = vst.msk [vmem:[#allocation6 + $0xec] sm:$0xf] %vm5367_vm9, %v5587_v39  ;;  %5540 = vst.msk [vmem:[#allocation6 + $0xb0] sm:$0xf] %vm5367_vm9, %v5521_v26  ;;  %v6021_v8 = vpop.f32.mrf.mxu1  ;;  %v12225_v38 = vld [vmem:[#allocation6 + $0x38] sm:$0xff]   ;;  %v10958_v39 = vcombine.high %v15196_v55, %v15196_v55 }
 0xffa   :  { %6430 = vst.msk [vmem:[#allocation6 + $0xa4] sm:$0xf] %vm6276_vm14, %v15117_v7  ;;  %v15123_v42 = vpack.c.bf16 %v6021_v8, %v6021_v8  ;;  %6329 = vrot.lane.b32.xlu0 %v15049_v23, %s12336_s2  ;;  %6262 = vrot.lane.b32.xlu1 %v15056_v47, %s12336_s2 }
 0xffb   :  { %v6025_v27 = vpop.f32.mrf.mxu1  ;;  %v12224_v34 = vld [vmem:[#allocation6 + $0x78] sm:$0xff]   ;;  %v5589_v20 = vpop.permute.xlu0 %5588  ;;  %7359 = vmatprep.mubr.bf16.mxu1 %v10958_v39 }
 0xffc   :  { %6498 = vst.msk [vmem:[#allocation6 + $0xe4] sm:$0xf] %vm6276_vm14, %v15123_v42  ;;  %v15131_v16 = vpack.c.bf16 %v6025_v27, %v6025_v27  ;;  %v5523_v0 = vpop.permute.xlu1 %5522  ;;  %11691 = vmatprep.subr.bf16.mxu1 %v12224_v34 }
 0xffd   :  { %5608 = vst.msk [vmem:[#allocation6 + $0xf0] sm:$0xf] %vm5367_vm9, %v5589_v20  ;;  %5541 = vst.msk [vmem:[#allocation6 + $0xb4] sm:$0xf] %vm5367_vm9, %v5523_v0  ;;  %v6027_v11 = vpop.f32.mrf.mxu1  ;;  %11692 = vmatpush3.bf16.msra.mxu1 %v12225_v38 }
 0xffe   :  { %6431 = vst.msk [vmem:[#allocation6 + $0xa8] sm:$0xf] %vm6276_vm14, %v15131_v16  ;;  %v15137_v37 = vpack.c.bf16 %v6027_v11, %v6027_v11  ;;  %6264 = vrot.lane.b32.xlu0 %v15070_v59, %s12336_s2  ;;  %6331 = vrot.lane.b32.xlu1 %v15062_v9, %s12336_s2  ;;  %v12229_v59 = vld [vmem:[#allocation6 + $0x28] sm:$0xff]  }
 0xfff   :  { %v6029_v3 = vpop.f32.mrf.mxu1  ;;  %v5525_v50 = vpop.permute.xlu0 %5524  ;;  %11693 = vmatprep.subr.bf16.mxu1 %v12226_v6 }
0x1000   :  { %6499 = vst.msk [vmem:[#allocation6 + $0xe8] sm:$0xf] %vm6276_vm14, %v15137_v37  ;;  %v15145_v2 = vpack.c.bf16 %v6029_v3, %v6029_v3  ;;  %v5591_v35 = vpop.permute.xlu1 %5590 }
0x1001   :  { %5609 = vst.msk [vmem:[#allocation6 + $0xf4] sm:$0xf] %vm5367_vm9, %v5591_v35  ;;  %5542 = vst.msk [vmem:[#allocation6 + $0xb8] sm:$0xf] %vm5367_vm9, %v5525_v50  ;;  %v6031_v23 = vpop.f32.mrf.mxu1  ;;  %11694 = vmatpush3.bf16.msra.mxu1 %v12227_v52 }
0x1002   :  { %6432 = vst.msk [vmem:[#allocation6 + $0xac] sm:$0xf] %vm6276_vm14, %v15145_v2  ;;  %v15151_v47 = vpack.c.bf16 %v6031_v23, %v6031_v23  ;;  %6333 = vrot.lane.b32.xlu0 %v15076_v1, %s12336_s2  ;;  %6266 = vrot.lane.b32.xlu1 %v15087_v45, %s12336_s2 }
0x1003   :  { %v6035_v51 = vpop.f32.mrf.mxu1  ;;  %v5593_v30 = vpop.permute.xlu0 %5592  ;;  %11695 = vmatprep.subr.bf16.mxu1 %v12228_v4 }
0x1004   :  { %6500 = vst.msk [vmem:[#allocation6 + $0xec] sm:$0xf] %vm6276_vm14, %v15151_v47  ;;  %v15159_v41 = vpack.c.bf16 %v6035_v51, %v6035_v51  ;;  %v5527_v9 = vpop.permute.xlu1 %5526 }
0x1005   :  { %5610 = vst.msk [vmem:[#allocation6 + $0xf8] sm:$0xf] %vm5367_vm9, %v5593_v30  ;;  %5543 = vst.msk [vmem:[#allocation6 + $0xbc] sm:$0xf] %vm5367_vm9, %v5527_v9  ;;  %v6037_v21 = vpop.f32.mrf.mxu1  ;;  %11696 = vmatpush3.bf16.msra.mxu1 %v12229_v59 }
0x1006   :  { %6433 = vst.msk [vmem:[#allocation6 + $0xb0] sm:$0xf] %vm6276_vm14, %v15159_v41  ;;  %v15165_v48 = vpack.c.bf16 %v6037_v21, %v6037_v21  ;;  %6389 = vrot.lane.b32.xlu0 %v15103_v33, %s12336_s2  ;;  %6335 = vrot.lane.b32.xlu1 %v15093_v36, %s12336_s2 }
0x1007   :  { %v6039_v56 = vpop.f32.mrf.mxu1  ;;  %v5649_v22 = vpop.permute.xlu0 %5648  ;;  %11697 = vmatprep.subr.bf16.mxu1 %v12230_v40 }
0x1008   :  { %6501 = vst.msk [vmem:[#allocation6 + $0xf0] sm:$0xf] %vm6276_vm14, %v15165_v48  ;;  %v11414_v57 = vpack.c.bf16 %v6039_v56, %v6039_v56  ;;  %v5595_v1 = vpop.permute.xlu1 %5594 }
0x1009   :  { %5611 = vst.msk [vmem:[#allocation6 + $0xfc] sm:$0xf] %vm5367_vm9, %v5595_v1  ;;  %5672 = vst.msk [vmem:[#allocation6 + $0x120] sm:$0xf] %vm5367_vm9, %v5649_v22  ;;  %v6041_v45 = vpop.f32.mrf.mxu1  ;;  %11698 = vmatpush3.bf16.msra.mxu1 %v12231_v14 }
0x100a   :  { %6434 = vst.msk [vmem:[#allocation6 + $0xb4] sm:$0xf] %vm6276_vm14, %v11414_v57  ;;  %v15176_v62 = vpack.c.bf16 %v6041_v45, %v6041_v45  ;;  %6457 = vrot.lane.b32.xlu0 %v15109_v46, %s12336_s2  ;;  %6391 = vrot.lane.b32.xlu1 %v15117_v7, %s12336_s2  ;;  %v15270_v45 = vpack.c.bf16 %v14992_v29, %v14992_v29  ;;  %v12238_v29 = vld [vmem:[#allocation6 + $0xe0] sm:$0xff]  }
0x100b   :  { %v6045_v49 = vpop.f32.mrf.mxu1  ;;  %v5717_v36 = vpop.permute.xlu0 %5716  ;;  %v12236_v1 = vld [vmem:[#allocation6 + $0xe8] sm:$0xff]  }
0x100c   :  { %6502 = vst.msk [vmem:[#allocation6 + $0xf4] sm:$0xf] %vm6276_vm14, %v15176_v62  ;;  %v11415_v12 = vpack.c.bf16 %v6045_v49, %v6045_v49  ;;  %v5651_v19 = vpop.permute.xlu1 %5650 }
0x100d   :  { %5740 = vst.msk [vmem:[#allocation6 + $0x160] sm:$0xf] %vm5367_vm9, %v5717_v36  ;;  %5673 = vst.msk [vmem:[#allocation6 + $0x124] sm:$0xf] %vm5367_vm9, %v5651_v19  ;;  %v6047_v33 = vpop.f32.mrf.mxu1  ;;  %v12237_v36 = vld [vmem:[#allocation6 + $0xa8] sm:$0xff]  }
0x100e   :  { %6435 = vst.msk [vmem:[#allocation6 + $0xb8] sm:$0xf] %vm6276_vm14, %v11415_v12  ;;  %v15187_v44 = vpack.c.bf16 %v6047_v33, %v6047_v33  ;;  %6393 = vrot.lane.b32.xlu0 %v15131_v16, %s12336_s2  ;;  %6459 = vrot.lane.b32.xlu1 %v15123_v42, %s12336_s2 }
0x100f   :  { %v6049_v25 = vpop.f32.mrf.mxu1  ;;  %v5653_v7 = vpop.permute.xlu0 %5652 }
0x1010   :  { %6503 = vst.msk [vmem:[#allocation6 + $0xf8] sm:$0xf] %vm6276_vm14, %v15187_v44  ;;  %v15200_v46 = vpack.c.bf16 %v6049_v25, %v6049_v25  ;;  %v5719_v61 = vpop.permute.xlu1 %5718  ;;  %v11443_v25 = vpack.c.bf16 %v14989_v17, %v14989_v17 }
0x1011   :  { %5741 = vst.msk [vmem:[#allocation6 + $0x164] sm:$0xf] %vm5367_vm9, %v5719_v61  ;;  %5674 = vst.msk [vmem:[#allocation6 + $0x128] sm:$0xf] %vm5367_vm9, %v5653_v7  ;;  %v6051_v26 = vpop.f32.mrf.mxu1  ;;  %v12235_v56 = vld [vmem:[#allocation6 + $0xb0] sm:$0xff]  }
0x1012   :  { %6436 = vst.msk [vmem:[#allocation6 + $0xbc] sm:$0xf] %vm6276_vm14, %v15200_v46  ;;  %v15208_v8 = vpack.c.bf16 %v6051_v26, %v6051_v26  ;;  %6461 = vrot.lane.b32.xlu0 %v15137_v37, %s12336_s2  ;;  %6395 = vrot.lane.b32.xlu1 %v15145_v2, %s12336_s2  ;;  %v12239_v26 = vld [vmem:[#allocation6 + $0xa0] sm:$0xff]  }
0x1013   :  { %v6088_v42 = vpop.f32.mrf.mxu1  ;;  %v5721_v34 = vpop.permute.xlu0 %5720  ;;  %v12234_v30 = vld [vmem:[#allocation6 + $0xf0] sm:$0xff]  }
0x1014   :  { %6504 = vst.msk [vmem:[#allocation6 + $0xfc] sm:$0xf] %vm6276_vm14, %v15208_v8  ;;  %v15216_v27 = vpack.c.bf16 %v6088_v42, %v6088_v42  ;;  %v5655_v16 = vpop.permute.xlu1 %5654  ;;  %v15315_v42 = vpack.c.bf16 %v14979_v28, %v14979_v28 }
0x1015   :  { %5742 = vst.msk [vmem:[#allocation6 + $0x168] sm:$0xf] %vm5367_vm9, %v5721_v34  ;;  %5675 = vst.msk [vmem:[#allocation6 + $0x12c] sm:$0xf] %vm5367_vm9, %v5655_v16  ;;  %v6090_v20 = vpop.f32.mrf.mxu1  ;;  %v11444_v34 = vpack.c.bf16 %v14999_v5, %v14999_v5  ;;  %v15333_v5 = vld [vmem:[%s16475_s8 + $0x8] sm:$0xff] }
0x1016   :  { %6565 = vst.msk [vmem:[#allocation6 + $0x120] sm:$0xf] %vm6276_vm14, %v15216_v27  ;;  %v15222_v0 = vpack.c.bf16 %v6090_v20, %v6090_v20  ;;  %6397 = vrot.lane.b32.xlu0 %v15159_v41, %s12336_s2  ;;  %6463 = vrot.lane.b32.xlu1 %v15151_v47, %s12336_s2 }
0x1017   :  { %v6092_v11 = vpop.f32.mrf.mxu1  ;;  %v5657_v6 = vpop.permute.xlu0 %5656 }
0x1018   :  { %6633 = vst.msk [vmem:[#allocation6 + $0x160] sm:$0xf] %vm6276_vm14, %v15222_v0  ;;  %v15230_v38 = vpack.c.bf16 %v6092_v11, %v6092_v11  ;;  %v5723_v37 = vpop.permute.xlu1 %5722 }
0x1019   :  { %5743 = vst.msk [vmem:[#allocation6 + $0x16c] sm:$0xf] %vm5367_vm9, %v5723_v37  ;;  %5676 = vst.msk [vmem:[#allocation6 + $0x130] sm:$0xf] %vm5367_vm9, %v5657_v6  ;;  %v6094_v3 = vpop.f32.mrf.mxu1  ;;  %v12233_v51 = vld [vmem:[#allocation6 + $0xb8] sm:$0xff]   ;;  %v15337_v6 = vpack.c.bf16 %v14982_v31, %v14982_v31 }
0x101a   :  { %6566 = vst.msk [vmem:[#allocation6 + $0x124] sm:$0xf] %vm6276_vm14, %v15230_v38  ;;  %v15236_v2 = vpack.c.bf16 %v6094_v3, %v6094_v3  ;;  %6465 = vrot.lane.b32.xlu0 %v15165_v48, %s12336_s2  ;;  %6399 = vrot.lane.b32.xlu1 %v11414_v57, %s12336_s2 }
0x101b   :  { %v6098_v35 = vpop.f32.mrf.mxu1  ;;  %v12232_v50 = vld [vmem:[#allocation6 + $0xf8] sm:$0xff]   ;;  %v5725_v52 = vpop.permute.xlu0 %5724 }
0x101c   :  { %6634 = vst.msk [vmem:[#allocation6 + $0x164] sm:$0xf] %vm6276_vm14, %v15236_v2  ;;  %v15243_v23 = vpack.c.bf16 %v6098_v35, %v6098_v35  ;;  %v5659_v47 = vpop.permute.xlu1 %5658  ;;  %11713 = vmatprep.subr.bf16.mxu0 %v12232_v50 }
0x101d   :  { %5744 = vst.msk [vmem:[#allocation6 + $0x170] sm:$0xf] %vm5367_vm9, %v5725_v52  ;;  %5677 = vst.msk [vmem:[#allocation6 + $0x134] sm:$0xf] %vm5367_vm9, %v5659_v47  ;;  %v6100_v4 = vpop.f32.mrf.mxu1  ;;  %11714 = vmatpush3.bf16.msra.mxu0 %v12233_v51 }
0x101e   :  { %6567 = vst.msk [vmem:[#allocation6 + $0x128] sm:$0xf] %vm6276_vm14, %v15243_v23  ;;  %v15249_v41 = vpack.c.bf16 %v6100_v4, %v6100_v4  ;;  %6401 = vrot.lane.b32.xlu0 %v11415_v12, %s12336_s2  ;;  %6467 = vrot.lane.b32.xlu1 %v15176_v62, %s12336_s2 }
0x101f   :  { %v6102_v9 = vpop.f32.mrf.mxu1  ;;  %v5661_v48 = vpop.permute.xlu0 %5660  ;;  %11715 = vmatprep.subr.bf16.mxu0 %v12234_v30 }
0x1020   :  { %6635 = vst.msk [vmem:[#allocation6 + $0x168] sm:$0xf] %vm6276_vm14, %v15249_v41  ;;  %v15256_v21 = vpack.c.bf16 %v6102_v9, %v6102_v9  ;;  %v5727_v59 = vpop.permute.xlu1 %5726 }
0x1021   :  { %5745 = vst.msk [vmem:[#allocation6 + $0x174] sm:$0xf] %vm5367_vm9, %v5727_v59  ;;  %5678 = vst.msk [vmem:[#allocation6 + $0x138] sm:$0xf] %vm5367_vm9, %v5661_v48  ;;  %v6104_v40 = vpop.f32.mrf.mxu1  ;;  %11716 = vmatpush3.bf16.msra.mxu0 %v12235_v56 }
0x1022   :  { %6568 = vst.msk [vmem:[#allocation6 + $0x12c] sm:$0xf] %vm6276_vm14, %v15256_v21  ;;  %v15262_v57 = vpack.c.bf16 %v6104_v40, %v6104_v40  ;;  %6469 = vrot.lane.b32.xlu0 %v15187_v44, %s12336_s2  ;;  %6403 = vrot.lane.b32.xlu1 %v15200_v46, %s12336_s2  ;;  %v15288_v44 = vpack.c.bf16 %v14970_v53, %v14970_v53  ;;  %v16928_v40 = vmov 1  }
0x1023   :  { %v6108_v22 = vpop.f32.mrf.mxu1  ;;  %v5729_v62 = vpop.permute.xlu0 %5728  ;;  %11717 = vmatprep.subr.bf16.mxu0 %v12236_v1  ;;  %v15294_v46 = vpack.c.bf16 %v15007_v60, %v15007_v60 }
0x1024   :  { %6636 = vst.msk [vmem:[#allocation6 + $0x16c] sm:$0xf] %vm6276_vm14, %v15262_v57  ;;  %v15274_v14 = vpack.c.bf16 %v6108_v22, %v6108_v22  ;;  %v5663_v49 = vpop.permute.xlu1 %5662 }
0x1025   :  { %5746 = vst.msk [vmem:[#allocation6 + $0x178] sm:$0xf] %vm5367_vm9, %v5729_v62  ;;  %5679 = vst.msk [vmem:[#allocation6 + $0x13c] sm:$0xf] %vm5367_vm9, %v5663_v49  ;;  %v6110_v12 = vpop.f32.mrf.mxu1  ;;  %11718 = vmatpush3.bf16.msra.mxu0 %v12237_v36 }
0x1026   :  { %6569 = vst.msk [vmem:[#allocation6 + $0x130] sm:$0xf] %vm6276_vm14, %v15274_v14  ;;  %v15280_v19 = vpack.c.bf16 %v6110_v12, %v6110_v12  ;;  %6733 = vrot.lane.b32.xlu0 %v15270_v45, %s12336_s2  ;;  %6471 = vrot.lane.b32.xlu1 %v15208_v8, %s12336_s2  ;;  %v15311_v8 = vpack.c.bf16 %v14973_v10, %v14973_v10 }
0x1027   :  { %v6112_v33 = vpop.f32.mrf.mxu1  ;;  %v5785_v39 = vpop.permute.xlu0 %5784  ;;  %11719 = vmatprep.subr.bf16.mxu0 %v12238_v29 }
0x1028   :  { %6637 = vst.msk [vmem:[#allocation6 + $0x170] sm:$0xf] %vm6276_vm14, %v15280_v19  ;;  %v15298_v61 = vpack.c.bf16 %v6112_v33, %v6112_v33  ;;  %v5731_v7 = vpop.permute.xlu1 %5730 }
0x1029   :  { %5747 = vst.msk [vmem:[#allocation6 + $0x17c] sm:$0xf] %vm5367_vm9, %v5731_v7  ;;  %5808 = vst.msk [vmem:[#allocation6 + $0x1a0] sm:$0xf] %vm5367_vm9, %v5785_v39  ;;  %v6114_v53 = vpop.f32.mrf.mxu1  ;;  %11720 = vmatpush3.bf16.msra.mxu0 %v12239_v26 }
0x102a   :  { %6570 = vst.msk [vmem:[#allocation6 + $0x134] sm:$0xf] %vm6276_vm14, %v15298_v61  ;;  %6701 = vst.msk [vmem:[#allocation6 + $0x1a0] sm:$0xf] %vm6276_vm14, %v15288_v44  ;;  %v11438_v17 = vpack.c.bf16 %v6114_v53, %v6114_v53  ;;  %6665 = vrot.lane.b32.xlu0 %v11443_v25, %s12336_s2  ;;  %6735 = vrot.lane.b32.xlu1 %v15294_v46, %s12336_s2 }
0x102b   :  { %v6118_v60 = vpop.f32.mrf.mxu1  ;;  %v5853_v20 = vpop.permute.xlu0 %5852 }
0x102c   :  { %6638 = vst.msk [vmem:[#allocation6 + $0x174] sm:$0xf] %vm6276_vm14, %v11438_v17  ;;  %v11431_v16 = vpack.c.bf16 %v6118_v60, %v6118_v60  ;;  %v5787_v11 = vpop.permute.xlu1 %5786 }
0x102d   :  { %5876 = vst.msk [vmem:[#allocation6 + $0x1e0] sm:$0xf] %vm5367_vm9, %v5853_v20  ;;  %5809 = vst.msk [vmem:[#allocation6 + $0x1a4] sm:$0xf] %vm5367_vm9, %v5787_v11  ;;  %v6120_v37 = vpop.f32.mrf.mxu1 }
0x102e   :  { %6571 = vst.msk [vmem:[#allocation6 + $0x138] sm:$0xf] %vm6276_vm14, %v11431_v16  ;;  %6769 = vst.msk [vmem:[#allocation6 + $0x1e0] sm:$0xf] %vm6276_vm14, %v15311_v8  ;;  %v11439_v10 = vpack.c.bf16 %v6120_v37, %v6120_v37  ;;  %6529 = vrot.lane.b32.xlu0 %v15243_v23, %s12336_s2  ;;  %6667 = vrot.lane.b32.xlu1 %v11444_v34, %s12336_s2  ;;  %v10960_v23 = vcombine.high %v15333_v5, %v15333_v5 }
0x102f   :  { %6702 = vst.msk [vmem:[#allocation6 + $0x1a4] sm:$0xf] %vm6276_vm14, %v15315_v42  ;;  %v6122_v28 = vpop.f32.mrf.mxu1  ;;  %v5789_v50 = vpop.permute.xlu0 %5788 }
0x1030   :  { %6639 = vst.msk [vmem:[#allocation6 + $0x178] sm:$0xf] %vm6276_vm14, %v11439_v10  ;;  %v11432_v3 = vpack.c.bf16 %v6122_v28, %v6122_v28  ;;  %v5855_v35 = vpop.permute.xlu1 %5854  ;;  %7399 = vmatprep.mubr.bf16.mxu0 %v10960_v23  ;;  %v10957_v23 = vcombine.low %v15196_v55, %v15196_v55 }
0x1031   :  { %5877 = vst.msk [vmem:[#allocation6 + $0x1e4] sm:$0xf] %vm5367_vm9, %v5855_v35  ;;  %5810 = vst.msk [vmem:[#allocation6 + $0x1a8] sm:$0xf] %vm5367_vm9, %v5789_v50  ;;  %v6124_v52 = vpop.f32.mrf.mxu1  ;;  %v12253_v55 = vld [vmem:[#allocation6 + $0x130] sm:$0xff]  }
0x1032   :  { %6572 = vst.msk [vmem:[#allocation6 + $0x13c] sm:$0xf] %vm6276_vm14, %v11432_v3  ;;  %6770 = vst.msk [vmem:[#allocation6 + $0x1e4] sm:$0xf] %vm6276_vm14, %v15337_v6  ;;  %v11440_v31 = vpack.c.bf16 %v6124_v52, %v6124_v52  ;;  %6597 = vrot.lane.b32.xlu0 %v15249_v41, %s12336_s2  ;;  %6531 = vrot.lane.b32.xlu1 %v15256_v21, %s12336_s2 }
0x1033   :  { %6703 = vst.msk [vmem:[#allocation6 + $0x1a8] sm:$0xf] %vm6276_vm14, %v11443_v25  ;;  %v5857_v47 = vpop.permute.xlu0 %5856 }
0x1034   :  { %6640 = vst.msk [vmem:[#allocation6 + $0x17c] sm:$0xf] %vm6276_vm14, %v11440_v31  ;;  %v5791_v4 = vpop.permute.xlu1 %5790 }
0x1035   :  { %5878 = vst.msk [vmem:[#allocation6 + $0x1e8] sm:$0xf] %vm5367_vm9, %v5857_v47  ;;  %5811 = vst.msk [vmem:[#allocation6 + $0x1ac] sm:$0xf] %vm5367_vm9, %v5791_v4 }
0x1036   :  { %6771 = vst.msk [vmem:[#allocation6 + $0x1e8] sm:$0xf] %vm6276_vm14, %v15270_v45  ;;  %6704 = vst.msk [vmem:[#allocation6 + $0x1ac] sm:$0xf] %vm6276_vm14, %v11444_v34  ;;  %6533 = vrot.lane.b32.xlu0 %v15274_v14, %s12336_s2  ;;  %6599 = vrot.lane.b32.xlu1 %v15262_v57, %s12336_s2 }
0x1037   :  { %v5793_v41 = vpop.permute.xlu0 %5792 }
0x1038   :  { %v5859_v51 = vpop.permute.xlu1 %5858  ;;  %5812 = vst.msk [vmem:[#allocation6 + $0x1b0] sm:$0xf] %vm5367_vm9, %v5793_v41 }
0x1039   :  { %5879 = vst.msk [vmem:[#allocation6 + $0x1ec] sm:$0xf] %vm5367_vm9, %v5859_v51  ;;  %v12251_v4 = vld [vmem:[#allocation6 + $0x138] sm:$0xff]   ;;  %v12252_v51 = vld [vmem:[#allocation6 + $0x170] sm:$0xff]  }
0x103a   :  { %6772 = vst.msk [vmem:[#allocation6 + $0x1ec] sm:$0xf] %vm6276_vm14, %v15294_v46  ;;  %6705 = vst.msk [vmem:[#allocation6 + $0x1b0] sm:$0xf] %vm6276_vm14, %v15019_v54  ;;  %6601 = vrot.lane.b32.xlu0 %v15280_v19, %s12336_s2  ;;  %6535 = vrot.lane.b32.xlu1 %v15298_v61, %s12336_s2 }
0x103b   :  { %v5861_v30 = vpop.permute.xlu0 %5860  ;;  %v12248_v50 = vld [vmem:[#allocation6 + $0x178] sm:$0xff]  }
0x103c   :  { %v5795_v9 = vpop.permute.xlu1 %5794  ;;  %5880 = vst.msk [vmem:[#allocation6 + $0x1f0] sm:$0xf] %vm5367_vm9, %v5861_v30 }
0x103d   :  { %5813 = vst.msk [vmem:[#allocation6 + $0x1b4] sm:$0xf] %vm5367_vm9, %v5795_v9  ;;  %v12254_v9 = vld [vmem:[#allocation6 + $0x168] sm:$0xff]  }
0x103e   :  { %6773 = vst.msk [vmem:[#allocation6 + $0x1f0] sm:$0xf] %vm6276_vm14, %v15028_v18  ;;  %6706 = vst.msk [vmem:[#allocation6 + $0x1b4] sm:$0xf] %vm6276_vm14, %v15030_v43  ;;  %6537 = vrot.lane.b32.xlu0 %v11431_v16, %s12336_s2  ;;  %6603 = vrot.lane.b32.xlu1 %v11438_v17, %s12336_s2 }
0x1040   :  { %v5863_v54 = vpop.permute.xlu1 %5862  ;;  %v5797_v21 = vpop.permute.xlu0 %5796 }
0x1041   :  { %5881 = vst.msk [vmem:[#allocation6 + $0x1f4] sm:$0xf] %vm5367_vm9, %v5863_v54  ;;  %5814 = vst.msk [vmem:[#allocation6 + $0x1b8] sm:$0xf] %vm5367_vm9, %v5797_v21 }
0x1042   :  { %6774 = vst.msk [vmem:[#allocation6 + $0x1f4] sm:$0xf] %vm6276_vm14, %v15040_v13  ;;  %6707 = vst.msk [vmem:[#allocation6 + $0x1b8] sm:$0xf] %vm6276_vm14, %v15066_v24  ;;  %6605 = vrot.lane.b32.xlu0 %v11439_v10, %s12336_s2  ;;  %6539 = vrot.lane.b32.xlu1 %v11432_v3, %s12336_s2  ;;  %v15457_v3 = vld [vmem:[%s16475_s8 + $0x10] sm:$0xff] }
0x1043   :  { %v10962_v52 = vcombine.high %v15457_v3, %v15457_v3 }
0x1044   :  { %v5865_v18 = vpop.permute.xlu0 %5864  ;;  %v5799_v43 = vpop.permute.xlu1 %5798 }
0x1045   :  { %5882 = vst.msk [vmem:[#allocation6 + $0x1f8] sm:$0xf] %vm5367_vm9, %v5865_v18  ;;  %5815 = vst.msk [vmem:[#allocation6 + $0x1bc] sm:$0xf] %vm5367_vm9, %v5799_v43  ;;  %v12255_v18 = vld [vmem:[#allocation6 + $0x128] sm:$0xff]   ;;  %v12256_v43 = vld [vmem:[#allocation6 + $0x160] sm:$0xff]  }
0x1046   :  { %6775 = vst.msk [vmem:[#allocation6 + $0x1f8] sm:$0xf] %vm6276_vm14, %v15081_v32  ;;  %6708 = vst.msk [vmem:[#allocation6 + $0x1bc] sm:$0xf] %vm6276_vm14, %v15083_v15  ;;  %6593 = vrot.lane.b32.xlu0 %v15222_v0, %s12336_s2  ;;  %6607 = vrot.lane.b32.xlu1 %v11440_v31, %s12336_s2 }
0x1048   :  { %v6253_v13 = vpop.permute.xlu0 %6252  ;;  %v5867_v24 = vpop.permute.xlu1 %5866 }
0x1049   :  { %6277 = vst.msk [vmem:[#allocation6] sm:$0xf] %vm6276_vm14, %v6253_v13 }
0x104a   :  { %5883 = vst.msk [vmem:[#allocation6 + $0x1fc] sm:$0xf] %vm5367_vm9, %v5867_v24  ;;  %6525 = vrot.lane.b32.xlu0 %v15216_v27, %s12336_s2  ;;  %6595 = vrot.lane.b32.xlu1 %v15236_v2, %s12336_s2  ;;  %v15420_v27 = vld [vmem:[%s16477_s10 + $0x38] sm:$0xff] }
0x104b   :  { %6776 = vst.msk [vmem:[#allocation6 + $0x1fc] sm:$0xf] %vm6276_vm14, %v15099_v58 }
0x104c   :  { %v6322_v32 = vpop.permute.xlu0 %6321  ;;  %v6255_v15 = vpop.permute.xlu1 %6254 }
0x104d   :  { %6345 = vst.msk [vmem:[#allocation6 + $0x40] sm:$0xf] %vm6276_vm14, %v6322_v32  ;;  %6278 = vst.msk [vmem:[#allocation6 + $0x4] sm:$0xf] %vm6276_vm14, %v6255_v15  ;;  %v12257_v32 = vld [vmem:[#allocation6 + $0x120] sm:$0xff]  }
0x104e   :  { %6729 = vrot.lane.b32.xlu0 %v15311_v8, %s12336_s2  ;;  %6527 = vrot.lane.b32.xlu1 %v15230_v38, %s12336_s2 }
0x1050   :  { %v6670_v0 = vpop.permute.xlu0 %6669  ;;  %v6324_v58 = vpop.permute.xlu1 %6323 }
0x1051   :  { %6689 = vst.msk [vmem:[#allocation6 + $0x190] sm:$0xf] %vm6276_vm14, %v6670_v0  ;;  %6346 = vst.msk [vmem:[#allocation6 + $0x44] sm:$0xf] %vm6276_vm14, %v6324_v58 }
0x1052   :  { %6661 = vrot.lane.b32.xlu0 %v15288_v44, %s12336_s2  ;;  %6731 = vrot.lane.b32.xlu1 %v15337_v6, %s12336_s2 }
0x1054   :  { %v6738_v2 = vpop.permute.xlu0 %6737  ;;  %v6672_v59 = vpop.permute.xlu1 %6671  ;;  %v12247_v35 = vld [vmem:[#allocation6] sm:$0xff]  }
0x1055   :  { %6757 = vst.msk [vmem:[#allocation6 + $0x1d0] sm:$0xf] %vm6276_vm14, %v6738_v2  ;;  %6690 = vst.msk [vmem:[#allocation6 + $0x194] sm:$0xf] %vm6276_vm14, %v6672_v59 }
0x1056   :  { %6912 = vperm.xlu0 %12022, %v15420_v27   ;;  %6663 = vrot.lane.b32.xlu1 %v15315_v42, %s12336_s2 }
0x1058   :  { %v6257_v38 = vpop.permute.xlu0 %6256  ;;  %v6740_v48 = vpop.permute.xlu1 %6739  ;;  %v12246_v10 = vld [vmem:[#allocation6 + $0x40] sm:$0xff]  }
0x1059   :  { %6279 = vst.msk [vmem:[#allocation6 + $0x8] sm:$0xf] %vm6276_vm14, %v6257_v38  ;;  %6758 = vst.msk [vmem:[#allocation6 + $0x1d4] sm:$0xf] %vm6276_vm14, %v6740_v48 }
0x105a   :  { %12023 = vset.pattern.permute.xlu0 %v16928_v40 }
0x105c   :  { %v6326_v56 = vpop.permute.xlu0 %6325  ;;  %v6259_v57 = vpop.permute.xlu1 %6258 }
0x105d   :  { %6347 = vst.msk [vmem:[#allocation6 + $0x48] sm:$0xf] %vm6276_vm14, %v6326_v56  ;;  %6280 = vst.msk [vmem:[#allocation6 + $0xc] sm:$0xf] %vm6276_vm14, %v6259_v57 }
0x1060   :  { %v6674_v1 = vpop.permute.xlu0 %6673  ;;  %v6328_v22 = vpop.permute.xlu1 %6327 }
0x1061   :  { %6691 = vst.msk [vmem:[#allocation6 + $0x198] sm:$0xf] %vm6276_vm14, %v6674_v1  ;;  %6348 = vst.msk [vmem:[#allocation6 + $0x4c] sm:$0xf] %vm6276_vm14, %v6328_v22 }
0x1064   :  { %v6742_v45 = vpop.permute.xlu0 %6741  ;;  %v6676_v14 = vpop.permute.xlu1 %6675  ;;  %v12245_v37 = vld [vmem:[#allocation6 + $0x8] sm:$0xff]  }
0x1065   :  { %6759 = vst.msk [vmem:[#allocation6 + $0x1d8] sm:$0xf] %vm6276_vm14, %v6742_v45  ;;  %6692 = vst.msk [vmem:[#allocation6 + $0x19c] sm:$0xf] %vm6276_vm14, %v6676_v14 }
0x1068   :  { %v6261_v62 = vpop.permute.xlu0 %6260  ;;  %v6744_v49 = vpop.permute.xlu1 %6743  ;;  %v12244_v16 = vld [vmem:[#allocation6 + $0x48] sm:$0xff]  }
0x1069   :  { %6281 = vst.msk [vmem:[#allocation6 + $0x10] sm:$0xf] %vm6276_vm14, %v6261_v62  ;;  %6760 = vst.msk [vmem:[#allocation6 + $0x1dc] sm:$0xf] %vm6276_vm14, %v6744_v49 }
0x106c   :  { %v6330_v12 = vpop.permute.xlu0 %6329  ;;  %v6263_v36 = vpop.permute.xlu1 %6262 }
0x106d   :  { %6349 = vst.msk [vmem:[#allocation6 + $0x50] sm:$0xf] %vm6276_vm14, %v6330_v12  ;;  %6282 = vst.msk [vmem:[#allocation6 + $0x14] sm:$0xf] %vm6276_vm14, %v6263_v36  ;;  %v15482_v12 = vld [vmem:[%s16475_s8 + $0x18] sm:$0xff] }
0x1070   :  { %v6265_v19 = vpop.permute.xlu0 %6264  ;;  %v6332_v29 = vpop.permute.xlu1 %6331 }
0x1071   :  { %6283 = vst.msk [vmem:[#allocation6 + $0x18] sm:$0xf] %vm6276_vm14, %v6265_v19  ;;  %6350 = vst.msk [vmem:[#allocation6 + $0x54] sm:$0xf] %vm6276_vm14, %v6332_v29  ;;  %v12266_v19 = vld [vmem:[#allocation6 + $0x1f8] sm:$0xff]   ;;  %v10959_v29 = vcombine.low %v15333_v5, %v15333_v5  ;;  %v12271_v5 = vld [vmem:[#allocation6 + $0x1b0] sm:$0xff]  }
0x1074   :  { %v6334_v33 = vpop.permute.xlu0 %6333  ;;  %v6267_v44 = vpop.permute.xlu1 %6266  ;;  %v12243_v34 = vld [vmem:[#allocation6 + $0x10] sm:$0xff]  }
0x1075   :  { %6351 = vst.msk [vmem:[#allocation6 + $0x58] sm:$0xf] %vm6276_vm14, %v6334_v33  ;;  %6284 = vst.msk [vmem:[#allocation6 + $0x1c] sm:$0xf] %vm6276_vm14, %v6267_v44  ;;  %v10964_v33 = vcombine.high %v15482_v12, %v15482_v12 }
0x1078   :  { %v6390_v25 = vpop.permute.xlu0 %6389  ;;  %v6336_v46 = vpop.permute.xlu1 %6335  ;;  %v12242_v60 = vld [vmem:[#allocation6 + $0x50] sm:$0xff]  }
0x1079   :  { %6413 = vst.msk [vmem:[#allocation6 + $0x80] sm:$0xf] %vm6276_vm14, %v6390_v25  ;;  %6352 = vst.msk [vmem:[#allocation6 + $0x5c] sm:$0xf] %vm6276_vm14, %v6336_v46  ;;  %v12269_v46 = vld [vmem:[#allocation6 + $0x1b8] sm:$0xff]  }
0x107c   :  { %v6458_v61 = vpop.permute.xlu0 %6457  ;;  %v6392_v7 = vpop.permute.xlu1 %6391  ;;  %v12241_v17 = vld [vmem:[#allocation6 + $0x18] sm:$0xff]  }
0x107d   :  { %6481 = vst.msk [vmem:[#allocation6 + $0xc0] sm:$0xf] %vm6276_vm14, %v6458_v61  ;;  %6414 = vst.msk [vmem:[#allocation6 + $0x84] sm:$0xf] %vm6276_vm14, %v6392_v7  ;;  %v12270_v61 = vld [vmem:[#allocation6 + $0x1f0] sm:$0xff]  }
0x1080   :  { %v6394_v39 = vpop.permute.xlu0 %6393  ;;  %v6460_v53 = vpop.permute.xlu1 %6459  ;;  %v12240_v26 = vld [vmem:[#allocation6 + $0x58] sm:$0xff]  }
0x1081   :  { %6415 = vst.msk [vmem:[#allocation6 + $0x88] sm:$0xf] %vm6276_vm14, %v6394_v39  ;;  %6482 = vst.msk [vmem:[#allocation6 + $0xc4] sm:$0xf] %vm6276_vm14, %v6460_v53  ;;  %11699 = vmatprep.subr.bf16.mxu1 %v12240_v26  ;;  %v12272_v53 = vld [vmem:[#allocation6 + $0x1e8] sm:$0xff]  }
0x1082   :  { %11700 = vmatpush3.bf16.msra.mxu1 %v12241_v17 }
0x1083   :  { %11701 = vmatprep.subr.bf16.mxu1 %v12242_v60  ;;  %v12273_v60 = vld [vmem:[#allocation6 + $0x1a8] sm:$0xff]  }
0x1084   :  { %v6462_v8 = vpop.permute.xlu0 %6461  ;;  %v6396_v42 = vpop.permute.xlu1 %6395  ;;  %v12265_v36 = vld [vmem:[#allocation6 + $0x80] sm:$0xff]  }
0x1085   :  { %6483 = vst.msk [vmem:[#allocation6 + $0xc8] sm:$0xf] %vm6276_vm14, %v6462_v8  ;;  %6416 = vst.msk [vmem:[#allocation6 + $0x8c] sm:$0xf] %vm6276_vm14, %v6396_v42  ;;  %v12274_v8 = vld [vmem:[#allocation6 + $0x1e0] sm:$0xff]  }
0x1086   :  { %11702 = vmatpush3.bf16.msra.mxu1 %v12243_v34 }
0x1087   :  { %11703 = vmatprep.subr.bf16.mxu1 %v12244_v16  ;;  %v12275_v16 = vld [vmem:[#allocation6 + $0x1a0] sm:$0xff]  }
0x1088   :  { %v6398_v20 = vpop.permute.xlu0 %6397  ;;  %v6464_v11 = vpop.permute.xlu1 %6463  ;;  %v12264_v14 = vld [vmem:[#allocation6 + $0xc0] sm:$0xff]  }
0x1089   :  { %6417 = vst.msk [vmem:[#allocation6 + $0x90] sm:$0xf] %vm6276_vm14, %v6398_v20  ;;  %6484 = vst.msk [vmem:[#allocation6 + $0xcc] sm:$0xf] %vm6276_vm14, %v6464_v11  ;;  %v12276_v20 = vld [vmem:[#allocation6 + $0x1d8] sm:$0xff]  }
0x108a   :  { %11704 = vmatpush3.bf16.msra.mxu1 %v12245_v37 }
0x108b   :  { %11705 = vmatprep.subr.bf16.mxu1 %v12246_v10 }
0x108c   :  { %v6466_v28 = vpop.permute.xlu0 %6465  ;;  %v6400_v6 = vpop.permute.xlu1 %6399  ;;  %v12263_v45 = vld [vmem:[#allocation6 + $0x88] sm:$0xff]  }
0x108d   :  { %6485 = vst.msk [vmem:[#allocation6 + $0xd0] sm:$0xf] %vm6276_vm14, %v6466_v28  ;;  %6418 = vst.msk [vmem:[#allocation6 + $0x94] sm:$0xf] %vm6276_vm14, %v6400_v6  ;;  %v12279_v6 = vld [vmem:[#allocation6 + $0x198] sm:$0xff]  }
0x108e   :  { %11706 = vmatpush3.bf16.msra.mxu1 %v12247_v35 }
0x108f   :  { %11735 = vmatprep.subr.bf16.mxu1 %v12248_v50  ;;  %v12281_v50 = vld [vmem:[#allocation6 + $0x1d0] sm:$0xff]  }
0x1090   :  { %v6402_v31 = vpop.permute.xlu0 %6401  ;;  %v6468_v47 = vpop.permute.xlu1 %6467  ;;  %v12262_v57 = vld [vmem:[#allocation6 + $0xc8] sm:$0xff]  }
0x1091   :  { %6419 = vst.msk [vmem:[#allocation6 + $0x98] sm:$0xf] %vm6276_vm14, %v6402_v31  ;;  %6486 = vst.msk [vmem:[#allocation6 + $0xd4] sm:$0xf] %vm6276_vm14, %v6468_v47  ;;  %7360 = vmatmul.mubr.bf16.vlgmr.msra.gmra.mxu1 %v10957_v23  ;;  %v12283_v47 = vld [vmem:[#allocation6 + $0x190] sm:$0xff]  }
0x1092   :  { %11736 = vmatpush3.bf16.msra.mxu1 %v12251_v4  ;;  %7439 = vmatprep.mubr.bf16.mxu1 %v10962_v52 }
0x1093   :  { %11737 = vmatprep.subr.bf16.mxu1 %v12252_v51 }
0x1094   :  { %v6470_v41 = vpop.permute.xlu0 %6469  ;;  %v6404_v30 = vpop.permute.xlu1 %6403  ;;  %v12261_v56 = vld [vmem:[#allocation6 + $0x90] sm:$0xff]  }
0x1095   :  { %6487 = vst.msk [vmem:[#allocation6 + $0xd8] sm:$0xf] %vm6276_vm14, %v6470_v41  ;;  %6420 = vst.msk [vmem:[#allocation6 + $0x9c] sm:$0xf] %vm6276_vm14, %v6404_v30 }
0x1096   :  { %11738 = vmatpush3.bf16.msra.mxu1 %v12253_v55 }
0x1097   :  { %11739 = vmatprep.subr.bf16.mxu1 %v12254_v9 }
0x1098   :  { %v6734_v54 = vpop.permute.xlu0 %6733  ;;  %v6472_v21 = vpop.permute.xlu1 %6471  ;;  %v12260_v59 = vld [vmem:[#allocation6 + $0xd0] sm:$0xff]  }
0x1099   :  { %6755 = vst.msk [vmem:[#allocation6 + $0x1c8] sm:$0xf] %vm6276_vm14, %v6734_v54  ;;  %6488 = vst.msk [vmem:[#allocation6 + $0xdc] sm:$0xf] %vm6276_vm14, %v6472_v21 }
0x109a   :  { %11740 = vmatpush3.bf16.msra.mxu1 %v12255_v18  ;;  %v10961_v18 = vcombine.low %v15457_v3, %v15457_v3 }
0x109b   :  { %11741 = vmatprep.subr.bf16.mxu1 %v12256_v43 }
0x109c   :  { %v6666_v13 = vpop.permute.xlu0 %6665  ;;  %v6736_v24 = vpop.permute.xlu1 %6735  ;;  %v12259_v2 = vld [vmem:[#allocation6 + $0x98] sm:$0xff]  }
0x109d   :  { %6687 = vst.msk [vmem:[#allocation6 + $0x188] sm:$0xf] %vm6276_vm14, %v6666_v13  ;;  %6756 = vst.msk [vmem:[#allocation6 + $0x1cc] sm:$0xf] %vm6276_vm14, %v6736_v24  ;;  %v16929_v13 = vmov 0.0   ;;  %v10963_v24 = vcombine.low %v15482_v12, %v15482_v12 }
0x109e   :  { %11742 = vmatpush3.bf16.msra.mxu1 %v12257_v32 }
0x10a0   :  { %v6530_v15 = vpop.permute.xlu0 %6529  ;;  %v6668_v0 = vpop.permute.xlu1 %6667  ;;  %v12258_v58 = vld [vmem:[#allocation6 + $0xd8] sm:$0xff]  }
0x10a1   :  { %6551 = vst.msk [vmem:[#allocation6 + $0x108] sm:$0xf] %vm6276_vm14, %v6530_v15  ;;  %6688 = vst.msk [vmem:[#allocation6 + $0x18c] sm:$0xf] %vm6276_vm14, %v6668_v0  ;;  %11721 = vmatprep.subr.bf16.mxu0 %v12258_v58 }
0x10a2   :  { %11722 = vmatpush3.bf16.msra.mxu0 %v12259_v2 }
0x10a3   :  { %11723 = vmatprep.subr.bf16.mxu0 %v12260_v59 }
0x10a4   :  { %v6598_v38 = vpop.permute.xlu0 %6597  ;;  %v6532_v48 = vpop.permute.xlu1 %6531  ;;  %v12285_v51 = vld [vmem:[#allocation6 + $0x1c8] sm:$0xff]  }
0x10a5   :  { %6619 = vst.msk [vmem:[#allocation6 + $0x148] sm:$0xf] %vm6276_vm14, %v6598_v38  ;;  %6552 = vst.msk [vmem:[#allocation6 + $0x10c] sm:$0xf] %vm6276_vm14, %v6532_v48 }
0x10a6   :  { %11724 = vmatpush3.bf16.msra.mxu0 %v12261_v56 }
0x10a7   :  { %11725 = vmatprep.subr.bf16.mxu0 %v12262_v57 }
0x10a8   :  { %v6534_v1 = vpop.permute.xlu0 %6533  ;;  %v6600_v22 = vpop.permute.xlu1 %6599  ;;  %v12287_v55 = vld [vmem:[#allocation6 + $0x188] sm:$0xff]  }
0x10a9   :  { %6553 = vst.msk [vmem:[#allocation6 + $0x110] sm:$0xf] %vm6276_vm14, %v6534_v1  ;;  %6620 = vst.msk [vmem:[#allocation6 + $0x14c] sm:$0xf] %vm6276_vm14, %v6600_v22 }
0x10aa   :  { %11726 = vmatpush3.bf16.msra.mxu0 %v12263_v45 }
0x10ab   :  { %11727 = vmatprep.subr.bf16.mxu0 %v12264_v14 }
0x10ac   :  { %v6602_v62 = vpop.permute.xlu0 %6601  ;;  %v6536_v49 = vpop.permute.xlu1 %6535  ;;  %v12286_v30 = vld [vmem:[#allocation6 + $0x108] sm:$0xff]  }
0x10ad   :  { %6621 = vst.msk [vmem:[#allocation6 + $0x150] sm:$0xf] %vm6276_vm14, %v6602_v62  ;;  %6554 = vst.msk [vmem:[#allocation6 + $0x114] sm:$0xf] %vm6276_vm14, %v6536_v49 }
0x10ae   :  { %11728 = vmatpush3.bf16.msra.mxu0 %v12265_v36 }
0x10af   :  { %11757 = vmatprep.subr.bf16.mxu0 %v12266_v19 }
0x10b0   :  { %v6538_v44 = vpop.permute.xlu0 %6537  ;;  %v6604_v25 = vpop.permute.xlu1 %6603  ;;  %v12284_v4 = vld [vmem:[#allocation6 + $0x148] sm:$0xff]  }
0x10b1   :  { %6555 = vst.msk [vmem:[#allocation6 + $0x118] sm:$0xf] %vm6276_vm14, %v6538_v44  ;;  %6622 = vst.msk [vmem:[#allocation6 + $0x154] sm:$0xf] %vm6276_vm14, %v6604_v25  ;;  %7400 = vmatmul.mubr.bf16.vlgmr.msra.gmra.mxu0 %v10959_v29 }
0x10b2   :  { %11758 = vmatpush3.bf16.msra.mxu0 %v12269_v46  ;;  %7479 = vmatprep.mubr.bf16.mxu0 %v10964_v33 }
0x10b3   :  { %11759 = vmatprep.subr.bf16.mxu0 %v12270_v61 }
0x10b4   :  { %v6606_v7 = vpop.permute.xlu0 %6605  ;;  %v6540_v39 = vpop.permute.xlu1 %6539  ;;  %v12282_v31 = vld [vmem:[#allocation6 + $0x110] sm:$0xff]  }
0x10b5   :  { %6623 = vst.msk [vmem:[#allocation6 + $0x158] sm:$0xf] %vm6276_vm14, %v6606_v7  ;;  %6556 = vst.msk [vmem:[#allocation6 + $0x11c] sm:$0xf] %vm6276_vm14, %v6540_v39  ;;  %v7516_v7 = vld [vmem:[%s16477_s10 + $0x40] sm:$0xff]  ;;  %v7517_v39 = vld [vmem:[%s16477_s10 + $0x48] sm:$0xff] }
0x10b6   :  { %11760 = vmatpush3.bf16.msra.mxu0 %v12271_v5  ;;  %v16930_v5 = vmov 2  }
0x10b7   :  { %11761 = vmatprep.subr.bf16.mxu0 %v12272_v53 }
0x10b8   :  { %v6594_v26 = vpop.permute.xlu0 %6593  ;;  %v6608_v17 = vpop.permute.xlu1 %6607  ;;  %v12280_v35 = vld [vmem:[#allocation6 + $0x150] sm:$0xff]  }
0x10b9   :  { %6617 = vst.msk [vmem:[#allocation6 + $0x140] sm:$0xf] %vm6276_vm14, %v6594_v26  ;;  %6624 = vst.msk [vmem:[#allocation6 + $0x15c] sm:$0xf] %vm6276_vm14, %v6608_v17 }
0x10ba   :  { %11762 = vmatpush3.bf16.msra.mxu0 %v12273_v60 }
0x10bb   :  { %11763 = vmatprep.subr.bf16.mxu0 %v12274_v8 }
0x10bc   :  { %v6526_v42 = vpop.permute.xlu0 %6525  ;;  %v6596_v34 = vpop.permute.xlu1 %6595  ;;  %v12278_v28 = vld [vmem:[#allocation6 + $0x118] sm:$0xff]  }
0x10bd   :  { %6549 = vst.msk [vmem:[#allocation6 + $0x100] sm:$0xf] %vm6276_vm14, %v6526_v42  ;;  %6618 = vst.msk [vmem:[#allocation6 + $0x144] sm:$0xf] %vm6276_vm14, %v6596_v34 }
0x10be   :  { %11764 = vmatpush3.bf16.msra.mxu0 %v12275_v16 }
0x10bf   :  { %11765 = vmatprep.subr.bf16.mxu0 %v12276_v20 }
0x10c0   :  { %v6730_v11 = vpop.permute.xlu0 %6729  ;;  %v6528_v37 = vpop.permute.xlu1 %6527  ;;  %v12277_v10 = vld [vmem:[#allocation6 + $0x158] sm:$0xff]  }
0x10c1   :  { %6753 = vst.msk [vmem:[#allocation6 + $0x1c0] sm:$0xf] %vm6276_vm14, %v6730_v11  ;;  %6550 = vst.msk [vmem:[#allocation6 + $0x104] sm:$0xf] %vm6276_vm14, %v6528_v37  ;;  %11743 = vmatprep.subr.bf16.mxu1 %v12277_v10 }
0x10c2   :  { %11744 = vmatpush3.bf16.msra.mxu1 %v12278_v28  ;;  %11766 = vmatpush3.bf16.msra.mxu0 %v12279_v6 }
0x10c3   :  { %11745 = vmatprep.subr.bf16.mxu1 %v12280_v35  ;;  %11767 = vmatprep.subr.bf16.mxu0 %v12281_v50 }
0x10c4   :  { %v6662_v23 = vpop.permute.xlu0 %6661  ;;  %v6732_v52 = vpop.permute.xlu1 %6731  ;;  %v12288_v9 = vld [vmem:[#allocation6 + $0x140] sm:$0xff]  }
0x10c5   :  { %6685 = vst.msk [vmem:[#allocation6 + $0x180] sm:$0xf] %vm6276_vm14, %v6662_v23  ;;  %6754 = vst.msk [vmem:[#allocation6 + $0x1c4] sm:$0xf] %vm6276_vm14, %v6732_v52  ;;  %v12296_v52 = vld [vmem:[%s16471_s4 + $0x80] ss:$8 sps:$4 sm:$0xff]  }
0x10c6   :  { %11746 = vmatpush3.bf16.msra.mxu1 %v12282_v31  ;;  %11768 = vmatpush3.bf16.msra.mxu0 %v12283_v47 }
0x10c7   :  { %11747 = vmatprep.subr.bf16.mxu1 %v12284_v4  ;;  %11769 = vmatprep.subr.bf16.mxu0 %v12285_v51 }
0x10c8   :  { %v6664_v41 = vpop.permute.xlu1 %6663  ;;  %v12290_v21 = vld [vmem:[#allocation6 + $0x100] sm:$0xff]  }
0x10c9   :  { %6686 = vst.msk [vmem:[#allocation6 + $0x184] sm:$0xf] %vm6276_vm14, %v6664_v41 }
0x10ca   :  { %11748 = vmatpush3.bf16.msra.mxu1 %v12286_v30  ;;  %11770 = vmatpush3.bf16.msra.mxu0 %v12287_v55 }
0x10cb   :  { %11749 = vmatprep.subr.bf16.mxu1 %v12288_v9 }
0x10cc   :  { %v12289_v54 = vld [vmem:[#allocation6 + $0x1c0] sm:$0xff]  }
0x10cd   :  { %11771 = vmatprep.subr.bf16.mxu0 %v12289_v54 }
0x10ce   :  { %11750 = vmatpush3.bf16.msra.mxu1 %v12290_v21 }
0x10cf   :  { %11957 = vmatprep.subr.bf16.mxu1 %v16929_v13 }
0x10d0   :  { %v12293_v43 = vld [vmem:[#allocation6 + $0x180] sm:$0xff]  }
0x10d1   :  { %7440 = vmatmul.mubr.bf16.vlgmr.msra.gmra.mxu1 %v10961_v18  ;;  %11772 = vmatpush3.bf16.msra.mxu0 %v12293_v43  ;;  %v6913_v57 = vpop.permute.xlu0 %6912 }
0x10d2   :  { %11959 = vmatprep.mubr.msk.bf16.mxu1 %vm12346_vm5, %v16929_v13 }
0x10d4   :  { %7480 = vmatmul.mubr.bf16.vlgmr.msra.gmra.mxu0 %v10963_v24 }
0x10d5   :  { %7950 = vmatprep.mubr.bf16.mxu0 %v16851_v63 }
0x1151   :  { %v11707_v32 = vpop.f32.mrf.mxu1 }
0x1153   :  { %v11708_v15 = vpop.f32.mrf.mxu1 }
0x1154   :  { %v11709_v48 = vadd.f32 %v11708_v15, %v11707_v32 }
0x1155   :  { %v11710_v0 = vpop.f32.mrf.mxu1 }
0x1156   :  { %v7362_v22 = vadd.f32 %v11709_v48, %v6913_v57 }
0x1157   :  { %v11711_v58 = vpop.f32.mrf.mxu1 }
0x1171   :  { %v11729_v2 = vpop.f32.mrf.mxu0 }
0x1173   :  { %v11730_v59 = vpop.f32.mrf.mxu0 }
0x1174   :  { %v11731_v56 = vadd.f32 %v11730_v59, %v11729_v2 }
0x1175   :  { %v11732_v3 = vpop.f32.mrf.mxu0 }
0x1176   :  { %v7402_v14 = vadd.f32 %v11731_v56, %v7362_v22 }
0x1177   :  { %v11733_v38 = vpop.f32.mrf.mxu0 }
0x1191   :  { %v11751_v1 = vpop.f32.mrf.mxu1 }
0x1193   :  { %v11752_v45 = vpop.f32.mrf.mxu1 }
0x1194   :  { %v11753_v62 = vadd.f32 %v11752_v45, %v11751_v1  ;;  %v11773_v49 = vpop.f32.mrf.mxu0 }
0x1195   :  { %v11754_v12 = vpop.f32.mrf.mxu1 }
0x1196   :  { %v7442_v36 = vadd.f32 %v11753_v62, %v7402_v14  ;;  %v11774_v19 = vpop.f32.mrf.mxu0 }
0x1197   :  { %v11775_v29 = vadd.f32 %v11774_v19, %v11773_v49  ;;  %v11755_v33 = vpop.f32.mrf.mxu1 }
0x1198   :  { %v11776_v44 = vpop.f32.mrf.mxu0 }
0x1199   :  { %v7482_v25 = vadd.f32 %v11775_v29, %v7442_v36 }
0x119a   :  { %v11777_v46 = vpop.f32.mrf.mxu0 }
0x119b   :  { %7488 = vadd.xlane.f32.xlu1 %v7482_v25  ;;  %v7487_v61 = vmul.f32 %v7482_v25, %v7482_v25 }
0x119d   :  { %7490 = vadd.xlane.f32.xlu0 %v7487_v61 }
0x11ac   :  { %7506 = vperm.xlu1 %12024, %v15420_v27  }
0x11b0   :  { %12025 = vset.pattern.permute.xlu1 %v16851_v63 }
0x11b1   :  { %7520 = vperm.xlu1 %12025, %v7516_v7  }
0x11b3   :  { %7498 = vperm.xlu0 %12023, %v15420_v27  }
0x11b5   :  { %7525 = vperm.xlu1 %12025, %v7517_v39  }
0x11b9   :  { %12026 = vset.pattern.permute.xlu1 %v16928_v40 }
0x11ba   :  { %7601 = vperm.xlu1 %12026, %v7516_v7  }
0x11be   :  { %12027 = vset.pattern.permute.xlu1 %v16930_v5 }
0x1224   :  { %v7489_v53 = vpop.xlane.xlu1 %7488 }
0x1225   :  { %v7492_v26 = vmul.f32 0.0078125, %v7489_v53  ;;  %v16931_v53 = vld [vmem:[#allocation45_spill] sm:$0xff] }
0x1226   :  { %v7491_v17 = vpop.xlane.xlu0 %7490 }
0x1227   :  { %v7494_v60 = vmul.f32 %v7492_v26, %v7492_v26  ;;  %v7493_v27 = vmul.f32 0.0078125, %v7491_v17  ;;  %v7496_v16 = vsub.f32 %v7482_v25, %v7492_v26  ;;  %v16652_v26 = vunpack.c.h.s8.bf16 %v16931_v53  ;;  %v16932_v17 = vld [vmem:[#allocation49_spill] sm:$0xff] }
0x1228   :  { %v7507_v37 = vpop.permute.xlu1 %7506 }
0x1229   :  { %v7495_v8 = vsub.f32 %v7493_v27, %v7494_v60  ;;  %v16628_v60 = vunpack.c.h.s8.bf16 %v16932_v17  ;;  %v16933_v27 = vld [vmem:[#allocation44_spill] sm:$0xff] }
0x122b   :  { %v7502_v42 = vadd.f32 1e-05, %v7495_v8  ;;  %v16651_v8 = vunpack.c.h.s8.bf16 %v16933_v27 }
0x122c   :  { %v7521_v31 = vpop.permute.xlu1 %7520 }
0x122d   :  { %12313 = vrsqrt.f32 %v7502_v42  ;;  %v16934_v42 = vld [vmem:[#allocation48_spill] sm:$0xff] }
0x122e   :  { %v7499_v34 = vpop.permute.xlu0 %7498 }
0x122f   :  { %v7501_v20 = vmul.f32 %v7499_v34, %v7496_v16  ;;  %v16627_v34 = vunpack.c.h.s8.bf16 %v16934_v42 }
0x1230   :  { %v7526_v41 = vpop.permute.xlu1 %7525 }
0x1235   :  { %v7602_v18 = vpop.permute.xlu1 %7601 }
0x123a   :  { %v12314_v11 = vpop.eup %12313 }
0x123b   :  { %v7504_v10 = vmul.f32 %v12314_v11, %v7501_v20 }
0x123d   :  { %v7509_v28 = vadd.f32 %v7507_v37, %v7504_v10 }
0x123f   :  { %vm7510_vm5 = vcmp.ge.f32.partialorder %v7509_v28, 0.0  ;;  %v7511_v6 = vmul.f32 0.2, %v7509_v28 }
0x1241   :  { %v7512_v35 = vsel %vm7510_vm5, %v7509_v28, %v7511_v6 }
0x1242   :  { %v7515_v50 = vpack.c.bf16 %v7512_v35, %v7512_v35 }
0x1244   :  { %v7537_v23 = vsel %vm1108_vm7, %v7515_v50, 0 }
0x1245   :  { %11958 = vmatpush3.bf16.msra.mxu1 %v7537_v23 }
0x1248   :  { %11960 = vmatmul.mubr.msk.bf16.vlgmr.msra.gmra.mxu1 %vm3062_vm4, %v12296_v52 }
0x1249   :  { %7864 = vmatprep.mubr.bf16.mxu1 %v16851_v63 }
0x1308   :  { %v7573_v47 = vpop.f32.mrf.mxu1 }
0x1309   :  { %v7574_v4 = vadd.f32 %v7573_v47, %v7521_v31 }
0x130a   :  { %v11961_v51 = vpop.f32.mrf.mxu1 }
0x130b   :  { %7582 = vadd.xlane.f32.xlu1 %v7574_v4  ;;  %v7580_v9 = vmul.f32 %v7574_v4, %v7574_v4 }
0x130c   :  { %v7576_v30 = vpop.f32.mrf.mxu1 }
0x130d   :  { %v7577_v55 = vadd.f32 %v7576_v30, %v7526_v41 }
0x130e   :  { %v11962_v54 = vpop.f32.mrf.mxu1 }
0x130f   :  { %7586 = vadd.xlane.f32.xlu1 %v7580_v9  ;;  %7584 = vadd.xlane.f32.xlu0 %v7577_v55  ;;  %v7581_v21 = vmul.f32 %v7577_v55, %v7577_v55 }
0x1320   :  { %7617 = vperm.xlu1 %12027, %v7516_v7  }
0x1325   :  { %7605 = vperm.xlu0 %12023, %v7517_v39  }
0x1329   :  { %12028 = vset.pattern.permute.xlu0 %v16930_v5 }
0x1344   :  { %7588 = vadd.xlane.f32.xlu1 %v7581_v21 }
0x1355   :  { %7621 = vperm.xlu1 %12027, %v7517_v39  }
0x1394   :  { %v7583_v43 = vpop.xlane.xlu1 %7582 }
0x1395   :  { %v7590_v13 = vmul.f32 0.0078125, %v7583_v43 }
0x1397   :  { %v7594_v32 = vmul.f32 %v7590_v13, %v7590_v13  ;;  %v7598_v2 = vsub.f32 %v7574_v4, %v7590_v13 }
0x1398   :  { %v7587_v24 = vpop.xlane.xlu1 %7586  ;;  %v7585_v22 = vpop.xlane.xlu0 %7584 }
0x1399   :  { %v7592_v15 = vmul.f32 0.0078125, %v7587_v24  ;;  %v7608_v59 = vmul.f32 %v7602_v18, %v7598_v2  ;;  %v7591_v45 = vmul.f32 0.0078125, %v7585_v22 }
0x139b   :  { %v7596_v0 = vsub.f32 %v7592_v15, %v7594_v32  ;;  %v7595_v62 = vmul.f32 %v7591_v45, %v7591_v45  ;;  %v7599_v29 = vsub.f32 %v7577_v55, %v7591_v45 }
0x139c   :  { %v7618_v48 = vpop.permute.xlu1 %7617 }
0x139d   :  { %v7610_v58 = vadd.f32 1e-05, %v7596_v0 }
0x139f   :  { %12315 = vrsqrt.f32 %v7610_v58 }
0x13a0   :  { %v7606_v19 = vpop.permute.xlu0 %7605 }
0x13a1   :  { %v7609_v33 = vmul.f32 %v7606_v19, %v7599_v29 }
0x13ac   :  { %v12316_v3 = vpop.eup %12315 }
0x13ad   :  { %v7614_v38 = vmul.f32 %v12316_v3, %v7608_v59 }
0x13af   :  { %v7624_v56 = vadd.f32 %v7618_v48, %v7614_v38 }
0x13b1   :  { %vm7626_vm7 = vcmp.ge.f32.partialorder %v7624_v56, 0.0  ;;  %v7628_v57 = vmul.f32 0.2, %v7624_v56 }
0x13b3   :  { %v7630_v1 = vsel %vm7626_vm7, %v7624_v56, %v7628_v57 }
0x13cd   :  { %v7589_v14 = vpop.xlane.xlu1 %7588 }
0x13ce   :  { %v7593_v49 = vmul.f32 0.0078125, %v7589_v14 }
0x13d0   :  { %v7597_v12 = vsub.f32 %v7593_v49, %v7595_v62 }
0x13d1   :  { %v7622_v46 = vpop.permute.xlu1 %7621 }
0x13d2   :  { %v7611_v36 = vadd.f32 1e-05, %v7597_v12 }
0x13d4   :  { %12317 = vrsqrt.f32 %v7611_v36 }
0x13e1   :  { %v12318_v44 = vpop.eup %12317 }
0x13e2   :  { %v7615_v25 = vmul.f32 %v12318_v44, %v7609_v33 }
0x13e4   :  { %v7625_v61 = vadd.f32 %v7622_v46, %v7615_v25 }
0x13e6   :  { %vm7627_vm4 = vcmp.ge.f32.partialorder %v7625_v61, 0.0  ;;  %v7629_v7 = vmul.f32 0.2, %v7625_v61 }
0x13e8   :  { %v7631_v39 = vsel %vm7627_vm4, %v7625_v61, %v7629_v7 }
0x13e9   :  { %12333 = dma.done.wait [#allocation9], 8192 }
0x13ea   :  { %12334 = vsyncadd [#allocation9], 4294959104  ;;  %v16648_v16 = vunpack.c.l.s8.bf16 %v16931_v53  ;;  %v16624_v20 = vunpack.c.l.s8.bf16 %v16932_v17  ;;  %12320 = vset.pattern.permute.xlu1 %v16851_v63  ;;  %12319 = vset.pattern.permute.xlu0 %v16851_v63  ;;  %v16647_v11 = vunpack.c.l.s8.bf16 %v16933_v27  ;;  %v16623_v37 = vunpack.c.l.s8.bf16 %v16934_v42  ;;  %v16935_v10 = vld [vmem:[#allocation13_spill] sm:$0xff]  ;;  %v16937_v23 = vld [vmem:[#allocation12_spill] sm:$0xff] }
0x13eb   :  { %7840 = vmatprep.subr.bf16.mxu1 %v16652_v26  ;;  %7926 = vmatprep.subr.bf16.mxu0 %v16628_v60  ;;  %v16642_v28 = vunpack.c.h.s8.bf16 %v16935_v10  ;;  %v16936_v6 = vld [vmem:[#allocation17_spill] sm:$0xff]  ;;  %v15553_v50 = vpack.c.bf16 %v7631_v39, %v7630_v1  ;;  %v16640_v52 = vunpack.c.h.s8.bf16 %v16937_v23  ;;  %v16938_v31 = vld [vmem:[#allocation16_spill] sm:$0xff]  ;;  %v16636_v4 = vunpack.c.l.s8.bf16 %v16935_v10  ;;  %v16939_v55 = vld [vmem:[#allocation47_spill] sm:$0xff] }
0x13ec   :  { %7841 = vmatpush1.bf16.msra.mxu1 %v16651_v8  ;;  %7927 = vmatpush1.bf16.msra.mxu0 %v16627_v34  ;;  %v16618_v35 = vunpack.c.h.s8.bf16 %v16936_v6  ;;  %v16616_v47 = vunpack.c.h.s8.bf16 %v16938_v31  ;;  %v16612_v51 = vunpack.c.l.s8.bf16 %v16936_v6  ;;  %v16635_v41 = vunpack.c.l.s8.bf16 %v16937_v23  ;;  %v16940_v54 = vld [vmem:[#allocation53_spill] sm:$0xff]  ;;  %v16941_v18 = vld [vmem:[#allocation46_spill] sm:$0xff]  ;;  %v16942_v13 = vld [vmem:[#allocation52_spill] sm:$0xff] }
0x13ed   :  { %7842 = vmatprep.subr.bf16.mxu1 %v16648_v16  ;;  %7928 = vmatprep.subr.bf16.mxu0 %v16624_v20  ;;  %v16611_v30 = vunpack.c.l.s8.bf16 %v16938_v31  ;;  %v16604_v9 = vunpack.c.h.s8.bf16 %v16939_v55  ;;  %v16603_v21 = vunpack.c.h.s8.bf16 %v16940_v54  ;;  %v16600_v43 = vunpack.c.h.s8.bf16 %v16941_v18  ;;  %v16943_v2 = vld [vmem:[#allocation15_spill] sm:$0xff]  ;;  %v16944_v3 = vld [vmem:[#allocation21_spill] sm:$0xff]  ;;  %v16945_v48 = vld [vmem:[#allocation14_spill] sm:$0xff] }
0x13ee   :  { %8745 = vrot.lane.b32.xlu0 %v15553_v50, %s12336_s2  ;;  %v16599_v24 = vunpack.c.h.s8.bf16 %v16942_v13  ;;  %v16594_v32 = vunpack.c.l.s8.bf16 %v16939_v55  ;;  %v16592_v15 = vunpack.c.l.s8.bf16 %v16940_v54  ;;  %v16588_v0 = vunpack.c.l.s8.bf16 %v16941_v18  ;;  %v16946_v57 = vld [vmem:[#allocation20_spill] sm:$0xff]  ;;  %v16947_v49 = vld [vmem:[#allocation51_spill] sm:$0xff]  ;;  %v16948_v36 = vld [vmem:[#allocation57_spill] sm:$0xff] }
0x13ef   :  { %v16587_v58 = vunpack.c.l.s8.bf16 %v16942_v13  ;;  %v16580_v59 = vunpack.c.h.s8.bf16 %v16943_v2  ;;  %v16579_v38 = vunpack.c.h.s8.bf16 %v16944_v3  ;;  %v16576_v56 = vunpack.c.h.s8.bf16 %v16945_v48  ;;  %v16949_v29 = vld [vmem:[#allocation50_spill] sm:$0xff]  ;;  %v16950_v44 = vld [vmem:[#allocation56_spill] sm:$0xff]  ;;  %v16984_v5 = vld [vmem:[#allocation41_spill] sm:$0xff] }
0x13f0   :  { %7843 = vmatpush1.bf16.msra.mxu1 %v16647_v11  ;;  %7929 = vmatpush1.bf16.msra.mxu0 %v16623_v37  ;;  %v16575_v1 = vunpack.c.h.s8.bf16 %v16946_v57  ;;  %v16570_v22 = vunpack.c.l.s8.bf16 %v16943_v2  ;;  %v16568_v45 = vunpack.c.l.s8.bf16 %v16944_v3  ;;  %v16564_v14 = vunpack.c.l.s8.bf16 %v16945_v48  ;;  %v16972_v37 = vld [vmem:[#allocation69_spill] sm:$0xff]  ;;  %v16974_v34 = vld [vmem:[#allocation68_spill] sm:$0xff] }
0x13f1   :  { %7844 = vmatprep.subr.bf16.mxu1 %v16642_v28  ;;  %7930 = vmatprep.subr.bf16.mxu0 %v16618_v35  ;;  %v16563_v62 = vunpack.c.l.s8.bf16 %v16946_v57  ;;  %v16562_v12 = vunpack.c.h.s8.bf16 %v16947_v49  ;;  %v16561_v19 = vunpack.c.h.s8.bf16 %v16948_v36  ;;  %v16566_v33 = vunpack.c.h.s8.bf16 %v16949_v29  ;;  %v16980_v11 = vld [vmem:[#allocation73_spill] sm:$0xff]  ;;  %v16982_v8 = vld [vmem:[#allocation72_spill] sm:$0xff] }
0x13f2   :  { %v16565_v25 = vunpack.c.h.s8.bf16 %v16950_v44  ;;  %v16567_v46 = vunpack.c.l.s8.bf16 %v16947_v49  ;;  %v16569_v61 = vunpack.c.l.s8.bf16 %v16948_v36  ;;  %v16572_v7 = vunpack.c.l.s8.bf16 %v16949_v29 }
0x13f3   :  { %v16571_v39 = vunpack.c.l.s8.bf16 %v16950_v44  ;;  %v16632_v20 = vunpack.c.h.s8.bf16 %v16972_v37  ;;  %v16637_v60 = vunpack.c.h.s8.bf16 %v16974_v34  ;;  %v16656_v16 = vunpack.c.h.s8.bf16 %v16980_v11 }
0x13f4   :  { %7845 = vmatpush1.bf16.msra.mxu1 %v16640_v52  ;;  %7931 = vmatpush1.bf16.msra.mxu0 %v16616_v47  ;;  %v16661_v26 = vunpack.c.h.s8.bf16 %v16982_v8  ;;  %v16669_v40 = vunpack.c.h.s8.bf16 %v16984_v5 }
0x13f5   :  { %7846 = vmatprep.subr.bf16.mxu1 %v16636_v4  ;;  %7932 = vmatprep.subr.bf16.mxu0 %v16612_v51 }
0x13f8   :  { %7847 = vmatpush1.bf16.msra.mxu1 %v16635_v41  ;;  %7933 = vmatpush1.bf16.msra.mxu0 %v16611_v30  ;;  %v16968_v30 = vld [vmem:[#allocation33_spill] sm:$0xff] }
0x13f9   :  { %7883 = vmatprep.subr.bf16.mxu1 %v16604_v9  ;;  %8012 = vmatprep.subr.bf16.mxu0 %v16603_v21  ;;  %v16966_v21 = vld [vmem:[#allocation64_spill] sm:$0xff]  ;;  %v16621_v51 = vunpack.c.h.s8.bf16 %v16968_v30  ;;  %v16629_v35 = vunpack.c.l.s8.bf16 %v16968_v30  ;;  %v16976_v41 = vld [vmem:[#allocation37_spill] sm:$0xff] }
0x13fa   :  { %v16613_v9 = vunpack.c.h.s8.bf16 %v16966_v21  ;;  %v16645_v4 = vunpack.c.h.s8.bf16 %v16976_v41  ;;  %v16653_v28 = vunpack.c.l.s8.bf16 %v16976_v41 }
0x13fb   :  { %11031 = vmatmul.mubr.msk.bf16.vlgmr.msra.gmra.mxu1 %vm879_vm3, %v15553_v50  ;;  %11033 = vmatmul.mubr.msk.bf16.vlgmr.msra.gmra.mxu0 %vm879_vm3, %v15553_v50 }
0x13fc   :  { %7884 = vmatpush1.bf16.msra.mxu1 %v16600_v43  ;;  %8013 = vmatpush1.bf16.msra.mxu0 %v16599_v24  ;;  %v16964_v24 = vld [vmem:[#allocation65_spill] sm:$0xff] }
0x13fd   :  { %7885 = vmatprep.subr.bf16.mxu1 %v16594_v32  ;;  %8014 = vmatprep.subr.bf16.mxu0 %v16592_v15  ;;  %v16608_v43 = vunpack.c.h.s8.bf16 %v16964_v24 }
0x13fe   :  { %7907 = vmatprep.mubr.bf16.mxu1 %v16851_v63  ;;  %8036 = vmatprep.mubr.bf16.mxu0 %v16851_v63 }
0x1400   :  { %7886 = vmatpush1.bf16.msra.mxu1 %v16588_v0  ;;  %8015 = vmatpush1.bf16.msra.mxu0 %v16587_v58  ;;  %v16960_v58 = vld [vmem:[#allocation29_spill] sm:$0xff] }
0x1401   :  { %7887 = vmatprep.subr.bf16.mxu1 %v16580_v59  ;;  %8016 = vmatprep.subr.bf16.mxu0 %v16579_v38  ;;  %v16958_v38 = vld [vmem:[#allocation60_spill] sm:$0xff]  ;;  %v16597_v0 = vunpack.c.h.s8.bf16 %v16960_v58  ;;  %v16605_v32 = vunpack.c.l.s8.bf16 %v16960_v58 }
0x1402   :  { %v16589_v59 = vunpack.c.h.s8.bf16 %v16958_v38 }
0x1404   :  { %7888 = vmatpush1.bf16.msra.mxu1 %v16576_v56  ;;  %8017 = vmatpush1.bf16.msra.mxu0 %v16575_v1  ;;  %v16956_v1 = vld [vmem:[#allocation61_spill] sm:$0xff] }
0x1405   :  { %7889 = vmatprep.subr.bf16.mxu1 %v16570_v22  ;;  %8018 = vmatprep.subr.bf16.mxu0 %v16568_v45  ;;  %v16584_v56 = vunpack.c.h.s8.bf16 %v16956_v1 }
0x1408   :  { %7890 = vmatpush1.bf16.msra.mxu1 %v16564_v14  ;;  %8019 = vmatpush1.bf16.msra.mxu0 %v16563_v62  ;;  %v16952_v62 = vld [vmem:[#allocation25_spill] sm:$0xff] }
0x1409   :  { %7969 = vmatprep.subr.bf16.mxu1 %v16562_v12  ;;  %8098 = vmatprep.subr.bf16.mxu0 %v16561_v19  ;;  %v16951_v19 = vld [vmem:[#allocation19_spill] sm:$0xff]  ;;  %v16573_v14 = vunpack.c.h.s8.bf16 %v16952_v62  ;;  %v16581_v22 = vunpack.c.l.s8.bf16 %v16952_v62 }
0x140a   :  { %v16574_v12 = vunpack.c.h.s8.bf16 %v16951_v19 }
0x140b   :  { %11032 = vmatmul.mubr.msk.bf16.vlgmr.msra.gmra.mxu1 %vm879_vm3, %v15553_v50  ;;  %11035 = vmatmul.mubr.msk.bf16.vlgmr.msra.gmra.mxu0 %vm879_vm3, %v15553_v50 }
0x140c   :  { %7970 = vmatpush1.bf16.msra.mxu1 %v16566_v33  ;;  %8099 = vmatpush1.bf16.msra.mxu0 %v16565_v25  ;;  %v16953_v25 = vld [vmem:[#allocation18_spill] sm:$0xff] }
0x140d   :  { %7971 = vmatprep.subr.bf16.mxu1 %v16567_v46  ;;  %8100 = vmatprep.subr.bf16.mxu0 %v16569_v61  ;;  %v16578_v33 = vunpack.c.h.s8.bf16 %v16953_v25  ;;  %v16954_v46 = vld [vmem:[#allocation24_spill] sm:$0xff]  ;;  %v16582_v61 = vunpack.c.l.s8.bf16 %v16951_v19 }
0x140e   :  { %7993 = vmatprep.mubr.bf16.mxu1 %v16851_v63  ;;  %8122 = vmatprep.mubr.bf16.mxu0 %v16851_v63  ;;  %v16577_v45 = vunpack.c.h.s8.bf16 %v16954_v46 }
0x1410   :  { %7972 = vmatpush1.bf16.msra.mxu1 %v16572_v7  ;;  %8101 = vmatpush1.bf16.msra.mxu0 %v16571_v39  ;;  %v16586_v39 = vunpack.c.l.s8.bf16 %v16953_v25  ;;  %v16585_v7 = vunpack.c.l.s8.bf16 %v16954_v46 }
0x1411   :  { %7973 = vmatprep.subr.bf16.mxu1 %v16574_v12  ;;  %8102 = vmatprep.subr.bf16.mxu0 %v16573_v14  ;;  %v16955_v14 = vld [vmem:[#allocation55_spill] sm:$0xff] }
0x1412   :  { %v16583_v12 = vunpack.c.h.s8.bf16 %v16955_v14 }
0x1414   :  { %7974 = vmatpush1.bf16.msra.mxu1 %v16578_v33  ;;  %8103 = vmatpush1.bf16.msra.mxu0 %v16577_v45  ;;  %v16957_v45 = vld [vmem:[#allocation54_spill] sm:$0xff] }
0x1415   :  { %7975 = vmatprep.subr.bf16.mxu1 %v16582_v61  ;;  %8104 = vmatprep.subr.bf16.mxu0 %v16581_v22  ;;  %v16590_v33 = vunpack.c.h.s8.bf16 %v16957_v45  ;;  %v16591_v22 = vunpack.c.l.s8.bf16 %v16955_v14  ;;  %v16593_v61 = vunpack.c.l.s8.bf16 %v16956_v1 }
0x1418   :  { %7976 = vmatpush1.bf16.msra.mxu1 %v16586_v39  ;;  %8105 = vmatpush1.bf16.msra.mxu0 %v16585_v7  ;;  %v16959_v7 = vld [vmem:[#allocation23_spill] sm:$0xff] }
0x1419   :  { %8055 = vmatprep.subr.bf16.mxu1 %v16583_v12  ;;  %8184 = vmatprep.subr.bf16.mxu0 %v16584_v56  ;;  %v16596_v12 = vunpack.c.l.s8.bf16 %v16957_v45  ;;  %v16595_v56 = vunpack.c.l.s8.bf16 %v16958_v38  ;;  %v16598_v39 = vunpack.c.h.s8.bf16 %v16959_v7 }
0x141b   :  { %11034 = vmatmul.mubr.msk.bf16.vlgmr.msra.gmra.mxu1 %vm879_vm3, %v15553_v50  ;;  %11037 = vmatmul.mubr.msk.bf16.vlgmr.msra.gmra.mxu0 %vm879_vm3, %v15553_v50 }
0x141c   :  { %8056 = vmatpush1.bf16.msra.mxu1 %v16590_v33  ;;  %8185 = vmatpush1.bf16.msra.mxu0 %v16589_v59  ;;  %v16961_v59 = vld [vmem:[#allocation22_spill] sm:$0xff] }
0x141d   :  { %8057 = vmatprep.subr.bf16.mxu1 %v16591_v22  ;;  %8186 = vmatprep.subr.bf16.mxu0 %v16593_v61  ;;  %v16602_v33 = vunpack.c.h.s8.bf16 %v16961_v59  ;;  %v16962_v22 = vld [vmem:[#allocation28_spill] sm:$0xff]  ;;  %v16606_v61 = vunpack.c.l.s8.bf16 %v16959_v7 }
0x141e   :  { %8079 = vmatprep.mubr.bf16.mxu1 %v16851_v63  ;;  %8208 = vmatprep.mubr.bf16.mxu0 %v16851_v63  ;;  %v16601_v15 = vunpack.c.h.s8.bf16 %v16962_v22 }
0x1420   :  { %8058 = vmatpush1.bf16.msra.mxu1 %v16596_v12  ;;  %8187 = vmatpush1.bf16.msra.mxu0 %v16595_v56  ;;  %v16610_v56 = vunpack.c.l.s8.bf16 %v16961_v59  ;;  %v16609_v12 = vunpack.c.l.s8.bf16 %v16962_v22 }
0x1421   :  { %8059 = vmatprep.subr.bf16.mxu1 %v16598_v39  ;;  %8188 = vmatprep.subr.bf16.mxu0 %v16597_v0  ;;  %v16963_v0 = vld [vmem:[#allocation59_spill] sm:$0xff] }
0x1422   :  { %v16607_v39 = vunpack.c.h.s8.bf16 %v16963_v0 }
0x1424   :  { %8060 = vmatpush1.bf16.msra.mxu1 %v16602_v33  ;;  %8189 = vmatpush1.bf16.msra.mxu0 %v16601_v15  ;;  %v16965_v15 = vld [vmem:[#allocation58_spill] sm:$0xff] }
0x1425   :  { %8061 = vmatprep.subr.bf16.mxu1 %v16606_v61  ;;  %8190 = vmatprep.subr.bf16.mxu0 %v16605_v32  ;;  %v16614_v33 = vunpack.c.h.s8.bf16 %v16965_v15  ;;  %v16615_v32 = vunpack.c.l.s8.bf16 %v16963_v0  ;;  %v16617_v61 = vunpack.c.l.s8.bf16 %v16964_v24 }
0x1428   :  { %8062 = vmatpush1.bf16.msra.mxu1 %v16610_v56  ;;  %8191 = vmatpush1.bf16.msra.mxu0 %v16609_v12  ;;  %v16967_v12 = vld [vmem:[#allocation27_spill] sm:$0xff] }
0x1429   :  { %8141 = vmatprep.subr.bf16.mxu1 %v16607_v39  ;;  %8270 = vmatprep.subr.bf16.mxu0 %v16608_v43  ;;  %v16620_v39 = vunpack.c.l.s8.bf16 %v16965_v15  ;;  %v16619_v43 = vunpack.c.l.s8.bf16 %v16966_v21  ;;  %v16622_v56 = vunpack.c.h.s8.bf16 %v16967_v12 }
0x142b   :  { %11036 = vmatmul.mubr.msk.bf16.vlgmr.msra.gmra.mxu1 %vm879_vm3, %v15553_v50  ;;  %11039 = vmatmul.mubr.msk.bf16.vlgmr.msra.gmra.mxu0 %vm879_vm3, %v15553_v50 }
0x142c   :  { %8142 = vmatpush1.bf16.msra.mxu1 %v16614_v33  ;;  %8271 = vmatpush1.bf16.msra.mxu0 %v16613_v9  ;;  %v16969_v9 = vld [vmem:[#allocation26_spill] sm:$0xff] }
0x142d   :  { %8143 = vmatprep.subr.bf16.mxu1 %v16615_v32  ;;  %8272 = vmatprep.subr.bf16.mxu0 %v16617_v61  ;;  %v16626_v33 = vunpack.c.h.s8.bf16 %v16969_v9  ;;  %v16970_v32 = vld [vmem:[#allocation32_spill] sm:$0xff]  ;;  %v16630_v61 = vunpack.c.l.s8.bf16 %v16967_v12 }
0x142e   :  { %8165 = vmatprep.mubr.bf16.mxu1 %v16851_v63  ;;  %8294 = vmatprep.mubr.bf16.mxu0 %v16851_v63  ;;  %v16625_v47 = vunpack.c.h.s8.bf16 %v16970_v32 }
0x1430   :  { %8144 = vmatpush1.bf16.msra.mxu1 %v16620_v39  ;;  %8273 = vmatpush1.bf16.msra.mxu0 %v16619_v43  ;;  %v16634_v43 = vunpack.c.l.s8.bf16 %v16969_v9  ;;  %v16633_v39 = vunpack.c.l.s8.bf16 %v16970_v32 }
0x1431   :  { %8145 = vmatprep.subr.bf16.mxu1 %v16622_v56  ;;  %8274 = vmatprep.subr.bf16.mxu0 %v16621_v51  ;;  %v16971_v51 = vld [vmem:[#allocation63_spill] sm:$0xff] }
0x1432   :  { %v16631_v56 = vunpack.c.h.s8.bf16 %v16971_v51 }
0x1434   :  { %8146 = vmatpush1.bf16.msra.mxu1 %v16626_v33  ;;  %8275 = vmatpush1.bf16.msra.mxu0 %v16625_v47  ;;  %v16973_v47 = vld [vmem:[#allocation62_spill] sm:$0xff] }
0x1435   :  { %8147 = vmatprep.subr.bf16.mxu1 %v16630_v61  ;;  %8276 = vmatprep.subr.bf16.mxu0 %v16629_v35  ;;  %v16638_v33 = vunpack.c.h.s8.bf16 %v16973_v47  ;;  %v16639_v35 = vunpack.c.l.s8.bf16 %v16971_v51  ;;  %v16641_v61 = vunpack.c.l.s8.bf16 %v16972_v37 }
0x1438   :  { %8148 = vmatpush1.bf16.msra.mxu1 %v16634_v43  ;;  %8277 = vmatpush1.bf16.msra.mxu0 %v16633_v39  ;;  %v16975_v39 = vld [vmem:[#allocation31_spill] sm:$0xff] }
0x1439   :  { %8227 = vmatprep.subr.bf16.mxu1 %v16631_v56  ;;  %8356 = vmatprep.subr.bf16.mxu0 %v16632_v20  ;;  %v16644_v56 = vunpack.c.l.s8.bf16 %v16973_v47  ;;  %v16643_v20 = vunpack.c.l.s8.bf16 %v16974_v34  ;;  %v16646_v43 = vunpack.c.h.s8.bf16 %v16975_v39 }
0x143b   :  { %11038 = vmatmul.mubr.msk.bf16.vlgmr.msra.gmra.mxu1 %vm879_vm3, %v15553_v50  ;;  %11041 = vmatmul.mubr.msk.bf16.vlgmr.msra.gmra.mxu0 %vm879_vm3, %v15553_v50 }
0x143c   :  { %8228 = vmatpush1.bf16.msra.mxu1 %v16638_v33  ;;  %8357 = vmatpush1.bf16.msra.mxu0 %v16637_v60  ;;  %v16977_v60 = vld [vmem:[#allocation30_spill] sm:$0xff] }
0x143d   :  { %8229 = vmatprep.subr.bf16.mxu1 %v16639_v35  ;;  %8358 = vmatprep.subr.bf16.mxu0 %v16641_v61  ;;  %v16650_v33 = vunpack.c.h.s8.bf16 %v16977_v60  ;;  %v16978_v35 = vld [vmem:[#allocation36_spill] sm:$0xff]  ;;  %v16654_v61 = vunpack.c.l.s8.bf16 %v16975_v39 }
0x143e   :  { %8251 = vmatprep.mubr.bf16.mxu1 %v16851_v63  ;;  %8380 = vmatprep.mubr.bf16.mxu0 %v16851_v63  ;;  %v16649_v52 = vunpack.c.h.s8.bf16 %v16978_v35 }
0x1440   :  { %8230 = vmatpush1.bf16.msra.mxu1 %v16644_v56  ;;  %8359 = vmatpush1.bf16.msra.mxu0 %v16643_v20  ;;  %v16658_v20 = vunpack.c.l.s8.bf16 %v16977_v60  ;;  %v16657_v56 = vunpack.c.l.s8.bf16 %v16978_v35 }
0x1441   :  { %8231 = vmatprep.subr.bf16.mxu1 %v16646_v43  ;;  %8360 = vmatprep.subr.bf16.mxu0 %v16645_v4  ;;  %v16979_v4 = vld [vmem:[#allocation67_spill] sm:$0xff] }
0x1442   :  { %v16655_v43 = vunpack.c.h.s8.bf16 %v16979_v4 }
0x1444   :  { %8232 = vmatpush1.bf16.msra.mxu1 %v16650_v33  ;;  %8361 = vmatpush1.bf16.msra.mxu0 %v16649_v52  ;;  %v16981_v52 = vld [vmem:[#allocation66_spill] sm:$0xff] }
0x1445   :  { %8233 = vmatprep.subr.bf16.mxu1 %v16654_v61  ;;  %8362 = vmatprep.subr.bf16.mxu0 %v16653_v28  ;;  %v16662_v33 = vunpack.c.h.s8.bf16 %v16981_v52  ;;  %v16663_v28 = vunpack.c.l.s8.bf16 %v16979_v4  ;;  %v16665_v61 = vunpack.c.l.s8.bf16 %v16980_v11  ;;  %v16678_v11 = vunpack.c.l.s8.bf16 %v16984_v5 }
0x1448   :  { %8234 = vmatpush1.bf16.msra.mxu1 %v16658_v20  ;;  %8363 = vmatpush1.bf16.msra.mxu0 %v16657_v56  ;;  %v16983_v56 = vld [vmem:[#allocation35_spill] sm:$0xff] }
0x1449   :  { %8313 = vmatprep.subr.bf16.mxu1 %v16655_v43  ;;  %8442 = vmatprep.subr.bf16.mxu0 %v16656_v16  ;;  %v16668_v43 = vunpack.c.l.s8.bf16 %v16981_v52  ;;  %v16667_v16 = vunpack.c.l.s8.bf16 %v16982_v8  ;;  %v16670_v20 = vunpack.c.h.s8.bf16 %v16983_v56  ;;  %v16989_v8 = vunpack.c.h.s8.bf16 %v16931_v53 }
0x144b   :  { %11040 = vmatmul.mubr.msk.bf16.vlgmr.msra.gmra.mxu1 %vm879_vm3, %v15553_v50  ;;  %11043 = vmatmul.mubr.msk.bf16.vlgmr.msra.gmra.mxu0 %vm879_vm3, %v15553_v50 }
0x144c   :  { %8314 = vmatpush1.bf16.msra.mxu1 %v16662_v33  ;;  %8443 = vmatpush1.bf16.msra.mxu0 %v16661_v26  ;;  %v16985_v26 = vld [vmem:[#allocation34_spill] sm:$0xff] }
0x144d   :  { %8315 = vmatprep.subr.bf16.mxu1 %v16663_v28  ;;  %8444 = vmatprep.subr.bf16.mxu0 %v16665_v61  ;;  %v16671_v33 = vunpack.c.h.s8.bf16 %v16985_v26  ;;  %v16986_v28 = vld [vmem:[#allocation40_spill] sm:$0xff]  ;;  %v16674_v61 = vunpack.c.l.s8.bf16 %v16983_v56 }
0x144e   :  { %8337 = vmatprep.mubr.bf16.mxu1 %v16851_v63  ;;  %8466 = vmatprep.mubr.bf16.mxu0 %v16851_v63  ;;  %v16672_v4 = vunpack.c.h.s8.bf16 %v16986_v28 }
0x1450   :  { %8316 = vmatpush1.bf16.msra.mxu1 %v16668_v43  ;;  %8445 = vmatpush1.bf16.msra.mxu0 %v16667_v16  ;;  %v16676_v16 = vunpack.c.l.s8.bf16 %v16985_v26  ;;  %v16675_v43 = vunpack.c.l.s8.bf16 %v16986_v28 }
0x1451   :  { %8317 = vmatprep.subr.bf16.mxu1 %v16670_v20  ;;  %8446 = vmatprep.subr.bf16.mxu0 %v16669_v40  ;;  %v16987_v40 = vld [vmem:[#allocation71_spill] sm:$0xff] }
0x1452   :  { %v16677_v20 = vunpack.c.h.s8.bf16 %v16987_v40 }
0x1454   :  { %8318 = vmatpush1.bf16.msra.mxu1 %v16671_v33  ;;  %8447 = vmatpush1.bf16.msra.mxu0 %v16672_v4  ;;  %v16988_v33 = vld [vmem:[#allocation70_spill] sm:$0xff] }
0x1455   :  { %8319 = vmatprep.subr.bf16.mxu1 %v16674_v61  ;;  %8448 = vmatprep.subr.bf16.mxu0 %v16678_v11  ;;  %v16679_v4 = vunpack.c.h.s8.bf16 %v16988_v33  ;;  %v16681_v61 = vunpack.c.l.s8.bf16 %v16987_v40 }
0x1458   :  { %8320 = vmatpush1.bf16.msra.mxu1 %v16676_v16  ;;  %8449 = vmatpush1.bf16.msra.mxu0 %v16675_v43  ;;  %v16990_v43 = vunpack.c.h.s8.bf16 %v16933_v27  ;;  %v16682_v16 = vunpack.c.l.s8.bf16 %v16988_v33  ;;  %v17000_v33 = vld [vmem:[#allocation74_spill] sm:$0xff] }
0x1459   :  { %8399 = vmatprep.subr.bf16.mxu1 %v16677_v20  ;;  %8758 = vmatprep.subr.bf16.mxu0 %v16989_v8  ;;  %v16991_v8 = vunpack.c.l.s8.bf16 %v16931_v53  ;;  %v16992_v20 = vld [vmem:[#allocation39_spill] sm:$0xff]  ;;  %v16995_v53 = vunpack.c.h.s8.bf16 %v16935_v10 }
0x145a   :  { %v16683_v11 = vunpack.c.h.s8.bf16 %v16992_v20 }
0x145b   :  { %11042 = vmatmul.mubr.msk.bf16.vlgmr.msra.gmra.mxu1 %vm879_vm3, %v15553_v50  ;;  %11045 = vmatmul.mubr.msk.bf16.vlgmr.msra.gmra.mxu0 %vm879_vm3, %v15553_v50 }
0x145c   :  { %8400 = vmatpush1.bf16.msra.mxu1 %v16679_v4  ;;  %8759 = vmatpush1.bf16.msra.mxu0 %v16990_v43  ;;  %v16993_v4 = vunpack.c.l.s8.bf16 %v16933_v27  ;;  %v16994_v43 = vld [vmem:[#allocation38_spill] sm:$0xff]  ;;  %v16997_v27 = vunpack.c.l.s8.bf16 %v16935_v10 }
0x145d   :  { %8401 = vmatprep.subr.bf16.mxu1 %v16681_v61  ;;  %8760 = vmatprep.subr.bf16.mxu0 %v16991_v8  ;;  %v16684_v28 = vunpack.c.h.s8.bf16 %v16994_v43  ;;  %v16686_v8 = vunpack.c.l.s8.bf16 %v16992_v20  ;;  %v16996_v61 = vunpack.c.h.s8.bf16 %v16937_v23 }
0x145e   :  { %8423 = vmatprep.mubr.bf16.mxu1 %v16851_v63  ;;  %8782 = vmatprep.mubr.bf16.mxu0 %v16851_v63 }
0x1460   :  { %8402 = vmatpush1.bf16.msra.mxu1 %v16682_v16  ;;  %8761 = vmatpush1.bf16.msra.mxu0 %v16993_v4  ;;  %v16689_v16 = vunpack.c.l.s8.bf16 %v16994_v43  ;;  %v16998_v4 = vld [vmem:[#allocation75_spill] sm:$0xff] }
0x1461   :  { %8403 = vmatprep.subr.bf16.mxu1 %v16683_v11  ;;  %8762 = vmatprep.subr.bf16.mxu0 %v16995_v53  ;;  %v16687_v11 = vunpack.c.h.s8.bf16 %v16998_v4  ;;  %v16999_v53 = vunpack.c.l.s8.bf16 %v16937_v23  ;;  %v16690_v10 = vunpack.c.l.s8.bf16 %v16998_v4  ;;  %v17002_v23 = vunpack.c.h.s8.bf16 %v16934_v42 }
0x1464   :  { %8404 = vmatpush1.bf16.msra.mxu1 %v16684_v28  ;;  %8763 = vmatpush1.bf16.msra.mxu0 %v16996_v61  ;;  %v15954_v28 = vpop.permute.xlu0 %8745  ;;  %v16688_v61 = vunpack.c.h.s8.bf16 %v17000_v33 }
0x1465   :  { %8405 = vmatprep.subr.bf16.mxu1 %v16686_v8  ;;  %8764 = vmatprep.subr.bf16.mxu0 %v16997_v27  ;;  %v17001_v8 = vunpack.c.h.s8.bf16 %v16932_v17  ;;  %v16691_v27 = vunpack.c.l.s8.bf16 %v17000_v33 }
0x1468   :  { %8406 = vmatpush1.bf16.msra.mxu1 %v16689_v16  ;;  %8765 = vmatpush1.bf16.msra.mxu0 %v16999_v53  ;;  %v17004_v53 = vld [vmem:[#allocation43_spill] sm:$0xff] }
0x1469   :  { %8485 = vmatprep.subr.bf16.mxu1 %v16687_v11  ;;  %8844 = vmatprep.subr.bf16.mxu0 %v17001_v8  ;;  %v17003_v8 = vunpack.c.l.s8.bf16 %v16932_v17  ;;  %v7763_v11 = vunpack.c.h.s8.bf16 %v17004_v53  ;;  %v17007_v17 = vunpack.c.h.s8.bf16 %v16936_v6 }
0x146b   :  { %11044 = vmatmul.mubr.msk.bf16.vlgmr.msra.gmra.mxu1 %vm879_vm3, %v15553_v50  ;;  %11079 = vmatmul.mubr.msk.bf16.vlgmr.msra.gmra.mxu0 %vm879_vm3, %v15954_v28 }
0x146c   :  { %8486 = vmatpush1.bf16.msra.mxu1 %v16688_v61  ;;  %8845 = vmatpush1.bf16.msra.mxu0 %v17002_v23  ;;  %v17005_v61 = vunpack.c.l.s8.bf16 %v16934_v42  ;;  %v17006_v23 = vld [vmem:[#allocation42_spill] sm:$0xff]  ;;  %v17009_v42 = vunpack.c.l.s8.bf16 %v16936_v6  ;;  %v17013_v6 = vunpack.c.h.s8.bf16 %v16941_v18 }
0x146d   :  { %8487 = vmatprep.subr.bf16.mxu1 %v16690_v10  ;;  %8846 = vmatprep.subr.bf16.mxu0 %v17003_v8  ;;  %v16692_v16 = vunpack.c.h.s8.bf16 %v17006_v23  ;;  %v7731_v8 = vunpack.c.l.s8.bf16 %v17004_v53  ;;  %v17008_v10 = vunpack.c.h.s8.bf16 %v16938_v31 }
0x146e   :  { %8509 = vmatprep.mubr.bf16.mxu1 %v16851_v63  ;;  %8868 = vmatprep.mubr.bf16.mxu0 %v16851_v63 }
0x1470   :  { %8488 = vmatpush1.bf16.msra.mxu1 %v16691_v27  ;;  %8847 = vmatpush1.bf16.msra.mxu0 %v17005_v61  ;;  %v7730_v27 = vunpack.c.l.s8.bf16 %v17006_v23  ;;  %v17010_v61 = vunpack.c.l.s8.bf16 %v16938_v31  ;;  %v17015_v31 = vunpack.c.l.s8.bf16 %v16939_v55 }
0x1471   :  { %8489 = vmatprep.subr.bf16.mxu1 %v7763_v11  ;;  %8848 = vmatprep.subr.bf16.mxu0 %v17007_v17  ;;  %v17011_v17 = vunpack.c.h.s8.bf16 %v16939_v55  ;;  %v17021_v55 = vunpack.c.h.s8.bf16 %v16945_v48 }
0x1474   :  { %8490 = vmatpush1.bf16.msra.mxu1 %v16692_v16  ;;  %8849 = vmatpush1.bf16.msra.mxu0 %v17008_v10  ;;  %v17012_v16 = vunpack.c.h.s8.bf16 %v16940_v54  ;;  %v17014_v10 = vunpack.c.h.s8.bf16 %v16942_v13 }
0x1475   :  { %8491 = vmatprep.subr.bf16.mxu1 %v7731_v8  ;;  %8850 = vmatprep.subr.bf16.mxu0 %v17009_v42  ;;  %v17016_v42 = vunpack.c.l.s8.bf16 %v16940_v54  ;;  %v17022_v54 = vunpack.c.h.s8.bf16 %v16946_v57 }
0x1478   :  { %8492 = vmatpush1.bf16.msra.mxu1 %v7730_v27  ;;  %8851 = vmatpush1.bf16.msra.mxu0 %v17010_v61  ;;  %v17019_v61 = vunpack.c.h.s8.bf16 %v16943_v2 }
0x1479   :  { %8801 = vmatprep.subr.bf16.mxu1 %v17011_v17  ;;  %8930 = vmatprep.subr.bf16.mxu0 %v17012_v16  ;;  %v17017_v16 = vunpack.c.l.s8.bf16 %v16941_v18  ;;  %v17020_v17 = vunpack.c.h.s8.bf16 %v16944_v3  ;;  %v17024_v18 = vunpack.c.l.s8.bf16 %v16944_v3  ;;  %v17030_v3 = vunpack.c.h.s8.bf16 %v16950_v44 }
0x147b   :  { %11046 = vmatmul.mubr.msk.bf16.vlgmr.msra.gmra.mxu1 %vm879_vm3, %v15553_v50  ;;  %11081 = vmatmul.mubr.msk.bf16.vlgmr.msra.gmra.mxu0 %vm879_vm3, %v15954_v28  ;;  %v17018_v50 = vunpack.c.l.s8.bf16 %v16942_v13  ;;  %v17025_v13 = vunpack.c.l.s8.bf16 %v16945_v48  ;;  %v17031_v48 = vunpack.c.l.s8.bf16 %v16947_v49 }
0x147c   :  { %8802 = vmatpush1.bf16.msra.mxu1 %v17013_v6  ;;  %8931 = vmatpush1.bf16.msra.mxu0 %v17014_v10  ;;  %v17023_v6 = vunpack.c.l.s8.bf16 %v16943_v2  ;;  %v17026_v10 = vunpack.c.l.s8.bf16 %v16946_v57  ;;  %v17029_v2 = vunpack.c.h.s8.bf16 %v16949_v29  ;;  %v17032_v57 = vunpack.c.l.s8.bf16 %v16948_v36 }
0x147d   :  { %8803 = vmatprep.subr.bf16.mxu1 %v17015_v31  ;;  %8932 = vmatprep.subr.bf16.mxu0 %v17016_v42  ;;  %v17027_v31 = vunpack.c.h.s8.bf16 %v16947_v49  ;;  %v17028_v42 = vunpack.c.h.s8.bf16 %v16948_v36  ;;  %v17037_v49 = vunpack.c.h.s8.bf16 %v16953_v25  ;;  %v17038_v36 = vunpack.c.h.s8.bf16 %v16954_v46 }
0x147e   :  { %8825 = vmatprep.mubr.bf16.mxu1 %v16851_v63  ;;  %8954 = vmatprep.mubr.bf16.mxu0 %v16851_v63 }
0x1480   :  { %8804 = vmatpush1.bf16.msra.mxu1 %v17017_v16  ;;  %8933 = vmatpush1.bf16.msra.mxu0 %v17018_v50  ;;  %v17033_v16 = vunpack.c.l.s8.bf16 %v16949_v29  ;;  %v17034_v50 = vunpack.c.l.s8.bf16 %v16950_v44  ;;  %v17040_v29 = vunpack.c.l.s8.bf16 %v16952_v62  ;;  %v17041_v44 = vunpack.c.l.s8.bf16 %v16953_v25 }
0x1481   :  { %8805 = vmatprep.subr.bf16.mxu1 %v17019_v61  ;;  %8934 = vmatprep.subr.bf16.mxu0 %v17020_v17  ;;  %v17035_v61 = vunpack.c.h.s8.bf16 %v16951_v19  ;;  %v17036_v17 = vunpack.c.h.s8.bf16 %v16952_v62  ;;  %v17045_v62 = vunpack.c.h.s8.bf16 %v16957_v45  ;;  %v17047_v25 = vunpack.c.l.s8.bf16 %v16955_v14 }
0x1484   :  { %8806 = vmatpush1.bf16.msra.mxu1 %v17021_v55  ;;  %8935 = vmatpush1.bf16.msra.mxu0 %v17022_v54  ;;  %v17039_v55 = vunpack.c.l.s8.bf16 %v16951_v19  ;;  %v17042_v54 = vunpack.c.l.s8.bf16 %v16954_v46  ;;  %v17046_v19 = vunpack.c.h.s8.bf16 %v16958_v38  ;;  %v17048_v46 = vunpack.c.l.s8.bf16 %v16956_v1 }
0x1485   :  { %8807 = vmatprep.subr.bf16.mxu1 %v17023_v6  ;;  %8936 = vmatprep.subr.bf16.mxu0 %v17024_v18  ;;  %v17043_v6 = vunpack.c.h.s8.bf16 %v16955_v14  ;;  %v17044_v18 = vunpack.c.h.s8.bf16 %v16956_v1  ;;  %v17053_v14 = vunpack.c.h.s8.bf16 %v16961_v59  ;;  %v17054_v1 = vunpack.c.h.s8.bf16 %v16962_v22 }
0x1488   :  { %8808 = vmatpush1.bf16.msra.mxu1 %v17025_v13  ;;  %8937 = vmatpush1.bf16.msra.mxu0 %v17026_v10  ;;  %v17049_v13 = vunpack.c.l.s8.bf16 %v16957_v45  ;;  %v17050_v10 = vunpack.c.l.s8.bf16 %v16958_v38  ;;  %v17056_v45 = vunpack.c.l.s8.bf16 %v16960_v58  ;;  %v17057_v38 = vunpack.c.l.s8.bf16 %v16961_v59 }
0x1489   :  { %8887 = vmatprep.subr.bf16.mxu1 %v17027_v31  ;;  %9016 = vmatprep.subr.bf16.mxu0 %v17028_v42  ;;  %v17051_v31 = vunpack.c.h.s8.bf16 %v16959_v7  ;;  %v17052_v42 = vunpack.c.h.s8.bf16 %v16960_v58  ;;  %v17061_v58 = vunpack.c.h.s8.bf16 %v16965_v15  ;;  %v17062_v59 = vunpack.c.h.s8.bf16 %v16966_v21 }
0x148b   :  { %11080 = vmatmul.mubr.msk.bf16.vlgmr.msra.gmra.mxu1 %vm879_vm3, %v15954_v28  ;;  %11083 = vmatmul.mubr.msk.bf16.vlgmr.msra.gmra.mxu0 %vm879_vm3, %v15954_v28 }
0x148c   :  { %8888 = vmatpush1.bf16.msra.mxu1 %v17029_v2  ;;  %9017 = vmatpush1.bf16.msra.mxu0 %v17030_v3  ;;  %v17055_v2 = vunpack.c.l.s8.bf16 %v16959_v7  ;;  %v17058_v3 = vunpack.c.l.s8.bf16 %v16962_v22  ;;  %v17063_v22 = vunpack.c.l.s8.bf16 %v16963_v0  ;;  %v17064_v7 = vunpack.c.l.s8.bf16 %v16964_v24 }
0x148d   :  { %8889 = vmatprep.subr.bf16.mxu1 %v17031_v48  ;;  %9018 = vmatprep.subr.bf16.mxu0 %v17032_v57  ;;  %v17059_v48 = vunpack.c.h.s8.bf16 %v16963_v0  ;;  %v17060_v57 = vunpack.c.h.s8.bf16 %v16964_v24  ;;  %v17069_v0 = vunpack.c.h.s8.bf16 %v16969_v9  ;;  %v17070_v24 = vunpack.c.h.s8.bf16 %v16970_v32 }
0x148e   :  { %8911 = vmatprep.mubr.bf16.mxu1 %v16851_v63  ;;  %9040 = vmatprep.mubr.bf16.mxu0 %v16851_v63 }
0x1490   :  { %8890 = vmatpush1.bf16.msra.mxu1 %v17033_v16  ;;  %9019 = vmatpush1.bf16.msra.mxu0 %v17034_v50  ;;  %v17065_v16 = vunpack.c.l.s8.bf16 %v16965_v15  ;;  %v17066_v50 = vunpack.c.l.s8.bf16 %v16966_v21  ;;  %v17072_v15 = vunpack.c.l.s8.bf16 %v16968_v30  ;;  %v17073_v21 = vunpack.c.l.s8.bf16 %v16969_v9 }
0x1491   :  { %8891 = vmatprep.subr.bf16.mxu1 %v17035_v61  ;;  %9020 = vmatprep.subr.bf16.mxu0 %v17036_v17  ;;  %v17067_v61 = vunpack.c.h.s8.bf16 %v16967_v12  ;;  %v17068_v17 = vunpack.c.h.s8.bf16 %v16968_v30  ;;  %v17077_v30 = vunpack.c.h.s8.bf16 %v16973_v47  ;;  %v17078_v9 = vunpack.c.h.s8.bf16 %v16974_v34 }
0x1494   :  { %8892 = vmatpush1.bf16.msra.mxu1 %v17037_v49  ;;  %9021 = vmatpush1.bf16.msra.mxu0 %v17038_v36  ;;  %v17071_v49 = vunpack.c.l.s8.bf16 %v16967_v12  ;;  %v17074_v36 = vunpack.c.l.s8.bf16 %v16970_v32  ;;  %v17079_v32 = vunpack.c.l.s8.bf16 %v16971_v51  ;;  %v17080_v12 = vunpack.c.l.s8.bf16 %v16972_v37 }
0x1495   :  { %8893 = vmatprep.subr.bf16.mxu1 %v17039_v55  ;;  %9022 = vmatprep.subr.bf16.mxu0 %v17040_v29  ;;  %v17075_v55 = vunpack.c.h.s8.bf16 %v16971_v51  ;;  %v17076_v29 = vunpack.c.h.s8.bf16 %v16972_v37  ;;  %v17085_v37 = vunpack.c.h.s8.bf16 %v16977_v60 }
0x1498   :  { %8894 = vmatpush1.bf16.msra.mxu1 %v17041_v44  ;;  %9023 = vmatpush1.bf16.msra.mxu0 %v17042_v54  ;;  %v17081_v44 = vunpack.c.l.s8.bf16 %v16973_v47  ;;  %v17082_v54 = vunpack.c.l.s8.bf16 %v16974_v34  ;;  %v17087_v47 = vunpack.c.l.s8.bf16 %v16975_v39  ;;  %v17088_v34 = vunpack.c.l.s8.bf16 %v16976_v41 }
0x1499   :  { %8973 = vmatprep.subr.bf16.mxu1 %v17043_v6  ;;  %9102 = vmatprep.subr.bf16.mxu0 %v17044_v18  ;;  %v17083_v6 = vunpack.c.h.s8.bf16 %v16975_v39  ;;  %v17084_v18 = vunpack.c.h.s8.bf16 %v16976_v41  ;;  %v17096_v41 = vld [vmem:[#allocation72_spill] sm:$0xff] }
0x149b   :  { %11082 = vmatmul.mubr.msk.bf16.vlgmr.msra.gmra.mxu1 %vm879_vm3, %v15954_v28  ;;  %11085 = vmatmul.mubr.msk.bf16.vlgmr.msra.gmra.mxu0 %vm879_vm3, %v15954_v28 }
0x149c   :  { %8974 = vmatpush1.bf16.msra.mxu1 %v17045_v62  ;;  %9103 = vmatpush1.bf16.msra.mxu0 %v17046_v19  ;;  %v17086_v62 = vunpack.c.h.s8.bf16 %v16978_v35 }
0x149d   :  { %8975 = vmatprep.subr.bf16.mxu1 %v17047_v25  ;;  %9104 = vmatprep.subr.bf16.mxu0 %v17048_v46  ;;  %v17089_v25 = vunpack.c.l.s8.bf16 %v16977_v60  ;;  %v17090_v46 = vunpack.c.l.s8.bf16 %v16978_v35  ;;  %v17095_v60 = vunpack.c.h.s8.bf16 %v16981_v52  ;;  %v17097_v35 = vunpack.c.h.s8.bf16 %v17096_v41 }
0x149e   :  { %8997 = vmatprep.mubr.bf16.mxu1 %v16851_v63  ;;  %9126 = vmatprep.mubr.bf16.mxu0 %v16851_v63 }
0x14a0   :  { %8976 = vmatpush1.bf16.msra.mxu1 %v17049_v13  ;;  %9105 = vmatpush1.bf16.msra.mxu0 %v17050_v10  ;;  %v17091_v13 = vld [vmem:[#allocation67_spill] sm:$0xff] }
0x14a1   :  { %8977 = vmatprep.subr.bf16.mxu1 %v17051_v31  ;;  %9106 = vmatprep.subr.bf16.mxu0 %v17052_v42  ;;  %v17092_v10 = vunpack.c.h.s8.bf16 %v17091_v13  ;;  %v17093_v31 = vld [vmem:[#allocation73_spill] sm:$0xff]  ;;  %v17098_v39 = vunpack.c.l.s8.bf16 %v17091_v13  ;;  %v17124_v13 = vunpack.c.h.s8.bf16 %v17006_v23 }
0x14a2   :  { %v17094_v42 = vunpack.c.h.s8.bf16 %v17093_v31 }
0x14a4   :  { %8978 = vmatpush1.bf16.msra.mxu1 %v17053_v14  ;;  %9107 = vmatpush1.bf16.msra.mxu0 %v17054_v1  ;;  %v17099_v1 = vunpack.c.l.s8.bf16 %v17093_v31 }
0x14a5   :  { %8979 = vmatprep.subr.bf16.mxu1 %v17055_v2  ;;  %9108 = vmatprep.subr.bf16.mxu0 %v17056_v45  ;;  %v17100_v45 = vunpack.c.l.s8.bf16 %v16981_v52  ;;  %v17107_v52 = vunpack.c.l.s8.bf16 %v16983_v56 }
0x14a8   :  { %8980 = vmatpush1.bf16.msra.mxu1 %v17057_v38  ;;  %9109 = vmatpush1.bf16.msra.mxu0 %v17058_v3  ;;  %v17101_v38 = vunpack.c.l.s8.bf16 %v17096_v41 }
0x14a9   :  { %9059 = vmatprep.subr.bf16.mxu1 %v17059_v48  ;;  %9188 = vmatprep.subr.bf16.mxu0 %v17060_v57  ;;  %v17102_v48 = vunpack.c.h.s8.bf16 %v16983_v56  ;;  %v17103_v57 = vunpack.c.h.s8.bf16 %v16984_v5 }
0x14ab   :  { %11084 = vmatmul.mubr.msk.bf16.vlgmr.msra.gmra.mxu1 %vm879_vm3, %v15954_v28  ;;  %11087 = vmatmul.mubr.msk.bf16.vlgmr.msra.gmra.mxu0 %vm879_vm3, %v15954_v28 }
0x14ac   :  { %9060 = vmatpush1.bf16.msra.mxu1 %v17061_v58  ;;  %9189 = vmatpush1.bf16.msra.mxu0 %v17062_v59  ;;  %v17104_v58 = vunpack.c.h.s8.bf16 %v16985_v26  ;;  %v17105_v59 = vld [vmem:[#allocation40_spill] sm:$0xff] }
0x14ad   :  { %9061 = vmatprep.subr.bf16.mxu1 %v17063_v22  ;;  %9190 = vmatprep.subr.bf16.mxu0 %v17064_v7  ;;  %v17106_v22 = vunpack.c.h.s8.bf16 %v17105_v59 }
0x14ae   :  { %9083 = vmatprep.mubr.bf16.mxu1 %v16851_v63  ;;  %9212 = vmatprep.mubr.bf16.mxu0 %v16851_v63 }
0x14b0   :  { %9062 = vmatpush1.bf16.msra.mxu1 %v17065_v16  ;;  %9191 = vmatpush1.bf16.msra.mxu0 %v17066_v50  ;;  %v17108_v16 = vunpack.c.l.s8.bf16 %v16984_v5  ;;  %v17109_v50 = vunpack.c.l.s8.bf16 %v16985_v26  ;;  %v17112_v5 = vld [vmem:[#allocation70_spill] sm:$0xff] }
0x14b1   :  { %9063 = vmatprep.subr.bf16.mxu1 %v17067_v61  ;;  %9192 = vmatprep.subr.bf16.mxu0 %v17068_v17  ;;  %v17110_v61 = vunpack.c.l.s8.bf16 %v17105_v59  ;;  %v17113_v56 = vunpack.c.h.s8.bf16 %v17112_v5 }
0x14b4   :  { %9064 = vmatpush1.bf16.msra.mxu1 %v17069_v0  ;;  %9193 = vmatpush1.bf16.msra.mxu0 %v17070_v24  ;;  %v17111_v24 = vunpack.c.h.s8.bf16 %v16987_v40 }
0x14b5   :  { %9065 = vmatprep.subr.bf16.mxu1 %v17071_v49  ;;  %9194 = vmatprep.subr.bf16.mxu0 %v17072_v15  ;;  %v17114_v15 = vunpack.c.l.s8.bf16 %v16987_v40 }
0x14b8   :  { %9066 = vmatpush1.bf16.msra.mxu1 %v17073_v21  ;;  %9195 = vmatpush1.bf16.msra.mxu0 %v17074_v36  ;;  %v17115_v36 = vunpack.c.l.s8.bf16 %v17112_v5 }
0x14b9   :  { %9145 = vmatprep.subr.bf16.mxu1 %v17075_v55  ;;  %9274 = vmatprep.subr.bf16.mxu0 %v17076_v29  ;;  %v17116_v29 = vunpack.c.h.s8.bf16 %v16992_v20 }
0x14bb   :  { %11086 = vmatmul.mubr.msk.bf16.vlgmr.msra.gmra.mxu1 %vm879_vm3, %v15954_v28  ;;  %11089 = vmatmul.mubr.msk.bf16.vlgmr.msra.gmra.mxu0 %vm879_vm3, %v15954_v28  ;;  %v16179_v51 = vpop.f32.mrf.mxu1  ;;  %v16243_v0 = vpop.f32.mrf.mxu0 }
0x14bc   :  { %9146 = vmatpush1.bf16.msra.mxu1 %v17077_v30  ;;  %9275 = vmatpush1.bf16.msra.mxu0 %v17078_v9  ;;  %v17117_v9 = vunpack.c.h.s8.bf16 %v16994_v43 }
0x14bd   :  { %9147 = vmatprep.subr.bf16.mxu1 %v17079_v32  ;;  %9276 = vmatprep.subr.bf16.mxu0 %v17080_v12  ;;  %v16189_v19 = vpop.f32.mrf.mxu1  ;;  %v16256_v49 = vpop.f32.mrf.mxu0  ;;  %v17118_v12 = vunpack.c.l.s8.bf16 %v16992_v20 }
0x14be   :  { %9169 = vmatprep.mubr.bf16.mxu1 %v16851_v63  ;;  %9298 = vmatprep.mubr.bf16.mxu0 %v16851_v63 }
0x14bf   :  { %v16199_v14 = vpop.f32.mrf.mxu1  ;;  %v16264_v55 = vpop.f32.mrf.mxu0 }
0x14c0   :  { %9148 = vmatpush1.bf16.msra.mxu1 %v17081_v44  ;;  %9277 = vmatpush1.bf16.msra.mxu0 %v17082_v54  ;;  %v17119_v54 = vunpack.c.l.s8.bf16 %v16994_v43  ;;  %v17123_v43 = vunpack.c.l.s8.bf16 %v17000_v33 }
0x14c1   :  { %9149 = vmatprep.subr.bf16.mxu1 %v17083_v6  ;;  %9278 = vmatprep.subr.bf16.mxu0 %v17084_v18  ;;  %v16215_v2 = vpop.f32.mrf.mxu1  ;;  %v7958_v32 = vpop.f32.mrf.mxu0  ;;  %v17120_v6 = vunpack.c.h.s8.bf16 %v16998_v4 }
0x14c4   :  { %9150 = vmatpush1.bf16.msra.mxu1 %v17085_v37  ;;  %9279 = vmatpush1.bf16.msra.mxu0 %v17086_v62  ;;  %v17121_v62 = vunpack.c.h.s8.bf16 %v17000_v33 }
0x14c5   :  { %9151 = vmatprep.subr.bf16.mxu1 %v17087_v47  ;;  %9280 = vmatprep.subr.bf16.mxu0 %v17088_v34  ;;  %v17122_v47 = vunpack.c.l.s8.bf16 %v16998_v4 }
0x14c8   :  { %9152 = vmatpush1.bf16.msra.mxu1 %v17089_v25  ;;  %9281 = vmatpush1.bf16.msra.mxu0 %v17090_v46 }
0x14c9   :  { %9231 = vmatprep.subr.bf16.mxu1 %v17092_v10  ;;  %9360 = vmatprep.subr.bf16.mxu0 %v17094_v42 }
0x14cb   :  { %11088 = vmatmul.mubr.msk.bf16.vlgmr.msra.gmra.mxu1 %vm879_vm3, %v15954_v28  ;;  %11091 = vmatmul.mubr.msk.bf16.vlgmr.msra.gmra.mxu0 %vm879_vm3, %v15954_v28  ;;  %v16221_v3 = vpop.f32.mrf.mxu1  ;;  %v8038_v44 = vpop.f32.mrf.mxu0 }
0x14cc   :  { %9232 = vmatpush1.bf16.msra.mxu1 %v17095_v60  ;;  %9361 = vmatpush1.bf16.msra.mxu0 %v17097_v35 }
0x14cd   :  { %9233 = vmatprep.subr.bf16.mxu1 %v17098_v39  ;;  %9362 = vmatprep.subr.bf16.mxu0 %v17099_v1  ;;  %v16231_v7 = vpop.f32.mrf.mxu1  ;;  %v8040_v37 = vpop.f32.mrf.mxu0 }
0x14ce   :  { %9255 = vmatprep.mubr.bf16.mxu1 %v16851_v63  ;;  %9384 = vmatprep.mubr.bf16.mxu0 %v16851_v63 }
0x14cf   :  { %v16241_v17 = vpop.f32.mrf.mxu1  ;;  %v8042_v34 = vpop.f32.mrf.mxu0 }
0x14d0   :  { %9234 = vmatpush1.bf16.msra.mxu1 %v17100_v45  ;;  %9363 = vmatpush1.bf16.msra.mxu0 %v17101_v38 }
0x14d1   :  { %9235 = vmatprep.subr.bf16.mxu1 %v17102_v48  ;;  %9364 = vmatprep.subr.bf16.mxu0 %v17103_v57  ;;  %v16254_v26 = vpop.f32.mrf.mxu1  ;;  %v8044_v46 = vpop.f32.mrf.mxu0 }
0x14d2   :  { %v11538_v48 = vpack.c.bf16 %v8044_v46, %v8040_v37  ;;  %v11526_v5 = vpack.c.bf16 %v16254_v26, %v16231_v7  ;;  %v11521_v7 = vpack.c.bf16 %v16199_v14, %v16179_v51 }
0x14d4   :  { %9236 = vmatpush1.bf16.msra.mxu1 %v17104_v58  ;;  %9365 = vmatpush1.bf16.msra.mxu0 %v17106_v22 }
0x14d5   :  { %9237 = vmatprep.subr.bf16.mxu1 %v17107_v52  ;;  %9366 = vmatprep.subr.bf16.mxu0 %v17108_v16  ;;  %v11530_v16 = vpack.c.bf16 %v7958_v32, %v16256_v49  ;;  %v11525_v49 = vpack.c.bf16 %v16241_v17, %v16221_v3 }
0x14d8   :  { %9238 = vmatpush1.bf16.msra.mxu1 %v17109_v50  ;;  %9367 = vmatpush1.bf16.msra.mxu0 %v17110_v61  ;;  %v11529_v61 = vpack.c.bf16 %v16264_v55, %v16243_v0 }
0x14d9   :  { %9317 = vmatprep.subr.bf16.mxu1 %v17111_v24 }
0x14db   :  { %11090 = vmatmul.mubr.msk.bf16.vlgmr.msra.gmra.mxu1 %vm879_vm3, %v15954_v28  ;;  %11093 = vmatmul.mubr.msk.bf16.vlgmr.msra.gmra.mxu0 %vm879_vm3, %v15954_v28  ;;  %v16260_v21 = vpop.f32.mrf.mxu1  ;;  %v8124_v31 = vpop.f32.mrf.mxu0 }
0x14dc   :  { %9318 = vmatpush1.bf16.msra.mxu1 %v17113_v56  ;;  %9341 = vmatprep.mubr.bf16.mxu1 %v16851_v63 }
0x14dd   :  { %9319 = vmatprep.subr.bf16.mxu1 %v17114_v15  ;;  %v7997_v30 = vpop.f32.mrf.mxu1  ;;  %v8126_v42 = vpop.f32.mrf.mxu0 }
0x14df   :  { %v7999_v40 = vpop.f32.mrf.mxu1 }
0x14e0   :  { %9320 = vmatpush1.bf16.msra.mxu1 %v17115_v36  ;;  %v11533_v22 = vpack.c.bf16 %v7999_v40, %v16260_v21  ;;  %v11522_v21 = vpack.c.bf16 %v16215_v2, %v16189_v19 }
0x14e1   :  { %9321 = vmatprep.subr.bf16.mxu1 %v17116_v29  ;;  %v8001_v18 = vpop.f32.mrf.mxu1 }
0x14e2   :  { %v11534_v58 = vpack.c.bf16 %v8001_v18, %v7997_v30 }
0x14e4   :  { %9322 = vmatpush1.bf16.msra.mxu1 %v17117_v9 }
0x14e5   :  { %9323 = vmatprep.subr.bf16.mxu1 %v17118_v12 }
0x14e8   :  { %9324 = vmatpush1.bf16.msra.mxu1 %v17119_v54 }
0x14e9   :  { %9403 = vmatprep.subr.bf16.mxu1 %v17120_v6 }
0x14eb   :  { %11092 = vmatmul.mubr.msk.bf16.vlgmr.msra.gmra.mxu1 %vm879_vm3, %v15954_v28  ;;  %v8081_v20 = vpop.f32.mrf.mxu1 }
0x14ec   :  { %9404 = vmatpush1.bf16.msra.mxu1 %v17121_v62  ;;  %9427 = vmatprep.mubr.bf16.mxu1 %v16851_v63 }
0x14ed   :  { %9405 = vmatprep.subr.bf16.mxu1 %v17122_v47  ;;  %v8083_v25 = vpop.f32.mrf.mxu1 }
0x14ef   :  { %v8085_v10 = vpop.f32.mrf.mxu1 }
0x14f0   :  { %9406 = vmatpush1.bf16.msra.mxu1 %v17123_v43 }
0x14f1   :  { %9407 = vmatprep.subr.bf16.mxu1 %v7763_v11  ;;  %v8087_v4 = vpop.f32.mrf.mxu1  ;;  %v8128_v11 = vpop.f32.mrf.mxu0 }
0x14f2   :  { %v11545_v53 = vpack.c.bf16 %v8128_v11, %v8124_v31  ;;  %v11542_v23 = vpack.c.bf16 %v8087_v4, %v8083_v25 }
0x14f3   :  { %v8130_v35 = vpop.f32.mrf.mxu0 }
0x14f4   :  { %9408 = vmatpush1.bf16.msra.mxu1 %v17124_v13  ;;  %v11546_v38 = vpack.c.bf16 %v8130_v35, %v8126_v42 }
0x14f5   :  { %9409 = vmatprep.subr.bf16.mxu1 %v7731_v8  ;;  %v16295_v8 = vpop.f32.mrf.mxu0 }
0x14f7   :  { %v16297_v57 = vpop.f32.mrf.mxu0 }
0x14f8   :  { %9410 = vmatpush1.bf16.msra.mxu1 %v7730_v27  ;;  %v11541_v27 = vpack.c.bf16 %v8085_v10, %v8081_v20 }
0x14f9   :  { %v16302_v52 = vpop.f32.mrf.mxu0 }
0x14fb   :  { %v8167_v33 = vpop.f32.mrf.mxu1  ;;  %11094 = vmatmul.mubr.msk.bf16.vlgmr.msra.gmra.mxu1 %vm879_vm3, %v15954_v28  ;;  %v11537_v28 = vpack.c.bf16 %v8042_v34, %v8038_v44  ;;  %v16309_v24 = vpop.f32.mrf.mxu0 }
0x14fd   :  { %v8169_v60 = vpop.f32.mrf.mxu1  ;;  %v16315_v15 = vpop.f32.mrf.mxu0 }
0x14ff   :  { %v8171_v41 = vpop.f32.mrf.mxu1  ;;  %v8298_v0 = vpop.f32.mrf.mxu0 }
0x1500   :  { %v11549_v45 = vpack.c.bf16 %v8171_v41, %v8167_v33 }
0x1501   :  { %v8173_v39 = vpop.f32.mrf.mxu1  ;;  %v8300_v55 = vpop.f32.mrf.mxu0 }
0x1502   :  { %v11550_v1 = vpack.c.bf16 %v8173_v39, %v8169_v60 }
0x1503   :  { %v8302_v30 = vpop.f32.mrf.mxu0 }
0x1504   :  { %10070 = vmatprep.subr.bf16.mxu0 %v11550_v1  ;;  %v11562_v1 = vpack.c.bf16 %v8302_v30, %v8298_v0 }
0x1505   :  { %10071 = vmatpush1.bf16.msra.mxu0 %v11549_v45 }
0x1506   :  { %10072 = vmatprep.subr.bf16.mxu0 %v11546_v38  ;;  %v12328_v38 = vld [vmem:[%s16471_s4 + $0x94] ss:$8 sps:$4 sm:$0xff]  }
0x1507   :  { %10102 = vmatprep.mubr.bf16.mxu0 %v12328_v38  ;;  %10145 = vmatprep.mubr.bf16.mxu1 %v12328_v38 }
0x1509   :  { %10073 = vmatpush1.bf16.msra.mxu0 %v11545_v53  ;;  %v11561_v53 = vpack.c.bf16 %v8300_v55, %v16315_v15  ;;  %v16362_v15 = vld [vmem:[%s16471_s4 + $0x90] ss:$8 sps:$4 sm:$0xff]  }
0x150a   :  { %10074 = vmatprep.subr.bf16.mxu0 %v11542_v23 }
0x150b   :  { %v16299_v59 = vpop.f32.mrf.mxu1  ;;  %v8382_v32 = vpop.f32.mrf.mxu0 }
0x150d   :  { %10075 = vmatpush1.bf16.msra.mxu0 %v11541_v27  ;;  %v16305_v50 = vpop.f32.mrf.mxu1  ;;  %v8384_v3 = vpop.f32.mrf.mxu0 }
0x150e   :  { %10076 = vmatprep.subr.bf16.mxu0 %v11538_v48 }
0x150f   :  { %v16313_v56 = vpop.f32.mrf.mxu1  ;;  %v8386_v40 = vpop.f32.mrf.mxu0 }
0x1510   :  { %v11569_v33 = vpack.c.bf16 %v8386_v40, %v8382_v32 }
0x1511   :  { %10077 = vmatpush1.bf16.msra.mxu0 %v11537_v28  ;;  %v16321_v36 = vpop.f32.mrf.mxu1  ;;  %v8388_v2 = vpop.f32.mrf.mxu0  ;;  %v11557_v28 = vpack.c.bf16 %v16313_v56, %v16299_v59 }
0x1512   :  { %10078 = vmatprep.subr.bf16.mxu0 %v11534_v58  ;;  %v11570_v42 = vpack.c.bf16 %v8388_v2, %v8384_v3  ;;  %v11558_v27 = vpack.c.bf16 %v16321_v36, %v16305_v50  ;;  %v11553_v50 = vpack.c.bf16 %v16302_v52, %v16295_v8  ;;  %v16373_v8 = vld [vmem:[%s16477_s10 + $0x50] sm:$0xff] }
0x1513   :  { %9732 = vperm.xlu0 %12319, %v16373_v8  }
0x1515   :  { %10079 = vmatpush1.bf16.msra.mxu0 %v11533_v22  ;;  %v11554_v22 = vpack.c.bf16 %v16309_v24, %v16297_v57  ;;  %v16368_v57 = vld [vmem:[%s16477_s10 + $0x58] sm:$0xff] }
0x1516   :  { %10080 = vmatprep.subr.bf16.mxu0 %v11530_v16  ;;  %9737 = vperm.xlu1 %12320, %v16368_v57  }
0x1519   :  { %10081 = vmatpush1.bf16.msra.mxu0 %v11529_v61 }
0x151a   :  { %10082 = vmatprep.subr.bf16.mxu0 %v11526_v5 }
0x151b   :  { %v8339_v26 = vpop.f32.mrf.mxu1  ;;  %v8468_v54 = vpop.f32.mrf.mxu0 }
0x151d   :  { %10083 = vmatpush1.bf16.msra.mxu0 %v11525_v49  ;;  %v8341_v29 = vpop.f32.mrf.mxu1  ;;  %v8470_v18 = vpop.f32.mrf.mxu0  ;;  %v17125_v49 = vmov 1  }
0x151e   :  { %10084 = vmatprep.subr.bf16.mxu0 %v11522_v21  ;;  %12321 = vset.pattern.permute.xlu1 %v17125_v49 }
0x151f   :  { %v8343_v9 = vpop.f32.mrf.mxu1  ;;  %v8472_v51 = vpop.f32.mrf.mxu0  ;;  %12322 = vset.pattern.permute.xlu0 %v17125_v49  ;;  %10201 = vperm.xlu1 %12321, %v16373_v8  }
0x1520   :  { %v11577_v46 = vpack.c.bf16 %v8472_v51, %v8468_v54  ;;  %v11565_v35 = vpack.c.bf16 %v8343_v9, %v8339_v26 }
0x1521   :  { %10085 = vmatpush1.bf16.msra.mxu0 %v11521_v7  ;;  %v8345_v12 = vpop.f32.mrf.mxu1  ;;  %v8474_v34 = vpop.f32.mrf.mxu0  ;;  %v17126_v7 = vmov 2  }
0x1522   :  { %v11578_v25 = vpack.c.bf16 %v8474_v34, %v8470_v18  ;;  %v11566_v11 = vpack.c.bf16 %v8345_v12, %v8341_v29 }
0x1523   :  { %12323 = vset.pattern.permute.xlu1 %v17126_v7 }
0x152b   :  { %v8425_v17 = vpop.f32.mrf.mxu1  ;;  %v16325_v13 = vpop.f32.mrf.mxu0 }
0x152d   :  { %v8427_v19 = vpop.f32.mrf.mxu1  ;;  %v16327_v4 = vpop.f32.mrf.mxu0 }
0x152f   :  { %v8429_v44 = vpop.f32.mrf.mxu1  ;;  %v16329_v60 = vpop.f32.mrf.mxu0 }
0x1530   :  { %v11573_v31 = vpack.c.bf16 %v8429_v44, %v8425_v17 }
0x1531   :  { %v8431_v6 = vpop.f32.mrf.mxu1  ;;  %v16333_v39 = vpop.f32.mrf.mxu0 }
0x1532   :  { %v11574_v10 = vpack.c.bf16 %v8431_v6, %v8427_v19 }
0x153b   :  { %v8511_v37 = vpop.f32.mrf.mxu1  ;;  %v16341_v23 = vpop.f32.mrf.mxu0 }
0x153d   :  { %v8513_v62 = vpop.f32.mrf.mxu1  ;;  %v16349_v58 = vpop.f32.mrf.mxu0 }
0x153f   :  { %v8515_v14 = vpop.f32.mrf.mxu1  ;;  %v16357_v61 = vpop.f32.mrf.mxu0 }
0x1540   :  { %v11581_v43 = vpack.c.bf16 %v8515_v14, %v8511_v37 }
0x1541   :  { %v8517_v20 = vpop.f32.mrf.mxu1  ;;  %v8876_v59 = vpop.f32.mrf.mxu0 }
0x1542   :  { %v11582_v47 = vpack.c.bf16 %v8517_v20, %v8513_v62 }
0x1544   :  { %10086 = vmatprep.subr.bf16.mxu0 %v11582_v47 }
0x1545   :  { %10087 = vmatpush2.bf16.msra.mxu0 %v11581_v43 }
0x1546   :  { %10088 = vmatprep.subr.bf16.mxu0 %v11578_v25 }
0x1549   :  { %10089 = vmatpush2.bf16.msra.mxu0 %v11577_v46 }
0x154a   :  { %10090 = vmatprep.subr.bf16.mxu0 %v11574_v10 }
0x154b   :  { %v16331_v41 = vpop.f32.mrf.mxu1  ;;  %v8956_v52 = vpop.f32.mrf.mxu0 }
0x154d   :  { %10091 = vmatpush2.bf16.msra.mxu0 %v11573_v31  ;;  %v16335_v45 = vpop.f32.mrf.mxu1  ;;  %v8958_v21 = vpop.f32.mrf.mxu0  ;;  %v11532_v31 = vpack.c.bf16 %v8876_v59, %v16349_v58 }
0x154e   :  { %10092 = vmatprep.subr.bf16.mxu0 %v11570_v42 }
0x154f   :  { %v16345_v48 = vpop.f32.mrf.mxu1  ;;  %v8960_v26 = vpop.f32.mrf.mxu0 }
0x1550   :  { %v11539_v47 = vpack.c.bf16 %v8960_v26, %v8956_v52 }
0x1551   :  { %10093 = vmatpush2.bf16.msra.mxu0 %v11569_v33  ;;  %v16353_v16 = vpop.f32.mrf.mxu1  ;;  %v8962_v29 = vpop.f32.mrf.mxu0  ;;  %v11531_v33 = vpack.c.bf16 %v16357_v61, %v16341_v23  ;;  %v11523_v23 = vpack.c.bf16 %v16329_v60, %v16325_v13 }
0x1552   :  { %10094 = vmatprep.subr.bf16.mxu0 %v11566_v11  ;;  %v11540_v20 = vpack.c.bf16 %v8962_v29, %v8958_v21 }
0x1555   :  { %10095 = vmatpush2.bf16.msra.mxu0 %v11565_v35  ;;  %v11528_v35 = vpack.c.bf16 %v16353_v16, %v16335_v45 }
0x1556   :  { %10096 = vmatprep.subr.bf16.mxu0 %v11562_v1 }
0x1559   :  { %10097 = vmatpush2.bf16.msra.mxu0 %v11561_v53  ;;  %v11527_v53 = vpack.c.bf16 %v16345_v48, %v16331_v41 }
0x155a   :  { %10098 = vmatprep.subr.bf16.mxu0 %v11558_v27  ;;  %v11524_v27 = vpack.c.bf16 %v16333_v39, %v16327_v4 }
0x155b   :  { %v8913_v5 = vpop.f32.mrf.mxu1  ;;  %v9042_v30 = vpop.f32.mrf.mxu0 }
0x155d   :  { %10099 = vmatpush2.bf16.msra.mxu0 %v11557_v28  ;;  %v8915_v56 = vpop.f32.mrf.mxu1  ;;  %v9044_v32 = vpop.f32.mrf.mxu0 }
0x155e   :  { %10100 = vmatprep.subr.bf16.mxu0 %v11554_v22 }
0x155f   :  { %v8917_v24 = vpop.f32.mrf.mxu1  ;;  %v9046_v17 = vpop.f32.mrf.mxu0 }
0x1560   :  { %v11547_v37 = vpack.c.bf16 %v9046_v17, %v9042_v30  ;;  %v11535_v46 = vpack.c.bf16 %v8917_v24, %v8913_v5 }
0x1561   :  { %10101 = vmatpush2.bf16.msra.mxu0 %v11553_v50  ;;  %v8919_v36 = vpop.f32.mrf.mxu1  ;;  %v9048_v2 = vpop.f32.mrf.mxu0 }
0x1562   :  { %v11548_v18 = vpack.c.bf16 %v9048_v2, %v9044_v32  ;;  %v11536_v43 = vpack.c.bf16 %v8919_v36, %v8915_v56 }
0x1564   :  { %10103 = vmatmul.mubr.bf16.vlgmr.msra.gmra.mxu0 %v16362_v15 }
0x1565   :  { %10314 = vmatprep.mubr.bf16.mxu0 %v16851_v63 }
0x156b   :  { %v8999_v0 = vpop.f32.mrf.mxu1  ;;  %v16382_v51 = vpop.f32.mrf.mxu0 }
0x156d   :  { %v9001_v55 = vpop.f32.mrf.mxu1  ;;  %v16384_v34 = vpop.f32.mrf.mxu0 }
0x156f   :  { %v9003_v9 = vpop.f32.mrf.mxu1  ;;  %v16388_v10 = vpop.f32.mrf.mxu0 }
0x1570   :  { %v11543_v14 = vpack.c.bf16 %v9003_v9, %v8999_v0 }
0x1571   :  { %v9005_v12 = vpop.f32.mrf.mxu1  ;;  %v16395_v11 = vpop.f32.mrf.mxu0 }
0x1572   :  { %v11544_v62 = vpack.c.bf16 %v9005_v12, %v9001_v55 }
0x157b   :  { %v9085_v3 = vpop.f32.mrf.mxu1  ;;  %v9214_v1 = vpop.f32.mrf.mxu0 }
0x157d   :  { %v9087_v40 = vpop.f32.mrf.mxu1  ;;  %v9216_v28 = vpop.f32.mrf.mxu0 }
0x157f   :  { %v9089_v19 = vpop.f32.mrf.mxu1  ;;  %v9218_v50 = vpop.f32.mrf.mxu0 }
0x1580   :  { %v11551_v6 = vpack.c.bf16 %v9089_v19, %v9085_v3 }
0x1581   :  { %v9091_v44 = vpop.f32.mrf.mxu1  ;;  %v9220_v16 = vpop.f32.mrf.mxu0 }
0x1582   :  { %v11552_v54 = vpack.c.bf16 %v9091_v44, %v9087_v40  ;;  %v11564_v2 = vpack.c.bf16 %v9220_v16, %v9216_v28  ;;  %v11563_v44 = vpack.c.bf16 %v9218_v50, %v9214_v1 }
0x1584   :  { %10113 = vmatprep.subr.bf16.mxu1 %v11552_v54 }
0x1585   :  { %10114 = vmatpush1.bf16.msra.mxu1 %v11551_v6 }
0x1586   :  { %10115 = vmatprep.subr.bf16.mxu1 %v11548_v18  ;;  %v11556_v18 = vpack.c.bf16 %v16395_v11, %v16384_v34 }
0x1589   :  { %10116 = vmatpush1.bf16.msra.mxu1 %v11547_v37  ;;  %v11555_v37 = vpack.c.bf16 %v16388_v10, %v16382_v51 }
0x158a   :  { %10117 = vmatprep.subr.bf16.mxu1 %v11544_v62 }
0x158b   :  { %v16386_v25 = vpop.f32.mrf.mxu1  ;;  %v9300_v61 = vpop.f32.mrf.mxu0 }
0x158d   :  { %10118 = vmatpush1.bf16.msra.mxu1 %v11543_v14  ;;  %v16391_v42 = vpop.f32.mrf.mxu1  ;;  %v9302_v59 = vpop.f32.mrf.mxu0 }
0x158e   :  { %10119 = vmatprep.subr.bf16.mxu1 %v11540_v20  ;;  %v9733_v20 = vpop.permute.xlu0 %9732 }
0x158f   :  { %v9175_v38 = vpop.f32.mrf.mxu1  ;;  %v9304_v48 = vpop.f32.mrf.mxu0 }
0x1590   :  { %v11571_v17 = vpack.c.bf16 %v9304_v48, %v9300_v61  ;;  %v11559_v6 = vpack.c.bf16 %v9175_v38, %v16386_v25 }
0x1591   :  { %10120 = vmatpush1.bf16.msra.mxu1 %v11539_v47  ;;  %v9177_v58 = vpop.f32.mrf.mxu1  ;;  %v9306_v4 = vpop.f32.mrf.mxu0 }
0x1592   :  { %10121 = vmatprep.subr.bf16.mxu1 %v11536_v43  ;;  %v11572_v3 = vpack.c.bf16 %v9306_v4, %v9302_v59  ;;  %v11560_v54 = vpack.c.bf16 %v9177_v58, %v16391_v42  ;;  %v9738_v25 = vpop.permute.xlu1 %9737 }
0x1595   :  { %10122 = vmatpush1.bf16.msra.mxu1 %v11535_v46 }
0x1596   :  { %10123 = vmatprep.subr.bf16.mxu1 %v11532_v31 }
0x1599   :  { %10124 = vmatpush1.bf16.msra.mxu1 %v11531_v33 }
0x159a   :  { %10125 = vmatprep.subr.bf16.mxu1 %v11528_v35 }
0x159b   :  { %v9257_v22 = vpop.f32.mrf.mxu1  ;;  %v9386_v39 = vpop.f32.mrf.mxu0 }
0x159d   :  { %10126 = vmatpush1.bf16.msra.mxu1 %v11527_v53  ;;  %v9259_v45 = vpop.f32.mrf.mxu1  ;;  %v9388_v49 = vpop.f32.mrf.mxu0 }
0x159e   :  { %10127 = vmatprep.subr.bf16.mxu1 %v11524_v27 }
0x159f   :  { %v9261_v5 = vpop.f32.mrf.mxu1  ;;  %v9390_v0 = vpop.f32.mrf.mxu0 }
0x15a0   :  { %v11579_v9 = vpack.c.bf16 %v9390_v0, %v9386_v39  ;;  %v11567_v19 = vpack.c.bf16 %v9261_v5, %v9257_v22 }
0x15a1   :  { %10128 = vmatpush1.bf16.msra.mxu1 %v11523_v23  ;;  %v9263_v56 = vpop.f32.mrf.mxu1  ;;  %v9392_v7 = vpop.f32.mrf.mxu0 }
0x15a2   :  { %v11580_v30 = vpack.c.bf16 %v9392_v7, %v9388_v49  ;;  %v11568_v40 = vpack.c.bf16 %v9263_v56, %v9259_v45 }
0x15ab   :  { %v9343_v41 = vpop.f32.mrf.mxu1 }
0x15ad   :  { %v9345_v52 = vpop.f32.mrf.mxu1 }
0x15af   :  { %v9347_v24 = vpop.f32.mrf.mxu1 }
0x15b0   :  { %v11575_v12 = vpack.c.bf16 %v9347_v24, %v9343_v41 }
0x15b1   :  { %v9349_v21 = vpop.f32.mrf.mxu1 }
0x15b2   :  { %v11576_v32 = vpack.c.bf16 %v9349_v21, %v9345_v52  ;;  %v10273_v21 = vld [vmem:[%s16477_s10 + $0x70] sm:$0x1] }
0x15bb   :  { %v9429_v36 = vpop.f32.mrf.mxu1 }
0x15bd   :  { %v9431_v13 = vpop.f32.mrf.mxu1 }
0x15bf   :  { %v9433_v60 = vpop.f32.mrf.mxu1 }
0x15c0   :  { %v11583_v29 = vpack.c.bf16 %v9433_v60, %v9429_v36  ;;  %v10202_v36 = vpop.permute.xlu1 %10201 }
0x15c1   :  { %v9435_v26 = vpop.f32.mrf.mxu1 }
0x15c2   :  { %v11584_v55 = vpack.c.bf16 %v9435_v26, %v9431_v13 }
0x15c4   :  { %10129 = vmatprep.subr.bf16.mxu1 %v11584_v55 }
0x15c5   :  { %10130 = vmatpush2.bf16.msra.mxu1 %v11583_v29 }
0x15c6   :  { %10131 = vmatprep.subr.bf16.mxu1 %v11580_v30 }
0x15c9   :  { %10132 = vmatpush2.bf16.msra.mxu1 %v11579_v9 }
0x15ca   :  { %10133 = vmatprep.subr.bf16.mxu1 %v11576_v32 }
0x15cd   :  { %10134 = vmatpush2.bf16.msra.mxu1 %v11575_v12 }
0x15ce   :  { %10135 = vmatprep.subr.bf16.mxu1 %v11572_v3 }
0x15d1   :  { %10136 = vmatpush2.bf16.msra.mxu1 %v11571_v17 }
0x15d2   :  { %10137 = vmatprep.subr.bf16.mxu1 %v11568_v40 }
0x15d5   :  { %10138 = vmatpush2.bf16.msra.mxu1 %v11567_v19 }
0x15d6   :  { %10139 = vmatprep.subr.bf16.mxu1 %v11564_v2 }
0x15d9   :  { %10140 = vmatpush2.bf16.msra.mxu1 %v11563_v44 }
0x15da   :  { %10141 = vmatprep.subr.bf16.mxu1 %v11560_v54 }
0x15dd   :  { %10142 = vmatpush2.bf16.msra.mxu1 %v11559_v6 }
0x15de   :  { %10143 = vmatprep.subr.bf16.mxu1 %v11556_v18 }
0x15e1   :  { %10144 = vmatpush2.bf16.msra.mxu1 %v11555_v37 }
0x15e4   :  { %10146 = vmatmul.mubr.bf16.vlgmr.msra.gmra.mxu1 %v16362_v15 }
0x1624   :  { %v10104_v62 = vpop.f32.mrf.mxu0 }
0x1625   :  { %v16412_v43 = vadd.f32 %v10104_v62, %v9733_v20 }
0x1626   :  { %v10106_v14 = vpop.f32.mrf.mxu0 }
0x1627   :  { %v16414_v46 = vadd.f32 %v10106_v14, %v9733_v20  ;;  %v10156_v34 = vmul.f32 %v16412_v43, %v16412_v43 }
0x1628   :  { %v10108_v47 = vpop.f32.mrf.mxu0 }
0x1629   :  { %v16416_v42 = vadd.f32 %v10108_v47, %v9738_v25  ;;  %v10157_v51 = vmul.f32 %v16414_v46, %v16414_v46  ;;  %v10164_v11 = vadd.f32 %v16414_v46, %v16412_v43 }
0x162a   :  { %v10110_v31 = vpop.f32.mrf.mxu0 }
0x162b   :  { %v16422_v10 = vadd.f32 %v10110_v31, %v9738_v25  ;;  %v10174_v1 = vadd.f32 %v10157_v51, %v10156_v34  ;;  %v10160_v38 = vmul.f32 %v16416_v42, %v16416_v42 }
0x162d   :  { %v10161_v53 = vmul.f32 %v16422_v10, %v16422_v10  ;;  %v10169_v23 = vadd.f32 %v16422_v10, %v16416_v42 }
0x162f   :  { %v10179_v48 = vadd.f32 %v10161_v53, %v10160_v38 }
0x16a4   :  { %v10147_v15 = vpop.f32.mrf.mxu1 }
0x16a5   :  { %v16424_v33 = vadd.f32 %v10147_v15, %v9733_v20 }
0x16a6   :  { %v10149_v35 = vpop.f32.mrf.mxu1 }
0x16a7   :  { %v10158_v27 = vmul.f32 %v16424_v33, %v16424_v33  ;;  %v10150_v28 = vadd.f32 %v10149_v35, %v9733_v20  ;;  %v10165_v58 = vadd.f32 %v10164_v11, %v16424_v33 }
0x16a8   :  { %v10151_v22 = vpop.f32.mrf.mxu1 }
0x16a9   :  { %v16437_v50 = vadd.f32 %v10151_v22, %v9738_v25  ;;  %v10166_v45 = vadd.f32 %v10165_v58, %v10150_v28  ;;  %v10159_v16 = vmul.f32 %v10150_v28, %v10150_v28  ;;  %v10175_v61 = vadd.f32 %v10174_v1, %v10158_v27 }
0x16aa   :  { %v10153_v5 = vpop.f32.mrf.mxu1 }
0x16ab   :  { %v10162_v59 = vmul.f32 %v16437_v50, %v16437_v50  ;;  %v10154_v56 = vadd.f32 %v10153_v5, %v9738_v25  ;;  %10167 = vadd.xlane.f32.xlu1 %v10166_v45  ;;  %v10170_v41 = vadd.f32 %v10169_v23, %v16437_v50  ;;  %v10176_v4 = vadd.f32 %v10175_v61, %v10159_v16 }
0x16ad   :  { %v10171_v52 = vadd.f32 %v10170_v41, %v10154_v56  ;;  %v10163_v39 = vmul.f32 %v10154_v56, %v10154_v56  ;;  %v10180_v24 = vadd.f32 %v10179_v48, %v10162_v59 }
0x16af   :  { %10172 = vadd.xlane.f32.xlu0 %v10171_v52  ;;  %10177 = vadd.xlane.f32.xlu1 %v10176_v4  ;;  %v10181_v49 = vadd.f32 %v10180_v24, %v10163_v39 }
0x16b3   :  { %10182 = vadd.xlane.f32.xlu0 %v10181_v49 }
0x16c0   :  { %10229 = vperm.xlu1 %12323, %v16373_v8  }
0x16c4   :  { %10233 = vperm.xlu1 %12323, %v16368_v57  }
0x16c8   :  { %12324 = vset.pattern.permute.xlu1 %v16851_v63 }
0x16c9   :  { %10205 = vperm.xlu0 %12322, %v16368_v57   ;;  %10276 = vperm.xlu1 %12324, %v10273_v21  }
0x16cd   :  { %12325 = vset.pattern.permute.xlu0 %v16851_v63 }
0x1734   :  { %v10168_v0 = vpop.xlane.xlu1 %10167 }
0x1735   :  { %v10184_v13 = vmul.f32 0.001953125, %v10168_v0 }
0x1737   :  { %v10188_v8 = vmul.f32 %v10184_v13, %v10184_v13  ;;  %v10192_v17 = vsub.f32 %v16412_v43, %v10184_v13  ;;  %v10193_v40 = vsub.f32 %v16414_v46, %v10184_v13  ;;  %v10195_v19 = vsub.f32 %v10150_v28, %v10184_v13 }
0x1738   :  { %v10173_v60 = vpop.xlane.xlu0 %10172  ;;  %v10178_v7 = vpop.xlane.xlu1 %10177  ;;  %v10194_v2 = vsub.f32 %v16424_v33, %v10184_v13 }
0x1739   :  { %v10185_v26 = vmul.f32 0.001953125, %v10173_v60  ;;  %v10186_v55 = vmul.f32 0.001953125, %v10178_v7  ;;  %v10208_v54 = vmul.f32 %v10202_v36, %v10192_v17  ;;  %v10209_v6 = vmul.f32 %v10202_v36, %v10193_v40 }
0x173a   :  { %v10211_v14 = vmul.f32 %v10202_v36, %v10195_v19  ;;  %v10210_v46 = vmul.f32 %v10202_v36, %v10194_v2 }
0x173b   :  { %v10190_v29 = vsub.f32 %v10186_v55, %v10188_v8  ;;  %v10189_v32 = vmul.f32 %v10185_v26, %v10185_v26  ;;  %v10196_v37 = vsub.f32 %v16416_v42, %v10185_v26  ;;  %v10197_v62 = vsub.f32 %v16422_v10, %v10185_v26  ;;  %v10268_v55 = vld [vmem:[%s16471_s4 + $0xa0] sm:$0x1] }
0x173c   :  { %v10183_v30 = vpop.xlane.xlu0 %10182  ;;  %v10230_v20 = vpop.permute.xlu1 %10229  ;;  %v10198_v47 = vsub.f32 %v16437_v50, %v10185_v26  ;;  %v10199_v25 = vsub.f32 %v10154_v56, %v10185_v26 }
0x173d   :  { %v10216_v9 = vadd.f32 1e-05, %v10190_v29  ;;  %v10187_v57 = vmul.f32 0.001953125, %v10183_v30 }
0x173f   :  { %12329 = vrsqrt.f32 %v10216_v9  ;;  %v10191_v12 = vsub.f32 %v10187_v57, %v10189_v32  ;;  %v12375_v57 = vmov 1966171168  }
0x1740   :  { %v10234_v22 = vpop.permute.xlu1 %10233 }
0x1741   :  { %v10217_v3 = vadd.f32 1e-05, %v10191_v12  ;;  %v10371_v12 = vunpack.c.l.s4 %v12375_v57 }
0x1743   :  { %12331 = vrsqrt.f32 %v10217_v3  ;;  %v10372_v19 = vunpack.c.0.s8 %v10371_v12 }
0x1744   :  { %v10206_v44 = vpop.permute.xlu0 %10205  ;;  %v10277_v17 = vpop.permute.xlu1 %10276 }
0x1745   :  { %v10212_v34 = vmul.f32 %v10206_v44, %v10196_v37  ;;  %v10213_v15 = vmul.f32 %v10206_v44, %v10197_v62  ;;  %v10214_v33 = vmul.f32 %v10206_v44, %v10198_v47  ;;  %v10215_v11 = vmul.f32 %v10206_v44, %v10199_v25 }
0x174c   :  { %v12330_v18 = vpop.eup %12329 }
0x174d   :  { %v10220_v31 = vmul.f32 %v12330_v18, %v10208_v54  ;;  %v10221_v43 = vmul.f32 %v12330_v18, %v10209_v6  ;;  %v10223_v51 = vmul.f32 %v12330_v18, %v10211_v14  ;;  %v10222_v38 = vmul.f32 %v12330_v18, %v10210_v46  ;;  %v17127_v18 = vld [vmem:[#allocation76_spill] sm:$0xff] }
0x174e   :  { %v10375_v37 = vsub.s32 %v10372_v19, %v17127_v18  ;;  %v17128_v46 = vlaneseq }
0x174f   :  { %v10236_v35 = vadd.f32 %v10230_v20, %v10220_v31  ;;  %v10237_v53 = vadd.f32 %v10230_v20, %v10221_v43  ;;  %v10239_v58 = vadd.f32 %v10230_v20, %v10223_v51  ;;  %v10238_v5 = vadd.f32 %v10230_v20, %v10222_v38 }
0x1750   :  { %v12332_v1 = vpop.eup %12331 }
0x1751   :  { %v10224_v42 = vmul.f32 %v12332_v1, %v10212_v34  ;;  %v10225_v27 = vmul.f32 %v12332_v1, %v10213_v15  ;;  %v10226_v10 = vmul.f32 %v12332_v1, %v10214_v33  ;;  %v10227_v28 = vmul.f32 %v12332_v1, %v10215_v11 }
0x1752   :  { %vm10244_vm3 = vcmp.ge.f32.partialorder %v10236_v35, 0.0  ;;  %v10252_v23 = vmul.f32 0.2, %v10236_v35  ;;  %v10253_v59 = vmul.f32 0.2, %v10237_v53  ;;  %vm10245_vm0 = vcmp.ge.f32.partialorder %v10237_v53, 0.0 }
0x1753   :  { %v10240_v50 = vadd.f32 %v10234_v22, %v10224_v42  ;;  %v10241_v45 = vadd.f32 %v10234_v22, %v10225_v27  ;;  %v10242_v16 = vadd.f32 %v10234_v22, %v10226_v10  ;;  %v10243_v61 = vadd.f32 %v10234_v22, %v10227_v28 }
0x1754   :  { %v10260_v41 = vsel %vm10244_vm3, %v10236_v35, %v10252_v23  ;;  %vm10247_vm2 = vcmp.ge.f32.partialorder %v10239_v58, 0.0  ;;  %v10255_v39 = vmul.f32 0.2, %v10239_v58  ;;  %v10261_v49 = vsel %vm10245_vm0, %v10237_v53, %v10253_v59 }
0x1755   :  { %vm10248_vm15 = vcmp.ge.f32.partialorder %v10240_v50, 0.0  ;;  %v10256_v56 = vmul.f32 0.2, %v10240_v50  ;;  %vm10249_vm1 = vcmp.ge.f32.partialorder %v10241_v45, 0.0  ;;  %v10257_v48 = vmul.f32 0.2, %v10241_v45 }
0x1756   :  { %vm10251_vm6 = vcmp.ge.f32.partialorder %v10243_v61, 0.0  ;;  %v10258_v52 = vmul.f32 0.2, %v10242_v16  ;;  %v10259_v24 = vmul.f32 0.2, %v10243_v61  ;;  %vm10250_vm8 = vcmp.ge.f32.partialorder %v10242_v16, 0.0 }
0x1757   :  { %v10264_v4 = vsel %vm10248_vm15, %v10240_v50, %v10256_v56  ;;  %v10265_v21 = vsel %vm10249_vm1, %v10241_v45, %v10257_v48  ;;  %v10254_v0 = vmul.f32 0.2, %v10238_v5  ;;  %vm10246_vm10 = vcmp.ge.f32.partialorder %v10238_v5, 0.0 }
0x1758   :  { %v10269_v36 = vpack.c.bf16 %v10264_v4, %v10260_v41  ;;  %v10270_v13 = vpack.c.bf16 %v10265_v21, %v10261_v49  ;;  %v10267_v60 = vsel %vm10251_vm6, %v10243_v61, %v10259_v24  ;;  %v10263_v7 = vsel %vm10247_vm2, %v10239_v58, %v10255_v39 }
0x1759   :  { %v10272_v26 = vpack.c.bf16 %v10267_v60, %v10263_v7  ;;  %v10266_v8 = vsel %vm10250_vm8, %v10242_v16, %v10258_v52  ;;  %v10262_v29 = vsel %vm10246_vm10, %v10238_v5, %v10254_v0 }
0x175a   :  { %10296 = vmatprep.subr.bf16.mxu0 %v10270_v13  ;;  %v10271_v30 = vpack.c.bf16 %v10266_v8, %v10262_v29 }
0x175b   :  { %10297 = vmatpush1.bf16.msra.mxu0 %v10269_v36 }
0x175c   :  { %10337 = vmatprep.subr.bf16.mxu0 %v10272_v26 }
0x175e   :  { %11193 = vmatmul.mubr.msk.bf16.vlgmr.msra.gmra.mxu0 %vm1230_vm12, %v10268_v55 }
0x175f   :  { %10338 = vmatpush1.bf16.msra.mxu0 %v10271_v30  ;;  %10355 = vmatprep.mubr.bf16.mxu0 %v16851_v63 }
0x1766   :  { %11194 = vmatmul.mubr.msk.bf16.vlgmr.msra.gmra.mxu0 %vm1230_vm12, %v10268_v55  ;;  %vm10395_vm12 = vcmp.lt.s32.totalorder %v17128_v46, 512 }
0x181e   :  { %v10316_v9 = vpop.f32.mrf.mxu0 }
0x181f   :  { %v10317_v54 = vadd.f32 %v10316_v9, %v10277_v17 }
0x1820   :  { %v10318_v32 = vpop.f32.mrf.mxu0 }
0x1821   :  { %v10319_v2 = vadd.f32 %v10318_v32, %v10277_v17 }
0x1822   :  { %v10320_v3 = vpop.f32.mrf.mxu0 }
0x1823   :  { %v10368_v62 = vcombine.low %v10317_v54, %v10319_v2 }
0x1824   :  { %v10321_v40 = vpop.f32.mrf.mxu0 }
0x1825   :  { %v10376_v31 = vrot.slane %v10368_v62, %v10375_v37 }
0x1826   :  { %v10357_v44 = vpop.f32.mrf.mxu0 }
0x1827   :  { %v10358_v14 = vadd.f32 %v10357_v44, %v10277_v17 }
0x1828   :  { %v10359_v6 = vpop.f32.mrf.mxu0 }
0x1829   :  { %v10360_v20 = vadd.f32 %v10359_v6, %v10277_v17 }
0x182a   :  { %v10361_v63 = vpop.f32.mrf.mxu0 }
0x182b   :  { %v10369_v47 = vcombine.low %v10358_v14, %v10360_v20 }
0x182c   :  { %v10362_v25 = vpop.f32.mrf.mxu0 }
0x182d   :  { %v10383_v43 = vrot.slane %v10369_v47, %v10375_v37 }
0x182f   :  { %v10384_v34 = vcombine.low %v10376_v31, %v10383_v43 }
0x1831   :  { %v10391_v51 = vrot.slane %v10384_v34, %v10375_v37 }
0x1833   :  { %10397 = vst.msk [vmem:[%s16478_s11] sm:$0xf] %vm10395_vm12, %v10391_v51 }
0x1834   :  { %10406 = vsyncmov [#allocation9] }
0x1837   :  { %s10407_s7 = vpop.sfrf %10406 }
0x1838   :  { %p11195_p0 = scmp.ne.s32.totalorder %s10407_s7, 0 }
0x183a   :  { %10411 = shalt.err (%p11195_p0)  }

</bundles_post_ra>
